<compile_context>
chip_gen: v6e
topology: v6e:2x2x1
jax: 0.10.0
libtpu: 0.0.40
codegen_flags: <defaults>
</compile_context>

<pallas_src>
import functools

import numpy as np
import jax
import jax.numpy as jnp
from jax.experimental import pallas as pl
from jax.experimental.pallas import tpu as pltpu


UNARY_SCALE = 5.0      # `unary = unary * 5` in ModelWithCrf.forward
UNARY_WEIGHT = 0.85    # crf_params['unary_weight']
C_PAD = 8              # class dim padded to one sublane tile
NK = 3                 # number of pairwise kernels


# --------------------------------------------------------------------------
# Fused Pallas kernel: affinity construction + 5-step mean-field CRF (1 image)
#   unary_ref : (1, C_PAD, P)              raw unary, padded classes = -1e4
#   l_ref     : (1, NK, P, 8)              augmented features  [f, |f|^2, 1, 0]
#   rt_ref    : (1, NK, 8, P)              augmented features  [-2f, 1, |f|^2, 0]^T
#   mask_ref  : (NK, P, P)                 0/1 dilated-window masks (batch-const)
#   s_ref     : (num_steps, NK, C_PAD, C_PAD)   per-step compat * pairwise weight
#   out_ref   : (1, C_PAD, P)              final logQ
#   a_vmem    : (NK*P, P) f32 scratch      stacked masked affinities
#   sq_vmem   : (C_PAD, NK*P) f32 scratch  staging for the merged msg matmul
# --------------------------------------------------------------------------
def _crf_meanfield_kernel(unary_ref, l_ref, rt_ref, mask_ref, s_ref, out_ref,
                          a_vmem, sq_vmem, *,
                          num_steps, num_kernels, p,
                          unary_scale, unary_weight):
    # ---- build the masked affinity stack once (edge feats are step-invariant)
    for k in range(num_kernels):
        # d2[i,j] = |f_i|^2 + |f_j|^2 - 2 f_i.f_j via one augmented matmul.
        d2 = jnp.dot(l_ref[0, k], rt_ref[0, k],
                     preferred_element_type=jnp.float32)          # (P, P)
        d2 = jnp.maximum(d2, 0.0)                                 # exact PAC: d2 >= 0
        a_vmem[k * p:(k + 1) * p, :] = jnp.exp(-0.5 * d2) * mask_ref[k]

    # ---- fused mean-field loop (static unroll, 5 steps) ----
    u = unary_ref[0] * unary_scale                                # (C_PAD, P)
    uw = unary_weight * u                                         # hoisted
    logq = u                                                      # logQ init = unary*5
    for step in range(num_steps):
        m = jnp.max(logq, axis=0, keepdims=True)                  # softmax over classes
        e = jnp.exp(logq - m)
        denom = jnp.sum(e, axis=0, keepdims=True)
        q = e * pl.reciprocal(denom, approx=False)                # (C_PAD, P)
        # Stage [S_0 q | S_1 q | S_2 q] lane-dense, then one K=3P MXU matmul.
        for k in range(num_kernels):
            sq_vmem[:, k * p:(k + 1) * p] = jnp.dot(
                s_ref[step, k], q, preferred_element_type=jnp.float32)
        msg = jnp.dot(sq_vmem[...], a_vmem[...],
                      preferred_element_type=jnp.float32)         # (C_PAD, P)
        logq = uw - msg
    out_ref[0] = logq


# --------------------------------------------------------------------------
# Feature construction (paccrf.create_YXRGB / create_position_feats) -- glue
# --------------------------------------------------------------------------
def create_yxrgb(x, scales):
    """x: (B, 3, H, W); scales: (5,) = [y_sc, x_sc, r_sc, g_sc, b_sc]."""
    B, _, H, W = x.shape
    yy = jnp.broadcast_to(jnp.arange(H, dtype=jnp.float32)[:, None], (H, W))
    xx = jnp.broadcast_to(jnp.arange(W, dtype=jnp.float32)[None, :], (H, W))
    pos = jnp.stack([yy, xx], axis=0) / jnp.reshape(scales[:2], (2, 1, 1))
    pos = jnp.broadcast_to(pos[None], (B, 2, H, W))
    rgb = x / jnp.reshape(scales[2:], (1, 3, 1, 1))
    return jnp.concatenate([pos, rgb], axis=1)                # (B, 5, H, W)


def create_position_feats(shape, scales, bs):
    H, W = shape
    yy = jnp.broadcast_to(jnp.arange(H, dtype=jnp.float32)[:, None], (H, W))
    xx = jnp.broadcast_to(jnp.arange(W, dtype=jnp.float32)[None, :], (H, W))
    mesh = jnp.stack([yy, xx], axis=0) / jnp.reshape(scales, (-1, 1, 1))
    return jnp.broadcast_to(mesh[None], (bs, 2, H, W))


def _window_mask(H, W, ksize, dil):
    """Dense (P,P) 0/1 mask of the dilated ksize x ksize local window."""
    P = H * W
    m = np.zeros((P, P), np.float32)
    r = ksize // 2
    ys, xs = np.meshgrid(np.arange(H), np.arange(W), indexing='ij')
    for dy in range(-r, r + 1):
        for dx in range(-r, r + 1):
            ny, nx = ys + dy * dil, xs + dx * dil
            ok = (ny >= 0) & (ny < H) & (nx >= 0) & (nx < W)
            m[(ys * W + xs)[ok], (ny * W + nx)[ok]] = 1.0
    return m


# --------------------------------------------------------------------------
# Parameter init mirroring ModelWithCrf.__init__ defaults
#   pairwise=('4d_5_16_1',), kernel_size=7, p_kernel=9, potts=6.0,
#   adaptive_init=True, use_yx=True, shared_scales=False, loose=True
# --------------------------------------------------------------------------
def init_model_with_crf(key, H, W, num_classes=2, num_steps=5, kernel_size=7,
                        potts=6.0, p_kernel=9, adaptive_init=True):
    fs, dilation = 5.0, 16.0                               # from '4d_5_16_1'
    p_sc = ((fs - 1.0) * dilation + 1.0) / 4.0 if adaptive_init else 100.0
    c_sc = 30.0
    feat_scales = np.stack(
        [np.array([p_sc, p_sc, c_sc, c_sc, c_sc], np.float32)] * NK)

    # (kernel_size, dilation, compat_type, pairwise_weight); potts weight is
    # negated as in paccrf.PacCRF.add_pairwise_kernel.
    kernel_cfgs = [(kernel_size, 64, '4d', 1.0),
                   (kernel_size, 16, '4d', 1.0),
                   (p_kernel, 1, 'potts', -float(potts))]
    masks = np.stack([_window_mask(H, W, ks, dil) for ks, dil, _, _ in kernel_cfgs])

    C = num_classes
    eye = np.eye(C, dtype=np.float32)
    base = np.stack([w * (eye if ct == 'potts' else (1.0 - eye))
                     for _, _, ct, w in kernel_cfgs])           # (NK, C, C)
    S = np.tile(base[None], (num_steps, 1, 1, 1)).astype(np.float32)
    # perturbed_init: +-0.0005 uniform perturbation of the learned ('4d')
    # compatibilities; PacCRFLoose has independent parameters per step.
    # (np.array copies -> writable; np.asarray of a jax array is read-only.)
    perturb = np.array(jax.random.uniform(key, (num_steps, NK, C, C), jnp.float32))
    perturb = (perturb - 0.5) * 0.001
    perturb[:, 2] = 0.0                                         # Potts compat fixed
    S = S + perturb
    # TODO(synk): the '4d' PacConv2d learned 4-D filters are approximated by a
    # tap-uniform (1 - I) compatibility; the Potts kernel's learned spatial
    # filter (spatial_filter=True) is approximated as uniform.

    S_pad = np.zeros((num_steps, NK, C_PAD, C_PAD), np.float32)
    S_pad[:, :, :C, :C] = S

    return dict(feat_scales=jnp.asarray(feat_scales),
                masks=jnp.asarray(masks),
                S=jnp.asarray(S),
                S_pad=jnp.asarray(S_pad),
                potts_w=jnp.asarray([1.0], jnp.float32))


# --------------------------------------------------------------------------
# Pallas-backed forward
# --------------------------------------------------------------------------
def _prep_affinity_inputs(edge_feat):
    """edge_feat: list of NK (B,5,H,W) -> augmented L (B,NK,P,8), Rt (B,NK,8,P)."""
    Ls, Rts = [], []
    for f in edge_feat:
        B, D, H, W = f.shape
        P = H * W
        F = jnp.transpose(f, (0, 2, 3, 1)).reshape(B, P, D)
        sq = jnp.sum(F * F, axis=-1, keepdims=True)
        ones = jnp.ones_like(sq)
        zeros = jnp.zeros_like(sq)
        Ls.append(jnp.concatenate([F, sq, ones, zeros], axis=-1))          # (B,P,8)
        R = jnp.concatenate([-2.0 * F, ones, sq, zeros], axis=-1)
        Rts.append(jnp.transpose(R, (0, 2, 1)))                            # (B,8,P)
    return jnp.stack(Ls, axis=1), jnp.stack(Rts, axis=1)


def model_with_crf_forward(unary, x, params, *, num_steps=5):
    B, C, H, W = unary.shape
    P = H * W

    # --- edge features (plain JAX glue, mirrors create_YXRGB) ---
    edge_feat = [create_yxrgb(x, params['feat_scales'][k]) for k in range(NK)]
    # Appended position-only feature: present in the PyTorch forward but never
    # indexed by the 3 configured pairwise kernels.
    _ = create_position_feats((H, W), params['potts_w'], B)
    # TODO(synk): out_crop / create_position / use_preposition caching branches
    # are host-side bookkeeping and are not implemented.

    L_all, Rt_all = _prep_affinity_inputs(edge_feat)
    L_all = L_all.astype(jnp.float32)
    Rt_all = Rt_all.astype(jnp.float32)

    unary_flat = unary.reshape(B, C, P).astype(jnp.float32)
    pad = jnp.full((B, C_PAD - C, P), -1e4, jnp.float32)   # dead (padded) classes
    unary_pad = jnp.concatenate([unary_flat, pad], axis=1)

    kernel = functools.partial(
        _crf_meanfield_kernel, num_steps=num_steps, num_kernels=NK, p=P,
        unary_scale=UNARY_SCALE, unary_weight=UNARY_WEIGHT)

    # VMEM budget: A scratch (NK*P*P*4) + window masks (up to 2 buffers) + slack.
    vmem_need = 3 * NK * P * P * 4 + (4 << 20)
    vmem_limit = int(min(max(vmem_need, 32 << 20), 96 << 20))

    logq_pad = pl.pallas_call(
        kernel,
        out_shape=jax.ShapeDtypeStruct((B, C_PAD, P), jnp.float32),
        grid=(B,),
        in_specs=[
            pl.BlockSpec((1, C_PAD, P), lambda b: (b, 0, 0)),
            pl.BlockSpec((1, NK, P, 8), lambda b: (b, 0, 0, 0)),
            pl.BlockSpec((1, NK, 8, P), lambda b: (b, 0, 0, 0)),
            pl.BlockSpec((NK, P, P), lambda b: (0, 0, 0)),        # batch-constant
            pl.BlockSpec((num_steps, NK, C_PAD, C_PAD), lambda b: (0, 0, 0, 0)),
        ],
        out_specs=pl.BlockSpec((1, C_PAD, P), lambda b: (b, 0, 0)),
        scratch_shapes=[
            pltpu.VMEM((NK * P, P), jnp.float32),      # stacked affinities A
            pltpu.VMEM((C_PAD, NK * P), jnp.float32),  # [S_k q] staging (lane-dense)
        ],
        compiler_params=pltpu.CompilerParams(
            dimension_semantics=("parallel",),
            vmem_limit_bytes=vmem_limit),
    )(unary_pad, L_all, Rt_all, params['masks'], params['S_pad'])

    return logq_pad[:, :C].reshape(B, C, H, W)


# --------------------------------------------------------------------------
# Pure-JAX reference of the same forward math (for verification)
# --------------------------------------------------------------------------
def ref_forward(unary, x, params, *, num_steps=5):
    B, C, H, W = unary.shape
    P = H * W
    hp = jax.lax.Precision.HIGHEST
    A = []
    for k in range(NK):
        f = create_yxrgb(x, params['feat_scales'][k])
        F = jnp.transpose(f, (0, 2, 3, 1)).reshape(B, P, -1)
        sq = jnp.sum(F * F, axis=-1)
        g = jnp.einsum('bpd,bqd->bpq', F, F, precision=hp)
        d2 = jnp.maximum(sq[:, :, None] + sq[:, None, :] - 2.0 * g, 0.0)
        A.append(jnp.exp(-0.5 * d2) * params['masks'][k][None])
    u = unary.reshape(B, C, P) * UNARY_SCALE
    uw = UNARY_WEIGHT * u
    S = params['S']
    logq = u
    for step in range(num_steps):
        q = jax.nn.softmax(logq, axis=1)
        msg = jnp.zeros_like(u)
        for k in range(NK):
            sq_k = jnp.einsum('ij,bjp->bip', S[step, k], q, precision=hp)
            msg = msg + jnp.einsum('bip,bpq->biq', sq_k, A[k], precision=hp)
        logq = uw - msg
    return logq.reshape(B, C, H, W)


# --------------------------------------------------------------------------
if __name__ == "__main__":
    B, num_classes, H, W = 2, 2, 16, 16
    num_steps = 5

    key = jax.random.PRNGKey(0)
    k_par, k_unary, k_x = jax.random.split(key, 3)

    params = init_model_with_crf(k_par, H, W, num_classes=num_classes,
                                 num_steps=num_steps)
    unary = jax.random.normal(k_unary, (B, num_classes, H, W), jnp.float32)
    x = jax.random.uniform(k_x, (B, 3, H, W), jnp.float32)      # image-like

    fwd = jax.jit(functools.partial(model_with_crf_forward, num_steps=num_steps))
    out = jax.block_until_ready(fwd(unary, x, params))
    ref = ref_forward(unary, x, params, num_steps=num_steps)

    assert out.shape == (B, num_classes, H, W)
    np.testing.assert_allclose(np.asarray(out), np.asarray(ref),
                               rtol=1e-3, atol=1e-2)

    print("KERNEL_OK")
</pallas_src>

<mosaic_0001>
module attributes {stable_mosaic.version = 11 : i64} {
  func.func @_crf_meanfield_kernel(%arg0: i32, %arg1: memref<1x8x256xf32, #tpu.memory_space<vmem>>, %arg2: memref<1x3x256x8xf32, #tpu.memory_space<vmem>>, %arg3: memref<1x3x8x256xf32, #tpu.memory_space<vmem>>, %arg4: memref<3x256x256xf32, #tpu.memory_space<vmem>>, %arg5: memref<5x3x8x8xf32, #tpu.memory_space<vmem>>, %arg6: memref<1x8x256xf32, #tpu.memory_space<vmem>>, %arg7: memref<768x256xf32, #tpu.memory_space<vmem>>, %arg8: memref<8x768xf32, #tpu.memory_space<vmem>>) attributes {dimension_semantics = [#tpu.dimension_semantics<parallel>], iteration_bounds = array<i64: 2>, scalar_prefetch = 0 : i64, scratch_operands = 2 : i64, tpu.core_type = #tpu.core_type<tc>, window_params = [{transform_indices = @transform_0, window_bounds = array<i64: 1, 8, 256>}, {transform_indices = @transform_1, window_bounds = array<i64: 1, 3, 256, 8>}, {transform_indices = @transform_2, window_bounds = array<i64: 1, 3, 8, 256>}, {pipeline_mode = #tpu.pipeline_mode<synchronous>, transform_indices = @transform_3, window_bounds = array<i64: 3, 256, 256>}, {pipeline_mode = #tpu.pipeline_mode<synchronous>, transform_indices = @transform_4, window_bounds = array<i64: 5, 3, 8, 8>}, {transform_indices = @transform_5, window_bounds = array<i64: 1, 8, 256>}]} {
    %c0 = arith.constant 0 : index
    %c0_0 = arith.constant 0 : index
    %c0_1 = arith.constant 0 : index
    %c0_2 = arith.constant 0 : index
    %0 = vector.load %arg2[%c0, %c0_0, %c0_1, %c0_2] : memref<1x3x256x8xf32, #tpu.memory_space<vmem>>, vector<1x1x256x8xf32>
    %1 = vector.shape_cast %0 : vector<1x1x256x8xf32> to vector<256x8xf32>
    %c0_3 = arith.constant 0 : index
    %c0_4 = arith.constant 0 : index
    %c0_5 = arith.constant 0 : index
    %c0_6 = arith.constant 0 : index
    %2 = vector.load %arg3[%c0_3, %c0_4, %c0_5, %c0_6] : memref<1x3x8x256xf32, #tpu.memory_space<vmem>>, vector<1x1x8x256xf32>
    %3 = vector.shape_cast %2 : vector<1x1x8x256xf32> to vector<8x256xf32>
    %cst = arith.constant dense<0.000000e+00> : vector<256x256xf32>
    %4 = tpu.matmul %1, %3, %cst {dimension_numbers = #tpu.dot_dimension_numbers<[1], [0], [0], [1], [0, 0, 1, 1], [], []>} : vector<256x8xf32>, vector<8x256xf32>, vector<256x256xf32> -> vector<256x256xf32>
    %cst_7 = arith.constant 0.000000e+00 : f32
    %5 = vector.broadcast %cst_7 : f32 to vector<256x256xf32>
    %6 = arith.maximumf %4, %5 : vector<256x256xf32>
    %cst_8 = arith.constant -5.000000e-01 : f32
    %7 = vector.broadcast %cst_8 : f32 to vector<256x256xf32>
    %8 = arith.mulf %7, %6 : vector<256x256xf32>
    %9 = math.exp %8 : vector<256x256xf32>
    %c0_9 = arith.constant 0 : index
    %c0_10 = arith.constant 0 : index
    %c0_11 = arith.constant 0 : index
    %10 = vector.load %arg4[%c0_9, %c0_10, %c0_11] : memref<3x256x256xf32, #tpu.memory_space<vmem>>, vector<1x256x256xf32>
    %11 = vector.shape_cast %10 : vector<1x256x256xf32> to vector<256x256xf32>
    %12 = arith.mulf %9, %11 : vector<256x256xf32>
    %c0_12 = arith.constant 0 : index
    %c0_13 = arith.constant 0 : index
    %13 = vector.load %arg7[%c0_12, %c0_13] : memref<768x256xf32, #tpu.memory_space<vmem>>, vector<256x256xf32>
    tpu.vector_store %arg7[%c0_12, %c0_13], %12 {strides = array<i32>} : memref<768x256xf32, #tpu.memory_space<vmem>>, vector<256x256xf32>,
    %c0_14 = arith.constant 0 : index
    %c1 = arith.constant 1 : index
    %c0_15 = arith.constant 0 : index
    %c0_16 = arith.constant 0 : index
    %14 = vector.load %arg2[%c0_14, %c1, %c0_15, %c0_16] : memref<1x3x256x8xf32, #tpu.memory_space<vmem>>, vector<1x1x256x8xf32>
    %15 = vector.shape_cast %14 : vector<1x1x256x8xf32> to vector<256x8xf32>
    %c0_17 = arith.constant 0 : index
    %c1_18 = arith.constant 1 : index
    %c0_19 = arith.constant 0 : index
    %c0_20 = arith.constant 0 : index
    %16 = vector.load %arg3[%c0_17, %c1_18, %c0_19, %c0_20] : memref<1x3x8x256xf32, #tpu.memory_space<vmem>>, vector<1x1x8x256xf32>
    %17 = vector.shape_cast %16 : vector<1x1x8x256xf32> to vector<8x256xf32>
    %cst_21 = arith.constant dense<0.000000e+00> : vector<256x256xf32>
    %18 = tpu.matmul %15, %17, %cst_21 {dimension_numbers = #tpu.dot_dimension_numbers<[1], [0], [0], [1], [0, 0, 1, 1], [], []>} : vector<256x8xf32>, vector<8x256xf32>, vector<256x256xf32> -> vector<256x256xf32>
    %cst_22 = arith.constant 0.000000e+00 : f32
    %19 = vector.broadcast %cst_22 : f32 to vector<256x256xf32>
    %20 = arith.maximumf %18, %19 : vector<256x256xf32>
    %cst_23 = arith.constant -5.000000e-01 : f32
    %21 = vector.broadcast %cst_23 : f32 to vector<256x256xf32>
    %22 = arith.mulf %21, %20 : vector<256x256xf32>
    %23 = math.exp %22 : vector<256x256xf32>
    %c1_24 = arith.constant 1 : index
    %c0_25 = arith.constant 0 : index
    %c0_26 = arith.constant 0 : index
    %24 = vector.load %arg4[%c1_24, %c0_25, %c0_26] : memref<3x256x256xf32, #tpu.memory_space<vmem>>, vector<1x256x256xf32>
    %25 = vector.shape_cast %24 : vector<1x256x256xf32> to vector<256x256xf32>
    %26 = arith.mulf %23, %25 : vector<256x256xf32>
    %c256 = arith.constant 256 : index
    %c0_27 = arith.constant 0 : index
    %27 = vector.load %arg7[%c256, %c0_27] : memref<768x256xf32, #tpu.memory_space<vmem>>, vector<256x256xf32>
    tpu.vector_store %arg7[%c256, %c0_27], %26 {strides = array<i32>} : memref<768x256xf32, #tpu.memory_space<vmem>>, vector<256x256xf32>,
    %c0_28 = arith.constant 0 : index
    %c2 = arith.constant 2 : index
    %c0_29 = arith.constant 0 : index
    %c0_30 = arith.constant 0 : index
    %28 = vector.load %arg2[%c0_28, %c2, %c0_29, %c0_30] : memref<1x3x256x8xf32, #tpu.memory_space<vmem>>, vector<1x1x256x8xf32>
    %29 = vector.shape_cast %28 : vector<1x1x256x8xf32> to vector<256x8xf32>
    %c0_31 = arith.constant 0 : index
    %c2_32 = arith.constant 2 : index
    %c0_33 = arith.constant 0 : index
    %c0_34 = arith.constant 0 : index
    %30 = vector.load %arg3[%c0_31, %c2_32, %c0_33, %c0_34] : memref<1x3x8x256xf32, #tpu.memory_space<vmem>>, vector<1x1x8x256xf32>
    %31 = vector.shape_cast %30 : vector<1x1x8x256xf32> to vector<8x256xf32>
    %cst_35 = arith.constant dense<0.000000e+00> : vector<256x256xf32>
    %32 = tpu.matmul %29, %31, %cst_35 {dimension_numbers = #tpu.dot_dimension_numbers<[1], [0], [0], [1], [0, 0, 1, 1], [], []>} : vector<256x8xf32>, vector<8x256xf32>, vector<256x256xf32> -> vector<256x256xf32>
    %cst_36 = arith.constant 0.000000e+00 : f32
    %33 = vector.broadcast %cst_36 : f32 to vector<256x256xf32>
    %34 = arith.maximumf %32, %33 : vector<256x256xf32>
    %cst_37 = arith.constant -5.000000e-01 : f32
    %35 = vector.broadcast %cst_37 : f32 to vector<256x256xf32>
    %36 = arith.mulf %35, %34 : vector<256x256xf32>
    %37 = math.exp %36 : vector<256x256xf32>
    %c2_38 = arith.constant 2 : index
    %c0_39 = arith.constant 0 : index
    %c0_40 = arith.constant 0 : index
    %38 = vector.load %arg4[%c2_38, %c0_39, %c0_40] : memref<3x256x256xf32, #tpu.memory_space<vmem>>, vector<1x256x256xf32>
    %39 = vector.shape_cast %38 : vector<1x256x256xf32> to vector<256x256xf32>
    %40 = arith.mulf %37, %39 : vector<256x256xf32>
    %c512 = arith.constant 512 : index
    %c0_41 = arith.constant 0 : index
    %41 = vector.load %arg7[%c512, %c0_41] : memref<768x256xf32, #tpu.memory_space<vmem>>, vector<256x256xf32>
    tpu.vector_store %arg7[%c512, %c0_41], %40 {strides = array<i32>} : memref<768x256xf32, #tpu.memory_space<vmem>>, vector<256x256xf32>,
    %c0_42 = arith.constant 0 : index
    %c0_43 = arith.constant 0 : index
    %c0_44 = arith.constant 0 : index
    %42 = vector.load %arg1[%c0_42, %c0_43, %c0_44] : memref<1x8x256xf32, #tpu.memory_space<vmem>>, vector<1x8x256xf32>
    %43 = vector.shape_cast %42 : vector<1x8x256xf32> to vector<8x256xf32>
    %cst_45 = arith.constant 5.000000e+00 : f32
    %44 = vector.broadcast %cst_45 : f32 to vector<8x256xf32>
    %45 = arith.mulf %43, %44 : vector<8x256xf32>
    %cst_46 = arith.constant 8.500000e-01 : f32
    %46 = vector.broadcast %cst_46 : f32 to vector<8x256xf32>
    %47 = arith.mulf %46, %45 : vector<8x256xf32>
    %cst_47 = arith.constant dense<0xFF800000> : vector<256xf32>
    %48 = vector.multi_reduction <maximumf>, %45, %cst_47 [0] : vector<8x256xf32> to vector<256xf32>
    %49 = vector.shape_cast %48 : vector<256xf32> to vector<1x256xf32>
    %50 = vector.broadcast %49 : vector<1x256xf32> to vector<8x256xf32>
    %51 = arith.subf %45, %50 : vector<8x256xf32>
    %52 = math.exp %51 : vector<8x256xf32>
    %cst_48 = arith.constant dense<0.000000e+00> : vector<256xf32>
    %53 = vector.multi_reduction <add>, %52, %cst_48 [0] : vector<8x256xf32> to vector<256xf32>
    %54 = vector.shape_cast %53 : vector<256xf32> to vector<1x256xf32>
    %55 = tpu.reciprocal %54 : vector<1x256xf32> -> vector<1x256xf32>
    %56 = vector.broadcast %55 : vector<1x256xf32> to vector<8x256xf32>
    %57 = arith.mulf %52, %56 : vector<8x256xf32>
    %c0_49 = arith.constant 0 : index
    %c0_50 = arith.constant 0 : index
    %c0_51 = arith.constant 0 : index
    %c0_52 = arith.constant 0 : index
    %58 = vector.load %arg5[%c0_49, %c0_50, %c0_51, %c0_52] : memref<5x3x8x8xf32, #tpu.memory_space<vmem>>, vector<1x1x8x8xf32>
    %59 = vector.shape_cast %58 : vector<1x1x8x8xf32> to vector<8x8xf32>
    %cst_53 = arith.constant dense<0.000000e+00> : vector<8x256xf32>
    %60 = tpu.matmul %59, %57, %cst_53 {dimension_numbers = #tpu.dot_dimension_numbers<[1], [0], [0], [1], [0, 0, 1, 1], [], []>} : vector<8x8xf32>, vector<8x256xf32>, vector<8x256xf32> -> vector<8x256xf32>
    %c0_54 = arith.constant 0 : index
    %c0_55 = arith.constant 0 : index
    %61 = vector.load %arg8[%c0_54, %c0_55] : memref<8x768xf32, #tpu.memory_space<vmem>>, vector<8x256xf32>
    tpu.vector_store %arg8[%c0_54, %c0_55], %60 {strides = array<i32>} : memref<8x768xf32, #tpu.memory_space<vmem>>, vector<8x256xf32>,
    %c0_56 = arith.constant 0 : index
    %c1_57 = arith.constant 1 : index
    %c0_58 = arith.constant 0 : index
    %c0_59 = arith.constant 0 : index
    %62 = vector.load %arg5[%c0_56, %c1_57, %c0_58, %c0_59] : memref<5x3x8x8xf32, #tpu.memory_space<vmem>>, vector<1x1x8x8xf32>
    %63 = vector.shape_cast %62 : vector<1x1x8x8xf32> to vector<8x8xf32>
    %cst_60 = arith.constant dense<0.000000e+00> : vector<8x256xf32>
    %64 = tpu.matmul %63, %57, %cst_60 {dimension_numbers = #tpu.dot_dimension_numbers<[1], [0], [0], [1], [0, 0, 1, 1], [], []>} : vector<8x8xf32>, vector<8x256xf32>, vector<8x256xf32> -> vector<8x256xf32>
    %c0_61 = arith.constant 0 : index
    %c256_62 = arith.constant 256 : index
    %65 = vector.load %arg8[%c0_61, %c256_62] : memref<8x768xf32, #tpu.memory_space<vmem>>, vector<8x256xf32>
    tpu.vector_store %arg8[%c0_61, %c256_62], %64 {strides = array<i32>} : memref<8x768xf32, #tpu.memory_space<vmem>>, vector<8x256xf32>,
    %c0_63 = arith.constant 0 : index
    %c2_64 = arith.constant 2 : index
    %c0_65 = arith.constant 0 : index
    %c0_66 = arith.constant 0 : index
    %66 = vector.load %arg5[%c0_63, %c2_64, %c0_65, %c0_66] : memref<5x3x8x8xf32, #tpu.memory_space<vmem>>, vector<1x1x8x8xf32>
    %67 = vector.shape_cast %66 : vector<1x1x8x8xf32> to vector<8x8xf32>
    %cst_67 = arith.constant dense<0.000000e+00> : vector<8x256xf32>
    %68 = tpu.matmul %67, %57, %cst_67 {dimension_numbers = #tpu.dot_dimension_numbers<[1], [0], [0], [1], [0, 0, 1, 1], [], []>} : vector<8x8xf32>, vector<8x256xf32>, vector<8x256xf32> -> vector<8x256xf32>
    %c0_68 = arith.constant 0 : index
    %c512_69 = arith.constant 512 : index
    %69 = vector.load %arg8[%c0_68, %c512_69] : memref<8x768xf32, #tpu.memory_space<vmem>>, vector<8x256xf32>
    tpu.vector_store %arg8[%c0_68, %c512_69], %68 {strides = array<i32>} : memref<8x768xf32, #tpu.memory_space<vmem>>, vector<8x256xf32>,
    %c0_70 = arith.constant 0 : index
    %c0_71 = arith.constant 0 : index
    %70 = vector.load %arg8[%c0_70, %c0_71] : memref<8x768xf32, #tpu.memory_space<vmem>>, vector<8x768xf32>
    %c0_72 = arith.constant 0 : index
    %c0_73 = arith.constant 0 : index
    %71 = vector.load %arg7[%c0_72, %c0_73] : memref<768x256xf32, #tpu.memory_space<vmem>>, vector<768x256xf32>
    %cst_74 = arith.constant dense<0.000000e+00> : vector<8x256xf32>
    %72 = tpu.matmul %70, %71, %cst_74 {dimension_numbers = #tpu.dot_dimension_numbers<[1], [0], [0], [1], [0, 0, 1, 1], [], []>} : vector<8x768xf32>, vector<768x256xf32>, vector<8x256xf32> -> vector<8x256xf32>
    %73 = arith.subf %47, %72 : vector<8x256xf32>
    %cst_75 = arith.constant dense<0xFF800000> : vector<256xf32>
    %74 = vector.multi_reduction <maximumf>, %73, %cst_75 [0] : vector<8x256xf32> to vector<256xf32>
    %75 = vector.shape_cast %74 : vector<256xf32> to vector<1x256xf32>
    %76 = vector.broadcast %75 : vector<1x256xf32> to vector<8x256xf32>
    %77 = arith.subf %73, %76 : vector<8x256xf32>
    %78 = math.exp %77 : vector<8x256xf32>
    %cst_76 = arith.constant dense<0.000000e+00> : vector<256xf32>
    %79 = vector.multi_reduction <add>, %78, %cst_76 [0] : vector<8x256xf32> to vector<256xf32>
    %80 = vector.shape_cast %79 : vector<256xf32> to vector<1x256xf32>
    %81 = tpu.reciprocal %80 : vector<1x256xf32> -> vector<1x256xf32>
    %82 = vector.broadcast %81 : vector<1x256xf32> to vector<8x256xf32>
    %83 = arith.mulf %78, %82 : vector<8x256xf32>
    %c1_77 = arith.constant 1 : index
    %c0_78 = arith.constant 0 : index
    %c0_79 = arith.constant 0 : index
    %c0_80 = arith.constant 0 : index
    %84 = vector.load %arg5[%c1_77, %c0_78, %c0_79, %c0_80] : memref<5x3x8x8xf32, #tpu.memory_space<vmem>>, vector<1x1x8x8xf32>
    %85 = vector.shape_cast %84 : vector<1x1x8x8xf32> to vector<8x8xf32>
    %cst_81 = arith.constant dense<0.000000e+00> : vector<8x256xf32>
    %86 = tpu.matmul %85, %83, %cst_81 {dimension_numbers = #tpu.dot_dimension_numbers<[1], [0], [0], [1], [0, 0, 1, 1], [], []>} : vector<8x8xf32>, vector<8x256xf32>, vector<8x256xf32> -> vector<8x256xf32>
    %c0_82 = arith.constant 0 : index
    %c0_83 = arith.constant 0 : index
    %87 = vector.load %arg8[%c0_82, %c0_83] : memref<8x768xf32, #tpu.memory_space<vmem>>, vector<8x256xf32>
    tpu.vector_store %arg8[%c0_82, %c0_83], %86 {strides = array<i32>} : memref<8x768xf32, #tpu.memory_space<vmem>>, vector<8x256xf32>,
    %c1_84 = arith.constant 1 : index
    %c1_85 = arith.constant 1 : index
    %c0_86 = arith.constant 0 : index
    %c0_87 = arith.constant 0 : index
    %88 = vector.load %arg5[%c1_84, %c1_85, %c0_86, %c0_87] : memref<5x3x8x8xf32, #tpu.memory_space<vmem>>, vector<1x1x8x8xf32>
    %89 = vector.shape_cast %88 : vector<1x1x8x8xf32> to vector<8x8xf32>
    %cst_88 = arith.constant dense<0.000000e+00> : vector<8x256xf32>
    %90 = tpu.matmul %89, %83, %cst_88 {dimension_numbers = #tpu.dot_dimension_numbers<[1], [0], [0], [1], [0, 0, 1, 1], [], []>} : vector<8x8xf32>, vector<8x256xf32>, vector<8x256xf32> -> vector<8x256xf32>
    %c0_89 = arith.constant 0 : index
    %c256_90 = arith.constant 256 : index
    %91 = vector.load %arg8[%c0_89, %c256_90] : memref<8x768xf32, #tpu.memory_space<vmem>>, vector<8x256xf32>
    tpu.vector_store %arg8[%c0_89, %c256_90], %90 {strides = array<i32>} : memref<8x768xf32, #tpu.memory_space<vmem>>, vector<8x256xf32>,
    %c1_91 = arith.constant 1 : index
    %c2_92 = arith.constant 2 : index
    %c0_93 = arith.constant 0 : index
    %c0_94 = arith.constant 0 : index
    %92 = vector.load %arg5[%c1_91, %c2_92, %c0_93, %c0_94] : memref<5x3x8x8xf32, #tpu.memory_space<vmem>>, vector<1x1x8x8xf32>
    %93 = vector.shape_cast %92 : vector<1x1x8x8xf32> to vector<8x8xf32>
    %cst_95 = arith.constant dense<0.000000e+00> : vector<8x256xf32>
    %94 = tpu.matmul %93, %83, %cst_95 {dimension_numbers = #tpu.dot_dimension_numbers<[1], [0], [0], [1], [0, 0, 1, 1], [], []>} : vector<8x8xf32>, vector<8x256xf32>, vector<8x256xf32> -> vector<8x256xf32>
    %c0_96 = arith.constant 0 : index
    %c512_97 = arith.constant 512 : index
    %95 = vector.load %arg8[%c0_96, %c512_97] : memref<8x768xf32, #tpu.memory_space<vmem>>, vector<8x256xf32>
    tpu.vector_store %arg8[%c0_96, %c512_97], %94 {strides = array<i32>} : memref<8x768xf32, #tpu.memory_space<vmem>>, vector<8x256xf32>,
    %c0_98 = arith.constant 0 : index
    %c0_99 = arith.constant 0 : index
    %96 = vector.load %arg8[%c0_98, %c0_99] : memref<8x768xf32, #tpu.memory_space<vmem>>, vector<8x768xf32>
    %c0_100 = arith.constant 0 : index
    %c0_101 = arith.constant 0 : index
    %97 = vector.load %arg7[%c0_100, %c0_101] : memref<768x256xf32, #tpu.memory_space<vmem>>, vector<768x256xf32>
    %cst_102 = arith.constant dense<0.000000e+00> : vector<8x256xf32>
    %98 = tpu.matmul %96, %97, %cst_102 {dimension_numbers = #tpu.dot_dimension_numbers<[1], [0], [0], [1], [0, 0, 1, 1], [], []>} : vector<8x768xf32>, vector<768x256xf32>, vector<8x256xf32> -> vector<8x256xf32>
    %99 = arith.subf %47, %98 : vector<8x256xf32>
    %cst_103 = arith.constant dense<0xFF800000> : vector<256xf32>
    %100 = vector.multi_reduction <maximumf>, %99, %cst_103 [0] : vector<8x256xf32> to vector<256xf32>
    %101 = vector.shape_cast %100 : vector<256xf32> to vector<1x256xf32>
    %102 = vector.broadcast %101 : vector<1x256xf32> to vector<8x256xf32>
    %103 = arith.subf %99, %102 : vector<8x256xf32>
    %104 = math.exp %103 : vector<8x256xf32>
    %cst_104 = arith.constant dense<0.000000e+00> : vector<256xf32>
    %105 = vector.multi_reduction <add>, %104, %cst_104 [0] : vector<8x256xf32> to vector<256xf32>
    %106 = vector.shape_cast %105 : vector<256xf32> to vector<1x256xf32>
    %107 = tpu.reciprocal %106 : vector<1x256xf32> -> vector<1x256xf32>
    %108 = vector.broadcast %107 : vector<1x256xf32> to vector<8x256xf32>
    %109 = arith.mulf %104, %108 : vector<8x256xf32>
    %c2_105 = arith.constant 2 : index
    %c0_106 = arith.constant 0 : index
    %c0_107 = arith.constant 0 : index
    %c0_108 = arith.constant 0 : index
    %110 = vector.load %arg5[%c2_105, %c0_106, %c0_107, %c0_108] : memref<5x3x8x8xf32, #tpu.memory_space<vmem>>, vector<1x1x8x8xf32>
    %111 = vector.shape_cast %110 : vector<1x1x8x8xf32> to vector<8x8xf32>
    %cst_109 = arith.constant dense<0.000000e+00> : vector<8x256xf32>
    %112 = tpu.matmul %111, %109, %cst_109 {dimension_numbers = #tpu.dot_dimension_numbers<[1], [0], [0], [1], [0, 0, 1, 1], [], []>} : vector<8x8xf32>, vector<8x256xf32>, vector<8x256xf32> -> vector<8x256xf32>
    %c0_110 = arith.constant 0 : index
    %c0_111 = arith.constant 0 : index
    %113 = vector.load %arg8[%c0_110, %c0_111] : memref<8x768xf32, #tpu.memory_space<vmem>>, vector<8x256xf32>
    tpu.vector_store %arg8[%c0_110, %c0_111], %112 {strides = array<i32>} : memref<8x768xf32, #tpu.memory_space<vmem>>, vector<8x256xf32>,
    %c2_112 = arith.constant 2 : index
    %c1_113 = arith.constant 1 : index
    %c0_114 = arith.constant 0 : index
    %c0_115 = arith.constant 0 : index
    %114 = vector.load %arg5[%c2_112, %c1_113, %c0_114, %c0_115] : memref<5x3x8x8xf32, #tpu.memory_space<vmem>>, vector<1x1x8x8xf32>
    %115 = vector.shape_cast %114 : vector<1x1x8x8xf32> to vector<8x8xf32>
    %cst_116 = arith.constant dense<0.000000e+00> : vector<8x256xf32>
    %116 = tpu.matmul %115, %109, %cst_116 {dimension_numbers = #tpu.dot_dimension_numbers<[1], [0], [0], [1], [0, 0, 1, 1], [], []>} : vector<8x8xf32>, vector<8x256xf32>, vector<8x256xf32> -> vector<8x256xf32>
    %c0_117 = arith.constant 0 : index
    %c256_118 = arith.constant 256 : index
    %117 = vector.load %arg8[%c0_117, %c256_118] : memref<8x768xf32, #tpu.memory_space<vmem>>, vector<8x256xf32>
    tpu.vector_store %arg8[%c0_117, %c256_118], %116 {strides = array<i32>} : memref<8x768xf32, #tpu.memory_space<vmem>>, vector<8x256xf32>,
    %c2_119 = arith.constant 2 : index
    %c2_120 = arith.constant 2 : index
    %c0_121 = arith.constant 0 : index
    %c0_122 = arith.constant 0 : index
    %118 = vector.load %arg5[%c2_119, %c2_120, %c0_121, %c0_122] : memref<5x3x8x8xf32, #tpu.memory_space<vmem>>, vector<1x1x8x8xf32>
    %119 = vector.shape_cast %118 : vector<1x1x8x8xf32> to vector<8x8xf32>
    %cst_123 = arith.constant dense<0.000000e+00> : vector<8x256xf32>
    %120 = tpu.matmul %119, %109, %cst_123 {dimension_numbers = #tpu.dot_dimension_numbers<[1], [0], [0], [1], [0, 0, 1, 1], [], []>} : vector<8x8xf32>, vector<8x256xf32>, vector<8x256xf32> -> vector<8x256xf32>
    %c0_124 = arith.constant 0 : index
    %c512_125 = arith.constant 512 : index
    %121 = vector.load %arg8[%c0_124, %c512_125] : memref<8x768xf32, #tpu.memory_space<vmem>>, vector<8x256xf32>
    tpu.vector_store %arg8[%c0_124, %c512_125], %120 {strides = array<i32>} : memref<8x768xf32, #tpu.memory_space<vmem>>, vector<8x256xf32>,
    %c0_126 = arith.constant 0 : index
    %c0_127 = arith.constant 0 : index
    %122 = vector.load %arg8[%c0_126, %c0_127] : memref<8x768xf32, #tpu.memory_space<vmem>>, vector<8x768xf32>
    %c0_128 = arith.constant 0 : index
    %c0_129 = arith.constant 0 : index
    %123 = vector.load %arg7[%c0_128, %c0_129] : memref<768x256xf32, #tpu.memory_space<vmem>>, vector<768x256xf32>
    %cst_130 = arith.constant dense<0.000000e+00> : vector<8x256xf32>
    %124 = tpu.matmul %122, %123, %cst_130 {dimension_numbers = #tpu.dot_dimension_numbers<[1], [0], [0], [1], [0, 0, 1, 1], [], []>} : vector<8x768xf32>, vector<768x256xf32>, vector<8x256xf32> -> vector<8x256xf32>
    %125 = arith.subf %47, %124 : vector<8x256xf32>
    %cst_131 = arith.constant dense<0xFF800000> : vector<256xf32>
    %126 = vector.multi_reduction <maximumf>, %125, %cst_131 [0] : vector<8x256xf32> to vector<256xf32>
    %127 = vector.shape_cast %126 : vector<256xf32> to vector<1x256xf32>
    %128 = vector.broadcast %127 : vector<1x256xf32> to vector<8x256xf32>
    %129 = arith.subf %125, %128 : vector<8x256xf32>
    %130 = math.exp %129 : vector<8x256xf32>
    %cst_132 = arith.constant dense<0.000000e+00> : vector<256xf32>
    %131 = vector.multi_reduction <add>, %130, %cst_132 [0] : vector<8x256xf32> to vector<256xf32>
    %132 = vector.shape_cast %131 : vector<256xf32> to vector<1x256xf32>
    %133 = tpu.reciprocal %132 : vector<1x256xf32> -> vector<1x256xf32>
    %134 = vector.broadcast %133 : vector<1x256xf32> to vector<8x256xf32>
    %135 = arith.mulf %130, %134 : vector<8x256xf32>
    %c3 = arith.constant 3 : index
    %c0_133 = arith.constant 0 : index
    %c0_134 = arith.constant 0 : index
    %c0_135 = arith.constant 0 : index
    %136 = vector.load %arg5[%c3, %c0_133, %c0_134, %c0_135] : memref<5x3x8x8xf32, #tpu.memory_space<vmem>>, vector<1x1x8x8xf32>
    %137 = vector.shape_cast %136 : vector<1x1x8x8xf32> to vector<8x8xf32>
    %cst_136 = arith.constant dense<0.000000e+00> : vector<8x256xf32>
    %138 = tpu.matmul %137, %135, %cst_136 {dimension_numbers = #tpu.dot_dimension_numbers<[1], [0], [0], [1], [0, 0, 1, 1], [], []>} : vector<8x8xf32>, vector<8x256xf32>, vector<8x256xf32> -> vector<8x256xf32>
    %c0_137 = arith.constant 0 : index
    %c0_138 = arith.constant 0 : index
    %139 = vector.load %arg8[%c0_137, %c0_138] : memref<8x768xf32, #tpu.memory_space<vmem>>, vector<8x256xf32>
    tpu.vector_store %arg8[%c0_137, %c0_138], %138 {strides = array<i32>} : memref<8x768xf32, #tpu.memory_space<vmem>>, vector<8x256xf32>,
    %c3_139 = arith.constant 3 : index
    %c1_140 = arith.constant 1 : index
    %c0_141 = arith.constant 0 : index
    %c0_142 = arith.constant 0 : index
    %140 = vector.load %arg5[%c3_139, %c1_140, %c0_141, %c0_142] : memref<5x3x8x8xf32, #tpu.memory_space<vmem>>, vector<1x1x8x8xf32>
    %141 = vector.shape_cast %140 : vector<1x1x8x8xf32> to vector<8x8xf32>
    %cst_143 = arith.constant dense<0.000000e+00> : vector<8x256xf32>
    %142 = tpu.matmul %141, %135, %cst_143 {dimension_numbers = #tpu.dot_dimension_numbers<[1], [0], [0], [1], [0, 0, 1, 1], [], []>} : vector<8x8xf32>, vector<8x256xf32>, vector<8x256xf32> -> vector<8x256xf32>
    %c0_144 = arith.constant 0 : index
    %c256_145 = arith.constant 256 : index
    %143 = vector.load %arg8[%c0_144, %c256_145] : memref<8x768xf32, #tpu.memory_space<vmem>>, vector<8x256xf32>
    tpu.vector_store %arg8[%c0_144, %c256_145], %142 {strides = array<i32>} : memref<8x768xf32, #tpu.memory_space<vmem>>, vector<8x256xf32>,
    %c3_146 = arith.constant 3 : index
    %c2_147 = arith.constant 2 : index
    %c0_148 = arith.constant 0 : index
    %c0_149 = arith.constant 0 : index
    %144 = vector.load %arg5[%c3_146, %c2_147, %c0_148, %c0_149] : memref<5x3x8x8xf32, #tpu.memory_space<vmem>>, vector<1x1x8x8xf32>
    %145 = vector.shape_cast %144 : vector<1x1x8x8xf32> to vector<8x8xf32>
    %cst_150 = arith.constant dense<0.000000e+00> : vector<8x256xf32>
    %146 = tpu.matmul %145, %135, %cst_150 {dimension_numbers = #tpu.dot_dimension_numbers<[1], [0], [0], [1], [0, 0, 1, 1], [], []>} : vector<8x8xf32>, vector<8x256xf32>, vector<8x256xf32> -> vector<8x256xf32>
    %c0_151 = arith.constant 0 : index
    %c512_152 = arith.constant 512 : index
    %147 = vector.load %arg8[%c0_151, %c512_152] : memref<8x768xf32, #tpu.memory_space<vmem>>, vector<8x256xf32>
    tpu.vector_store %arg8[%c0_151, %c512_152], %146 {strides = array<i32>} : memref<8x768xf32, #tpu.memory_space<vmem>>, vector<8x256xf32>,
    %c0_153 = arith.constant 0 : index
    %c0_154 = arith.constant 0 : index
    %148 = vector.load %arg8[%c0_153, %c0_154] : memref<8x768xf32, #tpu.memory_space<vmem>>, vector<8x768xf32>
    %c0_155 = arith.constant 0 : index
    %c0_156 = arith.constant 0 : index
    %149 = vector.load %arg7[%c0_155, %c0_156] : memref<768x256xf32, #tpu.memory_space<vmem>>, vector<768x256xf32>
    %cst_157 = arith.constant dense<0.000000e+00> : vector<8x256xf32>
    %150 = tpu.matmul %148, %149, %cst_157 {dimension_numbers = #tpu.dot_dimension_numbers<[1], [0], [0], [1], [0, 0, 1, 1], [], []>} : vector<8x768xf32>, vector<768x256xf32>, vector<8x256xf32> -> vector<8x256xf32>
    %151 = arith.subf %47, %150 : vector<8x256xf32>
    %cst_158 = arith.constant dense<0xFF800000> : vector<256xf32>
    %152 = vector.multi_reduction <maximumf>, %151, %cst_158 [0] : vector<8x256xf32> to vector<256xf32>
    %153 = vector.shape_cast %152 : vector<256xf32> to vector<1x256xf32>
    %154 = vector.broadcast %153 : vector<1x256xf32> to vector<8x256xf32>
    %155 = arith.subf %151, %154 : vector<8x256xf32>
    %156 = math.exp %155 : vector<8x256xf32>
    %cst_159 = arith.constant dense<0.000000e+00> : vector<256xf32>
    %157 = vector.multi_reduction <add>, %156, %cst_159 [0] : vector<8x256xf32> to vector<256xf32>
    %158 = vector.shape_cast %157 : vector<256xf32> to vector<1x256xf32>
    %159 = tpu.reciprocal %158 : vector<1x256xf32> -> vector<1x256xf32>
    %160 = vector.broadcast %159 : vector<1x256xf32> to vector<8x256xf32>
    %161 = arith.mulf %156, %160 : vector<8x256xf32>
    %c4 = arith.constant 4 : index
    %c0_160 = arith.constant 0 : index
    %c0_161 = arith.constant 0 : index
    %c0_162 = arith.constant 0 : index
    %162 = vector.load %arg5[%c4, %c0_160, %c0_161, %c0_162] : memref<5x3x8x8xf32, #tpu.memory_space<vmem>>, vector<1x1x8x8xf32>
    %163 = vector.shape_cast %162 : vector<1x1x8x8xf32> to vector<8x8xf32>
    %cst_163 = arith.constant dense<0.000000e+00> : vector<8x256xf32>
    %164 = tpu.matmul %163, %161, %cst_163 {dimension_numbers = #tpu.dot_dimension_numbers<[1], [0], [0], [1], [0, 0, 1, 1], [], []>} : vector<8x8xf32>, vector<8x256xf32>, vector<8x256xf32> -> vector<8x256xf32>
    %c0_164 = arith.constant 0 : index
    %c0_165 = arith.constant 0 : index
    %165 = vector.load %arg8[%c0_164, %c0_165] : memref<8x768xf32, #tpu.memory_space<vmem>>, vector<8x256xf32>
    tpu.vector_store %arg8[%c0_164, %c0_165], %164 {strides = array<i32>} : memref<8x768xf32, #tpu.memory_space<vmem>>, vector<8x256xf32>,
    %c4_166 = arith.constant 4 : index
    %c1_167 = arith.constant 1 : index
    %c0_168 = arith.constant 0 : index
    %c0_169 = arith.constant 0 : index
    %166 = vector.load %arg5[%c4_166, %c1_167, %c0_168, %c0_169] : memref<5x3x8x8xf32, #tpu.memory_space<vmem>>, vector<1x1x8x8xf32>
    %167 = vector.shape_cast %166 : vector<1x1x8x8xf32> to vector<8x8xf32>
    %cst_170 = arith.constant dense<0.000000e+00> : vector<8x256xf32>
    %168 = tpu.matmul %167, %161, %cst_170 {dimension_numbers = #tpu.dot_dimension_numbers<[1], [0], [0], [1], [0, 0, 1, 1], [], []>} : vector<8x8xf32>, vector<8x256xf32>, vector<8x256xf32> -> vector<8x256xf32>
    %c0_171 = arith.constant 0 : index
    %c256_172 = arith.constant 256 : index
    %169 = vector.load %arg8[%c0_171, %c256_172] : memref<8x768xf32, #tpu.memory_space<vmem>>, vector<8x256xf32>
    tpu.vector_store %arg8[%c0_171, %c256_172], %168 {strides = array<i32>} : memref<8x768xf32, #tpu.memory_space<vmem>>, vector<8x256xf32>,
    %c4_173 = arith.constant 4 : index
    %c2_174 = arith.constant 2 : index
    %c0_175 = arith.constant 0 : index
    %c0_176 = arith.constant 0 : index
    %170 = vector.load %arg5[%c4_173, %c2_174, %c0_175, %c0_176] : memref<5x3x8x8xf32, #tpu.memory_space<vmem>>, vector<1x1x8x8xf32>
    %171 = vector.shape_cast %170 : vector<1x1x8x8xf32> to vector<8x8xf32>
    %cst_177 = arith.constant dense<0.000000e+00> : vector<8x256xf32>
    %172 = tpu.matmul %171, %161, %cst_177 {dimension_numbers = #tpu.dot_dimension_numbers<[1], [0], [0], [1], [0, 0, 1, 1], [], []>} : vector<8x8xf32>, vector<8x256xf32>, vector<8x256xf32> -> vector<8x256xf32>
    %c0_178 = arith.constant 0 : index
    %c512_179 = arith.constant 512 : index
    %173 = vector.load %arg8[%c0_178, %c512_179] : memref<8x768xf32, #tpu.memory_space<vmem>>, vector<8x256xf32>
    tpu.vector_store %arg8[%c0_178, %c512_179], %172 {strides = array<i32>} : memref<8x768xf32, #tpu.memory_space<vmem>>, vector<8x256xf32>,
    %c0_180 = arith.constant 0 : index
    %c0_181 = arith.constant 0 : index
    %174 = vector.load %arg8[%c0_180, %c0_181] : memref<8x768xf32, #tpu.memory_space<vmem>>, vector<8x768xf32>
    %c0_182 = arith.constant 0 : index
    %c0_183 = arith.constant 0 : index
    %175 = vector.load %arg7[%c0_182, %c0_183] : memref<768x256xf32, #tpu.memory_space<vmem>>, vector<768x256xf32>
    %cst_184 = arith.constant dense<0.000000e+00> : vector<8x256xf32>
    %176 = tpu.matmul %174, %175, %cst_184 {dimension_numbers = #tpu.dot_dimension_numbers<[1], [0], [0], [1], [0, 0, 1, 1], [], []>} : vector<8x768xf32>, vector<768x256xf32>, vector<8x256xf32> -> vector<8x256xf32>
    %177 = arith.subf %47, %176 : vector<8x256xf32>
    %c0_185 = arith.constant 0 : index
    %c0_186 = arith.constant 0 : index
    %c0_187 = arith.constant 0 : index
    %178 = vector.load %arg6[%c0_185, %c0_186, %c0_187] : memref<1x8x256xf32, #tpu.memory_space<vmem>>, vector<1x8x256xf32>
    %179 = vector.shape_cast %178 : vector<1x8x256xf32> to vector<8x256xf32>
    %180 = vector.shape_cast %177 : vector<8x256xf32> to vector<1x8x256xf32>
    tpu.vector_store %arg6[%c0_185, %c0_186, %c0_187], %180 {strides = array<i32>} : memref<1x8x256xf32, #tpu.memory_space<vmem>>, vector<1x8x256xf32>,
    return
  }
  func.func @transform_0(%arg0: i32) -> (i32, i32, i32) {
    %c0_i32 = arith.constant 0 : i32
    %c0_i32_0 = arith.constant 0 : i32
    %c0_i32_1 = arith.constant 0 : i32
    return %arg0, %c0_i32, %c0_i32_0 : i32, i32, i32
  }
  func.func @transform_1(%arg0: i32) -> (i32, i32, i32, i32) {
    %c0_i32 = arith.constant 0 : i32
    %c0_i32_0 = arith.constant 0 : i32
    %c0_i32_1 = arith.constant 0 : i32
    %c0_i32_2 = arith.constant 0 : i32
    return %arg0, %c0_i32, %c0_i32_0, %c0_i32_1 : i32, i32, i32, i32
  }
  func.func @transform_2(%arg0: i32) -> (i32, i32, i32, i32) {
    %c0_i32 = arith.constant 0 : i32
    %c0_i32_0 = arith.constant 0 : i32
    %c0_i32_1 = arith.constant 0 : i32
    %c0_i32_2 = arith.constant 0 : i32
    return %arg0, %c0_i32, %c0_i32_0, %c0_i32_1 : i32, i32, i32, i32
  }
  func.func @transform_3(%arg0: i32) -> (i32, i32, i32) {
    %c0_i32 = arith.constant 0 : i32
    %c0_i32_0 = arith.constant 0 : i32
    %c0_i32_1 = arith.constant 0 : i32
    %c0_i32_2 = arith.constant 0 : i32
    return %c0_i32, %c0_i32_0, %c0_i32_1 : i32, i32, i32
  }
  func.func @transform_4(%arg0: i32) -> (i32, i32, i32, i32) {
    %c0_i32 = arith.constant 0 : i32
    %c0_i32_0 = arith.constant 0 : i32
    %c0_i32_1 = arith.constant 0 : i32
    %c0_i32_2 = arith.constant 0 : i32
    %c0_i32_3 = arith.constant 0 : i32
    return %c0_i32, %c0_i32_0, %c0_i32_1, %c0_i32_2 : i32, i32, i32, i32
  }
  func.func @transform_5(%arg0: i32) -> (i32, i32, i32) {
    %c0_i32 = arith.constant 0 : i32
    %c0_i32_0 = arith.constant 0 : i32
    %c0_i32_1 = arith.constant 0 : i32
    return %arg0, %c0_i32, %c0_i32_0 : i32, i32, i32
  }
}

</mosaic_0001>

<bundles_post_ra>
// kernel: model_with_crf_forward.1
= control target key start
LH: loop header
LB: loop body
LE: loop exit
PB: predicated region body
PF: predicated region fallthrough
CT: control target
= control target key end

     0   :  { %s7080_s18 = smov 0   ;;  %s10225_s0 = inlined_call_operand.vmem [shape: f32[2,8,256], index: 0, kind: input, shape index: {}]   ;;  %s10226_s1 = inlined_call_operand.vmem [shape: f32[2,3,256,8], index: 1, kind: input, shape index: {}]   ;;  %s10227_s2 = inlined_call_operand.vmem [shape: f32[2,3,8,256], index: 2, kind: input, shape index: {}]   ;;  %s10228_s3 = inlined_call_operand.vmem [shape: f32[3,256,256], index: 3, kind: input, shape index: {}]   ;;  %s10229_s4 = inlined_call_operand.vmem [shape: f32[5,3,8,8], index: 4, kind: input, shape index: {}]   ;;  %s10230_s5 = inlined_call_operand.vmem [shape: f32[2,8,256], index: 5, kind: output, shape index: {}]  }
   0x1 LB: > { %s6268_s19 = sadd.s32 4294967295, %s7047_s18   ;;  %p6272_p0 = scmp.ge.s32.totalorder %s7047_s18, 1  ;;  %s7047_s18 = sphi %s7080_s18, %s15_s18  }
   0x2   : > { %p207_p1 = scmp.lt.s32.totalorder %s7047_s18, 3 }
   0x4   : > { %p208_p2 = pnand %p6272_p0, %p207_p1 }
   0x6   : > { %211 = sbr.rel (%p208_p2) target bundleno = 2793 (0xae9), region = 40 }
   0xb   : > { %p245_p3 = scmp.lt.s32.totalorder %s6268_s19, 1  ;;  %v10231_v0 = vmov 0.0   ;;  %vm299_vm0 = vcmask 64512  }
   0xc   : > { %460 = vmatprep.mubr.f32.mxu0 %v10231_v0  ;;  %640 = vmatprep.mubr.f32.mxu1 %v10231_v0 }
   0xd   : > { %s11591_s19 = smov (!%p245_p3, %s6268_s19), 1 }
   0xe   : > { %s6602_s20 = sshll.u32 %s11591_s19, 4  ;;  %s6606_s21 = smul.u32 768, %s11591_s19 }
   0xf   : > { %s249_s24 = scalar_lea.vmem %s10225_s0, %s6602_s20  ;;  %s6607_s25 = smul.u32 48, %s11591_s19 }
  0x10   : > { %s7103_s28 = scalar_lea.vmem %s10226_s1, %s6606_s21  ;;  %v2777_v1 = vld [vmem:[%s249_s24] sm:$0xff]  ;;  %v2778_v2 = vld [vmem:[%s249_s24 + $0x8] sm:$0xff]  ;;  %s264_s30 = scalar_lea.vmem %s10230_s5, %s6602_s20 }
  0x11   : > { %s259_s6 = scalar_lea.vmem %s10227_s2, %s6607_s25  ;;  %v7108_v3 = vmul.f32 5.0, %v2777_v1  ;;  %v7110_v4 = vmul.f32 5.0, %v2778_v2  ;;  %v265_v5 = vld [vmem:[%s7103_s28] sm:$0xff]  ;;  %v295_v8 = vld [vmem:[%s7103_s28 + $0xf0] sm:$0xff]  ;;  %v266_v16 = vld [vmem:[%s7103_s28 + $0x8] sm:$0xff] }
  0x12   : > { %v298_v6 = vld [vmem:[%s259_s6 + $0x8] sm:$0xff]  ;;  %v297_v7 = vld [vmem:[%s259_s6] sm:$0xff]  ;;  %v6344_v15 = vld [vmem:[%s259_s6 + $0x18] sm:$0xff] }
  0x13   : > { %10666 = vst [vmem:[#allocation4_spill] sm:$0xff] %v7108_v3  ;;  %10667 = vst [vmem:[#allocation5_spill] sm:$0xff] %v7110_v4  ;;  %426 = vmatprep.subr.mxu0 %v298_v6  ;;  %v2783_v9 = vrot.slane %v7108_v3, 4  ;;  %v2789_v10 = vrot.slane %v7110_v4, 4  ;;  %6604 = vmatprep.subr.mxu1 %v298_v6  ;;  %v6474_v11 = vld [vmem:[%s259_s6 + $0x28] sm:$0xff]  ;;  %v6473_v12 = vld [vmem:[%s259_s6 + $0x20] sm:$0xff] }
  0x14   : > { %427 = vmatpush1.msra.mxu0 %v297_v7  ;;  %6605 = vmatpush1.msra.mxu1 %v297_v7  ;;  %v296_v17 = vld [vmem:[%s7103_s28 + $0xf8] sm:$0xff]  ;;  %v6343_v20 = vld [vmem:[%s259_s6 + $0x10] sm:$0xff]  ;;  %v6311_v24 = vld [vmem:[%s7103_s28 + $0x100] sm:$0xff] }
  0x15   : > { %v2784_v13 = vmax.f32 %v7108_v3, %v2783_v9  ;;  %v2790_v14 = vmax.f32 %v7110_v4, %v2789_v10  ;;  %6279 = vmatmul.mubr.msk.f32.vlgmr.msra.gmra.mxu0 %vm299_vm0, %v265_v5  ;;  %6309 = vmatmul.mubr.msk.f32.vlgmr.msra.gmra.mxu1 %vm299_vm0, %v295_v8  ;;  %v267_v23 = vld [vmem:[%s7103_s28 + $0x10] sm:$0xff]  ;;  %v268_v29 = vld [vmem:[%s7103_s28 + $0x18] sm:$0xff]  ;;  %v6312_v30 = vld [vmem:[%s7103_s28 + $0x108] sm:$0xff] }
  0x16   : > { %2101 = vmatprep.subr.mxu0 %v6474_v11  ;;  %466 = vmatprep.mubr.f32.mxu0 %v10231_v0  ;;  %v269_v35 = vld [vmem:[%s7103_s28 + $0x20] sm:$0xff]  ;;  %v6313_v36 = vld [vmem:[%s7103_s28 + $0x110] sm:$0xff]  ;;  %v270_v37 = vld [vmem:[%s7103_s28 + $0x28] sm:$0xff] }
  0x17   : > { %v2785_v18 = vrot.slane %v2784_v13, 2  ;;  %v2791_v19 = vrot.slane %v2790_v14, 2  ;;  %646 = vmatprep.mubr.f32.mxu1 %v10231_v0  ;;  %2102 = vmatpush1.msra.mxu0 %v6473_v12  ;;  %v6314_v38 = vld [vmem:[%s7103_s28 + $0x118] sm:$0xff]  ;;  %v271_v39 = vld [vmem:[%s7103_s28 + $0x30] sm:$0xff]  ;;  %v6315_v40 = vld [vmem:[%s7103_s28 + $0x120] sm:$0xff] }
  0x18   : > { %1263 = vmatprep.subr.mxu1 %v6344_v15  ;;  %v272_v41 = vld [vmem:[%s7103_s28 + $0x38] sm:$0xff]  ;;  %v6316_v42 = vld [vmem:[%s7103_s28 + $0x128] sm:$0xff]  ;;  %v273_v46 = vld [vmem:[%s7103_s28 + $0x40] sm:$0xff] }
  0x19   : > { %v2786_v21 = vmax.f32 %v2784_v13, %v2785_v18  ;;  %v2792_v22 = vmax.f32 %v2790_v14, %v2791_v19  ;;  %6280 = vmatmul.mubr.msk.f32.gmra.mxu0 %vm299_vm0, %v266_v16  ;;  %6310 = vmatmul.mubr.msk.f32.gmra.mxu1 %vm299_vm0, %v296_v17  ;;  %v6317_v47 = vld [vmem:[%s7103_s28 + $0x130] sm:$0xff]  ;;  %v274_v52 = vld [vmem:[%s7103_s28 + $0x48] sm:$0xff]  ;;  %v6318_v53 = vld [vmem:[%s7103_s28 + $0x138] sm:$0xff] }
  0x1a   : > { %472 = vmatprep.mubr.f32.mxu0 %v10231_v0  ;;  %1264 = vmatpush1.msra.mxu1 %v6343_v20  ;;  %v275_v58 = vld [vmem:[%s7103_s28 + $0x50] sm:$0xff]  ;;  %v6319_v59 = vld [vmem:[%s7103_s28 + $0x140] sm:$0xff]  ;;  %v276_v63 = vld [vmem:[%s7103_s28 + $0x58] sm:$0xff] }
  0x1b   : > { %v2787_v25 = vrot.slane %v2786_v21, 1  ;;  %v2793_v26 = vrot.slane %v2792_v22, 1  ;;  %1297 = vmatprep.mubr.f32.mxu1 %v10231_v0  ;;  %v6320_v1 = vld [vmem:[%s7103_s28 + $0x148] sm:$0xff]  ;;  %v277_v2 = vld [vmem:[%s7103_s28 + $0x60] sm:$0xff]  ;;  %v6321_v5 = vld [vmem:[%s7103_s28 + $0x150] sm:$0xff] }
  0x1c   : > { %v278_v6 = vld [vmem:[%s7103_s28 + $0x68] sm:$0xff]  ;;  %v6322_v7 = vld [vmem:[%s7103_s28 + $0x158] sm:$0xff]  ;;  %v279_v9 = vld [vmem:[%s7103_s28 + $0x70] sm:$0xff] }
  0x1d   : > { %v2788_v27 = vmax.f32 %v2786_v21, %v2787_v25  ;;  %v2794_v28 = vmax.f32 %v2792_v22, %v2793_v26  ;;  %6281 = vmatmul.mubr.msk.f32.gmra.mxu0 %vm299_vm0, %v267_v23  ;;  %6345 = vmatmul.mubr.msk.f32.vlgmr.msra.gmra.mxu1 %vm299_vm0, %v6311_v24  ;;  %v6323_v10 = vld [vmem:[%s7103_s28 + $0x160] sm:$0xff]  ;;  %v280_v14 = vld [vmem:[%s7103_s28 + $0x78] sm:$0xff]  ;;  %v6324_v15 = vld [vmem:[%s7103_s28 + $0x168] sm:$0xff] }
  0x1e   : > { %478 = vmatprep.mubr.f32.mxu0 %v10231_v0  ;;  %1303 = vmatprep.mubr.f32.mxu1 %v10231_v0  ;;  %v281_v16 = vld [vmem:[%s7103_s28 + $0x80] sm:$0xff]  ;;  %v6325_v17 = vld [vmem:[%s7103_s28 + $0x170] sm:$0xff]  ;;  %v282_v18 = vld [vmem:[%s7103_s28 + $0x88] sm:$0xff] }
  0x1f   : > { %v2795_v31 = vsub.f32 %v7108_v3, %v2788_v27  ;;  %v2796_v32 = vsub.f32 %v7110_v4, %v2794_v28  ;;  %v6326_v19 = vld [vmem:[%s7103_s28 + $0x178] sm:$0xff]  ;;  %v283_v20 = vld [vmem:[%s7103_s28 + $0x90] sm:$0xff]  ;;  %v6327_v21 = vld [vmem:[%s7103_s28 + $0x180] sm:$0xff] }
  0x20   : > { %v284_v22 = vld [vmem:[%s7103_s28 + $0x98] sm:$0xff]  ;;  %v6328_v23 = vld [vmem:[%s7103_s28 + $0x188] sm:$0xff]  ;;  %v285_v24 = vld [vmem:[%s7103_s28 + $0xa0] sm:$0xff] }
  0x21   : > { %v2797_v33 = vmul.f32 1.442695, %v2795_v31  ;;  %v2799_v34 = vmul.f32 1.442695, %v2796_v32  ;;  %6282 = vmatmul.mubr.msk.f32.gmra.mxu0 %vm299_vm0, %v268_v29  ;;  %6346 = vmatmul.mubr.msk.f32.gmra.mxu1 %vm299_vm0, %v6312_v30  ;;  %v6329_v25 = vld [vmem:[%s7103_s28 + $0x190] sm:$0xff]  ;;  %v286_v26 = vld [vmem:[%s7103_s28 + $0xa8] sm:$0xff] }
  0x22   : > { %484 = vmatprep.mubr.f32.mxu0 %v10231_v0  ;;  %1309 = vmatprep.mubr.f32.mxu1 %v10231_v0  ;;  %v6330_v27 = vld [vmem:[%s7103_s28 + $0x198] sm:$0xff]  ;;  %v287_v28 = vld [vmem:[%s7103_s28 + $0xb0] sm:$0xff]  ;;  %v6331_v29 = vld [vmem:[%s7103_s28 + $0x1a0] sm:$0xff] }
  0x23   : > { %6617 = vpow2.f32 %v2797_v33  ;;  %v288_v30 = vld [vmem:[%s7103_s28 + $0xb8] sm:$0xff]  ;;  %v6332_v31 = vld [vmem:[%s7103_s28 + $0x1a8] sm:$0xff]  ;;  %v289_v32 = vld [vmem:[%s7103_s28 + $0xc0] sm:$0xff] }
  0x24   : > { %6619 = vpow2.f32 %v2799_v34  ;;  %v6333_v33 = vld [vmem:[%s7103_s28 + $0x1b0] sm:$0xff]  ;;  %v290_v34 = vld [vmem:[%s7103_s28 + $0xc8] sm:$0xff] }
  0x25   : > { %6283 = vmatmul.mubr.msk.f32.gmra.mxu0 %vm299_vm0, %v269_v35  ;;  %6347 = vmatmul.mubr.msk.f32.gmra.mxu1 %vm299_vm0, %v6313_v36  ;;  %v6334_v35 = vld [vmem:[%s7103_s28 + $0x1b8] sm:$0xff]  ;;  %v291_v36 = vld [vmem:[%s7103_s28 + $0xd0] sm:$0xff] }
  0x26   : > { %490 = vmatprep.mubr.f32.mxu0 %v10231_v0  ;;  %1315 = vmatprep.mubr.f32.mxu1 %v10231_v0 }
  0x29   : > { %6284 = vmatmul.mubr.msk.f32.gmra.mxu0 %vm299_vm0, %v270_v37  ;;  %6348 = vmatmul.mubr.msk.f32.gmra.mxu1 %vm299_vm0, %v6314_v38  ;;  %v6335_v37 = vld [vmem:[%s7103_s28 + $0x1c0] sm:$0xff]  ;;  %v292_v38 = vld [vmem:[%s7103_s28 + $0xd8] sm:$0xff] }
  0x2a   : > { %496 = vmatprep.mubr.f32.mxu0 %v10231_v0  ;;  %1321 = vmatprep.mubr.f32.mxu1 %v10231_v0 }
  0x2d   : > { %6285 = vmatmul.mubr.msk.f32.gmra.mxu0 %vm299_vm0, %v271_v39  ;;  %6349 = vmatmul.mubr.msk.f32.gmra.mxu1 %vm299_vm0, %v6315_v40  ;;  %v6336_v39 = vld [vmem:[%s7103_s28 + $0x1c8] sm:$0xff]  ;;  %v293_v40 = vld [vmem:[%s7103_s28 + $0xe0] sm:$0xff] }
  0x2e   : > { %502 = vmatprep.mubr.f32.mxu0 %v10231_v0  ;;  %1327 = vmatprep.mubr.f32.mxu1 %v10231_v0 }
  0x30   : > { %v6618_v43 = vpop.eup %6617 }
  0x31   : > { %v6620_v44 = vpop.eup %6619  ;;  %6286 = vmatmul.mubr.msk.f32.gmra.mxu0 %vm299_vm0, %v272_v41  ;;  %6350 = vmatmul.mubr.msk.f32.gmra.mxu1 %vm299_vm0, %v6316_v42  ;;  %v2801_v45 = vrot.slane %v6618_v43, 4  ;;  %v6337_v41 = vld [vmem:[%s7103_s28 + $0x1d0] sm:$0xff]  ;;  %v294_v42 = vld [vmem:[%s7103_s28 + $0xe8] sm:$0xff] }
  0x32   : > { %508 = vmatprep.mubr.f32.mxu0 %v10231_v0  ;;  %1333 = vmatprep.mubr.f32.mxu1 %v10231_v0  ;;  %v2807_v48 = vrot.slane %v6620_v44, 4 }
  0x33   : > { %v2802_v49 = vadd.f32 %v6618_v43, %v2801_v45  ;;  %v6441_v45 = vld [vmem:[%s7103_s28 + $0x200] sm:$0xff] }
  0x34   : > { %v2808_v50 = vadd.f32 %v6620_v44, %v2807_v48  ;;  %v6341_v48 = vld [vmem:[%s7103_s28 + $0x1f0] sm:$0xff] }
  0x35   : > { %6287 = vmatmul.mubr.msk.f32.gmra.mxu0 %vm299_vm0, %v273_v46  ;;  %6351 = vmatmul.mubr.msk.f32.gmra.mxu1 %vm299_vm0, %v6317_v47  ;;  %v2803_v51 = vrot.slane %v2802_v49, 2  ;;  %v6340_v46 = vld [vmem:[%s7103_s28 + $0x1e8] sm:$0xff] }
  0x36   : > { %514 = vmatprep.mubr.f32.mxu0 %v10231_v0  ;;  %1339 = vmatprep.mubr.f32.mxu1 %v10231_v0  ;;  %v2809_v54 = vrot.slane %v2808_v50, 2  ;;  %v6442_v47 = vld [vmem:[%s7103_s28 + $0x208] sm:$0xff] }
  0x37   : > { %v2804_v55 = vadd.f32 %v2803_v51, %v2802_v49  ;;  %v6443_v49 = vld [vmem:[%s7103_s28 + $0x210] sm:$0xff]  ;;  %v6444_v51 = vld [vmem:[%s7103_s28 + $0x218] sm:$0xff] }
  0x38   : > { %v2810_v56 = vadd.f32 %v2809_v54, %v2808_v50  ;;  %v6342_v50 = vld [vmem:[%s7103_s28 + $0x1f8] sm:$0xff]  ;;  %v6446_v54 = vld [vmem:[%s7103_s28 + $0x228] sm:$0xff] }
  0x39   : > { %6288 = vmatmul.mubr.msk.f32.gmra.mxu0 %vm299_vm0, %v274_v52  ;;  %6352 = vmatmul.mubr.msk.f32.gmra.mxu1 %vm299_vm0, %v6318_v53  ;;  %v2805_v57 = vrot.slane %v2804_v55, 1  ;;  %v6445_v52 = vld [vmem:[%s7103_s28 + $0x220] sm:$0xff] }
  0x3a   : > { %520 = vmatprep.mubr.f32.mxu0 %v10231_v0  ;;  %1345 = vmatprep.mubr.f32.mxu1 %v10231_v0  ;;  %v2811_v60 = vrot.slane %v2810_v56, 1  ;;  %v2817_v53 = vld [vmem:[%s10229_s4] sm:$0xff] }
  0x3b   : > { %v2806_v61 = vadd.f32 %v2805_v57, %v2804_v55  ;;  %v6572_v55 = vld [vmem:[%s10229_s4 + $0x8] sm:$0xff]  ;;  %v6448_v57 = vld [vmem:[%s7103_s28 + $0x238] sm:$0xff] }
  0x3c   : > { %v2812_v62 = vadd.f32 %v2811_v60, %v2810_v56  ;;  %v6447_v56 = vld [vmem:[%s7103_s28 + $0x230] sm:$0xff] }
  0x3d   : > { %6289 = vmatmul.mubr.msk.f32.gmra.mxu0 %vm299_vm0, %v275_v58  ;;  %6353 = vmatmul.mubr.msk.f32.gmra.mxu1 %vm299_vm0, %v6319_v59  ;;  %6621 = vrcp.f32 %v2806_v61  ;;  %v6449_v58 = vld [vmem:[%s7103_s28 + $0x240] sm:$0xff]  ;;  %v6450_v59 = vld [vmem:[%s7103_s28 + $0x248] sm:$0xff]  ;;  %v6574_v60 = vld [vmem:[%s10229_s4 + $0x10] sm:$0xff] }
  0x3e   : > { %526 = vmatprep.mubr.f32.mxu0 %v10231_v0  ;;  %1351 = vmatprep.mubr.f32.mxu1 %v10231_v0  ;;  %6623 = vrcp.f32 %v2812_v62  ;;  %v6451_v61 = vld [vmem:[%s7103_s28 + $0x250] sm:$0xff]  ;;  %v6452_v62 = vld [vmem:[%s7103_s28 + $0x258] sm:$0xff] }
  0x41   : > { %6290 = vmatmul.mubr.msk.f32.gmra.mxu0 %vm299_vm0, %v276_v63  ;;  %6354 = vmatmul.mubr.msk.f32.gmra.mxu1 %vm299_vm0, %v6320_v1  ;;  %v6453_v63 = vld [vmem:[%s7103_s28 + $0x260] sm:$0xff]  ;;  %v6454_v1 = vld [vmem:[%s7103_s28 + $0x268] sm:$0xff] }
  0x42   : > { %532 = vmatprep.mubr.f32.mxu0 %v10231_v0  ;;  %1357 = vmatprep.mubr.f32.mxu1 %v10231_v0 }
  0x45   : > { %6291 = vmatmul.mubr.msk.f32.gmra.mxu0 %vm299_vm0, %v277_v2  ;;  %6355 = vmatmul.mubr.msk.f32.gmra.mxu1 %vm299_vm0, %v6321_v5  ;;  %v6455_v2 = vld [vmem:[%s7103_s28 + $0x270] sm:$0xff]  ;;  %v6456_v5 = vld [vmem:[%s7103_s28 + $0x278] sm:$0xff] }
  0x46   : > { %538 = vmatprep.mubr.f32.mxu0 %v10231_v0  ;;  %1363 = vmatprep.mubr.f32.mxu1 %v10231_v0 }
  0x49   : > { %6292 = vmatmul.mubr.msk.f32.gmra.mxu0 %vm299_vm0, %v278_v6  ;;  %6356 = vmatmul.mubr.msk.f32.gmra.mxu1 %vm299_vm0, %v6322_v7  ;;  %v6457_v6 = vld [vmem:[%s7103_s28 + $0x280] sm:$0xff]  ;;  %v6458_v7 = vld [vmem:[%s7103_s28 + $0x288] sm:$0xff] }
  0x4a   : > { %v6622_v8 = vpop.eup %6621  ;;  %544 = vmatprep.mubr.f32.mxu0 %v10231_v0  ;;  %1369 = vmatprep.mubr.f32.mxu1 %v10231_v0 }
  0x4b   : > { %v6624_v11 = vpop.eup %6623  ;;  %v7206_v13 = vmul.f32 %v6622_v8, %v6618_v43  ;;  %v6338_v43 = vld [vmem:[%s7103_s28 + $0x1d8] sm:$0xff]  ;;  %v6459_v8 = vld [vmem:[%s7103_s28 + $0x290] sm:$0xff] }
  0x4c   : > { %v7204_v12 = vmul.f32 %v6624_v11, %v6620_v44  ;;  %v6339_v44 = vld [vmem:[%s7103_s28 + $0x1e0] sm:$0xff]  ;;  %v6460_v11 = vld [vmem:[%s7103_s28 + $0x298] sm:$0xff] }
  0x4d   : > { %6293 = vmatmul.mubr.msk.f32.gmra.mxu0 %vm299_vm0, %v279_v9  ;;  %6357 = vmatmul.mubr.msk.f32.gmra.mxu1 %vm299_vm0, %v6323_v10 }
  0x4e   : > { %550 = vmatprep.mubr.f32.mxu0 %v10231_v0  ;;  %1375 = vmatprep.mubr.f32.mxu1 %v10231_v0 }
  0x4f   : > { %2851 = vmatprep.subr.mxu1 %v7204_v12 }
  0x50   : > { %2852 = vmatpush1.msra.mxu1 %v7206_v13 }
  0x51   : > { %6294 = vmatmul.mubr.msk.f32.gmra.mxu0 %vm299_vm0, %v280_v14  ;;  %6358 = vmatmul.mubr.msk.f32.gmra.mxu1 %vm299_vm0, %v6324_v15 }
  0x52   : > { %556 = vmatprep.mubr.f32.mxu0 %v10231_v0  ;;  %1381 = vmatprep.mubr.f32.mxu1 %v10231_v0 }
  0x53   : > { %2929 = vmatprep.subr.mxu1 %v7204_v12 }
  0x55   : > { %6295 = vmatmul.mubr.msk.f32.gmra.mxu0 %vm299_vm0, %v281_v16  ;;  %6359 = vmatmul.mubr.msk.f32.gmra.mxu1 %vm299_vm0, %v6325_v17  ;;  %v6461_v16 = vld [vmem:[%s7103_s28 + $0x2a0] sm:$0xff] }
  0x56   : > { %562 = vmatprep.mubr.f32.mxu0 %v10231_v0  ;;  %1387 = vmatprep.mubr.f32.mxu1 %v10231_v0 }
  0x59   : > { %6296 = vmatmul.mubr.msk.f32.gmra.mxu0 %vm299_vm0, %v282_v18  ;;  %6360 = vmatmul.mubr.msk.f32.gmra.mxu1 %vm299_vm0, %v6326_v19 }
  0x5a   : > { %568 = vmatprep.mubr.f32.mxu0 %v10231_v0  ;;  %1393 = vmatprep.mubr.f32.mxu1 %v10231_v0 }
  0x5d   : > { %6297 = vmatmul.mubr.msk.f32.gmra.mxu0 %vm299_vm0, %v283_v20  ;;  %6361 = vmatmul.mubr.msk.f32.gmra.mxu1 %vm299_vm0, %v6327_v21  ;;  %v6462_v21 = vld [vmem:[%s7103_s28 + $0x2a8] sm:$0xff] }
  0x5e   : > { %574 = vmatprep.mubr.f32.mxu0 %v10231_v0  ;;  %1399 = vmatprep.mubr.f32.mxu1 %v10231_v0 }
  0x61   : > { %6298 = vmatmul.mubr.msk.f32.gmra.mxu0 %vm299_vm0, %v284_v22  ;;  %6362 = vmatmul.mubr.msk.f32.gmra.mxu1 %vm299_vm0, %v6328_v23 }
  0x62   : > { %580 = vmatprep.mubr.f32.mxu0 %v10231_v0  ;;  %1405 = vmatprep.mubr.f32.mxu1 %v10231_v0 }
  0x65   : > { %6299 = vmatmul.mubr.msk.f32.gmra.mxu0 %vm299_vm0, %v285_v24  ;;  %6363 = vmatmul.mubr.msk.f32.gmra.mxu1 %vm299_vm0, %v6329_v25 }
  0x66   : > { %586 = vmatprep.mubr.f32.mxu0 %v10231_v0  ;;  %1411 = vmatprep.mubr.f32.mxu1 %v10231_v0 }
  0x69   : > { %6300 = vmatmul.mubr.msk.f32.gmra.mxu0 %vm299_vm0, %v286_v26  ;;  %6364 = vmatmul.mubr.msk.f32.gmra.mxu1 %vm299_vm0, %v6330_v27  ;;  %v6463_v26 = vld [vmem:[%s7103_s28 + $0x2b0] sm:$0xff] }
  0x6a   : > { %592 = vmatprep.mubr.f32.mxu0 %v10231_v0  ;;  %1417 = vmatprep.mubr.f32.mxu1 %v10231_v0 }
  0x6d   : > { %6301 = vmatmul.mubr.msk.f32.gmra.mxu0 %vm299_vm0, %v287_v28  ;;  %6365 = vmatmul.mubr.msk.f32.gmra.mxu1 %vm299_vm0, %v6331_v29 }
  0x6e   : > { %598 = vmatprep.mubr.f32.mxu0 %v10231_v0  ;;  %1423 = vmatprep.mubr.f32.mxu1 %v10231_v0 }
  0x71   : > { %6302 = vmatmul.mubr.msk.f32.gmra.mxu0 %vm299_vm0, %v288_v30  ;;  %6366 = vmatmul.mubr.msk.f32.gmra.mxu1 %vm299_vm0, %v6332_v31  ;;  %v6464_v31 = vld [vmem:[%s7103_s28 + $0x2b8] sm:$0xff] }
  0x72   : > { %604 = vmatprep.mubr.f32.mxu0 %v10231_v0  ;;  %1429 = vmatprep.mubr.f32.mxu1 %v10231_v0 }
  0x75   : > { %6303 = vmatmul.mubr.msk.f32.gmra.mxu0 %vm299_vm0, %v289_v32  ;;  %6367 = vmatmul.mubr.msk.f32.gmra.mxu1 %vm299_vm0, %v6333_v33 }
  0x76   : > { %610 = vmatprep.mubr.f32.mxu0 %v10231_v0  ;;  %1435 = vmatprep.mubr.f32.mxu1 %v10231_v0 }
  0x79   : > { %6304 = vmatmul.mubr.msk.f32.gmra.mxu0 %vm299_vm0, %v290_v34  ;;  %6368 = vmatmul.mubr.msk.f32.gmra.mxu1 %vm299_vm0, %v6334_v35 }
  0x7a   : > { %616 = vmatprep.mubr.f32.mxu0 %v10231_v0  ;;  %1441 = vmatprep.mubr.f32.mxu1 %v10231_v0 }
  0x7d   : > { %6305 = vmatmul.mubr.msk.f32.gmra.mxu0 %vm299_vm0, %v291_v36  ;;  %6369 = vmatmul.mubr.msk.f32.gmra.mxu1 %vm299_vm0, %v6335_v37 }
  0x7e   : > { %622 = vmatprep.mubr.f32.mxu0 %v10231_v0  ;;  %1447 = vmatprep.mubr.f32.mxu1 %v10231_v0 }
  0x81   : > { %6306 = vmatmul.mubr.msk.f32.gmra.mxu0 %vm299_vm0, %v292_v38  ;;  %6370 = vmatmul.mubr.msk.f32.gmra.mxu1 %vm299_vm0, %v6336_v39 }
  0x82   : > { %628 = vmatprep.mubr.f32.mxu0 %v10231_v0  ;;  %1453 = vmatprep.mubr.f32.mxu1 %v10231_v0 }
  0x85   : > { %6307 = vmatmul.mubr.msk.f32.gmra.mxu0 %vm299_vm0, %v293_v40  ;;  %6371 = vmatmul.mubr.msk.f32.gmra.mxu1 %vm299_vm0, %v6337_v41  ;;  %v6465_v40 = vld [vmem:[%s7103_s28 + $0x2c0] sm:$0xff] }
  0x86   : > { %634 = vmatprep.mubr.f32.mxu0 %v10231_v0  ;;  %1459 = vmatprep.mubr.f32.mxu1 %v10231_v0 }
  0x89   : > { %6308 = vmatmul.mubr.msk.f32.gmra.mxu0 %vm299_vm0, %v294_v42  ;;  %6372 = vmatmul.mubr.msk.f32.gmra.mxu1 %vm299_vm0, %v6338_v43 }
  0x8a   : > { %1465 = vmatprep.mubr.f32.mxu1 %v10231_v0  ;;  %2135 = vmatprep.mubr.f32.mxu0 %v10231_v0 }
  0x8d   : > { %6373 = vmatmul.mubr.msk.f32.gmra.mxu1 %vm299_vm0, %v6339_v44  ;;  %6475 = vmatmul.mubr.msk.f32.vlgmr.msra.gmra.mxu0 %vm299_vm0, %v6441_v45 }
  0x8e   : > { %1471 = vmatprep.mubr.f32.mxu1 %v10231_v0  ;;  %2141 = vmatprep.mubr.f32.mxu0 %v10231_v0 }
  0x91   : > { %6374 = vmatmul.mubr.msk.f32.gmra.mxu1 %vm299_vm0, %v6340_v46  ;;  %6476 = vmatmul.mubr.msk.f32.gmra.mxu0 %vm299_vm0, %v6442_v47 }
  0x92   : > { %1477 = vmatprep.mubr.f32.mxu1 %v10231_v0  ;;  %2147 = vmatprep.mubr.f32.mxu0 %v10231_v0 }
  0x95   : > { %6375 = vmatmul.mubr.msk.f32.gmra.mxu1 %vm299_vm0, %v6341_v48  ;;  %6477 = vmatmul.mubr.msk.f32.gmra.mxu0 %vm299_vm0, %v6443_v49 }
  0x96   : > { %1483 = vmatprep.mubr.f32.mxu1 %v10231_v0  ;;  %2153 = vmatprep.mubr.f32.mxu0 %v10231_v0 }
  0x99   : > { %6376 = vmatmul.mubr.msk.f32.gmra.mxu1 %vm299_vm0, %v6342_v50  ;;  %6478 = vmatmul.mubr.msk.f32.gmra.mxu0 %vm299_vm0, %v6444_v51 }
  0x9a   : > { %2159 = vmatprep.mubr.f32.mxu0 %v10231_v0  ;;  %2885 = vmatprep.mubr.f32.mxu1 %v10231_v0 }
  0x9d   : > { %6479 = vmatmul.mubr.msk.f32.gmra.mxu0 %vm299_vm0, %v6445_v52  ;;  %6571 = vmatmul.mubr.msk.f32.vlgmr.msra.gmra.mxu1 %vm299_vm0, %v2817_v53  ;;  %v6466_v53 = vld [vmem:[%s7103_s28 + $0x2c8] sm:$0xff] }
  0x9e   : > { %2165 = vmatprep.mubr.f32.mxu0 %v10231_v0  ;;  %2930 = vmatpush1.msra.mxu1 %v7206_v13 }
  0x9f   : > { %2963 = vmatprep.mubr.f32.mxu1 %v10231_v0  ;;  %3007 = vmatprep.subr.mxu1 %v7204_v12 }
  0xa1   : > { %6480 = vmatmul.mubr.msk.f32.gmra.mxu0 %vm299_vm0, %v6446_v54  ;;  %6573 = vmatmul.mubr.msk.f32.vlgmr.msra.gmra.mxu1 %vm299_vm0, %v6572_v55 }
  0xa2   : > { %2171 = vmatprep.mubr.f32.mxu0 %v10231_v0  ;;  %3008 = vmatpush1.msra.mxu1 %v7206_v13 }
  0xa3   : > { %3041 = vmatprep.mubr.f32.mxu1 %v10231_v0 }
  0xa5   : > { %6481 = vmatmul.mubr.msk.f32.gmra.mxu0 %vm299_vm0, %v6447_v56  ;;  %6575 = vmatmul.mubr.msk.f32.vlgmr.msra.gmra.mxu1 %vm299_vm0, %v6574_v60 }
  0xa6   : > { %2177 = vmatprep.mubr.f32.mxu0 %v10231_v0 }
  0xa9   : > { %6482 = vmatmul.mubr.msk.f32.gmra.mxu0 %vm299_vm0, %v6448_v57 }
  0xaa   : > { %2183 = vmatprep.mubr.f32.mxu0 %v10231_v0 }
  0xad   : > { %6483 = vmatmul.mubr.msk.f32.gmra.mxu0 %vm299_vm0, %v6449_v58 }
  0xae   : > { %2189 = vmatprep.mubr.f32.mxu0 %v10231_v0 }
  0xb1   : > { %6484 = vmatmul.mubr.msk.f32.gmra.mxu0 %vm299_vm0, %v6450_v59 }
  0xb2   : > { %2195 = vmatprep.mubr.f32.mxu0 %v10231_v0 }
  0xb5   : > { %6485 = vmatmul.mubr.msk.f32.gmra.mxu0 %vm299_vm0, %v6451_v61 }
  0xb6   : > { %2201 = vmatprep.mubr.f32.mxu0 %v10231_v0 }
  0xb9   : > { %6486 = vmatmul.mubr.msk.f32.gmra.mxu0 %vm299_vm0, %v6452_v62 }
  0xba   : > { %2207 = vmatprep.mubr.f32.mxu0 %v10231_v0 }
  0xbd   : > { %6487 = vmatmul.mubr.msk.f32.gmra.mxu0 %vm299_vm0, %v6453_v63 }
  0xbe   : > { %2213 = vmatprep.mubr.f32.mxu0 %v10231_v0 }
  0xc1   : > { %6488 = vmatmul.mubr.msk.f32.gmra.mxu0 %vm299_vm0, %v6454_v1 }
  0xc2   : > { %2219 = vmatprep.mubr.f32.mxu0 %v10231_v0 }
  0xc5   : > { %6489 = vmatmul.mubr.msk.f32.gmra.mxu0 %vm299_vm0, %v6455_v2 }
  0xc6   : > { %2225 = vmatprep.mubr.f32.mxu0 %v10231_v0 }
  0xc9   : > { %6490 = vmatmul.mubr.msk.f32.gmra.mxu0 %vm299_vm0, %v6456_v5 }
  0xca   : > { %2231 = vmatprep.mubr.f32.mxu0 %v10231_v0 }
  0xcd   : > { %6491 = vmatmul.mubr.msk.f32.gmra.mxu0 %vm299_vm0, %v6457_v6 }
  0xce   : > { %2237 = vmatprep.mubr.f32.mxu0 %v10231_v0 }
  0xd1   : > { %6492 = vmatmul.mubr.msk.f32.gmra.mxu0 %vm299_vm0, %v6458_v7 }
  0xd2   : > { %2243 = vmatprep.mubr.f32.mxu0 %v10231_v0 }
  0xd5   : > { %v462_v9 = vpop.f32.mrf.mxu0  ;;  %v642_v10 = vpop.f32.mrf.mxu1  ;;  %6493 = vmatmul.mubr.msk.f32.gmra.mxu0 %vm299_vm0, %v6459_v8 }
  0xd6   : > { %2249 = vmatprep.mubr.f32.mxu0 %v10231_v0  ;;  %v653_v32 = vmax.f32 %v462_v9, 0.0  ;;  %v713_v35 = vmax.f32 %v642_v10, 0.0  ;;  %v6467_v9 = vld [vmem:[%s7103_s28 + $0x2d0] sm:$0xff] }
  0xd7   : > { %v464_v12 = vpop.f32.mrf.mxu0  ;;  %v644_v13 = vpop.f32.mrf.mxu1 }
  0xd8   : > { %v654_v36 = vmax.f32 %v464_v12, 0.0  ;;  %v714_v39 = vmax.f32 %v644_v13, 0.0  ;;  %v717_v41 = vmul.f32 -0.5, %v653_v32  ;;  %v777_v45 = vmul.f32 -0.5, %v713_v35 }
  0xd9   : > { %v468_v14 = vpop.f32.mrf.mxu0  ;;  %v648_v15 = vpop.f32.mrf.mxu1  ;;  %6494 = vmatmul.mubr.msk.f32.gmra.mxu0 %vm299_vm0, %v6460_v11 }
  0xda   : > { %2255 = vmatprep.mubr.f32.mxu0 %v10231_v0  ;;  %v655_v42 = vmax.f32 %v468_v14, 0.0  ;;  %v715_v46 = vmax.f32 %v648_v15, 0.0  ;;  %v718_v47 = vmul.f32 -0.5, %v654_v36  ;;  %v778_v51 = vmul.f32 -0.5, %v714_v39 }
  0xdb   : > { %v470_v17 = vpop.f32.mrf.mxu0  ;;  %v650_v18 = vpop.f32.mrf.mxu1  ;;  %v781_v54 = vmul.f32 1.442695, %v717_v41  ;;  %v901_v59 = vmul.f32 1.442695, %v777_v45 }
  0xdc   : > { %v656_v48 = vmax.f32 %v470_v17, 0.0  ;;  %v716_v52 = vmax.f32 %v650_v18, 0.0  ;;  %v719_v55 = vmul.f32 -0.5, %v655_v42  ;;  %v779_v60 = vmul.f32 -0.5, %v715_v46 }
  0xdd   : > { %v7395_v19 = vpop.f32.mrf.mxu0  ;;  %v7397_v20 = vpop.f32.mrf.mxu1  ;;  %6495 = vmatmul.mubr.msk.f32.gmra.mxu0 %vm299_vm0, %v6461_v16  ;;  %v783_v62 = vmul.f32 1.442695, %v718_v47  ;;  %v903_v6 = vmul.f32 1.442695, %v778_v51  ;;  %6625 = vpow2.f32 %v781_v54 }
  0xde   : > { %2261 = vmatprep.mubr.f32.mxu0 %v10231_v0  ;;  %v657_v56 = vmax.f32 %v7395_v19, 0.0  ;;  %v1490_v61 = vmax.f32 %v7397_v20, 0.0  ;;  %v720_v63 = vmul.f32 -0.5, %v656_v48  ;;  %v780_v7 = vmul.f32 -0.5, %v716_v52  ;;  %v6469_v52 = vld [vmem:[%s7103_s28 + $0x2e0] sm:$0xff] }
  0xdf   : > { %v7402_v22 = vpop.f32.mrf.mxu0  ;;  %v7404_v23 = vpop.f32.mrf.mxu1  ;;  %v785_v10 = vmul.f32 1.442695, %v719_v55  ;;  %6627 = vpow2.f32 %v901_v59  ;;  %v905_v15 = vmul.f32 1.442695, %v779_v60 }
  0xe0   : > { %v658_v1 = vmax.f32 %v7402_v22, 0.0  ;;  %v1491_v8 = vmax.f32 %v7404_v23, 0.0  ;;  %v721_v11 = vmul.f32 -0.5, %v657_v56  ;;  %v1554_v16 = vmul.f32 -0.5, %v1490_v61 }
  0xe1   : > { %v7406_v24 = vpop.f32.mrf.mxu0  ;;  %v7408_v25 = vpop.f32.mrf.mxu1  ;;  %6496 = vmatmul.mubr.msk.f32.gmra.mxu0 %vm299_vm0, %v6462_v21  ;;  %6629 = vpow2.f32 %v783_v62  ;;  %v787_v18 = vmul.f32 1.442695, %v720_v63  ;;  %v907_v23 = vmul.f32 1.442695, %v780_v7 }
  0xe2   : > { %2267 = vmatprep.mubr.f32.mxu0 %v10231_v0  ;;  %v659_v12 = vmax.f32 %v7406_v24, 0.0  ;;  %v1492_v17 = vmax.f32 %v7408_v25, 0.0  ;;  %v722_v19 = vmul.f32 -0.5, %v658_v1  ;;  %6631 = vpow2.f32 %v903_v6 }
  0xe3   : > { %v7413_v27 = vpop.f32.mrf.mxu0  ;;  %v7415_v28 = vpop.f32.mrf.mxu1  ;;  %v1555_v24 = vmul.f32 -0.5, %v1491_v8  ;;  %6633 = vpow2.f32 %v785_v10  ;;  %v789_v25 = vmul.f32 1.442695, %v721_v11  ;;  %v1618_v39 = vmul.f32 1.442695, %v1554_v16  ;;  %v6470_v8 = vld [vmem:[%s7103_s28 + $0x2e8] sm:$0xff] }
  0xe4   : > { %v660_v20 = vmax.f32 %v7413_v27, 0.0  ;;  %v723_v32 = vmul.f32 -0.5, %v659_v12  ;;  %6635 = vpow2.f32 %v905_v15 }
  0xe5   : > { %v7417_v29 = vpop.f32.mrf.mxu0  ;;  %v7419_v30 = vpop.f32.mrf.mxu1  ;;  %6497 = vmatmul.mubr.msk.f32.gmra.mxu0 %vm299_vm0, %v6463_v26  ;;  %v1493_v26 = vmax.f32 %v7415_v28, 0.0  ;;  %6637 = vpow2.f32 %v787_v18  ;;  %v791_v28 = vmul.f32 1.442695, %v722_v19 }
  0xe6   : > { %2273 = vmatprep.mubr.f32.mxu0 %v10231_v0  ;;  %v661_v35 = vmax.f32 %v7417_v29, 0.0  ;;  %v1494_v41 = vmax.f32 %v7419_v30, 0.0  ;;  %v724_v42 = vmul.f32 -0.5, %v660_v20  ;;  %6639 = vpow2.f32 %v907_v23 }
  0xe7   : > { %v7424_v33 = vpop.f32.mrf.mxu0  ;;  %v7426_v34 = vpop.f32.mrf.mxu1  ;;  %v1620_v29 = vmul.f32 1.442695, %v1555_v24  ;;  %v1557_v48 = vmul.f32 -0.5, %v1493_v26  ;;  %6641 = vpow2.f32 %v789_v25  ;;  %v793_v30 = vmul.f32 1.442695, %v723_v32  ;;  %v6471_v25 = vld [vmem:[%s7103_s28 + $0x2f0] sm:$0xff] }
  0xe8   : > { %v662_v45 = vmax.f32 %v7424_v33, 0.0  ;;  %v1495_v51 = vmax.f32 %v7426_v34, 0.0  ;;  %6643 = vpow2.f32 %v1618_v39  ;;  %v1558_v59 = vmul.f32 -0.5, %v1494_v41 }
  0xe9   : > { %v7428_v37 = vpop.f32.mrf.mxu0  ;;  %v7430_v38 = vpop.f32.mrf.mxu1  ;;  %6498 = vmatmul.mubr.msk.f32.gmra.mxu0 %vm299_vm0, %v6464_v31  ;;  %v6468_v31 = vld [vmem:[%s7103_s28 + $0x2d8] sm:$0xff]  ;;  %6645 = vpow2.f32 %v791_v28  ;;  %v795_v34 = vmul.f32 1.442695, %v724_v42 }
  0xea   : > { %2279 = vmatprep.mubr.f32.mxu0 %v10231_v0  ;;  %v663_v54 = vmax.f32 %v7428_v37, 0.0  ;;  %v1496_v60 = vmax.f32 %v7430_v38, 0.0  ;;  %v726_v61 = vmul.f32 -0.5, %v662_v45  ;;  %6647 = vpow2.f32 %v1620_v29  ;;  %v7511_v12 = vpop.eup %6625 }
  0xeb   : > { %v7435_v43 = vpop.f32.mrf.mxu0  ;;  %v7437_v44 = vpop.f32.mrf.mxu1  ;;  %v1624_v37 = vmul.f32 1.442695, %v1557_v48  ;;  %v1559_v6 = vmul.f32 -0.5, %v1495_v51  ;;  %6649 = vpow2.f32 %v793_v30  ;;  %10668 = vst [vmem:[#allocation6_spill] sm:$0xff] %v7511_v12  ;;  %v1626_v15 = vmul.f32 1.442695, %v1558_v59 }
  0xec   : > { %v664_v62 = vmax.f32 %v7435_v43, 0.0  ;;  %v1497_v7 = vmax.f32 %v7437_v44, 0.0  ;;  %v1560_v16 = vmul.f32 -0.5, %v1496_v60  ;;  %v799_v18 = vmul.f32 1.442695, %v726_v61  ;;  %v6472_v59 = vld [vmem:[%s7103_s28 + $0x2f8] sm:$0xff] }
  0xed   : > { %v7439_v49 = vpop.f32.mrf.mxu0  ;;  %v7441_v50 = vpop.f32.mrf.mxu1  ;;  %6499 = vmatmul.mubr.msk.f32.gmra.mxu0 %vm299_vm0, %v6465_v40  ;;  %v1556_v40 = vmul.f32 -0.5, %v1492_v17  ;;  %v1628_v26 = vmul.f32 1.442695, %v1559_v6 }
  0xee   : > { %2285 = vmatprep.mubr.f32.mxu0 %v10231_v0  ;;  %v665_v10 = vmax.f32 %v7439_v49, 0.0  ;;  %v1498_v44 = vmax.f32 %v7441_v50, 0.0  ;;  %v7514_v17 = vpop.eup %6627  ;;  %v728_v19 = vmul.f32 -0.5, %v664_v62  ;;  %v1630_v42 = vmul.f32 1.442695, %v1560_v16 }
  0xef   : > { %v7447_v57 = vpop.f32.mrf.mxu0  ;;  %v7449_v58 = vpop.f32.mrf.mxu1  ;;  %v1622_v56 = vmul.f32 1.442695, %v1556_v40  ;;  %10669 = vst [vmem:[#allocation7_spill] sm:$0xff] %v7514_v17 }
  0xf0   : > { %v666_v20 = vmax.f32 %v7447_v57, 0.0  ;;  %v7522_v24 = vpop.eup %6629  ;;  %v1499_v50 = vmax.f32 %v7449_v58, 0.0  ;;  %v1562_v45 = vmul.f32 -0.5, %v1498_v44  ;;  %v803_v48 = vmul.f32 1.442695, %v728_v19 }
  0xf1   : > { %v7453_v2 = vpop.f32.mrf.mxu0  ;;  %v7455_v5 = vpop.f32.mrf.mxu1  ;;  %6500 = vmatmul.mubr.msk.f32.gmra.mxu0 %vm299_vm0, %v6466_v53  ;;  %v725_v53 = vmul.f32 -0.5, %v661_v35  ;;  %6651 = vpow2.f32 %v1622_v56  ;;  %10670 = vst [vmem:[#allocation8_spill] sm:$0xff] %v7522_v24  ;;  %v729_v35 = vmul.f32 -0.5, %v665_v10 }
  0xf2   : > { %2291 = vmatprep.mubr.f32.mxu0 %v10231_v0  ;;  %6653 = vpow2.f32 %v795_v34  ;;  %v7527_v32 = vpop.eup %6631  ;;  %v667_v39 = vmax.f32 %v7453_v2, 0.0  ;;  %v1500_v58 = vmax.f32 %v7455_v5, 0.0  ;;  %v730_v51 = vmul.f32 -0.5, %v666_v20 }
  0xf3   : > { %v7462_v13 = vpop.f32.mrf.mxu0  ;;  %v7464_v14 = vpop.f32.mrf.mxu1  ;;  %v797_v38 = vmul.f32 1.442695, %v725_v53  ;;  %6655 = vpow2.f32 %v1624_v37  ;;  %10671 = vst [vmem:[#allocation9_spill] sm:$0xff] %v7527_v32  ;;  %v1563_v56 = vmul.f32 -0.5, %v1499_v50  ;;  %v1634_v6 = vmul.f32 1.442695, %v1562_v45 }
  0xf4   : > { %v7534_v28 = vpop.eup %6633  ;;  %v1501_v5 = vmax.f32 %v7464_v14, 0.0  ;;  %v731_v34 = vmul.f32 -0.5, %v667_v39 }
  0xf5   : > { %v7468_v21 = vpop.f32.mrf.mxu0  ;;  %v7470_v22 = vpop.f32.mrf.mxu1  ;;  %6501 = vmatmul.mubr.msk.f32.gmra.mxu0 %vm299_vm0, %v6467_v9  ;;  %v727_v9 = vmul.f32 -0.5, %v663_v54  ;;  %6657 = vpow2.f32 %v797_v38  ;;  %10672 = vst [vmem:[#allocation10_spill] sm:$0xff] %v7534_v28  ;;  %v807_v38 = vmul.f32 1.442695, %v730_v51  ;;  %v940_v28 = vld [vmem:[%s10228_s3 + $0xf8] sm:$0xff] }
  0xf6   : > { %2297 = vmatprep.mubr.f32.mxu0 %v10231_v0  ;;  %6659 = vpow2.f32 %v1626_v15  ;;  %v7537_v29 = vpop.eup %6635  ;;  %v1502_v10 = vmax.f32 %v7470_v22, 0.0  ;;  %v1565_v19 = vmul.f32 -0.5, %v1501_v5 }
  0xf7   : > { %v7477_v27 = vpop.f32.mrf.mxu0  ;;  %v7479_v36 = vpop.f32.mrf.mxu1  ;;  %v801_v57 = vmul.f32 1.442695, %v727_v9  ;;  %10673 = vst [vmem:[#allocation11_spill] sm:$0xff] %v7537_v29  ;;  %6661 = vpow2.f32 %v799_v18  ;;  %v1636_v18 = vmul.f32 1.442695, %v1563_v56 }
  0xf8   : > { %v7545_v53 = vpop.eup %6637  ;;  %6663 = vpow2.f32 %v1628_v26  ;;  %v1503_v45 = vmax.f32 %v7479_v36, 0.0 }
  0xf9   : > { %v7483_v46 = vpop.f32.mrf.mxu0  ;;  %v7485_v47 = vpop.f32.mrf.mxu1  ;;  %6502 = vmatmul.mubr.msk.f32.gmra.mxu0 %vm299_vm0, %v6468_v31  ;;  %v1561_v31 = vmul.f32 -0.5, %v1497_v7  ;;  %10674 = vst [vmem:[#allocation12_spill] sm:$0xff] %v7545_v53  ;;  %6665 = vpow2.f32 %v801_v57  ;;  %v1564_v7 = vmul.f32 -0.5, %v1500_v58  ;;  %v670_v57 = vmax.f32 %v7477_v27, 0.0 }
  0xfa   : > { %2303 = vmatprep.mubr.f32.mxu0 %v10231_v0  ;;  %v7550_v60 = vpop.eup %6639  ;;  %6667 = vpow2.f32 %v1630_v42  ;;  %v1566_v42 = vmul.f32 -0.5, %v1502_v10  ;;  %v1504_v27 = vmax.f32 %v7485_v47, 0.0 }
  0xfb   : > { %v7492_v33 = vpop.f32.mrf.mxu0  ;;  %v7494_v55 = vpop.f32.mrf.mxu1  ;;  %v1632_v54 = vmul.f32 1.442695, %v1561_v31  ;;  %10675 = vst [vmem:[#allocation13_spill] sm:$0xff] %v7550_v60  ;;  %6669 = vpow2.f32 %v803_v48  ;;  %v1638_v50 = vmul.f32 1.442695, %v1564_v7 }
  0xfc   : > { %v7556_v37 = vpop.eup %6641  ;;  %v1642_v7 = vmul.f32 1.442695, %v1566_v42 }
  0xfd   : > { %v7498_v63 = vpop.f32.mrf.mxu0  ;;  %v7500_v1 = vpop.f32.mrf.mxu1  ;;  %6503 = vmatmul.mubr.msk.f32.gmra.mxu0 %vm299_vm0, %v6469_v52  ;;  %v668_v52 = vmax.f32 %v7462_v13, 0.0  ;;  %v805_v13 = vmul.f32 1.442695, %v729_v35  ;;  %10676 = vst [vmem:[#allocation14_spill] sm:$0xff] %v7556_v37  ;;  %6671 = vpow2.f32 %v1632_v54  ;;  %v671_v54 = vmax.f32 %v7483_v46, 0.0 }
  0xfe   : > { %2309 = vmatprep.mubr.f32.mxu0 %v10231_v0  ;;  %v7559_v14 = vpop.eup %6643  ;;  %v672_v46 = vmax.f32 %v7492_v33, 0.0 }
  0xff   : > { %v7507_v43 = vpop.f32.mrf.mxu0  ;;  %v7509_v11 = vpop.f32.mrf.mxu1  ;;  %10677 = vst [vmem:[#allocation15_spill] sm:$0xff] %v7559_v14  ;;  %v732_v9 = vmul.f32 -0.5, %v668_v52  ;;  %6673 = vpow2.f32 %v805_v13  ;;  %v1640_v52 = vmul.f32 1.442695, %v1565_v19  ;;  %v735_v47 = vmul.f32 -0.5, %v671_v54 }
 0x100   : > { %v7567_v44 = vpop.eup %6645  ;;  %6675 = vpow2.f32 %v1634_v6  ;;  %v1568_v19 = vmul.f32 -0.5, %v1504_v27  ;;  %v736_v54 = vmul.f32 -0.5, %v672_v46 }
 0x101   : > { %v7517_v49 = vpop.f32.mrf.mxu0  ;;  %v7519_v23 = vpop.f32.mrf.mxu1  ;;  %6504 = vmatmul.mubr.msk.f32.gmra.mxu0 %vm299_vm0, %v6470_v8  ;;  %v669_v8 = vmax.f32 %v7468_v21, 0.0  ;;  %v809_v21 = vmul.f32 1.442695, %v731_v34  ;;  %6677 = vpow2.f32 %v807_v38  ;;  %v811_v39 = vmul.f32 1.442695, %v732_v9 }
 0x102   : > { %2315 = vmatprep.mubr.f32.mxu0 %v10231_v0  ;;  %v7569_v20 = vpop.eup %6647  ;;  %6679 = vpow2.f32 %v1636_v18  ;;  %v734_v34 = vmul.f32 -0.5, %v670_v57 }
 0x103   : > { %v7530_v40 = vpop.f32.mrf.mxu0  ;;  %v7532_v41 = vpop.f32.mrf.mxu1  ;;  %10678 = vst [vmem:[#allocation16_spill] sm:$0xff] %v7569_v20 }
 0x104   : > { %v7575_v22 = vpop.eup %6649  ;;  %6681 = vpow2.f32 %v809_v21  ;;  %v1505_v21 = vmax.f32 %v7494_v55, 0.0  ;;  %v815_v33 = vmul.f32 1.442695, %v734_v34 }
 0x105   : > { %v7540_v2 = vpop.f32.mrf.mxu0  ;;  %v7542_v30 = vpop.f32.mrf.mxu1  ;;  %6505 = vmatmul.mubr.msk.f32.gmra.mxu0 %vm299_vm0, %v6471_v25  ;;  %v733_v25 = vmul.f32 -0.5, %v669_v8  ;;  %v1567_v8 = vmul.f32 -0.5, %v1503_v45 }
 0x106   : > { %2321 = vmatprep.mubr.f32.mxu0 %v10231_v0  ;;  %v7578_v35 = vpop.eup %6651  ;;  %6683 = vpow2.f32 %v1638_v50  ;;  %v1569_v20 = vmul.f32 -0.5, %v1505_v21  ;;  %v674_v21 = vmax.f32 %v7507_v43, 0.0 }
 0x107   : > { %v7552_v61 = vpop.f32.mrf.mxu0  ;;  %v7554_v62 = vpop.f32.mrf.mxu1  ;;  %10679 = vst [vmem:[#allocation17_spill] sm:$0xff] %v7578_v35  ;;  %v813_v36 = vmul.f32 1.442695, %v733_v25 }
 0x108   : > { %v7585_v51 = vpop.eup %6653  ;;  %6685 = vpow2.f32 %v811_v39  ;;  %v1648_v32 = vmul.f32 1.442695, %v1569_v20 }
 0x109   : > { %v7562_v15 = vpop.f32.mrf.mxu0  ;;  %v7564_v16 = vpop.f32.mrf.mxu1  ;;  %6506 = vmatmul.mubr.msk.f32.gmra.mxu0 %vm299_vm0, %v6472_v59 }
 0x10a   : > { %v7588_v56 = vpop.eup %6655  ;;  %6687 = vpow2.f32 %v1640_v52  ;;  %v1644_v52 = vmul.f32 1.442695, %v1567_v8 }
 0x10b   : > { %v7571_v26 = vpop.f32.mrf.mxu0  ;;  %v7573_v31 = vpop.f32.mrf.mxu1  ;;  %10680 = vst [vmem:[#allocation18_spill] sm:$0xff] %v7588_v56 }
 0x10c   : > { %v7593_v13 = vpop.eup %6657  ;;  %6689 = vpow2.f32 %v813_v36  ;;  %v680_v3 = vmax.f32 %v7571_v26, 0.0  ;;  %v678_v26 = vmax.f32 %v7552_v61, 0.0  ;;  %v676_v61 = vmax.f32 %v7530_v40, 0.0 }
 0x10d   : > { %v7581_v58 = vpop.f32.mrf.mxu0  ;;  %v7583_v48 = vpop.f32.mrf.mxu1 }
 0x10e   : > { %v7595_v6 = vpop.eup %6659  ;;  %6691 = vpow2.f32 %v1642_v7  ;;  %v681_v4 = vmax.f32 %v7581_v58, 0.0  ;;  %v679_v7 = vmax.f32 %v7562_v15, 0.0  ;;  %v744_v17 = vmul.f32 -0.5, %v680_v3 }
 0x10f   : > { %v548_v5 = vpop.f32.mrf.mxu0  ;;  %v7591_v59 = vpop.f32.mrf.mxu1  ;;  %10681 = vst [vmem:[#allocation19_spill] sm:$0xff] %v7595_v6  ;;  %v738_v3 = vmul.f32 -0.5, %v674_v21 }
 0x110   : > { %v7600_v10 = vpop.eup %6661  ;;  %v682_v50 = vmax.f32 %v548_v5, 0.0  ;;  %6693 = vpow2.f32 %v815_v33  ;;  %v745_v15 = vmul.f32 -0.5, %v681_v4  ;;  %v677_v33 = vmax.f32 %v7540_v2, 0.0 }
 0x111   : > { %v552_v38 = vpop.f32.mrf.mxu0  ;;  %v7598_v9 = vpop.f32.mrf.mxu1 }
 0x112   : > { %v7602_v18 = vpop.eup %6663  ;;  %v683_v25 = vmax.f32 %v552_v38, 0.0  ;;  %v817_v38 = vmul.f32 1.442695, %v735_v47  ;;  %v746_v8 = vmul.f32 -0.5, %v682_v50  ;;  %v673_v47 = vmax.f32 %v7498_v63, 0.0 }
 0x113   : > { %10682 = vst [vmem:[#allocation20_spill] sm:$0xff] %v7602_v18  ;;  %v554_v57 = vpop.f32.mrf.mxu0  ;;  %v7605_v39 = vpop.f32.mrf.mxu1  ;;  %6695 = vpow2.f32 %v1644_v52  ;;  %v743_v52 = vmul.f32 -0.5, %v679_v7 }
 0x114   : > { %v7607_v42 = vpop.eup %6665  ;;  %v684_v45 = vmax.f32 %v554_v57, 0.0  ;;  %v747_v14 = vmul.f32 -0.5, %v683_v25  ;;  %v1646_v57 = vmul.f32 1.442695, %v1568_v19  ;;  %v819_v19 = vmul.f32 1.442695, %v736_v54 }
 0x115   : > { %v7609_v0 = vpop.eup %6667  ;;  %v7612_v27 = vpop.f32.mrf.mxu0  ;;  %6697 = vpow2.f32 %v817_v38  ;;  %v839_v54 = vmul.f32 1.442695, %v746_v8  ;;  %v742_v38 = vmul.f32 -0.5, %v678_v26  ;;  %v741_v8 = vmul.f32 -0.5, %v677_v33 }
 0x116   : > { %10683 = vst [vmem:[#allocation21_spill] sm:$0xff] %v7609_v0  ;;  %v7614_v55 = vpop.f32.mrf.mxu1  ;;  %v7616_v5 = vpop.eup %6669  ;;  %v748_v36 = vmul.f32 -0.5, %v684_v45  ;;  %v841_v63 = vmul.f32 1.442695, %v747_v14  ;;  %6699 = vpow2.f32 %v1646_v57  ;;  %v675_v0 = vmax.f32 %v7517_v49, 0.0 }
 0x117   : > { %v7619_v34 = vpop.eup %6671  ;;  %v7622_v46 = vpop.f32.mrf.mxu0  ;;  %v837_v14 = vmul.f32 1.442695, %v745_v15  ;;  %v740_v49 = vmul.f32 -0.5, %v676_v61  ;;  %v833_v26 = vmul.f32 1.442695, %v743_v52  ;;  %v1506_v15 = vmax.f32 %v7500_v1, 0.0 }
 0x118   : > { %10684 = vst [vmem:[#allocation22_spill] sm:$0xff] %v7619_v34  ;;  %v7624_v58 = vpop.f32.mrf.mxu1  ;;  %v7626_v35 = vpop.eup %6673  ;;  %v843_v25 = vmul.f32 1.442695, %v748_v36  ;;  %v835_v34 = vmul.f32 1.442695, %v744_v17 }
 0x119   : > { %v7630_v45 = vpop.eup %6675  ;;  %v7633_v50 = vpop.f32.mrf.mxu0  ;;  %v823_v17 = vmul.f32 1.442695, %v738_v3 }
 0x11a   : > { %10685 = vst [vmem:[#allocation23_spill] sm:$0xff] %v7630_v45  ;;  %v1389_v56 = vpop.f32.mrf.mxu1  ;;  %v7635_v6 = vpop.eup %6677  ;;  %6701 = vpow2.f32 %v843_v25  ;;  %v1519_v25 = vmax.f32 %v7624_v58, 0.0 }
 0x11b   : > { %v7638_v18 = vpop.eup %6679  ;;  %v7641_v36 = vpop.f32.mrf.mxu0  ;;  %6703 = vpow2.f32 %v819_v19  ;;  %v1520_v20 = vmax.f32 %v1389_v56, 0.0  ;;  %v739_v56 = vmul.f32 -0.5, %v675_v0 }
 0x11c   : > { %10686 = vst [vmem:[#allocation24_spill] sm:$0xff] %v7638_v18  ;;  %v1391_v4 = vpop.f32.mrf.mxu1  ;;  %v7643_v43 = vpop.eup %6681  ;;  %6705 = vpow2.f32 %v841_v63  ;;  %v1518_v63 = vmax.f32 %v7614_v55, 0.0  ;;  %v1583_v12 = vmul.f32 -0.5, %v1519_v25  ;;  %v1570_v55 = vmul.f32 -0.5, %v1506_v15 }
 0x11d   : > { %v7646_v2 = vpop.eup %6683  ;;  %v1521_v57 = vmax.f32 %v1391_v4, 0.0  ;;  %v7648_v29 = vpop.f32.mrf.mxu0  ;;  %6707 = vpow2.f32 %v839_v54  ;;  %v831_v4 = vmul.f32 1.442695, %v742_v38  ;;  %v829_v54 = vmul.f32 1.442695, %v741_v8 }
 0x11e   : > { %10687 = vst [vmem:[#allocation25_spill] sm:$0xff] %v7646_v2  ;;  %v7650_v40 = vpop.f32.mrf.mxu1  ;;  %v7652_v7 = vpop.eup %6685  ;;  %6709 = vpow2.f32 %v1648_v32  ;;  %v1517_v32 = vmax.f32 %v7605_v39, 0.0  ;;  %v1584_v1 = vmul.f32 -0.5, %v1520_v20  ;;  %v737_v38 = vmul.f32 -0.5, %v673_v47 }
 0x11f   : > { %v7654_v60 = vpop.eup %6687  ;;  %v7657_v19 = vpop.f32.mrf.mxu0  ;;  %v1585_v45 = vmul.f32 -0.5, %v1521_v57  ;;  %6711 = vpow2.f32 %v837_v14  ;;  %v827_v57 = vmul.f32 1.442695, %v740_v49  ;;  %v1516_v14 = vmax.f32 %v7598_v9, 0.0 }
 0x120   : > { %10688 = vst [vmem:[#allocation26_spill] sm:$0xff] %v7654_v60  ;;  %v7659_v21 = vpop.f32.mrf.mxu1  ;;  %v7662_v33 = vpop.eup %6689  ;;  %6713 = vpow2.f32 %v835_v34  ;;  %v825_v34 = vmul.f32 1.442695, %v739_v56  ;;  %v1515_v39 = vmax.f32 %v7591_v59, 0.0  ;;  %v1582_v8 = vmul.f32 -0.5, %v1518_v63 }
 0x121   : > { %v7665_v61 = vpop.f32.mrf.mxu0  ;;  %v7669_v58 = vpop.eup %6691  ;;  %6715 = vpow2.f32 %v833_v26  ;;  %v1680_v18 = vmul.f32 1.442695, %v1585_v45  ;;  %v1507_v26 = vmax.f32 %v7509_v11, 0.0  ;;  %v1581_v25 = vmul.f32 -0.5, %v1517_v32 }
 0x122   : > { %v7667_v52 = vpop.f32.mrf.mxu1  ;;  %10689 = vst [vmem:[#allocation27_spill] sm:$0xff] %v7669_v58  ;;  %6717 = vpow2.f32 %v831_v4  ;;  %v7677_v24 = vpop.eup %6693  ;;  %v1678_v15 = vmul.f32 1.442695, %v1584_v1  ;;  %v821_v45 = vmul.f32 1.442695, %v737_v38  ;;  %v1514_v4 = vmax.f32 %v7583_v48, 0.0 }
 0x123   : > { %v7672_v3 = vpop.f32.mrf.mxu0  ;;  %6719 = vpow2.f32 %v823_v17  ;;  %v7684_v49 = vpop.eup %6695  ;;  %v1676_v17 = vmul.f32 1.442695, %v1583_v12  ;;  %v1508_v2 = vmax.f32 %v7519_v23, 0.0  ;;  %v1513_v11 = vmax.f32 %v7573_v31, 0.0  ;;  %v939_v58 = vld [vmem:[%s10228_s3 + $0xf0] sm:$0xff] }
 0x124   : > { %v7674_v0 = vpop.f32.mrf.mxu1  ;;  %10690 = vst [vmem:[#allocation28_spill] sm:$0xff] %v7684_v49  ;;  %6721 = vpow2.f32 %v829_v54  ;;  %v7687_v9 = vpop.eup %6697  ;;  %v1580_v54 = vmul.f32 -0.5, %v1516_v14  ;;  %v1509_v1 = vmax.f32 %v7532_v41, 0.0  ;;  %v1579_v38 = vmul.f32 -0.5, %v1515_v39 }
 0x125   : > { %v7680_v47 = vpop.f32.mrf.mxu0  ;;  %6723 = vpow2.f32 %v827_v57  ;;  %v7694_v63 = vpop.eup %6699  ;;  %v1674_v57 = vmul.f32 1.442695, %v1582_v8  ;;  %v1571_v23 = vmul.f32 -0.5, %v1507_v26  ;;  %v1512_v31 = vmax.f32 %v7564_v16, 0.0 }
 0x126   : > { %v7682_v20 = vpop.f32.mrf.mxu1  ;;  %6725 = vpow2.f32 %v1680_v18  ;;  %v1672_v18 = vmul.f32 1.442695, %v1581_v25  ;;  %v1511_v41 = vmax.f32 %v7554_v62, 0.0  ;;  %v1578_v39 = vmul.f32 -0.5, %v1514_v4  ;;  %v938_v62 = vld [vmem:[%s10228_s3 + $0xe8] sm:$0xff] }
 0x127   : > { %v7690_v59 = vpop.f32.mrf.mxu0  ;;  %v6702_v32 = vpop.eup %6701  ;;  %6727 = vpow2.f32 %v825_v34  ;;  %v1650_v34 = vmul.f32 1.442695, %v1570_v55  ;;  %v1577_v26 = vmul.f32 -0.5, %v1513_v11  ;;  %v1670_v16 = vmul.f32 1.442695, %v1580_v54 }
 0x128   : > { %v7692_v56 = vpop.f32.mrf.mxu1  ;;  %v7706_v60 = vpop.eup %6703  ;;  %6729 = vpow2.f32 %v1678_v15  ;;  %v7717_v25 = vmul.f32 %v6702_v32, %v940_v28  ;;  %v1573_v15 = vmul.f32 -0.5, %v1509_v1  ;;  %v1510_v4 = vmax.f32 %v7542_v30, 0.0  ;;  %v937_v32 = vld [vmem:[%s10228_s3 + $0xe0] sm:$0xff] }
 0x129   : > { %v7699_v48 = vpop.f32.mrf.mxu0  ;;  %v6706_v14 = vpop.eup %6705  ;;  %6731 = vpow2.f32 %v1676_v17  ;;  %v1668_v17 = vmul.f32 1.442695, %v1579_v38  ;;  %v1652_v11 = vmul.f32 1.442695, %v1571_v23  ;;  %v1576_v54 = vmul.f32 -0.5, %v1512_v31  ;;  %v936_v23 = vld [vmem:[%s10228_s3 + $0xd8] sm:$0xff] }
 0x12a   : > { %v7701_v12 = vpop.f32.mrf.mxu1  ;;  %v6708_v37 = vpop.eup %6707  ;;  %6733 = vpow2.f32 %v821_v45  ;;  %10692 = vst [vmem:[#allocation30_spill] sm:$0xff] %v7717_v25  ;;  %3248 = vmatprep.subr.mxu1 %v7717_v25  ;;  %v7730_v28 = vmul.f32 %v6706_v14, %v939_v58  ;;  %v1575_v30 = vmul.f32 -0.5, %v1511_v41  ;;  %v1666_v38 = vmul.f32 1.442695, %v1578_v39 }
 0x12b   : > { %v7710_v8 = vpop.f32.mrf.mxu0  ;;  %v7722_v55 = vpop.eup %6709  ;;  %6735 = vpow2.f32 %v1674_v57  ;;  %v7735_v57 = vmul.f32 %v6708_v37, %v938_v62  ;;  %v1572_v14 = vmul.f32 -0.5, %v1508_v2  ;;  %v1664_v25 = vmul.f32 1.442695, %v1577_v26  ;;  %v934_v2 = vld [vmem:[%s10228_s3 + $0xc8] sm:$0xff] }
 0x12c   : > { %v7712_v53 = vpop.f32.mrf.mxu1  ;;  %v6712_v45 = vpop.eup %6711  ;;  %6737 = vpow2.f32 %v1672_v18  ;;  %10694 = vst [vmem:[#allocation32_spill] sm:$0xff] %v7730_v28  ;;  %3249 = vmatpush1.msra.mxu1 %v7730_v28  ;;  %v1656_v41 = vmul.f32 1.442695, %v1573_v15  ;;  %v1574_v39 = vmul.f32 -0.5, %v1510_v4  ;;  %v685_v15 = vmax.f32 %v7612_v27, 0.0 }
 0x12d   : > { %10691 = vst [vmem:[#allocation29_spill] sm:$0xff] %v7712_v53  ;;  %v7725_v53 = vpop.f32.mrf.mxu0  ;;  %v6714_v1 = vpop.eup %6713  ;;  %6739 = vpow2.f32 %v1650_v34  ;;  %10695 = vst [vmem:[#allocation33_spill] sm:$0xff] %v7735_v57  ;;  %v935_v34 = vld [vmem:[%s10228_s3 + $0xd0] sm:$0xff]  ;;  %3250 = vmatprep.subr.mxu1 %v7735_v57  ;;  %v7749_v62 = vmul.f32 %v6712_v45, %v937_v32  ;;  %v1660_v57 = vmul.f32 1.442695, %v1575_v30  ;;  %v686_v45 = vmax.f32 %v7622_v46, 0.0 }
 0x12e   : > { %v7727_v49 = vpop.f32.mrf.mxu1  ;;  %v6716_v58 = vpop.eup %6715  ;;  %6741 = vpow2.f32 %v1670_v16  ;;  %v7761_v4 = vmul.f32 %v6714_v1, %v936_v23  ;;  %v688_v1 = vmax.f32 %v7641_v36, 0.0  ;;  %v932_v30 = vld [vmem:[%s10228_s3 + $0xb8] sm:$0xff]  ;;  %v1658_v23 = vmul.f32 1.442695, %v1574_v39 }
 0x12f   : > { %10693 = vst [vmem:[#allocation31_spill] sm:$0xff] %v7727_v49  ;;  %v7740_v31 = vpop.f32.mrf.mxu0  ;;  %v6718_v37 = vpop.eup %6717  ;;  %6743 = vpow2.f32 %v1668_v17  ;;  %10697 = vst [vmem:[#allocation35_spill] sm:$0xff] %v7749_v62  ;;  %3251 = vmatpush1.msra.mxu1 %v7749_v62  ;;  %v7765_v32 = vmul.f32 %v6716_v58, %v935_v34  ;;  %v1654_v34 = vmul.f32 1.442695, %v1572_v14  ;;  %v930_v14 = vld [vmem:[%s10228_s3 + $0xa8] sm:$0xff] }
 0x130   : > { %v7742_v18 = vpop.f32.mrf.mxu1  ;;  %v7758_v28 = vpop.eup %6719  ;;  %6745 = vpow2.f32 %v1652_v11  ;;  %10699 = vst [vmem:[#allocation37_spill] sm:$0xff] %v7761_v4  ;;  %3252 = vmatprep.subr.mxu1 %v7761_v4  ;;  %v7777_v46 = vmul.f32 %v6718_v37, %v934_v2  ;;  %v749_v37 = vmul.f32 -0.5, %v685_v15  ;;  %v689_v4 = vmax.f32 %v7648_v29, 0.0 }
 0x131   : > { %10696 = vst [vmem:[#allocation34_spill] sm:$0xff] %v7742_v18  ;;  %v7754_v26 = vpop.f32.mrf.mxu0  ;;  %v1662_v18 = vmul.f32 1.442695, %v1576_v54  ;;  %v6722_v17 = vpop.eup %6721  ;;  %6747 = vpow2.f32 %v1666_v38  ;;  %10700 = vst [vmem:[#allocation38_spill] sm:$0xff] %v7765_v32  ;;  %v687_v54 = vmax.f32 %v7633_v50, 0.0  ;;  %3253 = vmatpush1.msra.mxu1 %v7765_v32  ;;  %v750_v32 = vmul.f32 -0.5, %v686_v45 }
 0x132   : > { %v7756_v16 = vpop.f32.mrf.mxu1  ;;  %v6724_v27 = vpop.eup %6723  ;;  %6749 = vpow2.f32 %v1664_v25  ;;  %10702 = vst [vmem:[#allocation40_spill] sm:$0xff] %v7777_v46  ;;  %v6408_v25 = vld [vmem:[%s10228_s3 + $0x2f8] sm:$0xff]  ;;  %3254 = vmatprep.subr.mxu1 %v7777_v46  ;;  %v1522_v45 = vmax.f32 %v7650_v40, 0.0  ;;  %v929_v40 = vld [vmem:[%s10228_s3 + $0xa0] sm:$0xff] }
 0x133   : > { %10698 = vst [vmem:[#allocation36_spill] sm:$0xff] %v7756_v16  ;;  %v933_v16 = vld [vmem:[%s10228_s3 + $0xc0] sm:$0xff]  ;;  %v7770_v49 = vpop.f32.mrf.mxu0  ;;  %v6726_v38 = vpop.eup %6725  ;;  %6751 = vpow2.f32 %v1656_v41  ;;  %v931_v41 = vld [vmem:[%s10228_s3 + $0xb0] sm:$0xff]  ;;  %v7797_v62 = vmul.f32 %v6724_v27, %v932_v30  ;;  %v751_v46 = vmul.f32 -0.5, %v687_v54  ;;  %v6406_v27 = vld [vmem:[%s10228_s3 + $0x2e8] sm:$0xff] }
 0x134   : > { %v7772_v11 = vpop.f32.mrf.mxu1  ;;  %v6728_v58 = vpop.eup %6727  ;;  %6753 = vpow2.f32 %v1662_v18  ;;  %v7791_v2 = vmul.f32 %v6722_v17, %v933_v16  ;;  %v6407_v18 = vld [vmem:[%s10228_s3 + $0x2f0] sm:$0xff]  ;;  %v7811_v29 = vmul.f32 %v6726_v38, %v6408_v25  ;;  %v845_v25 = vmul.f32 1.442695, %v749_v37 }
 0x135   : > { %10701 = vst [vmem:[#allocation39_spill] sm:$0xff] %v7772_v11  ;;  %v7786_v50 = vpop.f32.mrf.mxu0  ;;  %v6730_v39 = vpop.eup %6729  ;;  %6755 = vpow2.f32 %v1660_v57  ;;  %10705 = vst [vmem:[#allocation43_spill] sm:$0xff] %v7797_v62  ;;  %v752_v57 = vmul.f32 -0.5, %v688_v1  ;;  %v847_v37 = vmul.f32 1.442695, %v750_v32  ;;  %v927_v32 = vld [vmem:[%s10228_s3 + $0x90] sm:$0xff] }
 0x136   : > { %v7788_v36 = vpop.f32.mrf.mxu1  ;;  %10704 = vst [vmem:[#allocation42_spill] sm:$0xff] %v7791_v2  ;;  %v6732_v17 = vpop.eup %6731  ;;  %3255 = vmatpush1.msra.mxu1 %v7791_v2  ;;  %10707 = vst [vmem:[#allocation45_spill] sm:$0xff] %v7811_v29  ;;  %6757 = vpow2.f32 %v1658_v23  ;;  %v1523_v2 = vmax.f32 %v7659_v21, 0.0  ;;  %3319 = vmatprep.subr.mxu0 %v7811_v29  ;;  %v7829_v23 = vmul.f32 %v6730_v39, %v6407_v18  ;;  %v849_v29 = vmul.f32 1.442695, %v751_v46 }
 0x137   : > { %10703 = vst [vmem:[#allocation41_spill] sm:$0xff] %v7788_v36  ;;  %v7805_v16 = vpop.f32.mrf.mxu0  ;;  %v6734_v30 = vpop.eup %6733  ;;  %v690_v36 = vmax.f32 %v7657_v19, 0.0  ;;  %3256 = vmatprep.subr.mxu1 %v7797_v62  ;;  %v7832_v19 = vmul.f32 %v7758_v28, %v930_v14  ;;  %6759 = vpow2.f32 %v1654_v34  ;;  %v7841_v21 = vmul.f32 %v6732_v17, %v6406_v27  ;;  %v6404_v28 = vld [vmem:[%s10228_s3 + $0x2d8] sm:$0xff] }
 0x138   : > { %v7807_v15 = vpop.f32.mrf.mxu1  ;;  %v6736_v38 = vpop.eup %6735  ;;  %10711 = vst [vmem:[#allocation49_spill] sm:$0xff] %v7829_v23  ;;  %v851_v11 = vmul.f32 1.442695, %v752_v57  ;;  %3320 = vmatpush1.msra.mxu0 %v7829_v23  ;;  %v691_v27 = vmax.f32 %v7665_v61, 0.0  ;;  %v6403_v57 = vld [vmem:[%s10228_s3 + $0x2d0] sm:$0xff]  ;;  %6761 = vpow2.f32 %v845_v25 }
 0x139   : > { %10706 = vst [vmem:[#allocation44_spill] sm:$0xff] %v7807_v15  ;;  %v7818_v15 = vmul.f32 %v6728_v58, %v931_v41  ;;  %v7823_v54 = vpop.f32.mrf.mxu0  ;;  %10712 = vst [vmem:[#allocation50_spill] sm:$0xff] %v7832_v19  ;;  %v6405_v58 = vld [vmem:[%s10228_s3 + $0x2e0] sm:$0xff]  ;;  %v928_v41 = vld [vmem:[%s10228_s3 + $0x98] sm:$0xff]  ;;  %v6738_v62 = vpop.eup %6737  ;;  %v754_v17 = vmul.f32 -0.5, %v690_v36  ;;  %3321 = vmatprep.subr.mxu0 %v7841_v21  ;;  %6763 = vpow2.f32 %v847_v37 }
 0x13a   : > { %10709 = vst [vmem:[#allocation47_spill] sm:$0xff] %v7823_v54  ;;  %v7825_v1 = vpop.f32.mrf.mxu1  ;;  %10713 = vst [vmem:[#allocation51_spill] sm:$0xff] %v7841_v21  ;;  %v7850_v14 = vpop.eup %6739  ;;  %v1586_v54 = vmul.f32 -0.5, %v1522_v45  ;;  %v7864_v46 = vmul.f32 %v7706_v60, %v928_v41  ;;  %v926_v45 = vld [vmem:[%s10228_s3 + $0x88] sm:$0xff]  ;;  %v7878_v60 = vmul.f32 %v6738_v62, %v6404_v28  ;;  %6765 = vpow2.f32 %v849_v29 }
 0x13b   : > { %10708 = vst [vmem:[#allocation46_spill] sm:$0xff] %v7818_v15  ;;  %10710 = vst [vmem:[#allocation48_spill] sm:$0xff] %v7825_v1  ;;  %v753_v1 = vmul.f32 -0.5, %v689_v4  ;;  %3257 = vmatpush1.msra.mxu1 %v7818_v15  ;;  %v7846_v39 = vpop.f32.mrf.mxu0  ;;  %v7854_v4 = vmul.f32 %v6734_v30, %v929_v40  ;;  %v6742_v34 = vpop.eup %6741  ;;  %v7861_v15 = vmul.f32 %v6736_v38, %v6405_v58  ;;  %v1587_v40 = vmul.f32 -0.5, %v1523_v2  ;;  %v6402_v58 = vld [vmem:[%s10228_s3 + $0x2c8] sm:$0xff] }
 0x13c   : > { %v7848_v18 = vpop.f32.mrf.mxu1  ;;  %3258 = vmatprep.subr.mxu1 %v7832_v19  ;;  %10716 = vst [vmem:[#allocation54_spill] sm:$0xff] %v7864_v46  ;;  %v6744_v61 = vpop.eup %6743  ;;  %v1524_v38 = vmax.f32 %v7667_v52, 0.0  ;;  %10717 = vst [vmem:[#allocation55_spill] sm:$0xff] %v7878_v60  ;;  %v7888_v2 = vmul.f32 %v7687_v9, %v927_v32  ;;  %v925_v52 = vld [vmem:[%s10228_s3 + $0x80] sm:$0xff]  ;;  %v1682_v23 = vmul.f32 1.442695, %v1586_v54  ;;  %v7901_v37 = vmul.f32 %v7677_v24, %v926_v45 }
 0x13d   : > { %10714 = vst [vmem:[#allocation52_spill] sm:$0xff] %v7854_v4  ;;  %10715 = vst [vmem:[#allocation53_spill] sm:$0xff] %v7861_v15  ;;  %v7872_v30 = vpop.f32.mrf.mxu0  ;;  %3259 = vmatpush1.msra.mxu1 %v7854_v4  ;;  %v7883_v41 = vpop.eup %6745  ;;  %v853_v21 = vmul.f32 1.442695, %v753_v1  ;;  %3322 = vmatpush1.msra.mxu0 %v7861_v15  ;;  %v7898_v1 = vmul.f32 %v6742_v34, %v6403_v57  ;;  %v6401_v9 = vld [vmem:[%s10228_s3 + $0x2c0] sm:$0xff]  ;;  %v924_v32 = vld [vmem:[%s10228_s3 + $0x78] sm:$0xff]  ;;  %6767 = vpow2.f32 %v851_v11 }
 0x13e   : > { %v7874_v36 = vpop.f32.mrf.mxu1  ;;  %3260 = vmatprep.subr.mxu1 %v7864_v46  ;;  %10718 = vst [vmem:[#allocation56_spill] sm:$0xff] %v7888_v2  ;;  %v6748_v28 = vpop.eup %6747  ;;  %3323 = vmatprep.subr.mxu0 %v7878_v60  ;;  %10720 = vst [vmem:[#allocation58_spill] sm:$0xff] %v7901_v37  ;;  %v855_v46 = vmul.f32 1.442695, %v754_v17  ;;  %v755_v29 = vmul.f32 -0.5, %v691_v27  ;;  %v7910_v54 = vmul.f32 %v6744_v61, %v6402_v58  ;;  %v6400_v24 = vld [vmem:[%s10228_s3 + $0x2b8] sm:$0xff] }
 0x13f   : > { %v7893_v62 = vpop.f32.mrf.mxu0  ;;  %10719 = vst [vmem:[#allocation57_spill] sm:$0xff] %v7898_v1  ;;  %v6750_v15 = vpop.eup %6749  ;;  %3261 = vmatpush1.msra.mxu1 %v7888_v2  ;;  %v1684_v60 = vmul.f32 1.442695, %v1587_v40  ;;  %v1588_v4 = vmul.f32 -0.5, %v1524_v38  ;;  %v692_v11 = vmax.f32 %v7672_v3, 0.0  ;;  %3324 = vmatpush1.msra.mxu0 %v7898_v1  ;;  %v7925_v17 = vmul.f32 %v7662_v33, %v925_v52  ;;  %v923_v27 = vld [vmem:[%s10228_s3 + $0x70] sm:$0xff] }
 0x140   : > { %v7895_v25 = vpop.f32.mrf.mxu1  ;;  %10721 = vst [vmem:[#allocation59_spill] sm:$0xff] %v7910_v54  ;;  %v7919_v45 = vpop.eup %6751  ;;  %3262 = vmatprep.subr.mxu1 %v7901_v37  ;;  %6769 = vpow2.f32 %v853_v21  ;;  %v1525_v58 = vmax.f32 %v7674_v0, 0.0  ;;  %3325 = vmatprep.subr.mxu0 %v7910_v54  ;;  %v7932_v40 = vmul.f32 %v6748_v28, %v6401_v9  ;;  %v7935_v3 = vmul.f32 %v7652_v7, %v924_v32  ;;  %v6399_v33 = vld [vmem:[%s10228_s3 + $0x2b0] sm:$0xff]  ;;  %v922_v38 = vld [vmem:[%s10228_s3 + $0x68] sm:$0xff]  ;;  %v10764_v37 = vld [vmem:[#allocation31_spill] sm:$0xff] }
 0x141   : > { %v7915_v34 = vpop.f32.mrf.mxu0  ;;  %10722 = vst [vmem:[#allocation60_spill] sm:$0xff] %v7925_v17  ;;  %v6754_v61 = vpop.eup %6753  ;;  %6771 = vpow2.f32 %v1682_v23  ;;  %v693_v28 = vmax.f32 %v7680_v47, 0.0  ;;  %v1526_v9 = vmax.f32 %v7682_v20, 0.0  ;;  %3263 = vmatpush1.msra.mxu1 %v7925_v17  ;;  %v7950_v7 = vmul.f32 %v6750_v15, %v6400_v24  ;;  %v6398_v32 = vld [vmem:[%s10228_s3 + $0x2a8] sm:$0xff]  ;;  %v921_v47 = vld [vmem:[%s10228_s3 + $0x60] sm:$0xff]  ;;  %v972_v19 = vld [vmem:[%s10228_s3 + $0x1f8] sm:$0xff] }
 0x142   : > { %v7917_v57 = vpop.f32.mrf.mxu1  ;;  %10723 = vst [vmem:[#allocation61_spill] sm:$0xff] %v7932_v40  ;;  %10724 = vst [vmem:[#allocation62_spill] sm:$0xff] %v7935_v3  ;;  %v6756_v0 = vpop.eup %6755  ;;  %6773 = vpow2.f32 %v855_v46  ;;  %v857_v54 = vmul.f32 1.442695, %v755_v29  ;;  %3326 = vmatpush1.msra.mxu0 %v7932_v40  ;;  %3264 = vmatprep.subr.mxu1 %v7935_v3  ;;  %v7958_v23 = vmul.f32 %v7643_v43, %v923_v27  ;;  %v1686_v1 = vmul.f32 1.442695, %v1588_v4 }
 0x143   : > { %v7943_v52 = vpop.f32.mrf.mxu0  ;;  %10725 = vst [vmem:[#allocation63_spill] sm:$0xff] %v7950_v7  ;;  %v6758_v24 = vpop.eup %6757  ;;  %v756_v17 = vmul.f32 -0.5, %v692_v11  ;;  %3327 = vmatprep.subr.mxu0 %v7950_v7  ;;  %v7968_v46 = vmul.f32 %v6754_v61, %v6399_v33  ;;  %v7971_v29 = vmul.f32 %v7635_v6, %v922_v38  ;;  %v6397_v43 = vld [vmem:[%s10228_s3 + $0x2a0] sm:$0xff]  ;;  %v920_v27 = vld [vmem:[%s10228_s3 + $0x58] sm:$0xff]  ;;  %6775 = vpow2.f32 %v1684_v60 }
 0x144   : > { %v7945_v21 = vpop.f32.mrf.mxu1  ;;  %10726 = vst [vmem:[#allocation64_spill] sm:$0xff] %v7958_v23  ;;  %v7979_v40 = vmul.f32 -0.5, %v1525_v58  ;;  %v694_v4 = vmax.f32 %v7690_v59, 0.0  ;;  %3265 = vmatpush1.msra.mxu1 %v7958_v23  ;;  %v7983_v11 = vmul.f32 %v6756_v0, %v6398_v32  ;;  %v6396_v6 = vld [vmem:[%s10228_s3 + $0x298] sm:$0xff]  ;;  %v6760_v38 = vpop.eup %6759  ;;  %v757_v7 = vmul.f32 -0.5, %v693_v28  ;;  %v919_v58 = vld [vmem:[%s10228_s3 + $0x50] sm:$0xff] }
 0x145   : > { %v7963_v20 = vpop.f32.mrf.mxu0  ;;  %10727 = vst [vmem:[#allocation65_spill] sm:$0xff] %v7968_v46  ;;  %10728 = vst [vmem:[#allocation66_spill] sm:$0xff] %v7971_v29  ;;  %v7992_v3 = vmul.f32 -0.5, %v1526_v9  ;;  %v695_v60 = vmax.f32 %v7699_v48, 0.0  ;;  %3328 = vmatpush1.msra.mxu0 %v7968_v46  ;;  %3266 = vmatprep.subr.mxu1 %v7971_v29  ;;  %v7998_v59 = vmul.f32 %v7626_v35, %v921_v47  ;;  %6777 = vpow2.f32 %v857_v54  ;;  %v6395_v9 = vld [vmem:[%s10228_s3 + $0x290] sm:$0xff]  ;;  %v918_v35 = vld [vmem:[%s10228_s3 + $0x48] sm:$0xff] }
 0x146   : > { %v7965_v15 = vpop.f32.mrf.mxu1  ;;  %10729 = vst [vmem:[#allocation67_spill] sm:$0xff] %v7983_v11  ;;  %v696_v0 = vmax.f32 %v7710_v8, 0.0  ;;  %3329 = vmatprep.subr.mxu0 %v7983_v11  ;;  %v8005_v28 = vmul.f32 %v6758_v24, %v6397_v43  ;;  %v8008_v48 = vmul.f32 %v7616_v5, %v920_v27  ;;  %v859_v8 = vmul.f32 1.442695, %v756_v17  ;;  %v6394_v43 = vld [vmem:[%s10228_s3 + $0x288] sm:$0xff]  ;;  %v8029_v27 = vpop.eup %6761  ;;  %v10769_v23 = vld [vmem:[#allocation34_spill] sm:$0xff] }
 0x147   : > { %v7988_v61 = vpop.f32.mrf.mxu0  ;;  %10730 = vst [vmem:[#allocation68_spill] sm:$0xff] %v7998_v59  ;;  %v697_v24 = vmax.f32 %v7725_v53, 0.0  ;;  %3267 = vmatpush1.msra.mxu1 %v7998_v59  ;;  %v8024_v5 = vmul.f32 %v7919_v45, %v6396_v6  ;;  %10734 = vst [vmem:[#allocation72_spill] sm:$0xff] %v8029_v27  ;;  %6779 = vpow2.f32 %v1686_v1  ;;  %v758_v11 = vmul.f32 -0.5, %v694_v4  ;;  %v917_v45 = vld [vmem:[%s10228_s3 + $0x40] sm:$0xff]  ;;  %v8044_v47 = vpop.eup %6763 }
 0x148   : > { %v7990_v33 = vpop.f32.mrf.mxu1  ;;  %10731 = vst [vmem:[#allocation69_spill] sm:$0xff] %v8005_v28  ;;  %10732 = vst [vmem:[#allocation70_spill] sm:$0xff] %v8008_v48  ;;  %v698_v46 = vmax.f32 %v7740_v31, 0.0  ;;  %3330 = vmatpush1.msra.mxu0 %v8005_v28  ;;  %3268 = vmatprep.subr.mxu1 %v8008_v48  ;;  %v8035_v53 = vmul.f32 %v7607_v42, %v919_v58  ;;  %v759_v1 = vmul.f32 -0.5, %v695_v60  ;;  %v699_v31 = vmax.f32 %v7754_v26, 0.0  ;;  %v6393_v58 = vld [vmem:[%s10228_s3 + $0x280] sm:$0xff]  ;;  %v8059_v48 = vpop.eup %6765 }
 0x149   : > { %v8016_v32 = vpop.f32.mrf.mxu0  ;;  %10733 = vst [vmem:[#allocation71_spill] sm:$0xff] %v8024_v5  ;;  %10736 = vst [vmem:[#allocation74_spill] sm:$0xff] %v8044_v47  ;;  %3331 = vmatprep.subr.mxu0 %v8024_v5  ;;  %v8048_v4 = vmul.f32 %v6760_v38, %v6395_v9  ;;  %v8051_v42 = vmul.f32 %v7600_v10, %v918_v35  ;;  %v916_v28 = vld [vmem:[%s10228_s3 + $0x38] sm:$0xff]  ;;  %v861_v60 = vmul.f32 1.442695, %v757_v7  ;;  %v760_v59 = vmul.f32 -0.5, %v696_v0 }
 0x14a   : > { %v8018_v54 = vpop.f32.mrf.mxu1  ;;  %10735 = vst [vmem:[#allocation73_spill] sm:$0xff] %v8035_v53  ;;  %v700_v26 = vmax.f32 %v7770_v49, 0.0  ;;  %3269 = vmatpush1.msra.mxu1 %v8035_v53  ;;  %v8064_v38 = vmul.f32 %v7883_v41, %v6394_v43  ;;  %v6392_v10 = vld [vmem:[%s10228_s3 + $0x278] sm:$0xff]  ;;  %v8073_v5 = vpop.eup %6767  ;;  %6781 = vpow2.f32 %v859_v8  ;;  %v761_v7 = vmul.f32 -0.5, %v697_v24  ;;  %v915_v41 = vld [vmem:[%s10228_s3 + $0x30] sm:$0xff] }
 0x14b   : > { %v8040_v17 = vpop.f32.mrf.mxu0  ;;  %10737 = vst [vmem:[#allocation75_spill] sm:$0xff] %v8048_v4  ;;  %10738 = vst [vmem:[#allocation76_spill] sm:$0xff] %v8051_v42  ;;  %v701_v0 = vmax.f32 %v7786_v50, 0.0  ;;  %3332 = vmatpush1.msra.mxu0 %v8048_v4  ;;  %3270 = vmatprep.subr.mxu1 %v8051_v42  ;;  %v8079_v49 = vmul.f32 %v7593_v13, %v917_v45  ;;  %v863_v43 = vmul.f32 1.442695, %v758_v11  ;;  %v762_v53 = vmul.f32 -0.5, %v698_v46 }
 0x14c   : > { %v8042_v6 = vpop.f32.mrf.mxu1  ;;  %10739 = vst [vmem:[#allocation77_spill] sm:$0xff] %v8064_v38  ;;  %3333 = vmatprep.subr.mxu0 %v8064_v38  ;;  %v8086_v8 = vmul.f32 %v7850_v14, %v6393_v58  ;;  %v8089_v50 = vmul.f32 %v7585_v51, %v916_v28  ;;  %v6391_v24 = vld [vmem:[%s10228_s3 + $0x270] sm:$0xff]  ;;  %v914_v13 = vld [vmem:[%s10228_s3 + $0x28] sm:$0xff]  ;;  %v865_v38 = vmul.f32 1.442695, %v759_v1  ;;  %v1528_v14 = vmax.f32 %v7701_v12, 0.0 }
 0x14d   : > { %v8071_v35 = vpop.f32.mrf.mxu0  ;;  %10740 = vst [vmem:[#allocation78_spill] sm:$0xff] %v8079_v49  ;;  %v8101_v46 = vpop.eup %6769  ;;  %v763_v58 = vmul.f32 -0.5, %v699_v31  ;;  %3271 = vmatpush1.msra.mxu1 %v8079_v49  ;;  %v8106_v51 = vmul.f32 %v7722_v55, %v6392_v10  ;;  %v6390_v28 = vld [vmem:[%s10228_s3 + $0x268] sm:$0xff]  ;;  %6783 = vpow2.f32 %v861_v60  ;;  %v867_v42 = vmul.f32 1.442695, %v760_v59  ;;  %v913_v55 = vld [vmem:[%s10228_s3 + $0x20] sm:$0xff] }
 0x14e   : > { %v8069_v9 = vpop.f32.mrf.mxu1  ;;  %10741 = vst [vmem:[#allocation79_spill] sm:$0xff] %v8086_v8  ;;  %10742 = vst [vmem:[#allocation80_spill] sm:$0xff] %v8089_v50  ;;  %v8111_v4 = vpop.eup %6771  ;;  %v764_v29 = vmul.f32 -0.5, %v700_v26  ;;  %3334 = vmatpush1.msra.mxu0 %v8086_v8  ;;  %3272 = vmatprep.subr.mxu1 %v8089_v50  ;;  %v8116_v12 = vmul.f32 %v7575_v22, %v915_v41  ;;  %v869_v60 = vmul.f32 1.442695, %v761_v7  ;;  %v765_v59 = vmul.f32 -0.5, %v701_v0 }
 0x14f   : > { %v8099_v11 = vpop.f32.mrf.mxu0  ;;  %10743 = vst [vmem:[#allocation81_spill] sm:$0xff] %v8106_v51  ;;  %10744 = vst [vmem:[#allocation82_spill] sm:$0xff] %v8111_v4  ;;  %v8125_v10 = vpop.eup %6773  ;;  %3335 = vmatprep.subr.mxu0 %v8106_v51  ;;  %v8129_v26 = vmul.f32 %v7694_v63, %v6391_v24  ;;  %v8132_v22 = vmul.f32 %v7567_v44, %v914_v13  ;;  %v6389_v41 = vld [vmem:[%s10228_s3 + $0x260] sm:$0xff]  ;;  %v912_v8 = vld [vmem:[%s10228_s3 + $0x18] sm:$0xff]  ;;  %6785 = vpow2.f32 %v863_v43  ;;  %v10749_v7 = vmax.f32 %v7692_v56, 0.0 }
 0x150   : > { %v8097_v45 = vpop.f32.mrf.mxu1  ;;  %10745 = vst [vmem:[#allocation83_spill] sm:$0xff] %v8116_v12  ;;  %v871_v51 = vmul.f32 1.442695, %v762_v53  ;;  %3273 = vmatpush1.msra.mxu1 %v8116_v12  ;;  %v10750_v63 = vld [vmem:[#allocation28_spill] sm:$0xff]  ;;  %v6388_v44 = vld [vmem:[%s10228_s3 + $0x258] sm:$0xff]  ;;  %v8155_v49 = vpop.eup %6775  ;;  %6787 = vpow2.f32 %v865_v38  ;;  %v8157_v56 = vmul.f32 -0.5, %v1528_v14 }
 0x151   : > { %v8123_v31 = vpop.f32.mrf.mxu0  ;;  %10747 = vst [vmem:[#allocation85_spill] sm:$0xff] %v8129_v26  ;;  %10748 = vst [vmem:[#allocation86_spill] sm:$0xff] %v8132_v22  ;;  %v8142_v0 = vmul.f32 -0.5, %v10749_v7  ;;  %v8146_v24 = vmul.f32 %v10750_v63, %v6390_v28  ;;  %v873_v43 = vmul.f32 1.442695, %v763_v58  ;;  %3336 = vmatpush1.msra.mxu0 %v8129_v26  ;;  %3274 = vmatprep.subr.mxu1 %v8132_v22  ;;  %v10754_v53 = vld [vmem:[#allocation14_spill] sm:$0xff]  ;;  %6789 = vpow2.f32 %v867_v42 }
 0x152   : > { %v8121_v1 = vpop.f32.mrf.mxu1  ;;  %10746 = vst [vmem:[#allocation84_spill] sm:$0xff] %v8123_v31  ;;  %10753 = vst [vmem:[#allocation88_spill] sm:$0xff] %v8155_v49  ;;  %v8162_v28 = vmul.f32 %v10754_v53, %v913_v55  ;;  %v911_v7 = vld [vmem:[%s10228_s3 + $0x10] sm:$0xff]  ;;  %v875_v63 = vmul.f32 1.442695, %v764_v29  ;;  %v10756_v12 = vld [vmem:[#allocation27_spill] sm:$0xff]  ;;  %v8184_v29 = vpop.eup %6777  ;;  %6791 = vpow2.f32 %v869_v60 }
 0x153   : > { %10751 = vst [vmem:[#allocation28_spill] sm:$0xff] %v8146_v24  ;;  %v8153_v50 = vpop.f32.mrf.mxu0  ;;  %3337 = vmatprep.subr.mxu0 %v8146_v24  ;;  %v8169_v38 = vmul.f32 %v10756_v12, %v6389_v41  ;;  %v10758_v14 = vld [vmem:[#allocation12_spill] sm:$0xff]  ;;  %v6387_v26 = vld [vmem:[%s10228_s3 + $0x250] sm:$0xff]  ;;  %v910_v55 = vld [vmem:[%s10228_s3 + $0x8] sm:$0xff]  ;;  %v877_v12 = vmul.f32 1.442695, %v765_v59  ;;  %6793 = vpow2.f32 %v871_v51 }
 0x154   : > { %v8151_v13 = vpop.f32.mrf.mxu1  ;;  %10752 = vst [vmem:[#allocation87_spill] sm:$0xff] %v8153_v50  ;;  %10755 = vst [vmem:[#allocation14_spill] sm:$0xff] %v8162_v28  ;;  %v8172_v58 = vmul.f32 %v10758_v14, %v912_v8  ;;  %v702_v41 = vmax.f32 %v7805_v16, 0.0  ;;  %3275 = vmatpush1.msra.mxu1 %v8162_v28  ;;  %v10761_v8 = vld [vmem:[#allocation26_spill] sm:$0xff]  ;;  %v6386_v24 = vld [vmem:[%s10228_s3 + $0x248] sm:$0xff]  ;;  %v8208_v28 = vpop.eup %6779  ;;  %6795 = vpow2.f32 %v873_v43  ;;  %v710_v2 = vmax.f32 %v7988_v61, 0.0 }
 0x155   : > { %10757 = vst [vmem:[#allocation27_spill] sm:$0xff] %v8169_v38  ;;  %v8182_v42 = vpop.f32.mrf.mxu0  ;;  %v8189_v14 = vmul.f32 %v10761_v8, %v6388_v44  ;;  %v10763_v22 = vld [vmem:[#allocation29_spill] sm:$0xff]  ;;  %3338 = vmatpush1.msra.mxu0 %v8169_v38  ;;  %v10765_v60 = vld [vmem:[#allocation10_spill] sm:$0xff]  ;;  %v909_v59 = vld [vmem:[%s10228_s3] sm:$0xff]  ;;  %6797 = vpow2.f32 %v875_v63  ;;  %v709_v63 = vmax.f32 %v7963_v20, 0.0  ;;  %v705_v4 = vmax.f32 %v7872_v30, 0.0 }
 0x156   : > { %10759 = vst [vmem:[#allocation12_spill] sm:$0xff] %v8172_v58  ;;  %v8180_v53 = vpop.f32.mrf.mxu1  ;;  %10760 = vst [vmem:[#allocation89_spill] sm:$0xff] %v8182_v42  ;;  %3276 = vmatprep.subr.mxu1 %v8172_v58  ;;  %v8199_v16 = vmul.f32 %v10765_v60, %v911_v7  ;;  %v10770_v51 = vld [vmem:[#allocation25_spill] sm:$0xff]  ;;  %v10772_v7 = vld [vmem:[#allocation8_spill] sm:$0xff]  ;;  %6799 = vpow2.f32 %v877_v12  ;;  %v766_v42 = vmul.f32 -0.5, %v702_v41  ;;  %v708_v12 = vmax.f32 %v7943_v52, 0.0 }
 0x157   : > { %10762 = vst [vmem:[#allocation26_spill] sm:$0xff] %v8189_v14  ;;  %v8206_v8 = vpop.f32.mrf.mxu0  ;;  %10768 = vst [vmem:[#allocation10_spill] sm:$0xff] %v8208_v28  ;;  %3339 = vmatprep.subr.mxu0 %v8189_v14  ;;  %v8213_v38 = vmul.f32 %v10770_v51, %v6387_v26  ;;  %v8216_v60 = vmul.f32 %v10772_v7, %v910_v55  ;;  %v6385_v58 = vld [vmem:[%s10228_s3 + $0x240] sm:$0xff]  ;;  %v711_v26 = vmax.f32 %v8016_v32, 0.0  ;;  %v6384_v55 = vld [vmem:[%s10228_s3 + $0x238] sm:$0xff]  ;;  %v707_v52 = vmax.f32 %v7915_v34, 0.0 }
 0x158   : > { %10766 = vst [vmem:[#allocation29_spill] sm:$0xff] %v8199_v16  ;;  %v8204_v44 = vpop.f32.mrf.mxu1  ;;  %10767 = vst [vmem:[#allocation31_spill] sm:$0xff] %v8206_v8  ;;  %3277 = vmatpush1.msra.mxu1 %v8199_v16  ;;  %v10774_v43 = vld [vmem:[#allocation24_spill] sm:$0xff]  ;;  %v10777_v61 = vld [vmem:[#allocation6_spill] sm:$0xff]  ;;  %v706_v49 = vmax.f32 %v7893_v62, 0.0  ;;  %v774_v28 = vmul.f32 -0.5, %v710_v2 }
 0x159   : > { %10771 = vst [vmem:[#allocation34_spill] sm:$0xff] %v8213_v38  ;;  %10773 = vst [vmem:[#allocation25_spill] sm:$0xff] %v8216_v60  ;;  %v8227_v14 = vmul.f32 %v10774_v43, %v6386_v24  ;;  %v8235_v7 = vpop.f32.mrf.mxu0  ;;  %3340 = vmatpush1.msra.mxu0 %v8213_v38  ;;  %3278 = vmatprep.subr.mxu1 %v8216_v60  ;;  %v8241_v24 = vmul.f32 %v10777_v61, %v909_v59  ;;  %v971_v32 = vld [vmem:[%s10228_s3 + $0x1f0] sm:$0xff]  ;;  %v8246_v43 = vpop.eup %6781  ;;  %v10779_v16 = vld [vmem:[#allocation47_spill] sm:$0xff]  ;;  %v773_v30 = vmul.f32 -0.5, %v709_v63 }
 0x15a   : > { %v8233_v51 = vpop.f32.mrf.mxu1  ;;  %10776 = vst [vmem:[#allocation24_spill] sm:$0xff] %v8235_v7  ;;  %v10780_v20 = vld [vmem:[#allocation23_spill] sm:$0xff]  ;;  %v10782_v38 = vld [vmem:[#allocation13_spill] sm:$0xff]  ;;  %v6383_v59 = vld [vmem:[%s10228_s3 + $0x230] sm:$0xff]  ;;  %v704_v63 = vmax.f32 %v7846_v39, 0.0  ;;  %v771_v27 = vmul.f32 -0.5, %v707_v52 }
 0x15b   : > { %10775 = vst [vmem:[#allocation8_spill] sm:$0xff] %v8227_v14  ;;  %10778 = vst [vmem:[#allocation6_spill] sm:$0xff] %v8241_v24  ;;  %3341 = vmatprep.subr.mxu0 %v8227_v14  ;;  %v8252_v41 = vmul.f32 %v10780_v20, %v6385_v58  ;;  %v8255_v60 = vmul.f32 %v10782_v38, %v972_v19  ;;  %v970_v61 = vld [vmem:[%s10228_s3 + $0x1e8] sm:$0xff]  ;;  %v8265_v8 = vpop.f32.mrf.mxu0  ;;  %v775_v14 = vmul.f32 -0.5, %v711_v26  ;;  %3279 = vmatpush1.msra.mxu1 %v8241_v24  ;;  %v10785_v58 = vld [vmem:[#allocation22_spill] sm:$0xff]  ;;  %v8290_v24 = vpop.eup %6783 }
 0x15c   : > { %v8263_v7 = vpop.f32.mrf.mxu1  ;;  %10784 = vst [vmem:[#allocation13_spill] sm:$0xff] %v8265_v8  ;;  %v8270_v19 = vmul.f32 %v10785_v58, %v6384_v55  ;;  %v712_v38 = vmax.f32 %v8040_v17, 0.0  ;;  %v6382_v20 = vld [vmem:[%s10228_s3 + $0x228] sm:$0xff]  ;;  %v10787_v34 = vld [vmem:[#allocation11_spill] sm:$0xff]  ;;  %v969_v17 = vld [vmem:[%s10228_s3 + $0x1e0] sm:$0xff]  ;;  %v769_v47 = vmul.f32 -0.5, %v705_v4 }
 0x15d   : > { %10781 = vst [vmem:[#allocation47_spill] sm:$0xff] %v8252_v41  ;;  %10783 = vst [vmem:[#allocation23_spill] sm:$0xff] %v8255_v60  ;;  %3342 = vmatpush1.msra.mxu0 %v8252_v41  ;;  %3280 = vmatprep.subr.mxu1 %v8255_v60  ;;  %v8281_v26 = vmul.f32 %v10787_v34, %v971_v32  ;;  %v8286_v55 = vpop.f32.mrf.mxu0  ;;  %v10791_v62 = vld [vmem:[#allocation21_spill] sm:$0xff]  ;;  %v6381_v34 = vld [vmem:[%s10228_s3 + $0x220] sm:$0xff]  ;;  %v897_v50 = vmul.f32 1.442695, %v775_v14 }
 0x15e   : > { %10786 = vst [vmem:[#allocation22_spill] sm:$0xff] %v8270_v19  ;;  %10789 = vst [vmem:[#allocation90_spill] sm:$0xff] %v8286_v55  ;;  %v8288_v58 = vpop.f32.mrf.mxu1  ;;  %3343 = vmatprep.subr.mxu0 %v8270_v19  ;;  %v776_v2 = vmul.f32 -0.5, %v712_v38  ;;  %v8294_v41 = vmul.f32 %v10791_v62, %v6383_v59  ;;  %v10793_v60 = vld [vmem:[#allocation9_spill] sm:$0xff]  ;;  %v6380_v8 = vld [vmem:[%s10228_s3 + $0x218] sm:$0xff]  ;;  %v8315_v19 = vpop.eup %6785 }
 0x15f   : > { %10788 = vst [vmem:[#allocation11_spill] sm:$0xff] %v8281_v26  ;;  %10790 = vst [vmem:[#allocation91_spill] sm:$0xff] %v8288_v58  ;;  %v8297_v32 = vmul.f32 %v10793_v60, %v970_v61  ;;  %v879_v55 = vmul.f32 1.442695, %v766_v42  ;;  %v772_v58 = vmul.f32 -0.5, %v708_v12  ;;  %3281 = vmatpush2.msra.mxu1 %v8281_v26  ;;  %v10795_v38 = vld [vmem:[#allocation20_spill] sm:$0xff]  ;;  %v8313_v61 = vpop.f32.mrf.mxu0 }
 0x160   : > { %10792 = vst [vmem:[#allocation21_spill] sm:$0xff] %v8294_v41  ;;  %v8308_v59 = vmul.f32 %v10795_v38, %v6382_v20  ;;  %v6379_v60 = vld [vmem:[%s10228_s3 + $0x210] sm:$0xff]  ;;  %10797 = vst [vmem:[#allocation92_spill] sm:$0xff] %v8313_v61  ;;  %v2889_v62 = vpop.f32.mrf.mxu1  ;;  %v899_v42 = vmul.f32 1.442695, %v776_v2  ;;  %3344 = vmatpush1.msra.mxu0 %v8294_v41  ;;  %v10798_v39 = vld [vmem:[#allocation7_spill] sm:$0xff]  ;;  %v8325_v38 = vpop.eup %6787 }
 0x161   : > { %10794 = vst [vmem:[#allocation9_spill] sm:$0xff] %v8297_v32  ;;  %3282 = vmatprep.subr.mxu1 %v8297_v32  ;;  %v8320_v12 = vmul.f32 %v10798_v39, %v969_v17  ;;  %v6378_v20 = vld [vmem:[%s10228_s3 + $0x208] sm:$0xff]  ;;  %v770_v26 = vmul.f32 -0.5, %v706_v49  ;;  %v895_v61 = vmul.f32 1.442695, %v774_v28  ;;  %v10800_v52 = vld [vmem:[#allocation19_spill] sm:$0xff]  ;;  %v8334_v32 = vpop.f32.mrf.mxu0  ;;  %3312 = vmatprep.mubr.f32.mxu1 %v2889_v62  ;;  %v8338_v39 = vpop.eup %6789 }
 0x162   : > { %10796 = vst [vmem:[#allocation20_spill] sm:$0xff] %v8308_v59  ;;  %3345 = vmatprep.subr.mxu0 %v8308_v59  ;;  %v8329_v14 = vmul.f32 %v10800_v52, %v6381_v34  ;;  %v10802_v2 = vld [vmem:[#allocation18_spill] sm:$0xff]  ;;  %10804 = vst [vmem:[#allocation93_spill] sm:$0xff] %v8334_v32  ;;  %v8336_v17 = vpop.f32.mrf.mxu1  ;;  %v893_v31 = vmul.f32 1.442695, %v773_v30  ;;  %6801 = vpow2.f32 %v899_v42  ;;  %v10806_v49 = vld [vmem:[#allocation17_spill] sm:$0xff]  ;;  %v8347_v34 = vpop.eup %6791 }
 0x163   : > { %10799 = vst [vmem:[#allocation7_spill] sm:$0xff] %v8320_v12  ;;  %v8332_v41 = vmul.f32 %v10802_v2, %v6380_v8  ;;  %10805 = vst [vmem:[#allocation94_spill] sm:$0xff] %v8336_v17  ;;  %3283 = vmatpush2.msra.mxu1 %v8320_v12  ;;  %v8342_v28 = vmul.f32 %v10806_v49, %v6379_v60  ;;  %v6377_v8 = vld [vmem:[%s10228_s3 + $0x200] sm:$0xff]  ;;  %6803 = vpow2.f32 %v879_v55  ;;  %v768_v62 = vmul.f32 -0.5, %v704_v63  ;;  %v8353_v30 = vpop.f32.mrf.mxu0  ;;  %v8355_v59 = vpop.eup %6793 }
 0x164   : > { %10801 = vst [vmem:[#allocation19_spill] sm:$0xff] %v8329_v14  ;;  %v891_v52 = vmul.f32 1.442695, %v772_v58  ;;  %3346 = vmatpush1.msra.mxu0 %v8329_v14  ;;  %v10808_v2 = vld [vmem:[#allocation16_spill] sm:$0xff]  ;;  %10810 = vst [vmem:[#allocation95_spill] sm:$0xff] %v8353_v30  ;;  %v2967_v42 = vpop.f32.mrf.mxu1  ;;  %v10811_v60 = vmax.f32 %v10769_v23, 0.0  ;;  %6805 = vpow2.f32 %v897_v50  ;;  %v8364_v58 = vpop.eup %6795 }
 0x165   : > { %10803 = vst [vmem:[#allocation18_spill] sm:$0xff] %v8332_v41  ;;  %10807 = vst [vmem:[#allocation17_spill] sm:$0xff] %v8342_v28  ;;  %v8351_v4 = vmul.f32 %v10808_v2, %v6378_v20  ;;  %v10812_v12 = vmax.f32 %v10779_v16, 0.0  ;;  %v889_v55 = vmul.f32 1.442695, %v771_v27  ;;  %3347 = vmatprep.subr.mxu0 %v8332_v41  ;;  %3383 = vmatprep.mubr.f32.mxu0 %v2967_v42  ;;  %6807 = vpow2.f32 %v895_v61  ;;  %v10813_v20 = vld [vmem:[#allocation15_spill] sm:$0xff]  ;;  %v8373_v16 = vpop.eup %6797 }
 0x166   : > { %v8359_v49 = vmul.f32 -0.5, %v10811_v60  ;;  %v887_v63 = vmul.f32 1.442695, %v770_v26  ;;  %3348 = vmatpush1.msra.mxu0 %v8342_v28  ;;  %v8368_v2 = vmul.f32 %v10813_v20, %v6377_v8  ;;  %v1549_v23 = vmax.f32 %v8151_v13, 0.0  ;;  %v8371_v60 = vpop.f32.mrf.mxu0  ;;  %v10816_v27 = vld [vmem:[#allocation36_spill] sm:$0xff]  ;;  %v8378_v26 = vpop.eup %6799  ;;  %v10818_v61 = vld [vmem:[#allocation41_spill] sm:$0xff] }
 0x167   : > { %10809 = vst [vmem:[#allocation16_spill] sm:$0xff] %v8351_v4  ;;  %v767_v17 = vmul.f32 -0.5, %v10812_v12  ;;  %10815 = vst [vmem:[#allocation96_spill] sm:$0xff] %v8371_v60  ;;  %v10817_v12 = vld [vmem:[#allocation39_spill] sm:$0xff]  ;;  %v885_v42 = vmul.f32 1.442695, %v769_v47  ;;  %6809 = vpow2.f32 %v893_v31  ;;  %3349 = vmatprep.subr.mxu0 %v8351_v4 }
 0x168   : > { %10814 = vst [vmem:[#allocation15_spill] sm:$0xff] %v8368_v2  ;;  %v883_v8 = vmul.f32 1.442695, %v768_v62  ;;  %6811 = vpow2.f32 %v891_v52  ;;  %3350 = vmatpush1.msra.mxu0 %v8368_v2  ;;  %v1550_v13 = vmax.f32 %v8180_v53, 0.0  ;;  %v8383_v20 = vpop.f32.mrf.mxu0  ;;  %v1613_v50 = vmul.f32 -0.5, %v1549_v23  ;;  %v10819_v31 = vld [vmem:[#allocation44_spill] sm:$0xff] }
 0x169   : > { %v881_v14 = vmul.f32 1.442695, %v767_v17  ;;  %6813 = vpow2.f32 %v889_v55  ;;  %v1551_v47 = vmax.f32 %v8204_v44, 0.0  ;;  %v10820_v4 = vld [vmem:[#allocation48_spill] sm:$0xff]  ;;  %v1548_v28 = vmax.f32 %v8121_v1, 0.0 }
 0x16a   : > { %6815 = vpow2.f32 %v887_v63  ;;  %v8389_v62 = vpop.f32.mrf.mxu0  ;;  %v1547_v53 = vmax.f32 %v8097_v45, 0.0  ;;  %v1546_v17 = vmax.f32 %v8069_v9, 0.0  ;;  %v1614_v55 = vmul.f32 -0.5, %v1550_v13 }
 0x16b   : > { %6817 = vpow2.f32 %v885_v42  ;;  %v1615_v2 = vmul.f32 -0.5, %v1551_v47  ;;  %v1552_v44 = vmax.f32 %v8233_v51, 0.0  ;;  %v1539_v63 = vmax.f32 %v7895_v25, 0.0  ;;  %v968_v25 = vld [vmem:[%s10228_s3 + $0x1d8] sm:$0xff] }
 0x16c   : > { %6819 = vpow2.f32 %v883_v8  ;;  %v8395_v23 = vpop.f32.mrf.mxu0  ;;  %v1545_v1 = vmax.f32 %v8042_v6, 0.0  ;;  %v1736_v41 = vmul.f32 1.442695, %v1613_v50  ;;  %v1544_v32 = vmax.f32 %v8018_v54, 0.0 }
 0x16d   : > { %6821 = vpow2.f32 %v881_v14  ;;  %v1612_v42 = vmul.f32 -0.5, %v1548_v28  ;;  %v1740_v52 = vmul.f32 1.442695, %v1615_v2  ;;  %v1616_v45 = vmul.f32 -0.5, %v1552_v44 }
 0x16e   : > { %v8400_v47 = vpop.f32.mrf.mxu0  ;;  %v1540_v9 = vmax.f32 %v7917_v57, 0.0  ;;  %v1543_v8 = vmax.f32 %v7990_v33, 0.0  ;;  %v1611_v51 = vmul.f32 -0.5, %v1547_v53  ;;  %v1553_v13 = vmax.f32 %v8263_v7, 0.0 }
 0x16f   : > { %10821 = vst [vmem:[#allocation36_spill] sm:$0xff] %v8400_v47  ;;  %v6802_v6 = vpop.eup %6801  ;;  %v1542_v14 = vmax.f32 %v7965_v15, 0.0  ;;  %v1610_v54 = vmul.f32 -0.5, %v1546_v17  ;;  %v1738_v28 = vmul.f32 1.442695, %v1614_v55  ;;  %v1541_v57 = vmax.f32 %v7945_v21, 0.0 }
 0x170   : > { %v1742_v2 = vmul.f32 1.442695, %v1616_v45  ;;  %v8409_v50 = vpop.f32.mrf.mxu0  ;;  %v8411_v44 = vpop.eup %6803  ;;  %v1609_v33 = vmul.f32 -0.5, %v1545_v1  ;;  %6823 = vpow2.f32 %v1736_v41  ;;  %v1617_v53 = vmul.f32 -0.5, %v1553_v13  ;;  %v967_v15 = vld [vmem:[%s10228_s3 + $0x1d0] sm:$0xff]  ;;  %v966_v41 = vld [vmem:[%s10228_s3 + $0x1c8] sm:$0xff] }
 0x171   : > { %10822 = vst [vmem:[#allocation39_spill] sm:$0xff] %v8409_v50  ;;  %v6806_v7 = vpop.eup %6805  ;;  %v1608_v30 = vmul.f32 -0.5, %v1544_v32  ;;  %v1734_v60 = vmul.f32 1.442695, %v1612_v42  ;;  %6825 = vpow2.f32 %v1740_v52  ;;  %v8414_v47 = vmul.f32 %v6802_v6, %v968_v25  ;;  %v965_v13 = vld [vmem:[%s10228_s3 + $0x1c0] sm:$0xff] }
 0x172   : > { %v8419_v17 = vpop.f32.mrf.mxu0  ;;  %v6808_v55 = vpop.eup %6807  ;;  %v1607_v45 = vmul.f32 -0.5, %v1543_v8  ;;  %v1732_v50 = vmul.f32 1.442695, %v1611_v51  ;;  %6827 = vpow2.f32 %v1742_v2  ;;  %v1744_v21 = vmul.f32 1.442695, %v1617_v53 }
 0x173   : > { %10823 = vst [vmem:[#allocation41_spill] sm:$0xff] %v8414_v47  ;;  %v1538_v52 = vmax.f32 %v7874_v36, 0.0  ;;  %v1606_v1 = vmul.f32 -0.5, %v1542_v14  ;;  %v1730_v42 = vmul.f32 1.442695, %v1610_v54  ;;  %6829 = vpow2.f32 %v1738_v28  ;;  %3284 = vmatprep.subr.mxu1 %v8414_v47  ;;  %v964_v36 = vld [vmem:[%s10228_s3 + $0x1b8] sm:$0xff] }
 0x174   : > { %v6810_v32 = vpop.eup %6809  ;;  %v8429_v8 = vpop.f32.mrf.mxu0  ;;  %v1605_v25 = vmul.f32 -0.5, %v1541_v57  ;;  %v1728_v6 = vmul.f32 1.442695, %v1609_v33  ;;  %6831 = vpow2.f32 %v1744_v21  ;;  %v8431_v2 = vmul.f32 %v6806_v7, %v967_v15  ;;  %v963_v47 = vld [vmem:[%s10228_s3 + $0x1b0] sm:$0xff] }
 0x175   : > { %10824 = vst [vmem:[#allocation44_spill] sm:$0xff] %v8429_v8  ;;  %v6812_v51 = vpop.eup %6811  ;;  %v1604_v54 = vmul.f32 -0.5, %v1540_v9  ;;  %v1726_v28 = vmul.f32 1.442695, %v1608_v30  ;;  %6833 = vpow2.f32 %v1734_v60  ;;  %v8436_v53 = vmul.f32 %v6808_v55, %v966_v41  ;;  %v962_v30 = vld [vmem:[%s10228_s3 + $0x1a8] sm:$0xff] }
 0x176   : > { %10825 = vst [vmem:[#allocation48_spill] sm:$0xff] %v8431_v2  ;;  %v6814_v14 = vpop.eup %6813  ;;  %v8441_v8 = vpop.f32.mrf.mxu0  ;;  %v1603_v33 = vmul.f32 -0.5, %v1539_v63  ;;  %v1724_v7 = vmul.f32 1.442695, %v1607_v45  ;;  %6835 = vpow2.f32 %v1732_v50  ;;  %3285 = vmatpush2.msra.mxu1 %v8431_v2  ;;  %v8444_v15 = vmul.f32 %v6810_v32, %v965_v13  ;;  %v961_v63 = vld [vmem:[%s10228_s3 + $0x1a0] sm:$0xff] }
 0x177   : > { %10826 = vst [vmem:[#allocation97_spill] sm:$0xff] %v8436_v53  ;;  %v6816_v57 = vpop.eup %6815  ;;  %v1602_v9 = vmul.f32 -0.5, %v1538_v52  ;;  %v1722_v55 = vmul.f32 1.442695, %v1606_v1  ;;  %6837 = vpow2.f32 %v1730_v42  ;;  %3286 = vmatprep.subr.mxu1 %v8436_v53  ;;  %v8450_v21 = vmul.f32 %v6812_v51, %v964_v36  ;;  %v960_v1 = vld [vmem:[%s10228_s3 + $0x198] sm:$0xff] }
 0x178   : > { %10827 = vst [vmem:[#allocation98_spill] sm:$0xff] %v8444_v15  ;;  %v6818_v60 = vpop.eup %6817  ;;  %v8455_v50 = vpop.f32.mrf.mxu0  ;;  %v10829_v41 = vmax.f32 %v7848_v18, 0.0  ;;  %v1720_v13 = vmul.f32 1.442695, %v1605_v25  ;;  %6839 = vpow2.f32 %v1728_v6  ;;  %3287 = vmatpush2.msra.mxu1 %v8444_v15  ;;  %v8460_v52 = vmul.f32 %v6814_v14, %v963_v47  ;;  %v959_v25 = vld [vmem:[%s10228_s3 + $0x190] sm:$0xff] }
 0x179   : > { %10828 = vst [vmem:[#allocation99_spill] sm:$0xff] %v8450_v21  ;;  %v6820_v45 = vpop.eup %6819  ;;  %v10831_v51 = vmax.f32 %v10820_v4, 0.0  ;;  %v1718_v53 = vmul.f32 1.442695, %v1604_v54  ;;  %6841 = vpow2.f32 %v1726_v28  ;;  %3288 = vmatprep.subr.mxu1 %v8450_v21  ;;  %v8468_v18 = vmul.f32 %v6816_v57, %v962_v30  ;;  %v958_v54 = vld [vmem:[%s10228_s3 + $0x188] sm:$0xff] }
 0x17a   : > { %v1601_v32 = vmul.f32 -0.5, %v10829_v41  ;;  %10830 = vst [vmem:[#allocation100_spill] sm:$0xff] %v8460_v52  ;;  %v6822_v42 = vpop.eup %6821  ;;  %v8473_v47 = vpop.f32.mrf.mxu0  ;;  %v10833_v6 = vmax.f32 %v10819_v31, 0.0  ;;  %v1716_v41 = vmul.f32 1.442695, %v1603_v33  ;;  %6843 = vpow2.f32 %v1724_v7  ;;  %3289 = vmatpush2.msra.mxu1 %v8460_v52  ;;  %v957_v31 = vld [vmem:[%s10228_s3 + $0x180] sm:$0xff] }
 0x17b   : > { %v1600_v36 = vmul.f32 -0.5, %v10831_v51  ;;  %10832 = vst [vmem:[#allocation101_spill] sm:$0xff] %v8468_v18  ;;  %v8478_v4 = vmul.f32 %v6818_v60, %v961_v63  ;;  %v10835_v28 = vmax.f32 %v10818_v61, 0.0  ;;  %v1714_v30 = vmul.f32 1.442695, %v1602_v9  ;;  %3290 = vmatprep.subr.mxu1 %v8468_v18  ;;  %v956_v9 = vld [vmem:[%s10228_s3 + $0x178] sm:$0xff] }
 0x17c   : > { %v1599_v14 = vmul.f32 -0.5, %v10833_v6  ;;  %6845 = vpow2.f32 %v1722_v55  ;;  %v8486_v51 = vmul.f32 %v6820_v45, %v960_v1  ;;  %v8491_v33 = vpop.f32.mrf.mxu0  ;;  %v10837_v7 = vmax.f32 %v10817_v12, 0.0 }
 0x17d   : > { %10834 = vst [vmem:[#allocation102_spill] sm:$0xff] %v8478_v4  ;;  %v1598_v57 = vmul.f32 -0.5, %v10835_v28  ;;  %v1712_v63 = vmul.f32 1.442695, %v1601_v32  ;;  %6847 = vpow2.f32 %v1720_v13  ;;  %3291 = vmatpush2.msra.mxu1 %v8478_v4  ;;  %v8496_v61 = vmul.f32 %v6822_v42, %v959_v25  ;;  %v8501_v55 = vpop.eup %6823  ;;  %v955_v32 = vld [vmem:[%s10228_s3 + $0x170] sm:$0xff] }
 0x17e   : > { %10836 = vst [vmem:[#allocation103_spill] sm:$0xff] %v8486_v51  ;;  %v1597_v60 = vmul.f32 -0.5, %v10837_v7  ;;  %v10839_v45 = vmax.f32 %v10816_v27, 0.0  ;;  %v1710_v6 = vmul.f32 1.442695, %v1600_v36  ;;  %6849 = vpow2.f32 %v1718_v53  ;;  %3292 = vmatprep.subr.mxu1 %v8486_v51  ;;  %v8512_v13 = vpop.f32.mrf.mxu0  ;;  %v6826_v42 = vpop.eup %6825  ;;  %v6439_v53 = vld [vmem:[%s10228_s3 + $0x3f0] sm:$0xff] }
 0x17f   : > { %10838 = vst [vmem:[#allocation104_spill] sm:$0xff] %v8496_v61  ;;  %v8507_v12 = vmul.f32 %v8411_v44, %v958_v54  ;;  %v10841_v25 = vmax.f32 %v10763_v22, 0.0  ;;  %v1708_v7 = vmul.f32 1.442695, %v1599_v14  ;;  %6851 = vpow2.f32 %v1716_v41  ;;  %3293 = vmatpush2.msra.mxu1 %v8496_v61  ;;  %v954_v44 = vld [vmem:[%s10228_s3 + $0x168] sm:$0xff]  ;;  %v6828_v36 = vpop.eup %6827  ;;  %v6440_v41 = vld [vmem:[%s10228_s3 + $0x3f8] sm:$0xff] }
 0x180   : > { %v1596_v1 = vmul.f32 -0.5, %v10839_v45  ;;  %v8518_v27 = vmul.f32 %v8378_v26, %v957_v31  ;;  %v10843_v54 = vmax.f32 %v10764_v37, 0.0  ;;  %v1706_v45 = vmul.f32 1.442695, %v1598_v57  ;;  %v953_v26 = vld [vmem:[%s10228_s3 + $0x160] sm:$0xff]  ;;  %v6438_v37 = vld [vmem:[%s10228_s3 + $0x3e8] sm:$0xff]  ;;  %v8541_v31 = vpop.f32.mrf.mxu0  ;;  %v6830_v57 = vpop.eup %6829 }
 0x181   : > { %10840 = vst [vmem:[#allocation105_spill] sm:$0xff] %v8507_v12  ;;  %v1593_v28 = vmul.f32 -0.5, %v10841_v25  ;;  %6853 = vpow2.f32 %v1714_v30  ;;  %3294 = vmatprep.subr.mxu1 %v8507_v12  ;;  %v8530_v14 = vmul.f32 %v8373_v16, %v956_v9  ;;  %v1700_v30 = vmul.f32 1.442695, %v8359_v49  ;;  %v952_v9 = vld [vmem:[%s10228_s3 + $0x158] sm:$0xff]  ;;  %v6832_v12 = vpop.eup %6831 }
 0x182   : > { %10842 = vst [vmem:[#allocation106_spill] sm:$0xff] %v8518_v27  ;;  %v1594_v22 = vmul.f32 -0.5, %v10843_v54  ;;  %v1704_v25 = vmul.f32 1.442695, %v1597_v60  ;;  %6855 = vpow2.f32 %v1712_v63  ;;  %3295 = vmatpush2.msra.mxu1 %v8518_v27  ;;  %v8546_v16 = vmul.f32 %v8364_v58, %v955_v32  ;;  %v6437_v54 = vld [vmem:[%s10228_s3 + $0x3e0] sm:$0xff]  ;;  %v951_v58 = vld [vmem:[%s10228_s3 + $0x150] sm:$0xff]  ;;  %v8566_v32 = vpop.f32.mrf.mxu0  ;;  %v6834_v27 = vpop.eup %6833 }
 0x183   : > { %10844 = vst [vmem:[#allocation107_spill] sm:$0xff] %v8530_v14  ;;  %v1702_v61 = vmul.f32 1.442695, %v1596_v1  ;;  %6857 = vpow2.f32 %v1710_v6  ;;  %3296 = vmatprep.subr.mxu1 %v8530_v14  ;;  %v8556_v49 = vmul.f32 %v8355_v59, %v954_v44  ;;  %v8561_v60 = vmul.f32 %v6828_v36, %v6439_v53  ;;  %v6436_v63 = vld [vmem:[%s10228_s3 + $0x3d8] sm:$0xff]  ;;  %v950_v6 = vld [vmem:[%s10228_s3 + $0x148] sm:$0xff]  ;;  %v6435_v53 = vld [vmem:[%s10228_s3 + $0x3d0] sm:$0xff]  ;;  %v6836_v36 = vpop.eup %6835 }
 0x184   : > { %10845 = vst [vmem:[#allocation108_spill] sm:$0xff] %v8546_v16  ;;  %6859 = vpow2.f32 %v1708_v7  ;;  %3297 = vmatpush2.msra.mxu1 %v8546_v16  ;;  %v8570_v1 = vmul.f32 %v8347_v34, %v953_v26  ;;  %v8572_v59 = vmul.f32 %v6832_v12, %v6440_v41  ;;  %v8577_v44 = vmul.f32 %v6826_v42, %v6438_v37  ;;  %v949_v12 = vld [vmem:[%s10228_s3 + $0x140] sm:$0xff]  ;;  %v6434_v42 = vld [vmem:[%s10228_s3 + $0x3c8] sm:$0xff]  ;;  %v8594_v26 = vpop.f32.mrf.mxu0  ;;  %v6838_v41 = vpop.eup %6837 }
 0x185   : > { %10846 = vst [vmem:[#allocation109_spill] sm:$0xff] %v8556_v49  ;;  %10847 = vst [vmem:[#allocation110_spill] sm:$0xff] %v8561_v60  ;;  %v1698_v14 = vmul.f32 1.442695, %v1594_v22  ;;  %6861 = vpow2.f32 %v1706_v45  ;;  %3298 = vmatprep.subr.mxu1 %v8556_v49  ;;  %v8584_v34 = vmul.f32 %v8338_v39, %v952_v9  ;;  %v8589_v7 = vmul.f32 %v6830_v57, %v6437_v54  ;;  %v948_v45 = vld [vmem:[%s10228_s3 + $0x138] sm:$0xff]  ;;  %v6433_v57 = vld [vmem:[%s10228_s3 + $0x3c0] sm:$0xff] }
 0x186   : > { %10848 = vst [vmem:[#allocation111_spill] sm:$0xff] %v8570_v1  ;;  %10849 = vst [vmem:[#allocation112_spill] sm:$0xff] %v8572_v59  ;;  %v1696_v22 = vmul.f32 1.442695, %v1593_v28  ;;  %6863 = vpow2.f32 %v1704_v25  ;;  %3299 = vmatpush2.msra.mxu1 %v8570_v1  ;;  %3351 = vmatprep.subr.mxu0 %v8572_v59  ;;  %v8599_v39 = vmul.f32 %v8325_v38, %v951_v58  ;;  %v6840_v28 = vpop.eup %6839  ;;  %v1694_v25 = vmul.f32 1.442695, %v8157_v56  ;;  %v8624_v58 = vpop.f32.mrf.mxu0 }
 0x187   : > { %10850 = vst [vmem:[#allocation113_spill] sm:$0xff] %v8577_v44  ;;  %10851 = vst [vmem:[#allocation114_spill] sm:$0xff] %v8584_v34  ;;  %v8605_v37 = vmul.f32 %v8501_v55, %v6436_v63  ;;  %6865 = vpow2.f32 %v1702_v61  ;;  %3300 = vmatprep.subr.mxu1 %v8584_v34  ;;  %3352 = vmatpush2.msra.mxu0 %v8561_v60  ;;  %v8614_v38 = vmul.f32 %v8315_v19, %v950_v6  ;;  %v947_v55 = vld [vmem:[%s10228_s3 + $0x130] sm:$0xff]  ;;  %v6432_v54 = vld [vmem:[%s10228_s3 + $0x3b8] sm:$0xff]  ;;  %v6842_v56 = vpop.eup %6841 }
 0x188   : > { %10852 = vst [vmem:[#allocation115_spill] sm:$0xff] %v8589_v7  ;;  %10853 = vst [vmem:[#allocation116_spill] sm:$0xff] %v8599_v39  ;;  %v8619_v9 = vmul.f32 %v6834_v27, %v6435_v53  ;;  %v1692_v61 = vmul.f32 1.442695, %v8142_v0  ;;  %6867 = vpow2.f32 %v1700_v30  ;;  %3301 = vmatpush2.msra.mxu1 %v8599_v39  ;;  %3353 = vmatprep.subr.mxu0 %v8577_v44  ;;  %v946_v27 = vld [vmem:[%s10228_s3 + $0x128] sm:$0xff]  ;;  %v6431_v6 = vld [vmem:[%s10228_s3 + $0x3b0] sm:$0xff]  ;;  %v6844_v53 = vpop.eup %6843 }
 0x189   : > { %10854 = vst [vmem:[#allocation117_spill] sm:$0xff] %v8605_v37  ;;  %10855 = vst [vmem:[#allocation118_spill] sm:$0xff] %v8614_v38  ;;  %v8630_v19 = vmul.f32 %v8290_v24, %v949_v12  ;;  %v8635_v63 = vmul.f32 %v6836_v36, %v6434_v42  ;;  %v1690_v0 = vmul.f32 1.442695, %v7992_v3  ;;  %6869 = vpow2.f32 %v1698_v14  ;;  %3302 = vmatprep.subr.mxu1 %v8614_v38  ;;  %v945_v30 = vld [vmem:[%s10228_s3 + $0x120] sm:$0xff]  ;;  %v6430_v12 = vld [vmem:[%s10228_s3 + $0x3a8] sm:$0xff]  ;;  %v8654_v42 = vpop.f32.mrf.mxu0  ;;  %v6846_v3 = vpop.eup %6845 }
 0x18a   : > { %10856 = vst [vmem:[#allocation119_spill] sm:$0xff] %v8619_v9  ;;  %3354 = vmatpush2.msra.mxu0 %v8589_v7  ;;  %v8644_v24 = vmul.f32 %v8246_v43, %v948_v45  ;;  %v8649_v36 = vmul.f32 %v6838_v41, %v6433_v57  ;;  %v1688_v14 = vmul.f32 1.442695, %v7979_v40  ;;  %6871 = vpow2.f32 %v1696_v22  ;;  %v944_v41 = vld [vmem:[%s10228_s3 + $0x118] sm:$0xff]  ;;  %v6429_v57 = vld [vmem:[%s10228_s3 + $0x3a0] sm:$0xff]  ;;  %v6848_v7 = vpop.eup %6847 }
 0x18b   : > { %10857 = vst [vmem:[#allocation120_spill] sm:$0xff] %v8630_v19  ;;  %10858 = vst [vmem:[#allocation121_spill] sm:$0xff] %v8635_v63  ;;  %3303 = vmatpush2.msra.mxu1 %v8630_v19  ;;  %3355 = vmatprep.subr.mxu0 %v8605_v37  ;;  %v8660_v43 = vmul.f32 %v8184_v29, %v947_v55  ;;  %v8665_v45 = vmul.f32 %v6840_v28, %v6432_v54  ;;  %6873 = vpow2.f32 %v1694_v25  ;;  %v943_v29 = vld [vmem:[%s10228_s3 + $0x110] sm:$0xff]  ;;  %v6428_v28 = vld [vmem:[%s10228_s3 + $0x398] sm:$0xff]  ;;  %v8683_v55 = vpop.f32.mrf.mxu0  ;;  %v6850_v25 = vpop.eup %6849 }
 0x18c   : > { %10859 = vst [vmem:[#allocation122_spill] sm:$0xff] %v8644_v24  ;;  %10860 = vst [vmem:[#allocation123_spill] sm:$0xff] %v8649_v36  ;;  %3304 = vmatprep.subr.mxu1 %v8644_v24  ;;  %3356 = vmatpush2.msra.mxu0 %v8619_v9  ;;  %v8673_v40 = vmul.f32 %v8125_v10, %v946_v27  ;;  %v8678_v22 = vmul.f32 %v6842_v56, %v6431_v6  ;;  %6875 = vpow2.f32 %v1692_v61  ;;  %v942_v54 = vld [vmem:[%s10228_s3 + $0x108] sm:$0xff]  ;;  %v6427_v27 = vld [vmem:[%s10228_s3 + $0x390] sm:$0xff]  ;;  %v6852_v6 = vpop.eup %6851 }
 0x18d   : > { %10861 = vst [vmem:[#allocation124_spill] sm:$0xff] %v8660_v43  ;;  %10862 = vst [vmem:[#allocation125_spill] sm:$0xff] %v8665_v45  ;;  %3305 = vmatpush2.msra.mxu1 %v8660_v43  ;;  %3357 = vmatprep.subr.mxu0 %v8635_v63  ;;  %v8688_v10 = vmul.f32 %v8101_v46, %v945_v30  ;;  %v8693_v56 = vmul.f32 %v6844_v53, %v6430_v12  ;;  %6877 = vpow2.f32 %v1690_v0  ;;  %v941_v46 = vld [vmem:[%s10228_s3 + $0x100] sm:$0xff]  ;;  %v6426_v53 = vld [vmem:[%s10228_s3 + $0x388] sm:$0xff]  ;;  %v8711_v12 = vpop.f32.mrf.mxu0  ;;  %v8713_v0 = vpop.f32.mrf.mxu1 }
 0x18e   : > { %10863 = vst [vmem:[#allocation126_spill] sm:$0xff] %v8673_v40  ;;  %10864 = vst [vmem:[#allocation127_spill] sm:$0xff] %v8678_v22  ;;  %3306 = vmatprep.subr.mxu1 %v8673_v40  ;;  %3358 = vmatpush2.msra.mxu0 %v8649_v36  ;;  %v8701_v61 = vmul.f32 %v8073_v5, %v944_v41  ;;  %v8706_v30 = vmul.f32 %v6846_v3, %v6429_v57  ;;  %v6854_v63 = vpop.eup %6853  ;;  %6879 = vpow2.f32 %v1688_v14  ;;  %v6425_v41 = vld [vmem:[%s10228_s3 + $0x380] sm:$0xff]  ;;  %v10872_v36 = vld [vmem:[#allocation74_spill] sm:$0xff] }
 0x18f   : > { %10865 = vst [vmem:[#allocation128_spill] sm:$0xff] %v8688_v10  ;;  %10866 = vst [vmem:[#allocation129_spill] sm:$0xff] %v8693_v56  ;;  %3307 = vmatpush2.msra.mxu1 %v8688_v10  ;;  %3359 = vmatprep.subr.mxu0 %v8665_v45  ;;  %v8719_v5 = vmul.f32 %v8059_v48, %v943_v29  ;;  %v8721_v3 = vmul.f32 %v6848_v7, %v6428_v28  ;;  %v6856_v57 = vpop.eup %6855  ;;  %v10871_v37 = vld [vmem:[#allocation84_spill] sm:$0xff]  ;;  %v6424_v7 = vld [vmem:[%s10228_s3 + $0x378] sm:$0xff]  ;;  %v8738_v29 = vpop.f32.mrf.mxu0  ;;  %v2355_v14 = vmax.f32 %v8594_v26, 0.0 }
 0x190   : > { %10867 = vst [vmem:[#allocation130_spill] sm:$0xff] %v8701_v61  ;;  %10868 = vst [vmem:[#allocation131_spill] sm:$0xff] %v8706_v30  ;;  %3308 = vmatprep.subr.mxu1 %v8701_v61  ;;  %3360 = vmatpush2.msra.mxu0 %v8678_v22  ;;  %v8731_v45 = vmul.f32 %v10872_v36, %v942_v54  ;;  %v8733_v48 = vmul.f32 %v6850_v25, %v6427_v27  ;;  %v6858_v28 = vpop.eup %6857  ;;  %v10875_v44 = vld [vmem:[#allocation87_spill] sm:$0xff]  ;;  %v10876_v22 = vld [vmem:[#allocation72_spill] sm:$0xff]  ;;  %v2357_v26 = vmax.f32 %v8654_v42, 0.0 }
 0x191   : > { %10869 = vst [vmem:[#allocation132_spill] sm:$0xff] %v8719_v5  ;;  %10870 = vst [vmem:[#allocation133_spill] sm:$0xff] %v8721_v3  ;;  %3309 = vmatpush2.msra.mxu1 %v8719_v5  ;;  %3361 = vmatprep.subr.mxu0 %v8693_v56  ;;  %v8745_v36 = vmul.f32 %v10876_v22, %v941_v46  ;;  %v8747_v25 = vmul.f32 %v6852_v6, %v6426_v53  ;;  %v6423_v54 = vld [vmem:[%s10228_s3 + $0x370] sm:$0xff]  ;;  %v6860_v27 = vpop.eup %6859  ;;  %v10879_v59 = vld [vmem:[#allocation36_spill] sm:$0xff]  ;;  %v8762_v6 = vpop.f32.mrf.mxu0 }
 0x192   : > { %10873 = vst [vmem:[#allocation84_spill] sm:$0xff] %v8731_v45  ;;  %10874 = vst [vmem:[#allocation74_spill] sm:$0xff] %v8733_v48  ;;  %3310 = vmatprep.subr.mxu1 %v8731_v45  ;;  %3362 = vmatpush2.msra.mxu0 %v8706_v30  ;;  %v8757_v56 = vmul.f32 %v6854_v63, %v6425_v41  ;;  %v6422_v22 = vld [vmem:[%s10228_s3 + $0x368] sm:$0xff]  ;;  %v3045_v46 = vpop.f32.mrf.mxu1  ;;  %v6862_v53 = vpop.eup %6861  ;;  %v10881_v5 = vld [vmem:[#allocation39_spill] sm:$0xff]  ;;  %v8767_v9 = vmul.f32 %v6856_v57, %v6424_v7  ;;  %v2356_v63 = vmax.f32 %v8624_v58, 0.0 }
 0x193   : > { %10877 = vst [vmem:[#allocation87_spill] sm:$0xff] %v8745_v36  ;;  %10878 = vst [vmem:[#allocation72_spill] sm:$0xff] %v8747_v25  ;;  %3311 = vmatpush2.msra.mxu1 %v8745_v36  ;;  %3363 = vmatprep.subr.mxu0 %v8721_v3  ;;  %v6421_v41 = vld [vmem:[%s10228_s3 + $0x360] sm:$0xff]  ;;  %v6864_v30 = vpop.eup %6863  ;;  %v8777_v60 = vmul.f32 %v6858_v28, %v6423_v54  ;;  %v6420_v57 = vld [vmem:[%s10228_s3 + $0x358] sm:$0xff]  ;;  %v8783_v58 = vpop.f32.mrf.mxu0  ;;  %v2351_v45 = vmax.f32 %v8491_v33, 0.0  ;;  %v2354_v28 = vmax.f32 %v8566_v32, 0.0 }
 0x194   : > { %10880 = vst [vmem:[#allocation36_spill] sm:$0xff] %v8757_v56  ;;  %10882 = vst [vmem:[#allocation39_spill] sm:$0xff] %v8767_v9  ;;  %v10883_v61 = vld [vmem:[#allocation44_spill] sm:$0xff]  ;;  %3364 = vmatpush2.msra.mxu0 %v8733_v48  ;;  %v10885_v7 = vld [vmem:[#allocation91_spill] sm:$0xff]  ;;  %v6866_v3 = vpop.eup %6865  ;;  %v8790_v54 = vmul.f32 %v6860_v27, %v6422_v22  ;;  %v2353_v48 = vmax.f32 %v8541_v31, 0.0  ;;  %v2421_v36 = vmul.f32 -0.5, %v2357_v26  ;;  %v8807_v40 = vmul.f32 %v6864_v30, %v6420_v57 }
 0x195   : > { %10884 = vst [vmem:[#allocation44_spill] sm:$0xff] %v8777_v60  ;;  %3313 = vmatmul.mubr.f32.vlgmr.msra.gmra.mxu1 %v10885_v7  ;;  %3365 = vmatprep.subr.mxu0 %v8747_v25  ;;  %v6419_v10 = vld [vmem:[%s10228_s3 + $0x350] sm:$0xff]  ;;  %v6868_v42 = vpop.eup %6867  ;;  %v8797_v7 = vmul.f32 %v6862_v53, %v6421_v41  ;;  %v6418_v33 = vld [vmem:[%s10228_s3 + $0x348] sm:$0xff]  ;;  %v2358_v32 = vmax.f32 %v8683_v55, 0.0  ;;  %v8803_v27 = vpop.f32.mrf.mxu0  ;;  %v2352_v25 = vmax.f32 %v8512_v13, 0.0  ;;  %v2420_v31 = vmul.f32 -0.5, %v2356_v63 }
 0x196   : > { %10886 = vst [vmem:[#allocation91_spill] sm:$0xff] %v8790_v54  ;;  %3454 = vmatprep.mubr.f32.mxu1 %v3045_v46  ;;  %3366 = vmatpush2.msra.mxu0 %v8757_v56  ;;  %v6870_v22 = vpop.eup %6869  ;;  %v2419_v46 = vmul.f32 -0.5, %v2355_v14  ;;  %10888 = vst [vmem:[#allocation135_spill] sm:$0xff] %v8807_v40  ;;  %v6417_v53 = vld [vmem:[%s10228_s3 + $0x340] sm:$0xff]  ;;  %v2514_v26 = vmul.f32 1.442695, %v2421_v36  ;;  %v8813_v55 = vmul.f32 %v6866_v3, %v6419_v10 }
 0x197   : > { %10887 = vst [vmem:[#allocation134_spill] sm:$0xff] %v8797_v7  ;;  %3367 = vmatprep.subr.mxu0 %v8767_v9  ;;  %v6872_v41 = vpop.eup %6871  ;;  %v2422_v56 = vmul.f32 -0.5, %v2358_v32  ;;  %v6416_v13 = vld [vmem:[%s10228_s3 + $0x338] sm:$0xff]  ;;  %v2359_v14 = vmax.f32 %v8711_v12, 0.0  ;;  %v8819_v63 = vpop.f32.mrf.mxu0  ;;  %v2349_v57 = vmax.f32 %v8455_v50, 0.0  ;;  %v2350_v9 = vmax.f32 %v8473_v47, 0.0 }
 0x198   : > { %3368 = vmatpush2.msra.mxu0 %v8777_v60  ;;  %10889 = vst [vmem:[#allocation136_spill] sm:$0xff] %v8813_v55  ;;  %v6874_v30 = vpop.eup %6873  ;;  %v2418_v43 = vmul.f32 -0.5, %v2354_v28  ;;  %v8824_v36 = vmul.f32 %v6868_v42, %v6418_v33  ;;  %v6415_v10 = vld [vmem:[%s10228_s3 + $0x330] sm:$0xff]  ;;  %v2417_v32 = vmul.f32 -0.5, %v2353_v48  ;;  %v8830_v60 = vmul.f32 %v6870_v22, %v6417_v53  ;;  %v6414_v50 = vld [vmem:[%s10228_s3 + $0x328] sm:$0xff] }
 0x199   : > { %3369 = vmatprep.subr.mxu0 %v8790_v54  ;;  %v6876_v3 = vpop.eup %6875  ;;  %v2516_v12 = vmul.f32 1.442695, %v2422_v56  ;;  %v2423_v24 = vmul.f32 -0.5, %v2359_v14  ;;  %v8835_v47 = vpop.f32.mrf.mxu0  ;;  %v2415_v42 = vmul.f32 -0.5, %v2351_v45  ;;  %v2416_v33 = vmul.f32 -0.5, %v2352_v25  ;;  %v6413_v56 = vld [vmem:[%s10228_s3 + $0x320] sm:$0xff] }
 0x19a   : > { %10890 = vst [vmem:[#allocation137_spill] sm:$0xff] %v8824_v36  ;;  %3370 = vmatpush2.msra.mxu0 %v8797_v7  ;;  %10891 = vst [vmem:[#allocation138_spill] sm:$0xff] %v8830_v60  ;;  %v6878_v28 = vpop.eup %6877  ;;  %v2512_v54 = vmul.f32 1.442695, %v2420_v31  ;;  %v8838_v19 = vmul.f32 %v6872_v41, %v6416_v13  ;;  %v2510_v22 = vmul.f32 1.442695, %v2419_v46  ;;  %6881 = vpow2.f32 %v2514_v26 }
 0x19b   : > { %3371 = vmatprep.subr.mxu0 %v8807_v40  ;;  %v6880_v48 = vpop.eup %6879  ;;  %v2518_v53 = vmul.f32 1.442695, %v2423_v24  ;;  %v8844_v14 = vmul.f32 %v6874_v30, %v6415_v10  ;;  %v6412_v45 = vld [vmem:[%s10228_s3 + $0x318] sm:$0xff]  ;;  %v8849_v25 = vpop.f32.mrf.mxu0  ;;  %v2414_v31 = vmul.f32 -0.5, %v2350_v9  ;;  %v2508_v41 = vmul.f32 1.442695, %v2418_v43 }
 0x19c   : > { %10892 = vst [vmem:[#allocation139_spill] sm:$0xff] %v8838_v19  ;;  %3372 = vmatpush2.msra.mxu0 %v8813_v55  ;;  %6883 = vpow2.f32 %v2516_v12  ;;  %v8852_v13 = vmul.f32 %v6876_v3, %v6414_v50  ;;  %v6411_v46 = vld [vmem:[%s10228_s3 + $0x310] sm:$0xff]  ;;  %v2413_v24 = vmul.f32 -0.5, %v2349_v57  ;;  %v2506_v26 = vmul.f32 1.442695, %v2417_v32  ;;  %v6410_v9 = vld [vmem:[%s10228_s3 + $0x308] sm:$0xff] }
 0x19d   : > { %10893 = vst [vmem:[#allocation140_spill] sm:$0xff] %v8844_v14  ;;  %3373 = vmatprep.subr.mxu0 %v8824_v36  ;;  %6885 = vpow2.f32 %v2518_v53  ;;  %v8858_v30 = vmul.f32 %v6878_v28, %v6413_v56  ;;  %v8863_v43 = vpop.f32.mrf.mxu0  ;;  %v10896_v10 = vmax.f32 %v8441_v8, 0.0  ;;  %v2504_v12 = vmul.f32 1.442695, %v2416_v33  ;;  %v6409_v32 = vld [vmem:[%s10228_s3 + $0x300] sm:$0xff]  ;;  %v10899_v53 = vld [vmem:[#allocation10_spill] sm:$0xff] }
 0x19e   : > { %10894 = vst [vmem:[#allocation141_spill] sm:$0xff] %v8852_v13  ;;  %3374 = vmatpush2.msra.mxu0 %v8830_v60  ;;  %6887 = vpow2.f32 %v2512_v54  ;;  %v8868_v57 = vmul.f32 %v6880_v48, %v6412_v45  ;;  %v10898_v50 = vmax.f32 %v10883_v61, 0.0  ;;  %v2502_v56 = vmul.f32 1.442695, %v2415_v42  ;;  %v6535_v60 = vld [vmem:[%s10228_s3 + $0x4e0] sm:$0xff] }
 0x19f   : > { %10895 = vst [vmem:[#allocation142_spill] sm:$0xff] %v8858_v30  ;;  %v2412_v3 = vmul.f32 -0.5, %v10896_v10  ;;  %3375 = vmatprep.subr.mxu0 %v8838_v19  ;;  %6889 = vpow2.f32 %v2510_v22  ;;  %v8877_v8 = vmul.f32 %v10899_v53, %v6411_v46  ;;  %v8879_v33 = vpop.f32.mrf.mxu0  ;;  %v10901_v54 = vmax.f32 %v8419_v17, 0.0  ;;  %v10902_v10 = vld [vmem:[#allocation88_spill] sm:$0xff]  ;;  %v10905_v46 = vld [vmem:[#allocation82_spill] sm:$0xff] }
 0x1a0   : > { %10897 = vst [vmem:[#allocation143_spill] sm:$0xff] %v8868_v57  ;;  %v2411_v28 = vmul.f32 -0.5, %v10898_v50  ;;  %3376 = vmatpush2.msra.mxu0 %v8844_v14  ;;  %v2500_v45 = vmul.f32 1.442695, %v2414_v31  ;;  %6891 = vpow2.f32 %v2508_v41  ;;  %v8885_v19 = vmul.f32 %v10902_v10, %v6410_v9  ;;  %v10907_v17 = vld [vmem:[#allocation96_spill] sm:$0xff]  ;;  %v6536_v14 = vld [vmem:[%s10228_s3 + $0x4e8] sm:$0xff] }
 0x1a1   : > { %10900 = vst [vmem:[#allocation10_spill] sm:$0xff] %v8877_v8  ;;  %v2410_v48 = vmul.f32 -0.5, %v10901_v54  ;;  %3377 = vmatprep.subr.mxu0 %v8852_v13  ;;  %v10904_v61 = vmax.f32 %v10881_v5, 0.0  ;;  %v2498_v22 = vmul.f32 1.442695, %v2413_v24  ;;  %6893 = vpow2.f32 %v2506_v26  ;;  %v8893_v53 = vpop.f32.mrf.mxu0  ;;  %v10909_v5 = vld [vmem:[#allocation95_spill] sm:$0xff] }
 0x1a2   : > { %10903 = vst [vmem:[#allocation88_spill] sm:$0xff] %v8885_v19  ;;  %3378 = vmatpush2.msra.mxu0 %v8858_v30  ;;  %v8891_v50 = vmul.f32 %v10905_v46, %v6409_v32  ;;  %v2340_v31 = vmax.f32 %v10907_v17, 0.0  ;;  %v10908_v41 = vmax.f32 %v10879_v59, 0.0  ;;  %v2496_v13 = vmul.f32 1.442695, %v2412_v3 }
 0x1a3   : > { %v2409_v42 = vmul.f32 -0.5, %v10904_v61  ;;  %6895 = vpow2.f32 %v2504_v12  ;;  %3379 = vmatprep.subr.mxu0 %v8868_v57  ;;  %v2339_v9 = vmax.f32 %v10909_v5, 0.0  ;;  %v10910_v24 = vmax.f32 %v8395_v23, 0.0  ;;  %v8903_v32 = vpop.f32.mrf.mxu0  ;;  %v10911_v61 = vld [vmem:[#allocation93_spill] sm:$0xff]  ;;  %v10913_v12 = vld [vmem:[#allocation92_spill] sm:$0xff] }
 0x1a4   : > { %10906 = vst [vmem:[#allocation82_spill] sm:$0xff] %v8891_v50  ;;  %v2408_v54 = vmul.f32 -0.5, %v10908_v41  ;;  %v2494_v10 = vmul.f32 1.442695, %v2411_v28  ;;  %6897 = vpow2.f32 %v2502_v56  ;;  %3380 = vmatpush2.msra.mxu0 %v8877_v8  ;;  %v2338_v46 = vmax.f32 %v10911_v61, 0.0 }
 0x1a5   : > { %v2407_v26 = vmul.f32 -0.5, %v10910_v24  ;;  %v10912_v59 = vmax.f32 %v8389_v62, 0.0  ;;  %v2492_v3 = vmul.f32 1.442695, %v2410_v48  ;;  %6899 = vpow2.f32 %v2500_v45  ;;  %3381 = vmatprep.subr.mxu0 %v8885_v19  ;;  %v8913_v56 = vpop.f32.mrf.mxu0  ;;  %v10915_v24 = vld [vmem:[#allocation90_spill] sm:$0xff]  ;;  %v10917_v45 = vld [vmem:[#allocation13_spill] sm:$0xff] }
 0x1a6   : > { %v2337_v41 = vmax.f32 %v10913_v12, 0.0  ;;  %v10914_v23 = vmax.f32 %v8383_v20, 0.0  ;;  %v2490_v28 = vmul.f32 1.442695, %v2409_v42  ;;  %6901 = vpow2.f32 %v2498_v22  ;;  %3382 = vmatpush2.msra.mxu0 %v8891_v50  ;;  %v10916_v48 = vld [vmem:[#allocation94_spill] sm:$0xff] }
 0x1a7   : > { %v2406_v17 = vmul.f32 -0.5, %v10912_v59  ;;  %v2336_v61 = vmax.f32 %v10915_v24, 0.0  ;;  %v2404_v8 = vmul.f32 -0.5, %v2340_v31  ;;  %v2488_v62 = vmul.f32 1.442695, %v2408_v54  ;;  %3384 = vmatmul.mubr.f32.vlgmr.msra.gmra.mxu0 %v10916_v48  ;;  %v8918_v20 = vpop.f32.mrf.mxu0  ;;  %v6882_v22 = vpop.eup %6881  ;;  %v10920_v54 = vld [vmem:[#allocation31_spill] sm:$0xff] }
 0x1a8   : > { %v2405_v5 = vmul.f32 -0.5, %v10914_v23  ;;  %6903 = vpow2.f32 %v2496_v13  ;;  %v2335_v59 = vmax.f32 %v10917_v45, 0.0  ;;  %v2403_v19 = vmul.f32 -0.5, %v2339_v9  ;;  %v10919_v23 = vld [vmem:[#allocation24_spill] sm:$0xff]  ;;  %v6538_v13 = vld [vmem:[%s10228_s3 + $0x4f8] sm:$0xff] }
 0x1a9   : > { %v2486_v12 = vmul.f32 1.442695, %v2407_v26  ;;  %6905 = vpow2.f32 %v2494_v10  ;;  %v10918_v42 = vmov 0.0   ;;  %v2334_v50 = vmax.f32 %v10919_v23, 0.0  ;;  %v6884_v31 = vpop.eup %6883  ;;  %v6537_v10 = vld [vmem:[%s10228_s3 + $0x4f0] sm:$0xff]  ;;  %v8929_v48 = vpop.f32.mrf.mxu0 }
 0x1aa   : > { %3566 = vmatprep.mubr.f32.mxu0 %v10918_v42  ;;  %v2402_v57 = vmul.f32 -0.5, %v2338_v46  ;;  %v2484_v30 = vmul.f32 1.442695, %v2406_v17  ;;  %6907 = vpow2.f32 %v2492_v3  ;;  %v2333_v24 = vmax.f32 %v10920_v54, 0.0  ;;  %v6886_v45 = vpop.eup %6885  ;;  %v10921_v46 = vld [vmem:[#allocation89_spill] sm:$0xff] }
 0x1ab   : > { %v2401_v9 = vmul.f32 -0.5, %v2337_v41  ;;  %v2482_v26 = vmul.f32 1.442695, %v2405_v5  ;;  %6909 = vpow2.f32 %v2490_v28  ;;  %v2332_v17 = vmax.f32 %v10921_v46, 0.0  ;;  %v6888_v54 = vpop.eup %6887  ;;  %v8940_v36 = vpop.f32.mrf.mxu0 }
 0x1ac   : > { %v2400_v3 = vmul.f32 -0.5, %v2336_v61  ;;  %v2480_v23 = vmul.f32 1.442695, %v2404_v8  ;;  %6911 = vpow2.f32 %v2488_v62  ;;  %v2399_v41 = vmul.f32 -0.5, %v2335_v59  ;;  %v6890_v46 = vpop.eup %6889  ;;  %v6534_v59 = vld [vmem:[%s10228_s3 + $0x4d8] sm:$0xff] }
 0x1ad   : > { %v2478_v5 = vmul.f32 1.442695, %v2403_v19  ;;  %6913 = vpow2.f32 %v2486_v12  ;;  %v8935_v28 = vmul.f32 %v6886_v45, %v6538_v13  ;;  %v2398_v61 = vmul.f32 -0.5, %v2334_v50  ;;  %v6892_v19 = vpop.eup %6891  ;;  %v6533_v50 = vld [vmem:[%s10228_s3 + $0x4d0] sm:$0xff] }
 0x1ae   : > { %v2476_v8 = vmul.f32 1.442695, %v2402_v57  ;;  %6915 = vpow2.f32 %v2484_v30  ;;  %v8942_v62 = vmul.f32 %v6884_v31, %v6537_v10  ;;  %v2397_v12 = vmul.f32 -0.5, %v2333_v24  ;;  %v8953_v57 = vpop.f32.mrf.mxu0  ;;  %v6894_v30 = vpop.eup %6893  ;;  %v6532_v24 = vld [vmem:[%s10228_s3 + $0x4c8] sm:$0xff] }
 0x1af   : > { %10922 = vst [vmem:[#allocation96_spill] sm:$0xff] %v8935_v28  ;;  %v2474_v13 = vmul.f32 1.442695, %v2401_v9  ;;  %6917 = vpow2.f32 %v2482_v26  ;;  %3390 = vmatprep.subr.mxu1 %v8935_v28  ;;  %v8948_v45 = vmul.f32 %v6882_v22, %v6536_v14  ;;  %v2396_v31 = vmul.f32 -0.5, %v2332_v17  ;;  %v6531_v17 = vld [vmem:[%s10228_s3 + $0x4c0] sm:$0xff] }
 0x1b0   : > { %10923 = vst [vmem:[#allocation95_spill] sm:$0xff] %v8942_v62  ;;  %v2472_v10 = vmul.f32 1.442695, %v2400_v3  ;;  %6919 = vpow2.f32 %v2480_v23  ;;  %3391 = vmatpush1.msra.mxu1 %v8942_v62  ;;  %v8956_v55 = vmul.f32 %v6888_v54, %v6535_v60  ;;  %v6896_v14 = vpop.eup %6895  ;;  %v10926_v22 = vmax.f32 %v10875_v44, 0.0  ;;  %v8969_v60 = vpop.f32.mrf.mxu0 }
 0x1b1   : > { %10924 = vst [vmem:[#allocation93_spill] sm:$0xff] %v8948_v45  ;;  %v2470_v26 = vmul.f32 1.442695, %v2399_v41  ;;  %6921 = vpow2.f32 %v2478_v5  ;;  %3392 = vmatprep.subr.mxu1 %v8948_v45  ;;  %v8964_v40 = vmul.f32 %v6890_v46, %v6534_v59  ;;  %v6898_v3 = vpop.eup %6897  ;;  %v10928_v23 = vmax.f32 %v10871_v37, 0.0  ;;  %v6530_v41 = vld [vmem:[%s10228_s3 + $0x4b8] sm:$0xff] }
 0x1b2   : > { %10925 = vst [vmem:[#allocation92_spill] sm:$0xff] %v8956_v55  ;;  %v2395_v9 = vmul.f32 -0.5, %v10926_v22  ;;  %v2468_v62 = vmul.f32 1.442695, %v2398_v61  ;;  %6923 = vpow2.f32 %v2476_v8  ;;  %3393 = vmatpush1.msra.mxu1 %v8956_v55  ;;  %v8974_v44 = vmul.f32 %v6892_v19, %v6533_v50  ;;  %v6900_v5 = vpop.eup %6899  ;;  %v6529_v61 = vld [vmem:[%s10228_s3 + $0x4b0] sm:$0xff]  ;;  %v8987_v8 = vpop.f32.mrf.mxu0 }
 0x1b3   : > { %10927 = vst [vmem:[#allocation90_spill] sm:$0xff] %v8964_v40  ;;  %v2394_v54 = vmul.f32 -0.5, %v10928_v23  ;;  %v10930_v46 = vmax.f32 %v8099_v11, 0.0  ;;  %v2466_v22 = vmul.f32 1.442695, %v2397_v12  ;;  %6925 = vpow2.f32 %v2474_v13  ;;  %3394 = vmatprep.subr.mxu1 %v8964_v40  ;;  %v6902_v19 = vpop.eup %6901  ;;  %v6528_v12 = vld [vmem:[%s10228_s3 + $0x4a8] sm:$0xff] }
 0x1b4   : > { %10929 = vst [vmem:[#allocation94_spill] sm:$0xff] %v8974_v44  ;;  %v8982_v37 = vmul.f32 %v6894_v30, %v6532_v24  ;;  %v10932_v50 = vmax.f32 %v8071_v35, 0.0  ;;  %v2464_v55 = vmul.f32 1.442695, %v2396_v31  ;;  %6927 = vpow2.f32 %v2472_v10  ;;  %3395 = vmatpush1.msra.mxu1 %v8974_v44  ;;  %v6527_v35 = vld [vmem:[%s10228_s3 + $0x4a0] sm:$0xff]  ;;  %v9003_v31 = vpop.f32.mrf.mxu0 }
 0x1b5   : > { %v2393_v59 = vmul.f32 -0.5, %v10930_v46  ;;  %v8992_v11 = vmul.f32 %v6896_v14, %v6531_v17  ;;  %v6904_v13 = vpop.eup %6903  ;;  %v2462_v30 = vmul.f32 1.442695, %v2395_v9  ;;  %6929 = vpow2.f32 %v2470_v26  ;;  %v6526_v9 = vld [vmem:[%s10228_s3 + $0x498] sm:$0xff] }
 0x1b6   : > { %10931 = vst [vmem:[#allocation13_spill] sm:$0xff] %v8982_v37  ;;  %v2392_v23 = vmul.f32 -0.5, %v10932_v50  ;;  %3396 = vmatprep.subr.mxu1 %v8982_v37  ;;  %v8998_v24 = vmul.f32 %v6898_v3, %v6530_v41  ;;  %v6906_v10 = vpop.eup %6905  ;;  %v2460_v14 = vmul.f32 1.442695, %v2394_v54  ;;  %6931 = vpow2.f32 %v2468_v62  ;;  %v6525_v54 = vld [vmem:[%s10228_s3 + $0x490] sm:$0xff]  ;;  %v9017_v62 = vpop.f32.mrf.mxu0  ;;  %v6523_v50 = vld [vmem:[%s10228_s3 + $0x480] sm:$0xff] }
 0x1b7   : > { %10933 = vst [vmem:[#allocation24_spill] sm:$0xff] %v8992_v11  ;;  %3397 = vmatpush1.msra.mxu1 %v8992_v11  ;;  %v9006_v17 = vmul.f32 %v6900_v5, %v6529_v61  ;;  %v6908_v26 = vpop.eup %6907  ;;  %v2458_v3 = vmul.f32 1.442695, %v2393_v59  ;;  %6933 = vpow2.f32 %v2466_v22  ;;  %v9012_v41 = vmul.f32 %v6902_v19, %v6528_v12  ;;  %v6524_v59 = vld [vmem:[%s10228_s3 + $0x488] sm:$0xff] }
 0x1b8   : > { %10934 = vst [vmem:[#allocation31_spill] sm:$0xff] %v8998_v24  ;;  %3398 = vmatprep.subr.mxu1 %v8998_v24  ;;  %v6910_v46 = vpop.eup %6909  ;;  %v2456_v5 = vmul.f32 1.442695, %v2392_v23  ;;  %6935 = vpow2.f32 %v2464_v55  ;;  %v9020_v61 = vmul.f32 %v6904_v13, %v6527_v35  ;;  %v9026_v19 = vmul.f32 %v6906_v10, %v6526_v9  ;;  %v9031_v23 = vpop.f32.mrf.mxu0  ;;  %v6522_v13 = vld [vmem:[%s10228_s3 + $0x478] sm:$0xff]  ;;  %v6521_v10 = vld [vmem:[%s10228_s3 + $0x470] sm:$0xff] }
 0x1b9   : > { %10935 = vst [vmem:[#allocation89_spill] sm:$0xff] %v9006_v17  ;;  %10936 = vst [vmem:[#allocation144_spill] sm:$0xff] %v9012_v41  ;;  %3399 = vmatpush1.msra.mxu1 %v9006_v17  ;;  %v6912_v22 = vpop.eup %6911  ;;  %6937 = vpow2.f32 %v2462_v30  ;;  %v9034_v12 = vmul.f32 %v6908_v26, %v6525_v54  ;;  %v9040_v35 = vmul.f32 %v6910_v46, %v6524_v59  ;;  %v6519_v59 = vld [vmem:[%s10228_s3 + $0x460] sm:$0xff] }
 0x1ba   : > { %10937 = vst [vmem:[#allocation145_spill] sm:$0xff] %v9020_v61  ;;  %3400 = vmatprep.subr.mxu1 %v9012_v41  ;;  %10938 = vst [vmem:[#allocation146_spill] sm:$0xff] %v9026_v19  ;;  %v6914_v55 = vpop.eup %6913  ;;  %6939 = vpow2.f32 %v2460_v14  ;;  %v9045_v9 = vpop.f32.mrf.mxu0  ;;  %v9048_v26 = vmul.f32 %v6912_v22, %v6523_v50  ;;  %v6518_v50 = vld [vmem:[%s10228_s3 + $0x458] sm:$0xff] }
 0x1bb   : > { %3401 = vmatpush1.msra.mxu1 %v9020_v61  ;;  %10939 = vst [vmem:[#allocation147_spill] sm:$0xff] %v9034_v12  ;;  %v6916_v30 = vpop.eup %6915  ;;  %6941 = vpow2.f32 %v2458_v3  ;;  %10940 = vst [vmem:[#allocation148_spill] sm:$0xff] %v9040_v35  ;;  %v6520_v3 = vld [vmem:[%s10228_s3 + $0x468] sm:$0xff]  ;;  %v9054_v46 = vmul.f32 %v6914_v55, %v6522_v13  ;;  %v6517_v13 = vld [vmem:[%s10228_s3 + $0x450] sm:$0xff] }
 0x1bc   : > { %3402 = vmatprep.subr.mxu1 %v9026_v19  ;;  %v6918_v14 = vpop.eup %6917  ;;  %6943 = vpow2.f32 %v2456_v5  ;;  %10941 = vst [vmem:[#allocation149_spill] sm:$0xff] %v9048_v26  ;;  %v9059_v19 = vpop.f32.mrf.mxu0  ;;  %v9062_v22 = vmul.f32 %v6916_v30, %v6521_v10  ;;  %v6516_v10 = vld [vmem:[%s10228_s3 + $0x448] sm:$0xff] }
 0x1bd   : > { %3403 = vmatpush1.msra.mxu1 %v9034_v12  ;;  %v6920_v54 = vpop.eup %6919  ;;  %10942 = vst [vmem:[#allocation150_spill] sm:$0xff] %v9054_v46  ;;  %v9068_v55 = vmul.f32 %v6918_v14, %v6520_v3  ;;  %v6515_v3 = vld [vmem:[%s10228_s3 + $0x440] sm:$0xff] }
 0x1be   : > { %3404 = vmatprep.subr.mxu1 %v9040_v35  ;;  %v6922_v5 = vpop.eup %6921  ;;  %10943 = vst [vmem:[#allocation151_spill] sm:$0xff] %v9062_v22  ;;  %v9073_v35 = vpop.f32.mrf.mxu0  ;;  %v9076_v30 = vmul.f32 %v6920_v54, %v6519_v59  ;;  %v6514_v59 = vld [vmem:[%s10228_s3 + $0x438] sm:$0xff] }
 0x1bf   : > { %3405 = vmatpush1.msra.mxu1 %v9048_v26  ;;  %v6924_v12 = vpop.eup %6923  ;;  %10944 = vst [vmem:[#allocation152_spill] sm:$0xff] %v9068_v55  ;;  %v9082_v14 = vmul.f32 %v6922_v5, %v6518_v50  ;;  %v6513_v50 = vld [vmem:[%s10228_s3 + $0x430] sm:$0xff] }
 0x1c0   : > { %3406 = vmatprep.subr.mxu1 %v9054_v46  ;;  %v6926_v61 = vpop.eup %6925  ;;  %10945 = vst [vmem:[#allocation153_spill] sm:$0xff] %v9076_v30  ;;  %v9087_v46 = vpop.f32.mrf.mxu0  ;;  %v9090_v54 = vmul.f32 %v6924_v12, %v6517_v13  ;;  %v6512_v12 = vld [vmem:[%s10228_s3 + $0x428] sm:$0xff] }
 0x1c1   : > { %3407 = vmatpush1.msra.mxu1 %v9062_v22  ;;  %v6928_v26 = vpop.eup %6927  ;;  %10946 = vst [vmem:[#allocation154_spill] sm:$0xff] %v9082_v14  ;;  %v9096_v5 = vmul.f32 %v6926_v61, %v6516_v10  ;;  %v6511_v61 = vld [vmem:[%s10228_s3 + $0x420] sm:$0xff] }
 0x1c2   : > { %3408 = vmatprep.subr.mxu1 %v9068_v55  ;;  %v6930_v41 = vpop.eup %6929  ;;  %10947 = vst [vmem:[#allocation155_spill] sm:$0xff] %v9090_v54  ;;  %v2307_v55 = vpop.f32.mrf.mxu0 }
 0x1c3   : > { %3409 = vmatpush1.msra.mxu1 %v9076_v30  ;;  %v6932_v22 = vpop.eup %6931  ;;  %10948 = vst [vmem:[#allocation156_spill] sm:$0xff] %v9096_v5  ;;  %v9102_v30 = vmul.f32 %v6928_v26, %v6515_v3  ;;  %v6510_v26 = vld [vmem:[%s10228_s3 + $0x418] sm:$0xff] }
 0x1c4   : > { %3410 = vmatprep.subr.mxu1 %v9082_v14  ;;  %v6934_v17 = vpop.eup %6933  ;;  %v9108_v14 = vmul.f32 %v6930_v41, %v6514_v59  ;;  %v2311_v10 = vpop.f32.mrf.mxu0  ;;  %v6509_v41 = vld [vmem:[%s10228_s3 + $0x410] sm:$0xff] }
 0x1c5   : > { %3411 = vmatpush1.msra.mxu1 %v9090_v54  ;;  %10949 = vst [vmem:[#allocation157_spill] sm:$0xff] %v9102_v30  ;;  %v6936_v13 = vpop.eup %6935  ;;  %v9114_v54 = vmul.f32 %v6932_v22, %v6513_v50  ;;  %v6508_v22 = vld [vmem:[%s10228_s3 + $0x408] sm:$0xff]  ;;  %v2386_v44 = vmax.f32 %v2311_v10, 0.0 }
 0x1c6   : > { %3412 = vmatprep.subr.mxu1 %v9096_v5  ;;  %10950 = vst [vmem:[#allocation158_spill] sm:$0xff] %v9108_v14  ;;  %v6938_v24 = vpop.eup %6937  ;;  %v9120_v5 = vmul.f32 %v6934_v17, %v6512_v12  ;;  %v2313_v59 = vpop.f32.mrf.mxu0  ;;  %v6507_v17 = vld [vmem:[%s10228_s3 + $0x400] sm:$0xff] }
 0x1c7   : > { %3413 = vmatpush1.msra.mxu1 %v9102_v30  ;;  %10951 = vst [vmem:[#allocation159_spill] sm:$0xff] %v9114_v54  ;;  %v6940_v3 = vpop.eup %6939  ;;  %v9126_v30 = vmul.f32 %v6936_v13, %v6511_v61 }
 0x1c8   : > { %3414 = vmatprep.subr.mxu1 %v9108_v14  ;;  %10952 = vst [vmem:[#allocation160_spill] sm:$0xff] %v9120_v5  ;;  %v6942_v11 = vpop.eup %6941  ;;  %v9132_v14 = vmul.f32 %v6938_v24, %v6510_v26  ;;  %v2317_v12 = vpop.f32.mrf.mxu0  ;;  %v9138_v37 = vmul.f32 %v6940_v3, %v6509_v41  ;;  %v2387_v24 = vmax.f32 %v2313_v59, 0.0  ;;  %v2385_v3 = vmax.f32 %v2307_v55, 0.0 }
 0x1c9   : > { %3415 = vmatpush1.msra.mxu1 %v9114_v54  ;;  %10953 = vst [vmem:[#allocation161_spill] sm:$0xff] %v9126_v30  ;;  %v6944_v50 = vpop.eup %6943  ;;  %v9141_v13 = vmul.f32 %v6942_v11, %v6508_v22  ;;  %v2388_v61 = vmax.f32 %v2317_v12, 0.0  ;;  %v2383_v12 = vmax.f32 %v9073_v35, 0.0  ;;  %v2378_v55 = vmax.f32 %v9003_v31, 0.0 }
 0x1ca   : > { %3416 = vmatprep.subr.mxu1 %v9120_v5  ;;  %10954 = vst [vmem:[#allocation162_spill] sm:$0xff] %v9132_v14  ;;  %10955 = vst [vmem:[#allocation163_spill] sm:$0xff] %v9138_v37  ;;  %v2319_v54 = vpop.f32.mrf.mxu0  ;;  %v9144_v5 = vmul.f32 %v6944_v50, %v6507_v17  ;;  %v2384_v50 = vmax.f32 %v9087_v46, 0.0  ;;  %v2449_v22 = vmul.f32 -0.5, %v2385_v3  ;;  %v2379_v46 = vmax.f32 %v9017_v62, 0.0 }
 0x1cb   : > { %3417 = vmatpush1.msra.mxu1 %v9126_v30  ;;  %10956 = vst [vmem:[#allocation164_spill] sm:$0xff] %v9141_v13  ;;  %v2389_v26 = vmax.f32 %v2319_v54, 0.0  ;;  %v2452_v17 = vmul.f32 -0.5, %v2388_v61  ;;  %v2451_v54 = vmul.f32 -0.5, %v2387_v24  ;;  %v2382_v30 = vmax.f32 %v9059_v19, 0.0 }
 0x1cc   : > { %3418 = vmatprep.subr.mxu1 %v9132_v14  ;;  %10957 = vst [vmem:[#allocation165_spill] sm:$0xff] %v9144_v5  ;;  %v2323_v40 = vpop.f32.mrf.mxu0  ;;  %v2380_v61 = vmax.f32 %v9031_v23, 0.0  ;;  %v2448_v24 = vmul.f32 -0.5, %v2384_v50  ;;  %v2376_v62 = vmax.f32 %v8969_v60, 0.0  ;;  %v2443_v50 = vmul.f32 -0.5, %v2379_v46 }
 0x1cd   : > { %3419 = vmatpush1.msra.mxu1 %v9138_v37  ;;  %v2453_v41 = vmul.f32 -0.5, %v2389_v26  ;;  %v2390_v11 = vmax.f32 %v2323_v40, 0.0  ;;  %v2450_v26 = vmul.f32 -0.5, %v2386_v44  ;;  %v2381_v40 = vmax.f32 %v9045_v9, 0.0 }
 0x1ce   : > { %3420 = vmatprep.subr.mxu1 %v9141_v13  ;;  %v2325_v59 = vpop.f32.mrf.mxu0  ;;  %v2446_v45 = vmul.f32 -0.5, %v2382_v30  ;;  %v2377_v44 = vmax.f32 %v8987_v8, 0.0  ;;  %v2444_v3 = vmul.f32 -0.5, %v2380_v61  ;;  %v2568_v23 = vmul.f32 1.442695, %v2448_v24 }
 0x1cf   : > { %3421 = vmatpush1.msra.mxu1 %v9144_v5  ;;  %v2578_v37 = vmul.f32 1.442695, %v2453_v41  ;;  %v2454_v13 = vmul.f32 -0.5, %v2390_v11  ;;  %v2391_v10 = vmax.f32 %v2325_v59, 0.0  ;;  %v2576_v41 = vmul.f32 1.442695, %v2452_v17 }
 0x1d0   : > { %v2447_v11 = vmul.f32 -0.5, %v2383_v12  ;;  %v2574_v59 = vmul.f32 1.442695, %v2451_v54  ;;  %v2572_v19 = vmul.f32 1.442695, %v2450_v26  ;;  %v2445_v9 = vmul.f32 -0.5, %v2381_v40 }
 0x1d1   : > { %v2580_v5 = vmul.f32 1.442695, %v2454_v13  ;;  %v2455_v35 = vmul.f32 -0.5, %v2391_v10  ;;  %6945 = vpow2.f32 %v2578_v37  ;;  %v2570_v13 = vmul.f32 1.442695, %v2449_v22 }
 0x1d2   : > { %v2375_v12 = vmax.f32 %v8953_v57, 0.0  ;;  %v2566_v37 = vmul.f32 1.442695, %v2447_v11  ;;  %v2374_v31 = vmax.f32 %v8940_v36, 0.0  ;;  %v2442_v30 = vmul.f32 -0.5, %v2378_v55 }
 0x1d3   : > { %v2582_v14 = vmul.f32 1.442695, %v2455_v35  ;;  %6947 = vpow2.f32 %v2580_v5  ;;  %v2564_v17 = vmul.f32 1.442695, %v2446_v45  ;;  %v2373_v8 = vmax.f32 %v8929_v48, 0.0 }
 0x1d4   : > { %v2441_v5 = vmul.f32 -0.5, %v2377_v44  ;;  %v2562_v22 = vmul.f32 1.442695, %v2445_v9  ;;  %v2372_v60 = vmax.f32 %v8918_v20, 0.0  ;;  %v2560_v54 = vmul.f32 1.442695, %v2444_v3 }
 0x1d5   : > { %6949 = vpow2.f32 %v2582_v14  ;;  %v2440_v14 = vmul.f32 -0.5, %v2376_v62  ;;  %v2371_v57 = vmax.f32 %v8913_v56, 0.0  ;;  %v2439_v10 = vmul.f32 -0.5, %v2375_v12  ;;  %v6568_v12 = vld [vmem:[%s10228_s3 + $0x5e8] sm:$0xff] }
 0x1d6   : > { %6951 = vpow2.f32 %v2576_v41  ;;  %v2558_v26 = vmul.f32 1.442695, %v2443_v50  ;;  %v2370_v36 = vmax.f32 %v8903_v32, 0.0  ;;  %v2438_v55 = vmul.f32 -0.5, %v2374_v31 }
 0x1d7   : > { %6953 = vpow2.f32 %v2574_v59  ;;  %v2556_v45 = vmul.f32 1.442695, %v2442_v30  ;;  %v2369_v48 = vmax.f32 %v8893_v53, 0.0  ;;  %v2437_v40 = vmul.f32 -0.5, %v2373_v8  ;;  %v6570_v53 = vld [vmem:[%s10228_s3 + $0x5f8] sm:$0xff]  ;;  %v6567_v30 = vld [vmem:[%s10228_s3 + $0x5e0] sm:$0xff] }
 0x1d8   : > { %6955 = vpow2.f32 %v2572_v19  ;;  %v2554_v35 = vmul.f32 1.442695, %v2441_v5  ;;  %v2368_v20 = vmax.f32 %v8879_v33, 0.0  ;;  %v2436_v46 = vmul.f32 -0.5, %v2372_v60 }
 0x1d9   : > { %6957 = vpow2.f32 %v2570_v13  ;;  %v2552_v61 = vmul.f32 1.442695, %v2440_v14  ;;  %v2367_v56 = vmax.f32 %v8863_v43, 0.0  ;;  %v2435_v24 = vmul.f32 -0.5, %v2371_v57  ;;  %v6569_v43 = vld [vmem:[%s10228_s3 + $0x5f0] sm:$0xff] }
 0x1da   : > { %6959 = vpow2.f32 %v2568_v23  ;;  %v2550_v41 = vmul.f32 1.442695, %v2439_v10  ;;  %v2366_v32 = vmax.f32 %v8849_v25, 0.0  ;;  %v2434_v59 = vmul.f32 -0.5, %v2370_v36  ;;  %v6565_v10 = vld [vmem:[%s10228_s3 + $0x5d0] sm:$0xff] }
 0x1db   : > { %6961 = vpow2.f32 %v2566_v37  ;;  %v2548_v19 = vmul.f32 1.442695, %v2438_v55  ;;  %v2365_v33 = vmax.f32 %v8835_v47, 0.0  ;;  %v2433_v9 = vmul.f32 -0.5, %v2369_v48  ;;  %v6564_v48 = vld [vmem:[%s10228_s3 + $0x5c8] sm:$0xff] }
 0x1dc   : > { %6963 = vpow2.f32 %v2564_v17  ;;  %v2546_v13 = vmul.f32 1.442695, %v2437_v40  ;;  %v2364_v25 = vmax.f32 %v8819_v63, 0.0  ;;  %v2432_v3 = vmul.f32 -0.5, %v2368_v20 }
 0x1dd   : > { %6965 = vpow2.f32 %v2562_v22  ;;  %v2544_v23 = vmul.f32 1.442695, %v2436_v46  ;;  %v2431_v37 = vmul.f32 -0.5, %v2367_v56  ;;  %v2542_v47 = vmul.f32 1.442695, %v2435_v24  ;;  %v6566_v22 = vld [vmem:[%s10228_s3 + $0x5d8] sm:$0xff] }
 0x1de   : > { %6967 = vpow2.f32 %v2560_v54  ;;  %v6946_v11 = vpop.eup %6945  ;;  %v2430_v8 = vmul.f32 -0.5, %v2366_v32  ;;  %v2540_v63 = vmul.f32 1.442695, %v2434_v59  ;;  %v2429_v14 = vmul.f32 -0.5, %v2365_v33  ;;  %v6563_v56 = vld [vmem:[%s10228_s3 + $0x5c0] sm:$0xff]  ;;  %v6562_v59 = vld [vmem:[%s10228_s3 + $0x5b8] sm:$0xff] }
 0x1df   : > { %6969 = vpow2.f32 %v2558_v26  ;;  %v2538_v54 = vmul.f32 1.442695, %v2433_v9  ;;  %v9193_v57 = vmul.f32 %v6946_v11, %v6568_v12  ;;  %v2428_v36 = vmul.f32 -0.5, %v2364_v25  ;;  %v6561_v9 = vld [vmem:[%s10228_s3 + $0x5b0] sm:$0xff] }
 0x1e0   : > { %6971 = vpow2.f32 %v2556_v45  ;;  %v6948_v44 = vpop.eup %6947  ;;  %v2536_v55 = vmul.f32 1.442695, %v2432_v3  ;;  %v2534_v46 = vmul.f32 1.442695, %v2431_v37  ;;  %v2532_v32 = vmul.f32 1.442695, %v2430_v8 }
 0x1e1   : > { %6973 = vpow2.f32 %v2554_v35  ;;  %v9187_v5 = vmul.f32 %v6948_v44, %v6569_v43  ;;  %10960 = vst [vmem:[#allocation168_spill] sm:$0xff] %v9193_v57  ;;  %v10962_v35 = vmax.f32 %v8803_v27, 0.0  ;;  %v2530_v33 = vmul.f32 1.442695, %v2429_v14  ;;  %v6560_v3 = vld [vmem:[%s10228_s3 + $0x5a8] sm:$0xff] }
 0x1e2   : > { %v6950_v62 = vpop.eup %6949  ;;  %6975 = vpow2.f32 %v2552_v61  ;;  %v10968_v43 = vmax.f32 %v8738_v29, 0.0  ;;  %v2528_v25 = vmul.f32 1.442695, %v2428_v36  ;;  %v6559_v29 = vld [vmem:[%s10228_s3 + $0x5a0] sm:$0xff] }
 0x1e3   : > { %v6952_v50 = vpop.eup %6951  ;;  %6977 = vpow2.f32 %v2550_v41  ;;  %v9182_v31 = vmul.f32 %v6950_v62, %v6570_v53  ;;  %10959 = vst [vmem:[#allocation167_spill] sm:$0xff] %v9187_v5  ;;  %v2427_v20 = vmul.f32 -0.5, %v10962_v35  ;;  %v10964_v41 = vmax.f32 %v8783_v58, 0.0 }
 0x1e4   : > { %v6954_v17 = vpop.eup %6953  ;;  %6979 = vpow2.f32 %v2548_v19  ;;  %v9199_v45 = vmul.f32 %v6952_v50, %v6567_v30  ;;  %v10966_v53 = vmax.f32 %v8762_v6, 0.0  ;;  %v2424_v62 = vmul.f32 -0.5, %v10968_v43 }
 0x1e5   : > { %10958 = vst [vmem:[#allocation166_spill] sm:$0xff] %v9182_v31  ;;  %v6956_v60 = vpop.eup %6955  ;;  %6981 = vpow2.f32 %v2546_v13  ;;  %3422 = vmatprep.subr.mxu1 %v9182_v31  ;;  %v9207_v61 = vmul.f32 %v6954_v17, %v6566_v22  ;;  %v2426_v11 = vmul.f32 -0.5, %v10964_v41  ;;  %v2526_v12 = vmul.f32 1.442695, %v2427_v20  ;;  %v6558_v17 = vld [vmem:[%s10228_s3 + $0x598] sm:$0xff] }
 0x1e6   : > { %v6958_v26 = vpop.eup %6957  ;;  %6983 = vpow2.f32 %v2544_v23  ;;  %3423 = vmatpush2.msra.mxu1 %v9187_v5  ;;  %10961 = vst [vmem:[#allocation169_spill] sm:$0xff] %v9199_v45  ;;  %v9215_v27 = vmul.f32 %v6956_v60, %v6565_v10  ;;  %v2425_v44 = vmul.f32 -0.5, %v10966_v53  ;;  %v6557_v60 = vld [vmem:[%s10228_s3 + $0x590] sm:$0xff]  ;;  %v6554_v20 = vld [vmem:[%s10228_s3 + $0x578] sm:$0xff]  ;;  %v6551_v53 = vld [vmem:[%s10228_s3 + $0x560] sm:$0xff] }
 0x1e7   : > { %v6960_v40 = vpop.eup %6959  ;;  %6985 = vpow2.f32 %v2542_v47  ;;  %3424 = vmatprep.subr.mxu1 %v9193_v57  ;;  %10963 = vst [vmem:[#allocation170_spill] sm:$0xff] %v9207_v61  ;;  %v9223_v58 = vmul.f32 %v6958_v26, %v6564_v48  ;;  %v2524_v47 = vmul.f32 1.442695, %v2426_v11  ;;  %v6556_v26 = vld [vmem:[%s10228_s3 + $0x588] sm:$0xff]  ;;  %v6555_v48 = vld [vmem:[%s10228_s3 + $0x580] sm:$0xff] }
 0x1e8   : > { %v6962_v24 = vpop.eup %6961  ;;  %6987 = vpow2.f32 %v2540_v63  ;;  %3425 = vmatpush2.msra.mxu1 %v9199_v45  ;;  %10965 = vst [vmem:[#allocation171_spill] sm:$0xff] %v9215_v27  ;;  %v9231_v6 = vmul.f32 %v6960_v40, %v6563_v56  ;;  %v2522_v63 = vmul.f32 1.442695, %v2425_v44 }
 0x1e9   : > { %v6964_v19 = vpop.eup %6963  ;;  %6989 = vpow2.f32 %v2538_v54  ;;  %3426 = vmatprep.subr.mxu1 %v9207_v61  ;;  %10967 = vst [vmem:[#allocation172_spill] sm:$0xff] %v9223_v58  ;;  %v9237_v50 = vmul.f32 %v6962_v24, %v6562_v59  ;;  %v2520_v54 = vmul.f32 1.442695, %v2424_v62  ;;  %v6553_v24 = vld [vmem:[%s10228_s3 + $0x570] sm:$0xff] }
 0x1ea   : > { %v6966_v13 = vpop.eup %6965  ;;  %6991 = vpow2.f32 %v2536_v55  ;;  %3427 = vmatpush2.msra.mxu1 %v9215_v27  ;;  %10969 = vst [vmem:[#allocation173_spill] sm:$0xff] %v9231_v6  ;;  %v9243_v30 = vmul.f32 %v6964_v19, %v6561_v9  ;;  %v6550_v9 = vld [vmem:[%s10228_s3 + $0x558] sm:$0xff]  ;;  %v6549_v62 = vld [vmem:[%s10228_s3 + $0x550] sm:$0xff] }
 0x1eb   : > { %v6968_v23 = vpop.eup %6967  ;;  %6993 = vpow2.f32 %v2534_v46  ;;  %3428 = vmatprep.subr.mxu1 %v9223_v58  ;;  %10970 = vst [vmem:[#allocation174_spill] sm:$0xff] %v9237_v50  ;;  %v9249_v22 = vmul.f32 %v6966_v13, %v6560_v3 }
 0x1ec   : > { %v6970_v37 = vpop.eup %6969  ;;  %6995 = vpow2.f32 %v2532_v32  ;;  %3429 = vmatpush2.msra.mxu1 %v9231_v6  ;;  %10971 = vst [vmem:[#allocation175_spill] sm:$0xff] %v9243_v30  ;;  %v9255_v10 = vmul.f32 %v6968_v23, %v6559_v29  ;;  %v6552_v32 = vld [vmem:[%s10228_s3 + $0x568] sm:$0xff] }
 0x1ed   : > { %v6972_v8 = vpop.eup %6971  ;;  %6997 = vpow2.f32 %v2530_v33  ;;  %3430 = vmatprep.subr.mxu1 %v9237_v50  ;;  %10972 = vst [vmem:[#allocation176_spill] sm:$0xff] %v9249_v22  ;;  %v9261_v55 = vmul.f32 %v6970_v37, %v6558_v17  ;;  %v6548_v23 = vld [vmem:[%s10228_s3 + $0x548] sm:$0xff]  ;;  %v6547_v37 = vld [vmem:[%s10228_s3 + $0x540] sm:$0xff] }
 0x1ee   : > { %v6974_v14 = vpop.eup %6973  ;;  %6999 = vpow2.f32 %v2528_v25  ;;  %3431 = vmatpush2.msra.mxu1 %v9243_v30  ;;  %10973 = vst [vmem:[#allocation177_spill] sm:$0xff] %v9255_v10  ;;  %v9267_v35 = vmul.f32 %v6972_v8, %v6557_v60  ;;  %v6546_v8 = vld [vmem:[%s10228_s3 + $0x538] sm:$0xff] }
 0x1ef   : > { %v6976_v36 = vpop.eup %6975  ;;  %7001 = vpow2.f32 %v2526_v12  ;;  %3432 = vmatprep.subr.mxu1 %v9249_v22  ;;  %10974 = vst [vmem:[#allocation178_spill] sm:$0xff] %v9261_v55  ;;  %v9273_v56 = vmul.f32 %v6974_v14, %v6556_v26  ;;  %v6545_v14 = vld [vmem:[%s10228_s3 + $0x530] sm:$0xff] }
 0x1f0   : > { %v6978_v40 = vpop.eup %6977  ;;  %7003 = vpow2.f32 %v2524_v47  ;;  %3433 = vmatpush2.msra.mxu1 %v9255_v10  ;;  %10975 = vst [vmem:[#allocation179_spill] sm:$0xff] %v9267_v35  ;;  %v9279_v11 = vmul.f32 %v6976_v36, %v6555_v48  ;;  %v6544_v36 = vld [vmem:[%s10228_s3 + $0x528] sm:$0xff] }
 0x1f1   : > { %v6980_v46 = vpop.eup %6979  ;;  %7005 = vpow2.f32 %v2522_v63  ;;  %3434 = vmatprep.subr.mxu1 %v9261_v55  ;;  %10976 = vst [vmem:[#allocation180_spill] sm:$0xff] %v9273_v56  ;;  %v9285_v19 = vmul.f32 %v6978_v40, %v6554_v20  ;;  %v6543_v20 = vld [vmem:[%s10228_s3 + $0x520] sm:$0xff] }
 0x1f2   : > { %v6982_v41 = vpop.eup %6981  ;;  %7007 = vpow2.f32 %v2520_v54  ;;  %3435 = vmatpush2.msra.mxu1 %v9267_v35  ;;  %10977 = vst [vmem:[#allocation181_spill] sm:$0xff] %v9279_v11  ;;  %v9291_v33 = vmul.f32 %v6980_v46, %v6553_v24 }
 0x1f3   : > { %v6984_v59 = vpop.eup %6983  ;;  %3436 = vmatprep.subr.mxu1 %v9273_v56  ;;  %10978 = vst [vmem:[#allocation182_spill] sm:$0xff] %v9285_v19  ;;  %v9297_v43 = vmul.f32 %v6982_v41, %v6552_v32  ;;  %v6542_v41 = vld [vmem:[%s10228_s3 + $0x518] sm:$0xff] }
 0x1f4   : > { %v6986_v44 = vpop.eup %6985  ;;  %3437 = vmatpush2.msra.mxu1 %v9279_v11  ;;  %10979 = vst [vmem:[#allocation183_spill] sm:$0xff] %v9291_v33  ;;  %v9303_v3 = vmul.f32 %v6984_v59, %v6551_v53  ;;  %v6541_v53 = vld [vmem:[%s10228_s3 + $0x510] sm:$0xff] }
 0x1f5   : > { %v6988_v13 = vpop.eup %6987  ;;  %3438 = vmatprep.subr.mxu1 %v9285_v19  ;;  %10980 = vst [vmem:[#allocation184_spill] sm:$0xff] %v9297_v43  ;;  %v9309_v29 = vmul.f32 %v6986_v44, %v6550_v9 }
 0x1f6   : > { %v6990_v25 = vpop.eup %6989  ;;  %3439 = vmatpush2.msra.mxu1 %v9291_v33  ;;  %10981 = vst [vmem:[#allocation185_spill] sm:$0xff] %v9303_v3  ;;  %v9315_v17 = vmul.f32 %v6988_v13, %v6549_v62  ;;  %v6540_v13 = vld [vmem:[%s10228_s3 + $0x508] sm:$0xff] }
 0x1f7   : > { %v6992_v12 = vpop.eup %6991  ;;  %3440 = vmatprep.subr.mxu1 %v9297_v43  ;;  %10982 = vst [vmem:[#allocation186_spill] sm:$0xff] %v9309_v29  ;;  %v9321_v60 = vmul.f32 %v6990_v25, %v6548_v23  ;;  %v6539_v23 = vld [vmem:[%s10228_s3 + $0x500] sm:$0xff] }
 0x1f8   : > { %v6994_v47 = vpop.eup %6993  ;;  %3441 = vmatpush2.msra.mxu1 %v9303_v3  ;;  %10983 = vst [vmem:[#allocation187_spill] sm:$0xff] %v9315_v17  ;;  %v9327_v26 = vmul.f32 %v6992_v12, %v6547_v37 }
 0x1f9   : > { %v6996_v63 = vpop.eup %6995  ;;  %3442 = vmatprep.subr.mxu1 %v9309_v29  ;;  %10984 = vst [vmem:[#allocation188_spill] sm:$0xff] %v9321_v60  ;;  %v9333_v40 = vmul.f32 %v6994_v47, %v6546_v8  ;;  %v10994_v8 = vld [vmem:[#allocation30_spill] sm:$0xff] }
 0x1fa   : > { %v6998_v54 = vpop.eup %6997  ;;  %3443 = vmatpush2.msra.mxu1 %v9315_v17  ;;  %10985 = vst [vmem:[#allocation189_spill] sm:$0xff] %v9327_v26  ;;  %v9339_v24 = vmul.f32 %v6996_v63, %v6545_v14  ;;  %v10995_v63 = vld [vmem:[#allocation32_spill] sm:$0xff]  ;;  %v10996_v14 = vld [vmem:[#allocation33_spill] sm:$0xff] }
 0x1fb   : > { %v7000_v48 = vpop.eup %6999  ;;  %3444 = vmatprep.subr.mxu1 %v9321_v60  ;;  %10986 = vst [vmem:[#allocation190_spill] sm:$0xff] %v9333_v40  ;;  %v9345_v59 = vmul.f32 %v6998_v54, %v6544_v36  ;;  %v10997_v54 = vld [vmem:[#allocation35_spill] sm:$0xff]  ;;  %v10998_v36 = vld [vmem:[#allocation37_spill] sm:$0xff] }
 0x1fc   : > { %v7002_v46 = vpop.eup %7001  ;;  %3445 = vmatpush2.msra.mxu1 %v9327_v26  ;;  %10987 = vst [vmem:[#allocation191_spill] sm:$0xff] %v9339_v24  ;;  %v9351_v9 = vmul.f32 %v7000_v48, %v6543_v20  ;;  %v10999_v48 = vld [vmem:[#allocation38_spill] sm:$0xff]  ;;  %v11000_v20 = vld [vmem:[#allocation40_spill] sm:$0xff] }
 0x1fd   : > { %v7004_v32 = vpop.eup %7003  ;;  %3446 = vmatprep.subr.mxu1 %v9333_v40  ;;  %10988 = vst [vmem:[#allocation192_spill] sm:$0xff] %v9345_v59  ;;  %v9357_v25 = vmul.f32 %v7002_v46, %v6542_v41  ;;  %v11001_v46 = vld [vmem:[#allocation42_spill] sm:$0xff]  ;;  %v11002_v41 = vld [vmem:[#allocation43_spill] sm:$0xff] }
 0x1fe   : > { %v7006_v44 = vpop.eup %7005  ;;  %3447 = vmatpush2.msra.mxu1 %v9339_v24  ;;  %10989 = vst [vmem:[#allocation193_spill] sm:$0xff] %v9351_v9  ;;  %v9363_v12 = vmul.f32 %v7004_v32, %v6541_v53  ;;  %v11003_v32 = vld [vmem:[#allocation46_spill] sm:$0xff]  ;;  %v11005_v53 = vld [vmem:[#allocation52_spill] sm:$0xff] }
 0x1ff   : > { %v7008_v62 = vpop.eup %7007  ;;  %3448 = vmatprep.subr.mxu1 %v9345_v59  ;;  %10990 = vst [vmem:[#allocation194_spill] sm:$0xff] %v9357_v25  ;;  %v9366_v37 = vmul.f32 %v7006_v44, %v6540_v13  ;;  %v11006_v44 = vld [vmem:[#allocation54_spill] sm:$0xff]  ;;  %v11007_v13 = vld [vmem:[#allocation56_spill] sm:$0xff] }
 0x200   : > { %3449 = vmatpush2.msra.mxu1 %v9351_v9  ;;  %10991 = vst [vmem:[#allocation195_spill] sm:$0xff] %v9363_v12  ;;  %v9369_v47 = vmul.f32 %v7008_v62, %v6539_v23  ;;  %v11008_v62 = vld [vmem:[#allocation58_spill] sm:$0xff]  ;;  %v11009_v23 = vld [vmem:[#allocation60_spill] sm:$0xff] }
 0x201   : > { %3450 = vmatprep.subr.mxu1 %v9357_v25  ;;  %10992 = vst [vmem:[#allocation196_spill] sm:$0xff] %v9366_v37 }
 0x202   : > { %3451 = vmatpush2.msra.mxu1 %v9363_v12  ;;  %10993 = vst [vmem:[#allocation197_spill] sm:$0xff] %v9369_v47 }
 0x203   : > { %3452 = vmatprep.subr.mxu1 %v9366_v37 }
 0x204   : > { %3453 = vmatpush2.msra.mxu1 %v9369_v47 }
 0x205   : > { %3455 = vmatmul.mubr.f32.vlgmr.msra.gmra.mxu1 %v8713_v0  ;;  %3929 = vmatprep.subr.mxu1 %v10994_v8  ;;  %v11004_v0 = vld [vmem:[#allocation50_spill] sm:$0xff]  ;;  %v11076_v8 = vld [vmem:[#allocation19_spill] sm:$0xff] }
 0x206   : > { %3930 = vmatpush1.msra.mxu1 %v10995_v63  ;;  %v11075_v63 = vld [vmem:[#allocation20_spill] sm:$0xff] }
 0x207   : > { %3931 = vmatprep.subr.mxu1 %v10996_v14  ;;  %v11074_v14 = vld [vmem:[#allocation21_spill] sm:$0xff] }
 0x208   : > { %3932 = vmatpush1.msra.mxu1 %v10997_v54  ;;  %v11073_v54 = vld [vmem:[#allocation22_spill] sm:$0xff] }
 0x209   : > { %3933 = vmatprep.subr.mxu1 %v10998_v36 }
 0x20a   : > { %3934 = vmatpush1.msra.mxu1 %v10999_v48  ;;  %v11010_v48 = vld [vmem:[#allocation62_spill] sm:$0xff] }
 0x20b   : > { %3935 = vmatprep.subr.mxu1 %v11000_v20  ;;  %v11011_v20 = vld [vmem:[#allocation64_spill] sm:$0xff] }
 0x20c   : > { %3936 = vmatpush1.msra.mxu1 %v11001_v46  ;;  %v11012_v46 = vld [vmem:[#allocation66_spill] sm:$0xff] }
 0x20d   : > { %3937 = vmatprep.subr.mxu1 %v11002_v41  ;;  %v11013_v41 = vld [vmem:[#allocation68_spill] sm:$0xff] }
 0x20e   : > { %3938 = vmatpush1.msra.mxu1 %v11003_v32  ;;  %v11014_v32 = vld [vmem:[#allocation70_spill] sm:$0xff] }
 0x20f   : > { %3939 = vmatprep.subr.mxu1 %v11004_v0  ;;  %v11015_v0 = vld [vmem:[#allocation73_spill] sm:$0xff] }
 0x210   : > { %3940 = vmatpush1.msra.mxu1 %v11005_v53  ;;  %v11016_v53 = vld [vmem:[#allocation76_spill] sm:$0xff] }
 0x211   : > { %3941 = vmatprep.subr.mxu1 %v11006_v44  ;;  %v11017_v44 = vld [vmem:[#allocation78_spill] sm:$0xff] }
 0x212   : > { %3942 = vmatpush1.msra.mxu1 %v11007_v13  ;;  %v11018_v13 = vld [vmem:[#allocation80_spill] sm:$0xff] }
 0x213   : > { %3943 = vmatprep.subr.mxu1 %v11008_v62  ;;  %v11019_v62 = vld [vmem:[#allocation83_spill] sm:$0xff] }
 0x214   : > { %3944 = vmatpush1.msra.mxu1 %v11009_v23  ;;  %v11020_v23 = vld [vmem:[#allocation86_spill] sm:$0xff] }
 0x215   : > { %3945 = vmatprep.subr.mxu1 %v11010_v48  ;;  %v11021_v48 = vld [vmem:[#allocation14_spill] sm:$0xff] }
 0x216   : > { %3946 = vmatpush1.msra.mxu1 %v11011_v20  ;;  %v11022_v20 = vld [vmem:[#allocation12_spill] sm:$0xff] }
 0x217   : > { %3947 = vmatprep.subr.mxu1 %v11012_v46  ;;  %v11023_v46 = vld [vmem:[#allocation29_spill] sm:$0xff] }
 0x218   : > { %3948 = vmatpush1.msra.mxu1 %v11013_v41  ;;  %v11024_v41 = vld [vmem:[#allocation25_spill] sm:$0xff] }
 0x219   : > { %3949 = vmatprep.subr.mxu1 %v11014_v32  ;;  %v11025_v32 = vld [vmem:[#allocation6_spill] sm:$0xff] }
 0x21a   : > { %3950 = vmatpush1.msra.mxu1 %v11015_v0  ;;  %v11026_v0 = vld [vmem:[#allocation23_spill] sm:$0xff] }
 0x21b   : > { %3951 = vmatprep.subr.mxu1 %v11016_v53  ;;  %v11027_v53 = vld [vmem:[#allocation11_spill] sm:$0xff] }
 0x21c   : > { %3952 = vmatpush1.msra.mxu1 %v11017_v44  ;;  %v11028_v44 = vld [vmem:[#allocation9_spill] sm:$0xff] }
 0x21d   : > { %3953 = vmatprep.subr.mxu1 %v11018_v13  ;;  %v11029_v13 = vld [vmem:[#allocation7_spill] sm:$0xff] }
 0x21e   : > { %3954 = vmatpush1.msra.mxu1 %v11019_v62  ;;  %v11030_v62 = vld [vmem:[#allocation41_spill] sm:$0xff] }
 0x21f   : > { %3955 = vmatprep.subr.mxu1 %v11020_v23 }
 0x220   : > { %3956 = vmatpush1.msra.mxu1 %v11021_v48  ;;  %v11031_v48 = vld [vmem:[#allocation97_spill] sm:$0xff] }
 0x221   : > { %3957 = vmatprep.subr.mxu1 %v11022_v20 }
 0x222   : > { %3958 = vmatpush1.msra.mxu1 %v11023_v46 }
 0x223   : > { %3959 = vmatprep.subr.mxu1 %v11024_v41 }
 0x224   : > { %3960 = vmatpush1.msra.mxu1 %v11025_v32 }
 0x225   : > { %3961 = vmatprep.subr.mxu1 %v11026_v0 }
 0x226   : > { %3962 = vmatpush2.msra.mxu1 %v11027_v53 }
 0x227   : > { %3963 = vmatprep.subr.mxu1 %v11028_v44  ;;  %v11032_v44 = vld [vmem:[#allocation104_spill] sm:$0xff] }
 0x228   : > { %3964 = vmatpush2.msra.mxu1 %v11029_v13  ;;  %v11033_v13 = vld [vmem:[#allocation105_spill] sm:$0xff] }
 0x229   : > { %3965 = vmatprep.subr.mxu1 %v11030_v62  ;;  %v11034_v62 = vld [vmem:[#allocation106_spill] sm:$0xff] }
 0x22a   : > { %3966 = vmatpush2.msra.mxu1 %v8431_v2  ;;  %v11035_v2 = vld [vmem:[#allocation107_spill] sm:$0xff] }
 0x22b   : > { %3967 = vmatprep.subr.mxu1 %v11031_v48 }
 0x22c   : > { %3968 = vmatpush2.msra.mxu1 %v8444_v15 }
 0x22d   : > { %3969 = vmatprep.subr.mxu1 %v8450_v21 }
 0x22e   : > { %3970 = vmatpush2.msra.mxu1 %v8460_v52 }
 0x22f   : > { %3971 = vmatprep.subr.mxu1 %v8468_v18 }
 0x230   : > { %3972 = vmatpush2.msra.mxu1 %v8478_v4 }
 0x231   : > { %3973 = vmatprep.subr.mxu1 %v8486_v51  ;;  %v11036_v51 = vld [vmem:[#allocation120_spill] sm:$0xff] }
 0x232   : > { %3974 = vmatpush2.msra.mxu1 %v11032_v44  ;;  %v11037_v44 = vld [vmem:[#allocation122_spill] sm:$0xff] }
 0x233   : > { %3975 = vmatprep.subr.mxu1 %v11033_v13  ;;  %v11038_v13 = vld [vmem:[#allocation124_spill] sm:$0xff] }
 0x234   : > { %3976 = vmatpush2.msra.mxu1 %v11034_v62  ;;  %v11039_v62 = vld [vmem:[#allocation126_spill] sm:$0xff] }
 0x235   : > { %3977 = vmatprep.subr.mxu1 %v11035_v2  ;;  %v11040_v2 = vld [vmem:[#allocation128_spill] sm:$0xff] }
 0x236   : > { %3978 = vmatpush2.msra.mxu1 %v8546_v16  ;;  %v11041_v16 = vld [vmem:[#allocation130_spill] sm:$0xff] }
 0x237   : > { %3979 = vmatprep.subr.mxu1 %v8556_v49  ;;  %v11042_v49 = vld [vmem:[#allocation132_spill] sm:$0xff] }
 0x238   : > { %3980 = vmatpush2.msra.mxu1 %v8570_v1  ;;  %v11043_v1 = vld [vmem:[#allocation84_spill] sm:$0xff] }
 0x239   : > { %3981 = vmatprep.subr.mxu1 %v8584_v34  ;;  %v11044_v34 = vld [vmem:[#allocation87_spill] sm:$0xff] }
 0x23a   : > { %3982 = vmatpush2.msra.mxu1 %v8599_v39 }
 0x23b   : > { %3983 = vmatprep.subr.mxu1 %v8614_v38 }
 0x23c   : > { %3984 = vmatpush2.msra.mxu1 %v11036_v51 }
 0x23d   : > { %3985 = vmatprep.subr.mxu1 %v11037_v44 }
 0x23e   : > { %3986 = vmatpush2.msra.mxu1 %v11038_v13  ;;  %v11045_v13 = vld [vmem:[#allocation4_spill] sm:$0xff] }
 0x23f   : > { %3987 = vmatprep.subr.mxu1 %v11039_v62  ;;  %v9440_v18 = vmul.f32 0.85, %v11045_v13 }
 0x240   : > { %3988 = vmatpush2.msra.mxu1 %v11040_v2 }
 0x241   : > { %3989 = vmatprep.subr.mxu1 %v11041_v16  ;;  %11046 = vst [vmem:[#allocation4_spill] sm:$0xff] %v9440_v18  ;;  %v11047_v16 = vld [vmem:[#allocation5_spill] sm:$0xff] }
 0x242   : > { %3990 = vmatpush2.msra.mxu1 %v11042_v49  ;;  %v9443_v21 = vmul.f32 0.85, %v11047_v16 }
 0x243   : > { %3991 = vmatprep.subr.mxu1 %v11043_v1 }
 0x244   : > { %3992 = vmatpush2.msra.mxu1 %v11044_v34  ;;  %11048 = vst [vmem:[#allocation5_spill] sm:$0xff] %v9443_v21 }
 0x245   : > { %4071 = vmatprep.subr.mxu1 %v8935_v28 }
 0x255   : > { %v3314_v38 = vpop.f32.mrf.mxu1 }
 0x257   : > { %v3316_v39 = vpop.f32.mrf.mxu1 }
 0x267   : > { %v3385_v51 = vpop.f32.mrf.mxu0 }
 0x268   : > { %v3386_v4 = vadd.f32 %v3385_v51, %v3314_v38 }
 0x269   : > { %v3387_v44 = vpop.f32.mrf.mxu0 }
 0x26a   : > { %v3388_v2 = vadd.f32 %v3387_v44, %v3316_v39 }
 0x2c5   : > { %v3456_v62 = vpop.f32.mrf.mxu1 }
 0x2c6   : > { %v3457_v52 = vadd.f32 %v3456_v62, %v3386_v4 }
 0x2c7   : > { %v3458_v49 = vpop.f32.mrf.mxu1 }
 0x2c8   : > { %v3461_v1 = vsub.f32 %v9440_v18, %v3457_v52  ;;  %v3459_v34 = vadd.f32 %v3458_v49, %v3388_v2  ;;  %v11078_v18 = vld [vmem:[#allocation17_spill] sm:$0xff] }
 0x2ca   : > { %v3463_v15 = vrot.slane %v3461_v1, 4  ;;  %v3462_v28 = vsub.f32 %v9443_v21, %v3459_v34  ;;  %v11077_v21 = vld [vmem:[#allocation18_spill] sm:$0xff] }
 0x2cc   : > { %v3464_v48 = vmax.f32 %v3461_v1, %v3463_v15  ;;  %v3469_v53 = vrot.slane %v3462_v28, 4 }
 0x2ce   : > { %v3465_v0 = vrot.slane %v3464_v48, 2  ;;  %v3470_v51 = vmax.f32 %v3462_v28, %v3469_v53 }
 0x2d0   : > { %v3466_v38 = vmax.f32 %v3464_v48, %v3465_v0  ;;  %v3471_v13 = vrot.slane %v3470_v51, 2 }
 0x2d2   : > { %v3467_v32 = vrot.slane %v3466_v38, 1  ;;  %v3472_v41 = vmax.f32 %v3470_v51, %v3471_v13 }
 0x2d4   : > { %v3468_v39 = vmax.f32 %v3466_v38, %v3467_v32  ;;  %v3473_v4 = vrot.slane %v3472_v41, 1 }
 0x2d6   : > { %v3475_v44 = vsub.f32 %v3461_v1, %v3468_v39  ;;  %v3474_v16 = vmax.f32 %v3472_v41, %v3473_v4  ;;  %v6576_v39 = vld [vmem:[%s10229_s4 + $0x18] sm:$0xff]  ;;  %v11050_v4 = vld [vmem:[#allocation49_spill] sm:$0xff] }
 0x2d8   : > { %v3477_v62 = vmul.f32 1.442695, %v3475_v44  ;;  %v3476_v46 = vsub.f32 %v3462_v28, %v3474_v16  ;;  %v11051_v44 = vld [vmem:[#allocation51_spill] sm:$0xff]  ;;  %v11052_v16 = vld [vmem:[#allocation53_spill] sm:$0xff] }
 0x2da   : > { %7009 = vpow2.f32 %v3477_v62  ;;  %v3479_v52 = vmul.f32 1.442695, %v3476_v46  ;;  %v11053_v62 = vld [vmem:[#allocation55_spill] sm:$0xff] }
 0x2dc   : > { %7011 = vpow2.f32 %v3479_v52  ;;  %v11054_v52 = vld [vmem:[#allocation57_spill] sm:$0xff] }
 0x2e7   : > { %v7010_v2 = vpop.eup %7009 }
 0x2e8   : > { %v3481_v49 = vrot.slane %v7010_v2, 4 }
 0x2e9   : > { %v7012_v34 = vpop.eup %7011 }
 0x2ea   : > { %v3487_v15 = vrot.slane %v7012_v34, 4  ;;  %v3482_v20 = vadd.f32 %v7010_v2, %v3481_v49  ;;  %v11056_v49 = vld [vmem:[#allocation61_spill] sm:$0xff] }
 0x2ec   : > { %v3488_v23 = vadd.f32 %v7012_v34, %v3487_v15  ;;  %v3483_v53 = vrot.slane %v3482_v20, 2  ;;  %v11058_v15 = vld [vmem:[#allocation65_spill] sm:$0xff] }
 0x2ee   : > { %v3489_v48 = vrot.slane %v3488_v23, 2  ;;  %v3484_v0 = vadd.f32 %v3483_v53, %v3482_v20  ;;  %v6580_v20 = vld [vmem:[%s10229_s4 + $0x28] sm:$0xff]  ;;  %v11059_v53 = vld [vmem:[#allocation67_spill] sm:$0xff] }
 0x2f0   : > { %v3490_v36 = vadd.f32 %v3489_v48, %v3488_v23  ;;  %v3485_v51 = vrot.slane %v3484_v0, 1  ;;  %v11049_v23 = vld [vmem:[#allocation45_spill] sm:$0xff] }
 0x2f1   : > { %v11060_v48 = vld [vmem:[#allocation69_spill] sm:$0xff] }
 0x2f2   : > { %v3491_v32 = vrot.slane %v3490_v36, 1  ;;  %v3486_v38 = vadd.f32 %v3485_v51, %v3484_v0  ;;  %v11061_v0 = vld [vmem:[#allocation71_spill] sm:$0xff] }
 0x2f3   : > { %v11062_v51 = vld [vmem:[#allocation75_spill] sm:$0xff] }
 0x2f4   : > { %v3492_v1 = vadd.f32 %v3491_v32, %v3490_v36  ;;  %7013 = vrcp.f32 %v3486_v38  ;;  %v6578_v36 = vld [vmem:[%s10229_s4 + $0x20] sm:$0xff]  ;;  %v11063_v32 = vld [vmem:[#allocation77_spill] sm:$0xff]  ;;  %v11064_v38 = vld [vmem:[#allocation79_spill] sm:$0xff] }
 0x2f6   : > { %7015 = vrcp.f32 %v3492_v1  ;;  %v11065_v1 = vld [vmem:[#allocation81_spill] sm:$0xff] }
 0x301   : > { %v7014_v28 = vpop.eup %7013 }
 0x302   : > { %v3495_v13 = vmul.f32 %v7014_v28, %v7010_v2  ;;  %v11055_v2 = vld [vmem:[#allocation59_spill] sm:$0xff]  ;;  %v11066_v28 = vld [vmem:[#allocation85_spill] sm:$0xff] }
 0x303   : > { %v7016_v41 = vpop.eup %7015 }
 0x304   : > { %v3496_v46 = vmul.f32 %v7016_v41, %v7012_v34  ;;  %v11057_v34 = vld [vmem:[#allocation63_spill] sm:$0xff]  ;;  %v11067_v41 = vld [vmem:[#allocation28_spill] sm:$0xff] }
 0x306   : > { %3532 = vmatprep.subr.mxu0 %v3496_v46 }
 0x307   : > { %3533 = vmatpush1.msra.mxu0 %v3495_v13 }
 0x308   : > { %6577 = vmatmul.mubr.msk.f32.vlgmr.msra.gmra.mxu0 %vm299_vm0, %v6576_v39  ;;  %3610 = vmatprep.subr.mxu0 %v3496_v46  ;;  %v11070_v39 = vld [vmem:[#allocation34_spill] sm:$0xff] }
 0x309   : > { %3611 = vmatpush1.msra.mxu0 %v3495_v13  ;;  %3644 = vmatprep.mubr.f32.mxu0 %v10918_v42 }
 0x30a   : > { %3688 = vmatprep.subr.mxu0 %v3496_v46  ;;  %v11068_v46 = vld [vmem:[#allocation27_spill] sm:$0xff] }
 0x30c   : > { %6579 = vmatmul.mubr.msk.f32.vlgmr.msra.gmra.mxu0 %vm299_vm0, %v6578_v36  ;;  %v11071_v36 = vld [vmem:[#allocation8_spill] sm:$0xff] }
 0x30d   : > { %3689 = vmatpush1.msra.mxu0 %v3495_v13  ;;  %3722 = vmatprep.mubr.f32.mxu0 %v10918_v42  ;;  %v11069_v13 = vld [vmem:[#allocation26_spill] sm:$0xff] }
 0x30e   : > { %4000 = vmatprep.subr.mxu0 %v11049_v23 }
 0x310   : > { %6581 = vmatmul.mubr.msk.f32.vlgmr.msra.gmra.mxu0 %vm299_vm0, %v6580_v20  ;;  %v11072_v20 = vld [vmem:[#allocation47_spill] sm:$0xff] }
 0x311   : > { %4001 = vmatpush1.msra.mxu0 %v11050_v4 }
 0x312   : > { %4002 = vmatprep.subr.mxu0 %v11051_v44 }
 0x313   : > { %4003 = vmatpush1.msra.mxu0 %v11052_v16 }
 0x314   : > { %4004 = vmatprep.subr.mxu0 %v11053_v62 }
 0x315   : > { %4005 = vmatpush1.msra.mxu0 %v11054_v52 }
 0x316   : > { %4006 = vmatprep.subr.mxu0 %v11055_v2 }
 0x317   : > { %4007 = vmatpush1.msra.mxu0 %v11056_v49 }
 0x318   : > { %4008 = vmatprep.subr.mxu0 %v11057_v34 }
 0x319   : > { %4009 = vmatpush1.msra.mxu0 %v11058_v15 }
 0x31a   : > { %4010 = vmatprep.subr.mxu0 %v11059_v53 }
 0x31b   : > { %4011 = vmatpush1.msra.mxu0 %v11060_v48 }
 0x31c   : > { %4012 = vmatprep.subr.mxu0 %v11061_v0 }
 0x31d   : > { %4013 = vmatpush1.msra.mxu0 %v11062_v51 }
 0x31e   : > { %4014 = vmatprep.subr.mxu0 %v11063_v32 }
 0x31f   : > { %4015 = vmatpush1.msra.mxu0 %v11064_v38 }
 0x320   : > { %4016 = vmatprep.subr.mxu0 %v11065_v1 }
 0x321   : > { %4017 = vmatpush1.msra.mxu0 %v11066_v28 }
 0x322   : > { %4018 = vmatprep.subr.mxu0 %v11067_v41 }
 0x323   : > { %4019 = vmatpush1.msra.mxu0 %v11068_v46  ;;  %v11079_v46 = vld [vmem:[#allocation16_spill] sm:$0xff] }
 0x324   : > { %4020 = vmatprep.subr.mxu0 %v11069_v13  ;;  %v11080_v13 = vld [vmem:[#allocation15_spill] sm:$0xff] }
 0x325   : > { %4021 = vmatpush1.msra.mxu0 %v11070_v39  ;;  %v11081_v39 = vld [vmem:[#allocation112_spill] sm:$0xff] }
 0x326   : > { %4022 = vmatprep.subr.mxu0 %v11071_v36  ;;  %v11082_v36 = vld [vmem:[#allocation110_spill] sm:$0xff] }
 0x327   : > { %4023 = vmatpush1.msra.mxu0 %v11072_v20  ;;  %v11083_v20 = vld [vmem:[#allocation113_spill] sm:$0xff] }
 0x328   : > { %4024 = vmatprep.subr.mxu0 %v11073_v54  ;;  %v11084_v54 = vld [vmem:[#allocation115_spill] sm:$0xff] }
 0x329   : > { %4025 = vmatpush1.msra.mxu0 %v11074_v14  ;;  %v11085_v14 = vld [vmem:[#allocation117_spill] sm:$0xff] }
 0x32a   : > { %4026 = vmatprep.subr.mxu0 %v11075_v63  ;;  %v11086_v63 = vld [vmem:[#allocation119_spill] sm:$0xff] }
 0x32b   : > { %4027 = vmatpush1.msra.mxu0 %v11076_v8  ;;  %v11087_v8 = vld [vmem:[#allocation121_spill] sm:$0xff] }
 0x32c   : > { %4028 = vmatprep.subr.mxu0 %v11077_v21  ;;  %v11088_v21 = vld [vmem:[#allocation123_spill] sm:$0xff] }
 0x32d   : > { %4029 = vmatpush1.msra.mxu0 %v11078_v18  ;;  %v11089_v18 = vld [vmem:[#allocation125_spill] sm:$0xff] }
 0x32e   : > { %4030 = vmatprep.subr.mxu0 %v11079_v46  ;;  %v11090_v46 = vld [vmem:[#allocation127_spill] sm:$0xff] }
 0x32f   : > { %4031 = vmatpush1.msra.mxu0 %v11080_v13  ;;  %v11091_v13 = vld [vmem:[#allocation129_spill] sm:$0xff] }
 0x330   : > { %4032 = vmatprep.subr.mxu0 %v11081_v39  ;;  %v11092_v39 = vld [vmem:[#allocation131_spill] sm:$0xff] }
 0x331   : > { %4033 = vmatpush2.msra.mxu0 %v11082_v36  ;;  %v11093_v36 = vld [vmem:[#allocation133_spill] sm:$0xff] }
 0x332   : > { %4034 = vmatprep.subr.mxu0 %v11083_v20  ;;  %v11094_v20 = vld [vmem:[#allocation74_spill] sm:$0xff] }
 0x333   : > { %4035 = vmatpush2.msra.mxu0 %v11084_v54  ;;  %v11095_v54 = vld [vmem:[#allocation72_spill] sm:$0xff] }
 0x334   : > { %4036 = vmatprep.subr.mxu0 %v11085_v14  ;;  %v11096_v14 = vld [vmem:[#allocation36_spill] sm:$0xff] }
 0x335   : > { %4037 = vmatpush2.msra.mxu0 %v11086_v63  ;;  %v11097_v63 = vld [vmem:[#allocation39_spill] sm:$0xff] }
 0x336   : > { %4038 = vmatprep.subr.mxu0 %v11087_v8  ;;  %v11098_v8 = vld [vmem:[#allocation44_spill] sm:$0xff] }
 0x337   : > { %4039 = vmatpush2.msra.mxu0 %v11088_v21  ;;  %v11099_v21 = vld [vmem:[#allocation91_spill] sm:$0xff] }
 0x338   : > { %4040 = vmatprep.subr.mxu0 %v11089_v18  ;;  %v11114_v18 = vld [vmem:[#allocation92_spill] sm:$0xff] }
 0x339   : > { %4041 = vmatpush2.msra.mxu0 %v11090_v46  ;;  %v11100_v46 = vld [vmem:[#allocation135_spill] sm:$0xff] }
 0x33a   : > { %4042 = vmatprep.subr.mxu0 %v11091_v13  ;;  %v11101_v13 = vld [vmem:[#allocation136_spill] sm:$0xff] }
 0x33b   : > { %4043 = vmatpush2.msra.mxu0 %v11092_v39  ;;  %v11102_v39 = vld [vmem:[#allocation137_spill] sm:$0xff] }
 0x33c   : > { %4044 = vmatprep.subr.mxu0 %v11093_v36  ;;  %v11103_v36 = vld [vmem:[#allocation138_spill] sm:$0xff] }
 0x33d   : > { %4045 = vmatpush2.msra.mxu0 %v11094_v20  ;;  %v11104_v20 = vld [vmem:[#allocation139_spill] sm:$0xff] }
 0x33e   : > { %4046 = vmatprep.subr.mxu0 %v11095_v54  ;;  %v11105_v54 = vld [vmem:[#allocation140_spill] sm:$0xff] }
 0x33f   : > { %4047 = vmatpush2.msra.mxu0 %v11096_v14  ;;  %v11106_v14 = vld [vmem:[#allocation141_spill] sm:$0xff] }
 0x340   : > { %4048 = vmatprep.subr.mxu0 %v11097_v63  ;;  %v11107_v63 = vld [vmem:[#allocation142_spill] sm:$0xff] }
 0x341   : > { %4049 = vmatpush2.msra.mxu0 %v11098_v8  ;;  %v11108_v8 = vld [vmem:[#allocation143_spill] sm:$0xff] }
 0x342   : > { %4050 = vmatprep.subr.mxu0 %v11099_v21  ;;  %v11109_v21 = vld [vmem:[#allocation10_spill] sm:$0xff] }
 0x343   : > { %4051 = vmatpush2.msra.mxu0 %v8797_v7  ;;  %v11110_v7 = vld [vmem:[#allocation88_spill] sm:$0xff] }
 0x344   : > { %4052 = vmatprep.subr.mxu0 %v11100_v46  ;;  %v11111_v46 = vld [vmem:[#allocation82_spill] sm:$0xff] }
 0x345   : > { %4053 = vmatpush2.msra.mxu0 %v11101_v13 }
 0x346   : > { %4054 = vmatprep.subr.mxu0 %v11102_v39 }
 0x347   : > { %4055 = vmatpush2.msra.mxu0 %v11103_v36 }
 0x348   : > { %4056 = vmatprep.subr.mxu0 %v11104_v20  ;;  %v11112_v20 = vld [vmem:[#allocation95_spill] sm:$0xff] }
 0x349   : > { %4057 = vmatpush2.msra.mxu0 %v11105_v54  ;;  %v11113_v54 = vld [vmem:[#allocation93_spill] sm:$0xff] }
 0x34a   : > { %4058 = vmatprep.subr.mxu0 %v11106_v14 }
 0x34b   : > { %4059 = vmatpush2.msra.mxu0 %v11107_v63 }
 0x34c   : > { %4060 = vmatprep.subr.mxu0 %v11108_v8  ;;  %v11115_v8 = vld [vmem:[#allocation90_spill] sm:$0xff] }
 0x34d   : > { %4061 = vmatpush2.msra.mxu0 %v11109_v21 }
 0x34e   : > { %4062 = vmatprep.subr.mxu0 %v11110_v7  ;;  %v11116_v7 = vld [vmem:[#allocation94_spill] sm:$0xff] }
 0x34f   : > { %4063 = vmatpush2.msra.mxu0 %v11111_v46  ;;  %v11117_v46 = vld [vmem:[#allocation13_spill] sm:$0xff] }
 0x3c8   : > { %v3568_v13 = vpop.f32.mrf.mxu0 }
 0x3ca   : > { %v3570_v39 = vpop.f32.mrf.mxu0 }
 0x3cb   : > { %3993 = vmatprep.mubr.f32.mxu1 %v3570_v39 }
 0x3cc   : > { %v3646_v36 = vpop.f32.mrf.mxu0  ;;  %3994 = vmatmul.mubr.f32.vlgmr.msra.gmra.mxu1 %v3568_v13  ;;  %v11118_v13 = vld [vmem:[#allocation24_spill] sm:$0xff] }
 0x3cd   : > { %4072 = vmatpush1.msra.mxu1 %v11112_v20  ;;  %v11119_v20 = vld [vmem:[#allocation31_spill] sm:$0xff] }
 0x3ce   : > { %4073 = vmatprep.subr.mxu1 %v11113_v54  ;;  %v3648_v14 = vpop.f32.mrf.mxu0  ;;  %v11120_v54 = vld [vmem:[#allocation89_spill] sm:$0xff] }
 0x3cf   : > { %4074 = vmatpush1.msra.mxu1 %v11114_v18  ;;  %4064 = vmatprep.mubr.f32.mxu0 %v3648_v14  ;;  %v11121_v18 = vld [vmem:[#allocation144_spill] sm:$0xff]  ;;  %v11122_v14 = vld [vmem:[#allocation145_spill] sm:$0xff] }
 0x3d0   : > { %4075 = vmatprep.subr.mxu1 %v11115_v8  ;;  %4065 = vmatmul.mubr.f32.vlgmr.msra.gmra.mxu0 %v3646_v36  ;;  %v3724_v21 = vpop.f32.mrf.mxu0  ;;  %v11123_v36 = vld [vmem:[#allocation146_spill] sm:$0xff]  ;;  %v11124_v8 = vld [vmem:[#allocation147_spill] sm:$0xff] }
 0x3d1   : > { %4076 = vmatpush1.msra.mxu1 %v11116_v7  ;;  %4247 = vmatprep.mubr.f32.mxu0 %v10918_v42  ;;  %v11125_v7 = vld [vmem:[#allocation148_spill] sm:$0xff]  ;;  %v11126_v42 = vld [vmem:[#allocation149_spill] sm:$0xff] }
 0x3d2   : > { %4077 = vmatprep.subr.mxu1 %v11117_v46  ;;  %v3726_v39 = vpop.f32.mrf.mxu0  ;;  %v11127_v46 = vld [vmem:[#allocation150_spill] sm:$0xff] }
 0x3d3   : > { %4078 = vmatpush1.msra.mxu1 %v11118_v13  ;;  %4135 = vmatprep.mubr.f32.mxu1 %v3726_v39  ;;  %v11128_v13 = vld [vmem:[#allocation151_spill] sm:$0xff]  ;;  %v11129_v39 = vld [vmem:[#allocation152_spill] sm:$0xff] }
 0x3d4   : > { %4079 = vmatprep.subr.mxu1 %v11119_v20  ;;  %v11130_v20 = vld [vmem:[#allocation153_spill] sm:$0xff] }
 0x3d5   : > { %4080 = vmatpush1.msra.mxu1 %v11120_v54  ;;  %v11131_v54 = vld [vmem:[#allocation154_spill] sm:$0xff] }
 0x3d6   : > { %4081 = vmatprep.subr.mxu1 %v11121_v18  ;;  %v11132_v18 = vld [vmem:[#allocation155_spill] sm:$0xff] }
 0x3d7   : > { %4082 = vmatpush1.msra.mxu1 %v11122_v14  ;;  %v11133_v14 = vld [vmem:[#allocation156_spill] sm:$0xff] }
 0x3d8   : > { %4083 = vmatprep.subr.mxu1 %v11123_v36  ;;  %v11134_v36 = vld [vmem:[#allocation157_spill] sm:$0xff] }
 0x3d9   : > { %4084 = vmatpush1.msra.mxu1 %v11124_v8  ;;  %v11135_v8 = vld [vmem:[#allocation158_spill] sm:$0xff] }
 0x3da   : > { %4085 = vmatprep.subr.mxu1 %v11125_v7  ;;  %v11136_v7 = vld [vmem:[#allocation159_spill] sm:$0xff] }
 0x3db   : > { %4086 = vmatpush1.msra.mxu1 %v11126_v42  ;;  %v11137_v42 = vld [vmem:[#allocation160_spill] sm:$0xff] }
 0x3dc   : > { %4087 = vmatprep.subr.mxu1 %v11127_v46  ;;  %v11138_v46 = vld [vmem:[#allocation161_spill] sm:$0xff] }
 0x3dd   : > { %4088 = vmatpush1.msra.mxu1 %v11128_v13  ;;  %v11139_v13 = vld [vmem:[#allocation162_spill] sm:$0xff] }
 0x3de   : > { %4089 = vmatprep.subr.mxu1 %v11129_v39  ;;  %v11140_v39 = vld [vmem:[#allocation163_spill] sm:$0xff] }
 0x3df   : > { %4090 = vmatpush1.msra.mxu1 %v11130_v20  ;;  %v11141_v20 = vld [vmem:[#allocation164_spill] sm:$0xff] }
 0x3e0   : > { %4091 = vmatprep.subr.mxu1 %v11131_v54  ;;  %v11142_v54 = vld [vmem:[#allocation165_spill] sm:$0xff] }
 0x3e1   : > { %4092 = vmatpush1.msra.mxu1 %v11132_v18 }
 0x3e2   : > { %4093 = vmatprep.subr.mxu1 %v11133_v14 }
 0x3e3   : > { %4094 = vmatpush1.msra.mxu1 %v11134_v36 }
 0x3e4   : > { %4095 = vmatprep.subr.mxu1 %v11135_v8 }
 0x3e5   : > { %4096 = vmatpush1.msra.mxu1 %v11136_v7 }
 0x3e6   : > { %4097 = vmatprep.subr.mxu1 %v11137_v42 }
 0x3e7   : > { %4098 = vmatpush1.msra.mxu1 %v11138_v46 }
 0x3e8   : > { %4099 = vmatprep.subr.mxu1 %v11139_v13 }
 0x3e9   : > { %4100 = vmatpush1.msra.mxu1 %v11140_v39 }
 0x3ea   : > { %4101 = vmatprep.subr.mxu1 %v11141_v20 }
 0x3eb   : > { %4102 = vmatpush1.msra.mxu1 %v11142_v54 }
 0x3ec   : > { %4103 = vmatprep.subr.mxu1 %v9182_v31 }
 0x3ed   : > { %4104 = vmatpush2.msra.mxu1 %v9187_v5 }
 0x3ee   : > { %4105 = vmatprep.subr.mxu1 %v9193_v57 }
 0x3ef   : > { %4106 = vmatpush2.msra.mxu1 %v9199_v45 }
 0x3f0   : > { %4107 = vmatprep.subr.mxu1 %v9207_v61 }
 0x3f1   : > { %4108 = vmatpush2.msra.mxu1 %v9215_v27 }
 0x3f2   : > { %4109 = vmatprep.subr.mxu1 %v9223_v58 }
 0x3f3   : > { %4110 = vmatpush2.msra.mxu1 %v9231_v6 }
 0x3f4   : > { %4111 = vmatprep.subr.mxu1 %v9237_v50 }
 0x3f5   : > { %4112 = vmatpush2.msra.mxu1 %v9243_v30 }
 0x3f6   : > { %4113 = vmatprep.subr.mxu1 %v9249_v22 }
 0x3f7   : > { %4114 = vmatpush2.msra.mxu1 %v9255_v10 }
 0x3f8   : > { %4115 = vmatprep.subr.mxu1 %v9261_v55 }
 0x3f9   : > { %4116 = vmatpush2.msra.mxu1 %v9267_v35 }
 0x3fa   : > { %4117 = vmatprep.subr.mxu1 %v9273_v56 }
 0x3fb   : > { %4118 = vmatpush2.msra.mxu1 %v9279_v11 }
 0x3fc   : > { %4119 = vmatprep.subr.mxu1 %v9285_v19 }
 0x3fd   : > { %4120 = vmatpush2.msra.mxu1 %v9291_v33 }
 0x3fe   : > { %4121 = vmatprep.subr.mxu1 %v9297_v43 }
 0x3ff   : > { %4122 = vmatpush2.msra.mxu1 %v9303_v3 }
 0x400   : > { %4123 = vmatprep.subr.mxu1 %v9309_v29 }
 0x401   : > { %4124 = vmatpush2.msra.mxu1 %v9315_v17 }
 0x402   : > { %4125 = vmatprep.subr.mxu1 %v9321_v60 }
 0x403   : > { %4126 = vmatpush2.msra.mxu1 %v9327_v26 }
 0x404   : > { %4127 = vmatprep.subr.mxu1 %v9333_v40 }
 0x405   : > { %4128 = vmatpush2.msra.mxu1 %v9339_v24 }
 0x406   : > { %4129 = vmatprep.subr.mxu1 %v9345_v59 }
 0x407   : > { %4130 = vmatpush2.msra.mxu1 %v9351_v9 }
 0x408   : > { %4131 = vmatprep.subr.mxu1 %v9357_v25 }
 0x409   : > { %4132 = vmatpush2.msra.mxu1 %v9363_v12 }
 0x40a   : > { %4133 = vmatprep.subr.mxu1 %v9366_v37 }
 0x40b   : > { %4134 = vmatpush2.msra.mxu1 %v9369_v47 }
 0x40c   : > { %4136 = vmatmul.mubr.f32.vlgmr.msra.gmra.mxu1 %v3724_v21  ;;  %4681 = vmatprep.subr.mxu1 %v11049_v23  ;;  %v11143_v21 = vld [vmem:[#allocation27_spill] sm:$0xff] }
 0x40d   : > { %4682 = vmatpush1.msra.mxu1 %v11050_v4 }
 0x40e   : > { %4683 = vmatprep.subr.mxu1 %v11051_v44 }
 0x40f   : > { %4684 = vmatpush1.msra.mxu1 %v11052_v16 }
 0x410   : > { %4685 = vmatprep.subr.mxu1 %v11053_v62 }
 0x411   : > { %4686 = vmatpush1.msra.mxu1 %v11054_v52 }
 0x412   : > { %4687 = vmatprep.subr.mxu1 %v11055_v2 }
 0x413   : > { %4688 = vmatpush1.msra.mxu1 %v11056_v49 }
 0x414   : > { %4689 = vmatprep.subr.mxu1 %v11057_v34 }
 0x415   : > { %4690 = vmatpush1.msra.mxu1 %v11058_v15  ;;  %v11144_v15 = vld [vmem:[#allocation26_spill] sm:$0xff] }
 0x416   : > { %4691 = vmatprep.subr.mxu1 %v11059_v53  ;;  %v11145_v53 = vld [vmem:[#allocation34_spill] sm:$0xff] }
 0x417   : > { %4692 = vmatpush1.msra.mxu1 %v11060_v48  ;;  %v11146_v48 = vld [vmem:[#allocation8_spill] sm:$0xff] }
 0x418   : > { %4693 = vmatprep.subr.mxu1 %v11061_v0  ;;  %v11147_v0 = vld [vmem:[#allocation47_spill] sm:$0xff] }
 0x419   : > { %4694 = vmatpush1.msra.mxu1 %v11062_v51  ;;  %v11148_v51 = vld [vmem:[#allocation22_spill] sm:$0xff] }
 0x41a   : > { %4695 = vmatprep.subr.mxu1 %v11063_v32  ;;  %v11149_v32 = vld [vmem:[#allocation21_spill] sm:$0xff] }
 0x41b   : > { %4696 = vmatpush1.msra.mxu1 %v11064_v38  ;;  %v11150_v38 = vld [vmem:[#allocation20_spill] sm:$0xff] }
 0x41c   : > { %4697 = vmatprep.subr.mxu1 %v11065_v1  ;;  %v11151_v1 = vld [vmem:[#allocation19_spill] sm:$0xff] }
 0x41d   : > { %4698 = vmatpush1.msra.mxu1 %v11066_v28  ;;  %v11152_v28 = vld [vmem:[#allocation18_spill] sm:$0xff] }
 0x41e   : > { %4699 = vmatprep.subr.mxu1 %v11067_v41  ;;  %v11153_v41 = vld [vmem:[#allocation17_spill] sm:$0xff] }
 0x41f   : > { %4700 = vmatpush1.msra.mxu1 %v11143_v21  ;;  %v11154_v21 = vld [vmem:[#allocation16_spill] sm:$0xff] }
 0x420   : > { %4701 = vmatprep.subr.mxu1 %v11144_v15  ;;  %v11155_v15 = vld [vmem:[#allocation15_spill] sm:$0xff] }
 0x421   : > { %4702 = vmatpush1.msra.mxu1 %v11145_v53  ;;  %v11156_v53 = vld [vmem:[#allocation112_spill] sm:$0xff] }
 0x422   : > { %4703 = vmatprep.subr.mxu1 %v11146_v48  ;;  %v11157_v48 = vld [vmem:[#allocation110_spill] sm:$0xff] }
 0x423   : > { %4704 = vmatpush1.msra.mxu1 %v11147_v0  ;;  %v11158_v0 = vld [vmem:[#allocation113_spill] sm:$0xff] }
 0x424   : > { %4705 = vmatprep.subr.mxu1 %v11148_v51  ;;  %v11159_v51 = vld [vmem:[#allocation115_spill] sm:$0xff] }
 0x425   : > { %4706 = vmatpush1.msra.mxu1 %v11149_v32  ;;  %v11160_v32 = vld [vmem:[#allocation117_spill] sm:$0xff] }
 0x426   : > { %4707 = vmatprep.subr.mxu1 %v11150_v38  ;;  %v11161_v38 = vld [vmem:[#allocation119_spill] sm:$0xff] }
 0x427   : > { %4708 = vmatpush1.msra.mxu1 %v11151_v1  ;;  %v11162_v1 = vld [vmem:[#allocation121_spill] sm:$0xff] }
 0x428   : > { %4709 = vmatprep.subr.mxu1 %v11152_v28  ;;  %v11163_v28 = vld [vmem:[#allocation123_spill] sm:$0xff] }
 0x429   : > { %4710 = vmatpush1.msra.mxu1 %v11153_v41  ;;  %v11164_v41 = vld [vmem:[#allocation125_spill] sm:$0xff] }
 0x42a   : > { %4711 = vmatprep.subr.mxu1 %v11154_v21  ;;  %v11165_v21 = vld [vmem:[#allocation127_spill] sm:$0xff] }
 0x42b   : > { %4712 = vmatpush1.msra.mxu1 %v11155_v15  ;;  %v11166_v15 = vld [vmem:[#allocation129_spill] sm:$0xff] }
 0x42c   : > { %4713 = vmatprep.subr.mxu1 %v11156_v53  ;;  %v11167_v53 = vld [vmem:[#allocation131_spill] sm:$0xff] }
 0x42d   : > { %4714 = vmatpush2.msra.mxu1 %v11157_v48  ;;  %v11168_v48 = vld [vmem:[#allocation133_spill] sm:$0xff] }
 0x42e   : > { %4715 = vmatprep.subr.mxu1 %v11158_v0  ;;  %v11169_v0 = vld [vmem:[#allocation74_spill] sm:$0xff] }
 0x42f   : > { %4716 = vmatpush2.msra.mxu1 %v11159_v51  ;;  %v11170_v51 = vld [vmem:[#allocation72_spill] sm:$0xff] }
 0x430   : > { %4717 = vmatprep.subr.mxu1 %v11160_v32  ;;  %v11171_v32 = vld [vmem:[#allocation36_spill] sm:$0xff] }
 0x431   : > { %4718 = vmatpush2.msra.mxu1 %v11161_v38  ;;  %v11172_v38 = vld [vmem:[#allocation39_spill] sm:$0xff] }
 0x432   : > { %4719 = vmatprep.subr.mxu1 %v11162_v1  ;;  %v11173_v1 = vld [vmem:[#allocation44_spill] sm:$0xff] }
 0x433   : > { %4720 = vmatpush2.msra.mxu1 %v11163_v28  ;;  %v11174_v28 = vld [vmem:[#allocation91_spill] sm:$0xff] }
 0x434   : > { %4721 = vmatprep.subr.mxu1 %v11164_v41  ;;  %v11175_v41 = vld [vmem:[#allocation134_spill] sm:$0xff] }
 0x435   : > { %4722 = vmatpush2.msra.mxu1 %v11165_v21  ;;  %v11176_v21 = vld [vmem:[#allocation135_spill] sm:$0xff] }
 0x436   : > { %4723 = vmatprep.subr.mxu1 %v11166_v15  ;;  %v11177_v15 = vld [vmem:[#allocation136_spill] sm:$0xff] }
 0x437   : > { %4724 = vmatpush2.msra.mxu1 %v11167_v53  ;;  %v11178_v53 = vld [vmem:[#allocation137_spill] sm:$0xff] }
 0x438   : > { %4725 = vmatprep.subr.mxu1 %v11168_v48  ;;  %v11179_v48 = vld [vmem:[#allocation138_spill] sm:$0xff] }
 0x439   : > { %4726 = vmatpush2.msra.mxu1 %v11169_v0  ;;  %v11180_v0 = vld [vmem:[#allocation139_spill] sm:$0xff] }
 0x43a   : > { %4727 = vmatprep.subr.mxu1 %v11170_v51  ;;  %v11181_v51 = vld [vmem:[#allocation140_spill] sm:$0xff] }
 0x43b   : > { %4728 = vmatpush2.msra.mxu1 %v11171_v32  ;;  %v11182_v32 = vld [vmem:[#allocation141_spill] sm:$0xff] }
 0x43c   : > { %4729 = vmatprep.subr.mxu1 %v11172_v38 }
 0x43d   : > { %4730 = vmatpush2.msra.mxu1 %v11173_v1  ;;  %v11183_v1 = vld [vmem:[#allocation143_spill] sm:$0xff] }
 0x43e   : > { %4731 = vmatprep.subr.mxu1 %v11174_v28  ;;  %v11184_v28 = vld [vmem:[#allocation10_spill] sm:$0xff] }
 0x43f   : > { %4732 = vmatpush2.msra.mxu1 %v11175_v41  ;;  %v11185_v41 = vld [vmem:[#allocation88_spill] sm:$0xff] }
 0x440   : > { %4733 = vmatprep.subr.mxu1 %v11176_v21  ;;  %v11186_v21 = vld [vmem:[#allocation82_spill] sm:$0xff] }
 0x441   : > { %4734 = vmatpush2.msra.mxu1 %v11177_v15 }
 0x442   : > { %4735 = vmatprep.subr.mxu1 %v11178_v53 }
 0x443   : > { %4736 = vmatpush2.msra.mxu1 %v11179_v48 }
 0x444   : > { %4737 = vmatprep.subr.mxu1 %v11180_v0 }
 0x445   : > { %4738 = vmatpush2.msra.mxu1 %v11181_v51 }
 0x446   : > { %4739 = vmatprep.subr.mxu1 %v11182_v32  ;;  %v11187_v32 = vld [vmem:[#allocation4_spill] sm:$0xff] }
 0x447   : > { %4740 = vmatpush2.msra.mxu1 %v11107_v63 }
 0x448   : > { %4741 = vmatprep.subr.mxu1 %v11183_v1  ;;  %v11188_v1 = vld [vmem:[#allocation5_spill] sm:$0xff] }
 0x449   : > { %4742 = vmatpush2.msra.mxu1 %v11184_v28 }
 0x44a   : > { %4743 = vmatprep.subr.mxu1 %v11185_v41 }
 0x44b   : > { %4744 = vmatpush2.msra.mxu1 %v11186_v21 }
 0x48c   : > { %v3995_v15 = vpop.f32.mrf.mxu1 }
 0x48e   : > { %v3997_v38 = vpop.f32.mrf.mxu1 }
 0x490   : > { %v4066_v53 = vpop.f32.mrf.mxu0 }
 0x491   : > { %v4067_v34 = vadd.f32 %v4066_v53, %v3995_v15 }
 0x492   : > { %v4068_v48 = vpop.f32.mrf.mxu0 }
 0x493   : > { %v4069_v49 = vadd.f32 %v4068_v48, %v3997_v38 }
 0x4cc   : > { %v4137_v0 = vpop.f32.mrf.mxu1 }
 0x4cd   : > { %v4138_v51 = vadd.f32 %v4137_v0, %v4067_v34 }
 0x4ce   : > { %v4139_v2 = vpop.f32.mrf.mxu1 }
 0x4cf   : > { %v4142_v52 = vsub.f32 %v11187_v32, %v4138_v51  ;;  %v4140_v63 = vadd.f32 %v4139_v2, %v4069_v49 }
 0x4d1   : > { %v4144_v62 = vrot.slane %v4142_v52, 4  ;;  %v4143_v16 = vsub.f32 %v11188_v1, %v4140_v63 }
 0x4d3   : > { %v4145_v28 = vmax.f32 %v4142_v52, %v4144_v62  ;;  %v4150_v44 = vrot.slane %v4143_v16, 4 }
 0x4d5   : > { %v4146_v41 = vrot.slane %v4145_v28, 2  ;;  %v4151_v4 = vmax.f32 %v4143_v16, %v4150_v44 }
 0x4d7   : > { %v4147_v21 = vmax.f32 %v4145_v28, %v4146_v41  ;;  %v4152_v23 = vrot.slane %v4151_v4, 2 }
 0x4d9   : > { %v4148_v47 = vrot.slane %v4147_v21, 1  ;;  %v4153_v37 = vmax.f32 %v4151_v4, %v4152_v23 }
 0x4db   : > { %v4149_v12 = vmax.f32 %v4147_v21, %v4148_v47  ;;  %v4154_v15 = vrot.slane %v4153_v37, 1 }
 0x4dd   : > { %v4156_v53 = vsub.f32 %v4142_v52, %v4149_v12  ;;  %v4155_v48 = vmax.f32 %v4153_v37, %v4154_v15  ;;  %v6582_v15 = vld [vmem:[%s10229_s4 + $0x30] sm:$0xff] }
 0x4df   : > { %v4158_v34 = vmul.f32 1.442695, %v4156_v53  ;;  %v4157_v0 = vsub.f32 %v4143_v16, %v4155_v48  ;;  %v6586_v53 = vld [vmem:[%s10229_s4 + $0x40] sm:$0xff]  ;;  %v11190_v48 = vld [vmem:[#allocation30_spill] sm:$0xff] }
 0x4e1   : > { %7017 = vpow2.f32 %v4158_v34  ;;  %v4160_v51 = vmul.f32 1.442695, %v4157_v0  ;;  %v11191_v34 = vld [vmem:[#allocation32_spill] sm:$0xff]  ;;  %v11192_v0 = vld [vmem:[#allocation33_spill] sm:$0xff] }
 0x4e3   : > { %7019 = vpow2.f32 %v4160_v51  ;;  %v11193_v51 = vld [vmem:[#allocation35_spill] sm:$0xff] }
 0x4ee   : > { %v7018_v2 = vpop.eup %7017 }
 0x4ef   : > { %v4162_v49 = vrot.slane %v7018_v2, 4 }
 0x4f0   : > { %v7020_v63 = vpop.eup %7019 }
 0x4f1   : > { %v4168_v62 = vrot.slane %v7020_v63, 4  ;;  %v4163_v38 = vadd.f32 %v7018_v2, %v4162_v49  ;;  %v11195_v49 = vld [vmem:[#allocation38_spill] sm:$0xff] }
 0x4f3   : > { %v4169_v1 = vadd.f32 %v7020_v63, %v4168_v62  ;;  %v4164_v44 = vrot.slane %v4163_v38, 2  ;;  %v11197_v62 = vld [vmem:[#allocation42_spill] sm:$0xff] }
 0x4f5   : > { %v4170_v28 = vrot.slane %v4169_v1, 2  ;;  %v4165_v41 = vadd.f32 %v4164_v44, %v4163_v38  ;;  %v11198_v38 = vld [vmem:[#allocation43_spill] sm:$0xff]  ;;  %v11199_v44 = vld [vmem:[#allocation46_spill] sm:$0xff] }
 0x4f7   : > { %v4171_v32 = vadd.f32 %v4170_v28, %v4169_v1  ;;  %v4166_v23 = vrot.slane %v4165_v41, 1  ;;  %v11189_v1 = vmov 0.0   ;;  %v11200_v28 = vld [vmem:[#allocation50_spill] sm:$0xff] }
 0x4f9   : > { %v4172_v47 = vrot.slane %v4171_v32, 1  ;;  %v4167_v4 = vadd.f32 %v4166_v23, %v4165_v41  ;;  %v11201_v41 = vld [vmem:[#allocation52_spill] sm:$0xff]  ;;  %v11202_v23 = vld [vmem:[#allocation54_spill] sm:$0xff] }
 0x4fb   : > { %v4173_v12 = vadd.f32 %v4172_v47, %v4171_v32  ;;  %7021 = vrcp.f32 %v4167_v4  ;;  %v6584_v32 = vld [vmem:[%s10229_s4 + $0x38] sm:$0xff]  ;;  %v11203_v47 = vld [vmem:[#allocation56_spill] sm:$0xff]  ;;  %v11204_v4 = vld [vmem:[#allocation58_spill] sm:$0xff] }
 0x4fd   : > { %7023 = vrcp.f32 %v4173_v12  ;;  %v11205_v12 = vld [vmem:[#allocation60_spill] sm:$0xff] }
 0x508   : > { %v7022_v37 = vpop.eup %7021 }
 0x509   : > { %v4176_v21 = vmul.f32 %v7022_v37, %v7018_v2  ;;  %v11194_v2 = vld [vmem:[#allocation37_spill] sm:$0xff]  ;;  %v11206_v37 = vld [vmem:[#allocation62_spill] sm:$0xff] }
 0x50a   : > { %v7024_v16 = vpop.eup %7023 }
 0x50b   : > { %v4177_v52 = vmul.f32 %v7024_v16, %v7020_v63  ;;  %v11196_v63 = vld [vmem:[#allocation40_spill] sm:$0xff] }
 0x50c   : > { %v11207_v16 = vld [vmem:[#allocation64_spill] sm:$0xff] }
 0x50d   : > { %4213 = vmatprep.subr.mxu0 %v4177_v52 }
 0x50e   : > { %4214 = vmatpush1.msra.mxu0 %v4176_v21 }
 0x50f   : > { %6583 = vmatmul.mubr.msk.f32.vlgmr.msra.gmra.mxu0 %vm299_vm0, %v6582_v15  ;;  %4291 = vmatprep.subr.mxu0 %v4177_v52  ;;  %v11210_v15 = vld [vmem:[#allocation70_spill] sm:$0xff] }
 0x510   : > { %4292 = vmatpush1.msra.mxu0 %v4176_v21  ;;  %4325 = vmatprep.mubr.f32.mxu0 %v11189_v1 }
 0x511   : > { %4369 = vmatprep.subr.mxu0 %v4177_v52  ;;  %v11208_v52 = vld [vmem:[#allocation66_spill] sm:$0xff] }
 0x513   : > { %6585 = vmatmul.mubr.msk.f32.vlgmr.msra.gmra.mxu0 %vm299_vm0, %v6584_v32  ;;  %v11211_v32 = vld [vmem:[#allocation73_spill] sm:$0xff] }
 0x514   : > { %4370 = vmatpush1.msra.mxu0 %v4176_v21  ;;  %4403 = vmatprep.mubr.f32.mxu0 %v11189_v1  ;;  %v11209_v21 = vld [vmem:[#allocation68_spill] sm:$0xff] }
 0x515   : > { %4610 = vmatprep.subr.mxu0 %v11190_v48 }
 0x517   : > { %6587 = vmatmul.mubr.msk.f32.vlgmr.msra.gmra.mxu0 %vm299_vm0, %v6586_v53  ;;  %v11212_v53 = vld [vmem:[#allocation76_spill] sm:$0xff] }
 0x518   : > { %4611 = vmatpush1.msra.mxu0 %v11191_v34 }
 0x519   : > { %4612 = vmatprep.subr.mxu0 %v11192_v0 }
 0x51a   : > { %4613 = vmatpush1.msra.mxu0 %v11193_v51 }
 0x51b   : > { %4614 = vmatprep.subr.mxu0 %v11194_v2 }
 0x51c   : > { %4615 = vmatpush1.msra.mxu0 %v11195_v49 }
 0x51d   : > { %4616 = vmatprep.subr.mxu0 %v11196_v63 }
 0x51e   : > { %4617 = vmatpush1.msra.mxu0 %v11197_v62 }
 0x51f   : > { %4618 = vmatprep.subr.mxu0 %v11198_v38 }
 0x520   : > { %4619 = vmatpush1.msra.mxu0 %v11199_v44 }
 0x521   : > { %4620 = vmatprep.subr.mxu0 %v11200_v28 }
 0x522   : > { %4621 = vmatpush1.msra.mxu0 %v11201_v41  ;;  %v11257_v41 = vld [vmem:[#allocation92_spill] sm:$0xff] }
 0x523   : > { %4622 = vmatprep.subr.mxu0 %v11202_v23  ;;  %v11213_v23 = vld [vmem:[#allocation78_spill] sm:$0xff] }
 0x524   : > { %4623 = vmatpush1.msra.mxu0 %v11203_v47  ;;  %v11214_v47 = vld [vmem:[#allocation80_spill] sm:$0xff] }
 0x525   : > { %4624 = vmatprep.subr.mxu0 %v11204_v4  ;;  %v11215_v4 = vld [vmem:[#allocation83_spill] sm:$0xff] }
 0x526   : > { %4625 = vmatpush1.msra.mxu0 %v11205_v12  ;;  %v11216_v12 = vld [vmem:[#allocation86_spill] sm:$0xff] }
 0x527   : > { %4626 = vmatprep.subr.mxu0 %v11206_v37  ;;  %v11217_v37 = vld [vmem:[#allocation14_spill] sm:$0xff] }
 0x528   : > { %4627 = vmatpush1.msra.mxu0 %v11207_v16  ;;  %v11218_v16 = vld [vmem:[#allocation12_spill] sm:$0xff] }
 0x529   : > { %4628 = vmatprep.subr.mxu0 %v11208_v52  ;;  %v11219_v52 = vld [vmem:[#allocation29_spill] sm:$0xff] }
 0x52a   : > { %4629 = vmatpush1.msra.mxu0 %v11209_v21  ;;  %v11220_v21 = vld [vmem:[#allocation25_spill] sm:$0xff] }
 0x52b   : > { %4630 = vmatprep.subr.mxu0 %v11210_v15  ;;  %v11221_v15 = vld [vmem:[#allocation6_spill] sm:$0xff] }
 0x52c   : > { %4631 = vmatpush1.msra.mxu0 %v11211_v32  ;;  %v11222_v32 = vld [vmem:[#allocation23_spill] sm:$0xff] }
 0x52d   : > { %4632 = vmatprep.subr.mxu0 %v11212_v53  ;;  %v11223_v53 = vld [vmem:[#allocation11_spill] sm:$0xff] }
 0x52e   : > { %4633 = vmatpush1.msra.mxu0 %v11213_v23  ;;  %v11224_v23 = vld [vmem:[#allocation9_spill] sm:$0xff] }
 0x52f   : > { %4634 = vmatprep.subr.mxu0 %v11214_v47  ;;  %v11225_v47 = vld [vmem:[#allocation7_spill] sm:$0xff] }
 0x530   : > { %4635 = vmatpush1.msra.mxu0 %v11215_v4  ;;  %v11226_v4 = vld [vmem:[#allocation41_spill] sm:$0xff] }
 0x531   : > { %4636 = vmatprep.subr.mxu0 %v11216_v12  ;;  %v11227_v12 = vld [vmem:[#allocation48_spill] sm:$0xff] }
 0x532   : > { %4637 = vmatpush1.msra.mxu0 %v11217_v37  ;;  %v11228_v37 = vld [vmem:[#allocation97_spill] sm:$0xff] }
 0x533   : > { %4638 = vmatprep.subr.mxu0 %v11218_v16  ;;  %v11229_v16 = vld [vmem:[#allocation98_spill] sm:$0xff] }
 0x534   : > { %4639 = vmatpush1.msra.mxu0 %v11219_v52  ;;  %v11230_v52 = vld [vmem:[#allocation99_spill] sm:$0xff] }
 0x535   : > { %4640 = vmatprep.subr.mxu0 %v11220_v21  ;;  %v11231_v21 = vld [vmem:[#allocation100_spill] sm:$0xff] }
 0x536   : > { %4641 = vmatpush1.msra.mxu0 %v11221_v15  ;;  %v11232_v15 = vld [vmem:[#allocation101_spill] sm:$0xff] }
 0x537   : > { %4642 = vmatprep.subr.mxu0 %v11222_v32  ;;  %v11233_v32 = vld [vmem:[#allocation102_spill] sm:$0xff] }
 0x538   : > { %4643 = vmatpush2.msra.mxu0 %v11223_v53  ;;  %v11234_v53 = vld [vmem:[#allocation103_spill] sm:$0xff] }
 0x539   : > { %4644 = vmatprep.subr.mxu0 %v11224_v23  ;;  %v11235_v23 = vld [vmem:[#allocation104_spill] sm:$0xff] }
 0x53a   : > { %4645 = vmatpush2.msra.mxu0 %v11225_v47  ;;  %v11236_v47 = vld [vmem:[#allocation105_spill] sm:$0xff] }
 0x53b   : > { %4646 = vmatprep.subr.mxu0 %v11226_v4  ;;  %v11237_v4 = vld [vmem:[#allocation106_spill] sm:$0xff] }
 0x53c   : > { %4647 = vmatpush2.msra.mxu0 %v11227_v12  ;;  %v11238_v12 = vld [vmem:[#allocation107_spill] sm:$0xff] }
 0x53d   : > { %4648 = vmatprep.subr.mxu0 %v11228_v37  ;;  %v11239_v37 = vld [vmem:[#allocation108_spill] sm:$0xff] }
 0x53e   : > { %4649 = vmatpush2.msra.mxu0 %v11229_v16  ;;  %v11240_v16 = vld [vmem:[#allocation109_spill] sm:$0xff] }
 0x53f   : > { %4650 = vmatprep.subr.mxu0 %v11230_v52  ;;  %v11241_v52 = vld [vmem:[#allocation111_spill] sm:$0xff] }
 0x540   : > { %4651 = vmatpush2.msra.mxu0 %v11231_v21  ;;  %v11242_v21 = vld [vmem:[#allocation114_spill] sm:$0xff] }
 0x541   : > { %4652 = vmatprep.subr.mxu0 %v11232_v15  ;;  %v11243_v15 = vld [vmem:[#allocation116_spill] sm:$0xff] }
 0x542   : > { %4653 = vmatpush2.msra.mxu0 %v11233_v32  ;;  %v11244_v32 = vld [vmem:[#allocation118_spill] sm:$0xff] }
 0x543   : > { %4654 = vmatprep.subr.mxu0 %v11234_v53  ;;  %v11245_v53 = vld [vmem:[#allocation120_spill] sm:$0xff] }
 0x544   : > { %4655 = vmatpush2.msra.mxu0 %v11235_v23  ;;  %v11246_v23 = vld [vmem:[#allocation122_spill] sm:$0xff] }
 0x545   : > { %4656 = vmatprep.subr.mxu0 %v11236_v47  ;;  %v11247_v47 = vld [vmem:[#allocation124_spill] sm:$0xff] }
 0x546   : > { %4657 = vmatpush2.msra.mxu0 %v11237_v4  ;;  %v11248_v4 = vld [vmem:[#allocation126_spill] sm:$0xff] }
 0x547   : > { %4658 = vmatprep.subr.mxu0 %v11238_v12  ;;  %v11249_v12 = vld [vmem:[#allocation128_spill] sm:$0xff] }
 0x548   : > { %4659 = vmatpush2.msra.mxu0 %v11239_v37  ;;  %v11250_v37 = vld [vmem:[#allocation130_spill] sm:$0xff] }
 0x549   : > { %4660 = vmatprep.subr.mxu0 %v11240_v16  ;;  %v11251_v16 = vld [vmem:[#allocation132_spill] sm:$0xff] }
 0x54a   : > { %4661 = vmatpush2.msra.mxu0 %v11241_v52  ;;  %v11252_v52 = vld [vmem:[#allocation84_spill] sm:$0xff] }
 0x54b   : > { %4662 = vmatprep.subr.mxu0 %v11242_v21  ;;  %v11253_v21 = vld [vmem:[#allocation87_spill] sm:$0xff] }
 0x54c   : > { %4663 = vmatpush2.msra.mxu0 %v11243_v15  ;;  %v11254_v15 = vld [vmem:[#allocation96_spill] sm:$0xff] }
 0x54d   : > { %4664 = vmatprep.subr.mxu0 %v11244_v32 }
 0x54e   : > { %4665 = vmatpush2.msra.mxu0 %v11245_v53 }
 0x54f   : > { %4666 = vmatprep.subr.mxu0 %v11246_v23 }
 0x550   : > { %4667 = vmatpush2.msra.mxu0 %v11247_v47  ;;  %v11255_v47 = vld [vmem:[#allocation95_spill] sm:$0xff] }
 0x551   : > { %4668 = vmatprep.subr.mxu0 %v11248_v4  ;;  %v11256_v4 = vld [vmem:[#allocation93_spill] sm:$0xff] }
 0x552   : > { %4669 = vmatpush2.msra.mxu0 %v11249_v12 }
 0x553   : > { %4670 = vmatprep.subr.mxu0 %v11250_v37  ;;  %v11269_v37 = vld [vmem:[#allocation149_spill] sm:$0xff] }
 0x554   : > { %4671 = vmatpush2.msra.mxu0 %v11251_v16  ;;  %v11258_v16 = vld [vmem:[#allocation90_spill] sm:$0xff] }
 0x555   : > { %4672 = vmatprep.subr.mxu0 %v11252_v52 }
 0x556   : > { %4673 = vmatpush2.msra.mxu0 %v11253_v21  ;;  %v11259_v21 = vld [vmem:[#allocation94_spill] sm:$0xff] }
 0x557   : > { %4752 = vmatprep.subr.mxu0 %v11254_v15  ;;  %v11260_v15 = vld [vmem:[#allocation13_spill] sm:$0xff] }
 0x5cf   : > { %v4249_v32 = vpop.f32.mrf.mxu0 }
 0x5d1   : > { %v4251_v53 = vpop.f32.mrf.mxu0 }
 0x5d2   : > { %4674 = vmatprep.mubr.f32.mxu0 %v4251_v53 }
 0x5d3   : > { %v4327_v23 = vpop.f32.mrf.mxu0  ;;  %4675 = vmatmul.mubr.f32.vlgmr.msra.gmra.mxu0 %v4249_v32  ;;  %v11261_v32 = vld [vmem:[#allocation24_spill] sm:$0xff] }
 0x5d4   : > { %4753 = vmatpush1.msra.mxu0 %v11255_v47  ;;  %v11262_v47 = vld [vmem:[#allocation31_spill] sm:$0xff] }
 0x5d5   : > { %4754 = vmatprep.subr.mxu0 %v11256_v4  ;;  %v4329_v12 = vpop.f32.mrf.mxu0  ;;  %v11263_v4 = vld [vmem:[#allocation89_spill] sm:$0xff] }
 0x5d6   : > { %4755 = vmatpush1.msra.mxu0 %v11257_v41  ;;  %4745 = vmatprep.mubr.f32.mxu1 %v4329_v12  ;;  %v11264_v41 = vld [vmem:[#allocation144_spill] sm:$0xff]  ;;  %v11265_v12 = vld [vmem:[#allocation145_spill] sm:$0xff] }
 0x5d7   : > { %4756 = vmatprep.subr.mxu0 %v11258_v16  ;;  %4746 = vmatmul.mubr.f32.vlgmr.msra.gmra.mxu1 %v4327_v23  ;;  %v4405_v52 = vpop.f32.mrf.mxu0  ;;  %v11266_v23 = vld [vmem:[#allocation146_spill] sm:$0xff]  ;;  %v11267_v16 = vld [vmem:[#allocation147_spill] sm:$0xff] }
 0x5d8   : > { %4757 = vmatpush1.msra.mxu0 %v11259_v21  ;;  %4928 = vmatprep.mubr.f32.mxu1 %v11189_v1  ;;  %v11268_v21 = vld [vmem:[#allocation148_spill] sm:$0xff] }
 0x5d9   : > { %4758 = vmatprep.subr.mxu0 %v11260_v15  ;;  %v4407_v53 = vpop.f32.mrf.mxu0  ;;  %v11270_v15 = vld [vmem:[#allocation150_spill] sm:$0xff] }
 0x5da   : > { %4759 = vmatpush1.msra.mxu0 %v11261_v32  ;;  %4816 = vmatprep.mubr.f32.mxu0 %v4407_v53  ;;  %v11271_v32 = vld [vmem:[#allocation151_spill] sm:$0xff]  ;;  %v11272_v53 = vld [vmem:[#allocation152_spill] sm:$0xff] }
 0x5db   : > { %4760 = vmatprep.subr.mxu0 %v11262_v47  ;;  %v11273_v47 = vld [vmem:[#allocation153_spill] sm:$0xff] }
 0x5dc   : > { %4761 = vmatpush1.msra.mxu0 %v11263_v4  ;;  %v11274_v4 = vld [vmem:[#allocation154_spill] sm:$0xff] }
 0x5dd   : > { %4762 = vmatprep.subr.mxu0 %v11264_v41 }
 0x5de   : > { %4763 = vmatpush1.msra.mxu0 %v11265_v12 }
 0x5df   : > { %4764 = vmatprep.subr.mxu0 %v11266_v23 }
 0x5e0   : > { %4765 = vmatpush1.msra.mxu0 %v11267_v16 }
 0x5e1   : > { %4766 = vmatprep.subr.mxu0 %v11268_v21 }
 0x5e2   : > { %4767 = vmatpush1.msra.mxu0 %v11269_v37 }
 0x5e3   : > { %4768 = vmatprep.subr.mxu0 %v11270_v15 }
 0x5e4   : > { %4769 = vmatpush1.msra.mxu0 %v11271_v32 }
 0x5e5   : > { %4770 = vmatprep.subr.mxu0 %v11272_v53 }
 0x5e6   : > { %4771 = vmatpush1.msra.mxu0 %v11273_v47 }
 0x5e7   : > { %4772 = vmatprep.subr.mxu0 %v11274_v4 }
 0x5e8   : > { %4773 = vmatpush1.msra.mxu0 %v11132_v18 }
 0x5e9   : > { %4774 = vmatprep.subr.mxu0 %v11133_v14 }
 0x5ea   : > { %4775 = vmatpush1.msra.mxu0 %v11134_v36 }
 0x5eb   : > { %4776 = vmatprep.subr.mxu0 %v11135_v8 }
 0x5ec   : > { %4777 = vmatpush1.msra.mxu0 %v11136_v7 }
 0x5ed   : > { %4778 = vmatprep.subr.mxu0 %v11137_v42 }
 0x5ee   : > { %4779 = vmatpush1.msra.mxu0 %v11138_v46 }
 0x5ef   : > { %4780 = vmatprep.subr.mxu0 %v11139_v13 }
 0x5f0   : > { %4781 = vmatpush1.msra.mxu0 %v11140_v39 }
 0x5f1   : > { %4782 = vmatprep.subr.mxu0 %v11141_v20 }
 0x5f2   : > { %4783 = vmatpush1.msra.mxu0 %v11142_v54 }
 0x5f3   : > { %4784 = vmatprep.subr.mxu0 %v9182_v31 }
 0x5f4   : > { %4785 = vmatpush2.msra.mxu0 %v9187_v5 }
 0x5f5   : > { %4786 = vmatprep.subr.mxu0 %v9193_v57 }
 0x5f6   : > { %4787 = vmatpush2.msra.mxu0 %v9199_v45 }
 0x5f7   : > { %4788 = vmatprep.subr.mxu0 %v9207_v61 }
 0x5f8   : > { %4789 = vmatpush2.msra.mxu0 %v9215_v27 }
 0x5f9   : > { %4790 = vmatprep.subr.mxu0 %v9223_v58 }
 0x5fa   : > { %4791 = vmatpush2.msra.mxu0 %v9231_v6 }
 0x5fb   : > { %4792 = vmatprep.subr.mxu0 %v9237_v50 }
 0x5fc   : > { %4793 = vmatpush2.msra.mxu0 %v9243_v30 }
 0x5fd   : > { %4794 = vmatprep.subr.mxu0 %v9249_v22 }
 0x5fe   : > { %4795 = vmatpush2.msra.mxu0 %v9255_v10 }
 0x5ff   : > { %4796 = vmatprep.subr.mxu0 %v9261_v55 }
 0x600   : > { %4797 = vmatpush2.msra.mxu0 %v9267_v35 }
 0x601   : > { %4798 = vmatprep.subr.mxu0 %v9273_v56 }
 0x602   : > { %4799 = vmatpush2.msra.mxu0 %v9279_v11 }
 0x603   : > { %4800 = vmatprep.subr.mxu0 %v9285_v19 }
 0x604   : > { %4801 = vmatpush2.msra.mxu0 %v9291_v33 }
 0x605   : > { %4802 = vmatprep.subr.mxu0 %v9297_v43  ;;  %v11275_v43 = vld [vmem:[#allocation195_spill] sm:$0xff] }
 0x606   : > { %4803 = vmatpush2.msra.mxu0 %v9303_v3  ;;  %v11276_v3 = vld [vmem:[#allocation196_spill] sm:$0xff] }
 0x607   : > { %4804 = vmatprep.subr.mxu0 %v9309_v29  ;;  %v11277_v29 = vld [vmem:[#allocation197_spill] sm:$0xff] }
 0x608   : > { %4805 = vmatpush2.msra.mxu0 %v9315_v17 }
 0x609   : > { %4806 = vmatprep.subr.mxu0 %v9321_v60  ;;  %v11278_v60 = vld [vmem:[#allocation45_spill] sm:$0xff] }
 0x60a   : > { %4807 = vmatpush2.msra.mxu0 %v9327_v26  ;;  %v11279_v26 = vld [vmem:[#allocation49_spill] sm:$0xff] }
 0x60b   : > { %4808 = vmatprep.subr.mxu0 %v9333_v40  ;;  %v11280_v40 = vld [vmem:[#allocation51_spill] sm:$0xff] }
 0x60c   : > { %4809 = vmatpush2.msra.mxu0 %v9339_v24  ;;  %v11281_v24 = vld [vmem:[#allocation53_spill] sm:$0xff] }
 0x60d   : > { %4810 = vmatprep.subr.mxu0 %v9345_v59  ;;  %v11282_v59 = vld [vmem:[#allocation55_spill] sm:$0xff] }
 0x60e   : > { %4811 = vmatpush2.msra.mxu0 %v9351_v9  ;;  %v11283_v9 = vld [vmem:[#allocation57_spill] sm:$0xff] }
 0x60f   : > { %4812 = vmatprep.subr.mxu0 %v9357_v25  ;;  %v11284_v25 = vld [vmem:[#allocation59_spill] sm:$0xff] }
 0x610   : > { %4813 = vmatpush2.msra.mxu0 %v11275_v43  ;;  %v11285_v43 = vld [vmem:[#allocation61_spill] sm:$0xff] }
 0x611   : > { %4814 = vmatprep.subr.mxu0 %v11276_v3  ;;  %v11286_v3 = vld [vmem:[#allocation63_spill] sm:$0xff] }
 0x612   : > { %4815 = vmatpush2.msra.mxu0 %v11277_v29  ;;  %v11287_v29 = vld [vmem:[#allocation65_spill] sm:$0xff] }
 0x613   : > { %4817 = vmatmul.mubr.f32.vlgmr.msra.gmra.mxu0 %v4405_v52  ;;  %5362 = vmatprep.subr.mxu0 %v11278_v60  ;;  %v11288_v52 = vld [vmem:[#allocation67_spill] sm:$0xff]  ;;  %v11289_v60 = vld [vmem:[#allocation69_spill] sm:$0xff] }
 0x614   : > { %5363 = vmatpush1.msra.mxu0 %v11279_v26  ;;  %v11290_v26 = vld [vmem:[#allocation71_spill] sm:$0xff] }
 0x615   : > { %5364 = vmatprep.subr.mxu0 %v11280_v40  ;;  %v11291_v40 = vld [vmem:[#allocation75_spill] sm:$0xff] }
 0x616   : > { %5365 = vmatpush1.msra.mxu0 %v11281_v24  ;;  %v11292_v24 = vld [vmem:[#allocation77_spill] sm:$0xff] }
 0x617   : > { %5366 = vmatprep.subr.mxu0 %v11282_v59  ;;  %v11293_v59 = vld [vmem:[#allocation79_spill] sm:$0xff] }
 0x618   : > { %5367 = vmatpush1.msra.mxu0 %v11283_v9  ;;  %v11294_v9 = vld [vmem:[#allocation81_spill] sm:$0xff] }
 0x619   : > { %5368 = vmatprep.subr.mxu0 %v11284_v25  ;;  %v11295_v25 = vld [vmem:[#allocation85_spill] sm:$0xff] }
 0x61a   : > { %5369 = vmatpush1.msra.mxu0 %v11285_v43  ;;  %v11296_v43 = vld [vmem:[#allocation28_spill] sm:$0xff] }
 0x61b   : > { %5370 = vmatprep.subr.mxu0 %v11286_v3  ;;  %v11297_v3 = vld [vmem:[#allocation27_spill] sm:$0xff] }
 0x61c   : > { %5371 = vmatpush1.msra.mxu0 %v11287_v29  ;;  %v11298_v29 = vld [vmem:[#allocation26_spill] sm:$0xff] }
 0x61d   : > { %5372 = vmatprep.subr.mxu0 %v11288_v52  ;;  %v11299_v52 = vld [vmem:[#allocation34_spill] sm:$0xff] }
 0x61e   : > { %5373 = vmatpush1.msra.mxu0 %v11289_v60  ;;  %v11300_v60 = vld [vmem:[#allocation8_spill] sm:$0xff] }
 0x61f   : > { %5374 = vmatprep.subr.mxu0 %v11290_v26  ;;  %v11301_v26 = vld [vmem:[#allocation47_spill] sm:$0xff] }
 0x620   : > { %5375 = vmatpush1.msra.mxu0 %v11291_v40  ;;  %v11302_v40 = vld [vmem:[#allocation22_spill] sm:$0xff] }
 0x621   : > { %5376 = vmatprep.subr.mxu0 %v11292_v24  ;;  %v11303_v24 = vld [vmem:[#allocation21_spill] sm:$0xff] }
 0x622   : > { %5377 = vmatpush1.msra.mxu0 %v11293_v59  ;;  %v11304_v59 = vld [vmem:[#allocation20_spill] sm:$0xff] }
 0x623   : > { %5378 = vmatprep.subr.mxu0 %v11294_v9  ;;  %v11305_v9 = vld [vmem:[#allocation19_spill] sm:$0xff] }
 0x624   : > { %5379 = vmatpush1.msra.mxu0 %v11295_v25  ;;  %v11306_v25 = vld [vmem:[#allocation18_spill] sm:$0xff] }
 0x625   : > { %5380 = vmatprep.subr.mxu0 %v11296_v43  ;;  %v11307_v43 = vld [vmem:[#allocation17_spill] sm:$0xff] }
 0x626   : > { %5381 = vmatpush1.msra.mxu0 %v11297_v3  ;;  %v11308_v3 = vld [vmem:[#allocation16_spill] sm:$0xff] }
 0x627   : > { %5382 = vmatprep.subr.mxu0 %v11298_v29  ;;  %v11309_v29 = vld [vmem:[#allocation15_spill] sm:$0xff] }
 0x628   : > { %5383 = vmatpush1.msra.mxu0 %v11299_v52  ;;  %v11310_v52 = vld [vmem:[#allocation112_spill] sm:$0xff] }
 0x629   : > { %5384 = vmatprep.subr.mxu0 %v11300_v60  ;;  %v11311_v60 = vld [vmem:[#allocation110_spill] sm:$0xff] }
 0x62a   : > { %5385 = vmatpush1.msra.mxu0 %v11301_v26  ;;  %v11312_v26 = vld [vmem:[#allocation113_spill] sm:$0xff] }
 0x62b   : > { %5386 = vmatprep.subr.mxu0 %v11302_v40  ;;  %v11313_v40 = vld [vmem:[#allocation115_spill] sm:$0xff] }
 0x62c   : > { %5387 = vmatpush1.msra.mxu0 %v11303_v24  ;;  %v11314_v24 = vld [vmem:[#allocation117_spill] sm:$0xff] }
 0x62d   : > { %5388 = vmatprep.subr.mxu0 %v11304_v59  ;;  %v11315_v59 = vld [vmem:[#allocation119_spill] sm:$0xff] }
 0x62e   : > { %5389 = vmatpush1.msra.mxu0 %v11305_v9  ;;  %v11316_v9 = vld [vmem:[#allocation121_spill] sm:$0xff] }
 0x62f   : > { %5390 = vmatprep.subr.mxu0 %v11306_v25  ;;  %v11317_v25 = vld [vmem:[#allocation123_spill] sm:$0xff] }
 0x630   : > { %5391 = vmatpush1.msra.mxu0 %v11307_v43  ;;  %v11318_v43 = vld [vmem:[#allocation125_spill] sm:$0xff] }
 0x631   : > { %5392 = vmatprep.subr.mxu0 %v11308_v3  ;;  %v11319_v3 = vld [vmem:[#allocation127_spill] sm:$0xff] }
 0x632   : > { %5393 = vmatpush1.msra.mxu0 %v11309_v29  ;;  %v11320_v29 = vld [vmem:[#allocation129_spill] sm:$0xff] }
 0x633   : > { %5394 = vmatprep.subr.mxu0 %v11310_v52  ;;  %v11321_v52 = vld [vmem:[#allocation131_spill] sm:$0xff] }
 0x634   : > { %5395 = vmatpush2.msra.mxu0 %v11311_v60  ;;  %v11322_v60 = vld [vmem:[#allocation133_spill] sm:$0xff] }
 0x635   : > { %5396 = vmatprep.subr.mxu0 %v11312_v26  ;;  %v11323_v26 = vld [vmem:[#allocation74_spill] sm:$0xff] }
 0x636   : > { %5397 = vmatpush2.msra.mxu0 %v11313_v40  ;;  %v11324_v40 = vld [vmem:[#allocation72_spill] sm:$0xff] }
 0x637   : > { %5398 = vmatprep.subr.mxu0 %v11314_v24  ;;  %v11325_v24 = vld [vmem:[#allocation36_spill] sm:$0xff] }
 0x638   : > { %5399 = vmatpush2.msra.mxu0 %v11315_v59  ;;  %v11326_v59 = vld [vmem:[#allocation39_spill] sm:$0xff] }
 0x639   : > { %5400 = vmatprep.subr.mxu0 %v11316_v9  ;;  %v11327_v9 = vld [vmem:[#allocation44_spill] sm:$0xff] }
 0x63a   : > { %5401 = vmatpush2.msra.mxu0 %v11317_v25  ;;  %v11328_v25 = vld [vmem:[#allocation91_spill] sm:$0xff] }
 0x63b   : > { %5402 = vmatprep.subr.mxu0 %v11318_v43  ;;  %v11329_v43 = vld [vmem:[#allocation134_spill] sm:$0xff] }
 0x63c   : > { %5403 = vmatpush2.msra.mxu0 %v11319_v3  ;;  %v11330_v3 = vld [vmem:[#allocation135_spill] sm:$0xff] }
 0x63d   : > { %5404 = vmatprep.subr.mxu0 %v11320_v29  ;;  %v11331_v29 = vld [vmem:[#allocation136_spill] sm:$0xff] }
 0x63e   : > { %5405 = vmatpush2.msra.mxu0 %v11321_v52  ;;  %v11332_v52 = vld [vmem:[#allocation137_spill] sm:$0xff] }
 0x63f   : > { %5406 = vmatprep.subr.mxu0 %v11322_v60  ;;  %v11333_v60 = vld [vmem:[#allocation138_spill] sm:$0xff] }
 0x640   : > { %5407 = vmatpush2.msra.mxu0 %v11323_v26  ;;  %v11334_v26 = vld [vmem:[#allocation139_spill] sm:$0xff] }
 0x641   : > { %5408 = vmatprep.subr.mxu0 %v11324_v40  ;;  %v11335_v40 = vld [vmem:[#allocation140_spill] sm:$0xff] }
 0x642   : > { %5409 = vmatpush2.msra.mxu0 %v11325_v24  ;;  %v11336_v24 = vld [vmem:[#allocation141_spill] sm:$0xff] }
 0x643   : > { %5410 = vmatprep.subr.mxu0 %v11326_v59  ;;  %v11337_v59 = vld [vmem:[#allocation142_spill] sm:$0xff] }
 0x644   : > { %5411 = vmatpush2.msra.mxu0 %v11327_v9  ;;  %v11338_v9 = vld [vmem:[#allocation143_spill] sm:$0xff] }
 0x645   : > { %5412 = vmatprep.subr.mxu0 %v11328_v25  ;;  %v11339_v25 = vld [vmem:[#allocation10_spill] sm:$0xff] }
 0x646   : > { %5413 = vmatpush2.msra.mxu0 %v11329_v43  ;;  %v11340_v43 = vld [vmem:[#allocation88_spill] sm:$0xff] }
 0x647   : > { %5414 = vmatprep.subr.mxu0 %v11330_v3  ;;  %v11341_v3 = vld [vmem:[#allocation82_spill] sm:$0xff] }
 0x648   : > { %5415 = vmatpush2.msra.mxu0 %v11331_v29 }
 0x649   : > { %5416 = vmatprep.subr.mxu0 %v11332_v52 }
 0x64a   : > { %5417 = vmatpush2.msra.mxu0 %v11333_v60 }
 0x64b   : > { %5418 = vmatprep.subr.mxu0 %v11334_v26 }
 0x64c   : > { %5419 = vmatpush2.msra.mxu0 %v11335_v40 }
 0x64d   : > { %5420 = vmatprep.subr.mxu0 %v11336_v24  ;;  %v11342_v24 = vld [vmem:[#allocation4_spill] sm:$0xff] }
 0x64e   : > { %5421 = vmatpush2.msra.mxu0 %v11337_v59 }
 0x64f   : > { %5422 = vmatprep.subr.mxu0 %v11338_v9  ;;  %v11343_v9 = vld [vmem:[#allocation5_spill] sm:$0xff] }
 0x650   : > { %5423 = vmatpush2.msra.mxu0 %v11339_v25 }
 0x651   : > { %5424 = vmatprep.subr.mxu0 %v11340_v43 }
 0x652   : > { %5425 = vmatpush2.msra.mxu0 %v11341_v3 }
 0x693   : > { %v4676_v29 = vpop.f32.mrf.mxu0 }
 0x695   : > { %v4678_v17 = vpop.f32.mrf.mxu0 }
 0x697   : > { %v4747_v52 = vpop.f32.mrf.mxu1 }
 0x698   : > { %v4748_v33 = vadd.f32 %v4747_v52, %v4676_v29 }
 0x699   : > { %v4749_v60 = vpop.f32.mrf.mxu1 }
 0x69a   : > { %v4750_v19 = vadd.f32 %v4749_v60, %v4678_v17 }
 0x6d3   : > { %v4818_v26 = vpop.f32.mrf.mxu0 }
 0x6d4   : > { %v4819_v40 = vadd.f32 %v4818_v26, %v4748_v33 }
 0x6d5   : > { %v4820_v11 = vpop.f32.mrf.mxu0 }
 0x6d6   : > { %v4823_v56 = vsub.f32 %v11342_v24, %v4819_v40  ;;  %v4821_v59 = vadd.f32 %v4820_v11, %v4750_v19 }
 0x6d8   : > { %v4825_v35 = vrot.slane %v4823_v56, 4  ;;  %v4824_v55 = vsub.f32 %v11343_v9, %v4821_v59 }
 0x6da   : > { %v4826_v25 = vmax.f32 %v4823_v56, %v4825_v35  ;;  %v4831_v10 = vrot.slane %v4824_v55, 4 }
 0x6dc   : > { %v4827_v43 = vrot.slane %v4826_v25, 2  ;;  %v4832_v22 = vmax.f32 %v4824_v55, %v4831_v10 }
 0x6de   : > { %v4828_v3 = vmax.f32 %v4826_v25, %v4827_v43  ;;  %v4833_v30 = vrot.slane %v4832_v22, 2 }
 0x6e0   : > { %v4829_v50 = vrot.slane %v4828_v3, 1  ;;  %v4834_v6 = vmax.f32 %v4832_v22, %v4833_v30 }
 0x6e2   : > { %v4830_v58 = vmax.f32 %v4828_v3, %v4829_v50  ;;  %v4835_v29 = vrot.slane %v4834_v6, 1 }
 0x6e4   : > { %v4837_v52 = vsub.f32 %v4823_v56, %v4830_v58  ;;  %v4836_v17 = vmax.f32 %v4834_v6, %v4835_v29  ;;  %v6588_v29 = vld [vmem:[%s10229_s4 + $0x48] sm:$0xff] }
 0x6e6   : > { %v4839_v33 = vmul.f32 1.442695, %v4837_v52  ;;  %v4838_v60 = vsub.f32 %v4824_v55, %v4836_v17  ;;  %v11344_v52 = vld [vmem:[#allocation52_spill] sm:$0xff]  ;;  %v11345_v17 = vld [vmem:[#allocation54_spill] sm:$0xff] }
 0x6e8   : > { %7025 = vpow2.f32 %v4839_v33  ;;  %v4841_v26 = vmul.f32 1.442695, %v4838_v60  ;;  %v11346_v33 = vld [vmem:[#allocation56_spill] sm:$0xff]  ;;  %v11347_v60 = vld [vmem:[#allocation58_spill] sm:$0xff] }
 0x6ea   : > { %7027 = vpow2.f32 %v4841_v26  ;;  %v11348_v26 = vld [vmem:[#allocation60_spill] sm:$0xff] }
 0x6f5   : > { %v7026_v11 = vpop.eup %7025 }
 0x6f6   : > { %v4843_v19 = vrot.slane %v7026_v11, 4 }
 0x6f7   : > { %v7028_v40 = vpop.eup %7027 }
 0x6f8   : > { %v4849_v35 = vrot.slane %v7028_v40, 4  ;;  %v4844_v59 = vadd.f32 %v7026_v11, %v4843_v19  ;;  %v11350_v19 = vld [vmem:[#allocation64_spill] sm:$0xff] }
 0x6fa   : > { %v4850_v9 = vadd.f32 %v7028_v40, %v4849_v35  ;;  %v4845_v10 = vrot.slane %v4844_v59, 2  ;;  %v11352_v35 = vld [vmem:[#allocation68_spill] sm:$0xff] }
 0x6fc   : > { %v4851_v43 = vrot.slane %v4850_v9, 2  ;;  %v4846_v25 = vadd.f32 %v4845_v10, %v4844_v59  ;;  %v11353_v59 = vld [vmem:[#allocation70_spill] sm:$0xff]  ;;  %v11354_v10 = vld [vmem:[#allocation73_spill] sm:$0xff] }
 0x6fe   : > { %v4852_v24 = vadd.f32 %v4851_v43, %v4850_v9  ;;  %v4847_v30 = vrot.slane %v4846_v25, 1  ;;  %v6592_v9 = vld [vmem:[%s10229_s4 + $0x58] sm:$0xff]  ;;  %v11355_v43 = vld [vmem:[#allocation76_spill] sm:$0xff] }
 0x700   : > { %v4853_v50 = vrot.slane %v4852_v24, 1  ;;  %v4848_v22 = vadd.f32 %v4847_v30, %v4846_v25  ;;  %v11356_v25 = vld [vmem:[#allocation78_spill] sm:$0xff]  ;;  %v11357_v30 = vld [vmem:[#allocation80_spill] sm:$0xff] }
 0x702   : > { %v4854_v58 = vadd.f32 %v4853_v50, %v4852_v24  ;;  %7029 = vrcp.f32 %v4848_v22  ;;  %v6590_v24 = vld [vmem:[%s10229_s4 + $0x50] sm:$0xff]  ;;  %v11358_v50 = vld [vmem:[#allocation83_spill] sm:$0xff] }
 0x703   : > { %v11359_v22 = vld [vmem:[#allocation86_spill] sm:$0xff] }
 0x704   : > { %7031 = vrcp.f32 %v4854_v58  ;;  %v11360_v58 = vld [vmem:[#allocation14_spill] sm:$0xff] }
 0x70f   : > { %v7030_v6 = vpop.eup %7029 }
 0x710   : > { %v4857_v3 = vmul.f32 %v7030_v6, %v7026_v11  ;;  %v11349_v11 = vld [vmem:[#allocation62_spill] sm:$0xff]  ;;  %v11361_v6 = vld [vmem:[#allocation12_spill] sm:$0xff] }
 0x711   : > { %v7032_v55 = vpop.eup %7031 }
 0x712   : > { %v4858_v56 = vmul.f32 %v7032_v55, %v7028_v40  ;;  %v11351_v40 = vld [vmem:[#allocation66_spill] sm:$0xff]  ;;  %v11362_v55 = vld [vmem:[#allocation29_spill] sm:$0xff] }
 0x714   : > { %4894 = vmatprep.subr.mxu1 %v4858_v56 }
 0x715   : > { %4895 = vmatpush1.msra.mxu1 %v4857_v3 }
 0x716   : > { %6589 = vmatmul.mubr.msk.f32.vlgmr.msra.gmra.mxu1 %vm299_vm0, %v6588_v29  ;;  %4972 = vmatprep.subr.mxu1 %v4858_v56  ;;  %v11365_v29 = vld [vmem:[#allocation23_spill] sm:$0xff] }
 0x717   : > { %4973 = vmatpush1.msra.mxu1 %v4857_v3  ;;  %5006 = vmatprep.mubr.f32.mxu1 %v11189_v1 }
 0x718   : > { %5050 = vmatprep.subr.mxu1 %v4858_v56  ;;  %v11363_v56 = vld [vmem:[#allocation25_spill] sm:$0xff] }
 0x71a   : > { %6591 = vmatmul.mubr.msk.f32.vlgmr.msra.gmra.mxu1 %vm299_vm0, %v6590_v24  ;;  %v11366_v24 = vld [vmem:[#allocation11_spill] sm:$0xff] }
 0x71b   : > { %5051 = vmatpush1.msra.mxu1 %v4857_v3  ;;  %5084 = vmatprep.mubr.f32.mxu1 %v11189_v1  ;;  %v11364_v3 = vld [vmem:[#allocation6_spill] sm:$0xff] }
 0x71c   : > { %5291 = vmatprep.subr.mxu1 %v11190_v48 }
 0x71e   : > { %6593 = vmatmul.mubr.msk.f32.vlgmr.msra.gmra.mxu1 %vm299_vm0, %v6592_v9  ;;  %v11367_v9 = vld [vmem:[#allocation9_spill] sm:$0xff] }
 0x71f   : > { %5292 = vmatpush1.msra.mxu1 %v11191_v34 }
 0x720   : > { %5293 = vmatprep.subr.mxu1 %v11192_v0 }
 0x721   : > { %5294 = vmatpush1.msra.mxu1 %v11193_v51 }
 0x722   : > { %5295 = vmatprep.subr.mxu1 %v11194_v2 }
 0x723   : > { %5296 = vmatpush1.msra.mxu1 %v11195_v49 }
 0x724   : > { %5297 = vmatprep.subr.mxu1 %v11196_v63 }
 0x725   : > { %5298 = vmatpush1.msra.mxu1 %v11197_v62 }
 0x726   : > { %5299 = vmatprep.subr.mxu1 %v11198_v38 }
 0x727   : > { %5300 = vmatpush1.msra.mxu1 %v11199_v44 }
 0x728   : > { %5301 = vmatprep.subr.mxu1 %v11200_v28 }
 0x729   : > { %5302 = vmatpush1.msra.mxu1 %v11344_v52 }
 0x72a   : > { %5303 = vmatprep.subr.mxu1 %v11345_v17 }
 0x72b   : > { %5304 = vmatpush1.msra.mxu1 %v11346_v33 }
 0x72c   : > { %5305 = vmatprep.subr.mxu1 %v11347_v60 }
 0x72d   : > { %5306 = vmatpush1.msra.mxu1 %v11348_v26 }
 0x72e   : > { %5307 = vmatprep.subr.mxu1 %v11349_v11 }
 0x72f   : > { %5308 = vmatpush1.msra.mxu1 %v11350_v19 }
 0x730   : > { %5309 = vmatprep.subr.mxu1 %v11351_v40 }
 0x731   : > { %5310 = vmatpush1.msra.mxu1 %v11352_v35 }
 0x732   : > { %5311 = vmatprep.subr.mxu1 %v11353_v59 }
 0x733   : > { %5312 = vmatpush1.msra.mxu1 %v11354_v10 }
 0x734   : > { %5313 = vmatprep.subr.mxu1 %v11355_v43 }
 0x735   : > { %5314 = vmatpush1.msra.mxu1 %v11356_v25  ;;  %v11400_v25 = vld [vmem:[#allocation92_spill] sm:$0xff] }
 0x736   : > { %5315 = vmatprep.subr.mxu1 %v11357_v30  ;;  %v11368_v30 = vld [vmem:[#allocation7_spill] sm:$0xff] }
 0x737   : > { %5316 = vmatpush1.msra.mxu1 %v11358_v50  ;;  %v11369_v50 = vld [vmem:[#allocation41_spill] sm:$0xff] }
 0x738   : > { %5317 = vmatprep.subr.mxu1 %v11359_v22  ;;  %v11370_v22 = vld [vmem:[#allocation48_spill] sm:$0xff] }
 0x739   : > { %5318 = vmatpush1.msra.mxu1 %v11360_v58  ;;  %v11371_v58 = vld [vmem:[#allocation97_spill] sm:$0xff] }
 0x73a   : > { %5319 = vmatprep.subr.mxu1 %v11361_v6  ;;  %v11372_v6 = vld [vmem:[#allocation98_spill] sm:$0xff] }
 0x73b   : > { %5320 = vmatpush1.msra.mxu1 %v11362_v55  ;;  %v11373_v55 = vld [vmem:[#allocation99_spill] sm:$0xff] }
 0x73c   : > { %5321 = vmatprep.subr.mxu1 %v11363_v56  ;;  %v11374_v56 = vld [vmem:[#allocation100_spill] sm:$0xff] }
 0x73d   : > { %5322 = vmatpush1.msra.mxu1 %v11364_v3  ;;  %v11375_v3 = vld [vmem:[#allocation101_spill] sm:$0xff] }
 0x73e   : > { %5323 = vmatprep.subr.mxu1 %v11365_v29  ;;  %v11376_v29 = vld [vmem:[#allocation102_spill] sm:$0xff] }
 0x73f   : > { %5324 = vmatpush2.msra.mxu1 %v11366_v24  ;;  %v11377_v24 = vld [vmem:[#allocation103_spill] sm:$0xff] }
 0x740   : > { %5325 = vmatprep.subr.mxu1 %v11367_v9  ;;  %v11378_v9 = vld [vmem:[#allocation104_spill] sm:$0xff] }
 0x741   : > { %5326 = vmatpush2.msra.mxu1 %v11368_v30  ;;  %v11379_v30 = vld [vmem:[#allocation105_spill] sm:$0xff] }
 0x742   : > { %5327 = vmatprep.subr.mxu1 %v11369_v50  ;;  %v11380_v50 = vld [vmem:[#allocation106_spill] sm:$0xff] }
 0x743   : > { %5328 = vmatpush2.msra.mxu1 %v11370_v22  ;;  %v11381_v22 = vld [vmem:[#allocation107_spill] sm:$0xff] }
 0x744   : > { %5329 = vmatprep.subr.mxu1 %v11371_v58  ;;  %v11382_v58 = vld [vmem:[#allocation108_spill] sm:$0xff] }
 0x745   : > { %5330 = vmatpush2.msra.mxu1 %v11372_v6  ;;  %v11383_v6 = vld [vmem:[#allocation109_spill] sm:$0xff] }
 0x746   : > { %5331 = vmatprep.subr.mxu1 %v11373_v55  ;;  %v11384_v55 = vld [vmem:[#allocation111_spill] sm:$0xff] }
 0x747   : > { %5332 = vmatpush2.msra.mxu1 %v11374_v56  ;;  %v11385_v56 = vld [vmem:[#allocation114_spill] sm:$0xff] }
 0x748   : > { %5333 = vmatprep.subr.mxu1 %v11375_v3  ;;  %v11386_v3 = vld [vmem:[#allocation116_spill] sm:$0xff] }
 0x749   : > { %5334 = vmatpush2.msra.mxu1 %v11376_v29  ;;  %v11387_v29 = vld [vmem:[#allocation118_spill] sm:$0xff] }
 0x74a   : > { %5335 = vmatprep.subr.mxu1 %v11377_v24  ;;  %v11388_v24 = vld [vmem:[#allocation120_spill] sm:$0xff] }
 0x74b   : > { %5336 = vmatpush2.msra.mxu1 %v11378_v9  ;;  %v11389_v9 = vld [vmem:[#allocation122_spill] sm:$0xff] }
 0x74c   : > { %5337 = vmatprep.subr.mxu1 %v11379_v30  ;;  %v11390_v30 = vld [vmem:[#allocation124_spill] sm:$0xff] }
 0x74d   : > { %5338 = vmatpush2.msra.mxu1 %v11380_v50  ;;  %v11391_v50 = vld [vmem:[#allocation126_spill] sm:$0xff] }
 0x74e   : > { %5339 = vmatprep.subr.mxu1 %v11381_v22  ;;  %v11392_v22 = vld [vmem:[#allocation128_spill] sm:$0xff] }
 0x74f   : > { %5340 = vmatpush2.msra.mxu1 %v11382_v58  ;;  %v11393_v58 = vld [vmem:[#allocation130_spill] sm:$0xff] }
 0x750   : > { %5341 = vmatprep.subr.mxu1 %v11383_v6  ;;  %v11394_v6 = vld [vmem:[#allocation132_spill] sm:$0xff] }
 0x751   : > { %5342 = vmatpush2.msra.mxu1 %v11384_v55  ;;  %v11395_v55 = vld [vmem:[#allocation84_spill] sm:$0xff] }
 0x752   : > { %5343 = vmatprep.subr.mxu1 %v11385_v56  ;;  %v11396_v56 = vld [vmem:[#allocation87_spill] sm:$0xff] }
 0x753   : > { %5344 = vmatpush2.msra.mxu1 %v11386_v3  ;;  %v11397_v3 = vld [vmem:[#allocation96_spill] sm:$0xff] }
 0x754   : > { %5345 = vmatprep.subr.mxu1 %v11387_v29 }
 0x755   : > { %5346 = vmatpush2.msra.mxu1 %v11388_v24 }
 0x756   : > { %5347 = vmatprep.subr.mxu1 %v11389_v9 }
 0x757   : > { %5348 = vmatpush2.msra.mxu1 %v11390_v30  ;;  %v11398_v30 = vld [vmem:[#allocation95_spill] sm:$0xff] }
 0x758   : > { %5349 = vmatprep.subr.mxu1 %v11391_v50  ;;  %v11399_v50 = vld [vmem:[#allocation93_spill] sm:$0xff] }
 0x759   : > { %5350 = vmatpush2.msra.mxu1 %v11392_v22 }
 0x75a   : > { %5351 = vmatprep.subr.mxu1 %v11393_v58 }
 0x75b   : > { %5352 = vmatpush2.msra.mxu1 %v11394_v6  ;;  %v11401_v6 = vld [vmem:[#allocation90_spill] sm:$0xff] }
 0x75c   : > { %5353 = vmatprep.subr.mxu1 %v11395_v55 }
 0x75d   : > { %5354 = vmatpush2.msra.mxu1 %v11396_v56  ;;  %v11402_v56 = vld [vmem:[#allocation94_spill] sm:$0xff] }
 0x75e   : > { %5433 = vmatprep.subr.mxu1 %v11397_v3  ;;  %v11403_v3 = vld [vmem:[#allocation13_spill] sm:$0xff] }
 0x7d6   : > { %v4930_v29 = vpop.f32.mrf.mxu1 }
 0x7d8   : > { %v4932_v24 = vpop.f32.mrf.mxu1 }
 0x7d9   : > { %5355 = vmatprep.mubr.f32.mxu1 %v4932_v24 }
 0x7da   : > { %v5008_v9 = vpop.f32.mrf.mxu1  ;;  %5356 = vmatmul.mubr.f32.vlgmr.msra.gmra.mxu1 %v4930_v29  ;;  %v11404_v29 = vld [vmem:[#allocation24_spill] sm:$0xff] }
 0x7db   : > { %5434 = vmatpush1.msra.mxu1 %v11398_v30  ;;  %v11405_v30 = vld [vmem:[#allocation31_spill] sm:$0xff] }
 0x7dc   : > { %5435 = vmatprep.subr.mxu1 %v11399_v50  ;;  %v5010_v22 = vpop.f32.mrf.mxu1  ;;  %v11406_v50 = vld [vmem:[#allocation89_spill] sm:$0xff] }
 0x7dd   : > { %5436 = vmatpush1.msra.mxu1 %v11400_v25  ;;  %5426 = vmatprep.mubr.f32.mxu0 %v5010_v22  ;;  %v11407_v22 = vld [vmem:[#allocation172_spill] sm:$0xff] }
 0x7de   : > { %5437 = vmatprep.subr.mxu1 %v11401_v6  ;;  %5427 = vmatmul.mubr.f32.vlgmr.msra.gmra.mxu0 %v5008_v9  ;;  %v5086_v55 = vpop.f32.mrf.mxu1  ;;  %v11408_v9 = vld [vmem:[#allocation173_spill] sm:$0xff] }
 0x7df   : > { %5438 = vmatpush1.msra.mxu1 %v11402_v56  ;;  %5609 = vmatprep.mubr.f32.mxu0 %v11189_v1 }
 0x7e0   : > { %5439 = vmatprep.subr.mxu1 %v11403_v3  ;;  %v5088_v24 = vpop.f32.mrf.mxu1 }
 0x7e1   : > { %5440 = vmatpush1.msra.mxu1 %v11404_v29  ;;  %5497 = vmatprep.mubr.f32.mxu1 %v5088_v24  ;;  %v11409_v24 = vld [vmem:[#allocation174_spill] sm:$0xff] }
 0x7e2   : > { %5441 = vmatprep.subr.mxu1 %v11405_v30 }
 0x7e3   : > { %5442 = vmatpush1.msra.mxu1 %v11406_v50 }
 0x7e4   : > { %5443 = vmatprep.subr.mxu1 %v11264_v41 }
 0x7e5   : > { %5444 = vmatpush1.msra.mxu1 %v11265_v12 }
 0x7e6   : > { %5445 = vmatprep.subr.mxu1 %v11266_v23 }
 0x7e7   : > { %5446 = vmatpush1.msra.mxu1 %v11267_v16 }
 0x7e8   : > { %5447 = vmatprep.subr.mxu1 %v11268_v21 }
 0x7e9   : > { %5448 = vmatpush1.msra.mxu1 %v11269_v37 }
 0x7ea   : > { %5449 = vmatprep.subr.mxu1 %v11270_v15 }
 0x7eb   : > { %5450 = vmatpush1.msra.mxu1 %v11271_v32 }
 0x7ec   : > { %5451 = vmatprep.subr.mxu1 %v11272_v53 }
 0x7ed   : > { %5452 = vmatpush1.msra.mxu1 %v11273_v47 }
 0x7ee   : > { %5453 = vmatprep.subr.mxu1 %v11274_v4 }
 0x7ef   : > { %5454 = vmatpush1.msra.mxu1 %v11132_v18 }
 0x7f0   : > { %5455 = vmatprep.subr.mxu1 %v11133_v14 }
 0x7f1   : > { %5456 = vmatpush1.msra.mxu1 %v11134_v36 }
 0x7f2   : > { %5457 = vmatprep.subr.mxu1 %v11135_v8 }
 0x7f3   : > { %5458 = vmatpush1.msra.mxu1 %v11136_v7 }
 0x7f4   : > { %5459 = vmatprep.subr.mxu1 %v11137_v42 }
 0x7f5   : > { %5460 = vmatpush1.msra.mxu1 %v11138_v46 }
 0x7f6   : > { %5461 = vmatprep.subr.mxu1 %v11139_v13 }
 0x7f7   : > { %5462 = vmatpush1.msra.mxu1 %v11140_v39 }
 0x7f8   : > { %5463 = vmatprep.subr.mxu1 %v11141_v20  ;;  %v11410_v20 = vld [vmem:[#allocation175_spill] sm:$0xff] }
 0x7f9   : > { %5464 = vmatpush1.msra.mxu1 %v11142_v54  ;;  %v11411_v54 = vld [vmem:[#allocation176_spill] sm:$0xff] }
 0x7fa   : > { %5465 = vmatprep.subr.mxu1 %v9182_v31  ;;  %v11412_v31 = vld [vmem:[#allocation177_spill] sm:$0xff] }
 0x7fb   : > { %5466 = vmatpush2.msra.mxu1 %v9187_v5  ;;  %v11413_v5 = vld [vmem:[#allocation178_spill] sm:$0xff] }
 0x7fc   : > { %5467 = vmatprep.subr.mxu1 %v9193_v57  ;;  %v11414_v57 = vld [vmem:[#allocation179_spill] sm:$0xff] }
 0x7fd   : > { %5468 = vmatpush2.msra.mxu1 %v9199_v45  ;;  %v11415_v45 = vld [vmem:[#allocation180_spill] sm:$0xff] }
 0x7fe   : > { %5469 = vmatprep.subr.mxu1 %v9207_v61  ;;  %v11416_v61 = vld [vmem:[#allocation181_spill] sm:$0xff] }
 0x7ff   : > { %5470 = vmatpush2.msra.mxu1 %v9215_v27  ;;  %v11417_v27 = vld [vmem:[#allocation182_spill] sm:$0xff] }
 0x800   : > { %5471 = vmatprep.subr.mxu1 %v11407_v22  ;;  %v11418_v22 = vld [vmem:[#allocation183_spill] sm:$0xff] }
 0x801   : > { %5472 = vmatpush2.msra.mxu1 %v11408_v9  ;;  %v11419_v9 = vld [vmem:[#allocation184_spill] sm:$0xff] }
 0x802   : > { %5473 = vmatprep.subr.mxu1 %v11409_v24  ;;  %v11420_v24 = vld [vmem:[#allocation185_spill] sm:$0xff] }
 0x803   : > { %5474 = vmatpush2.msra.mxu1 %v11410_v20  ;;  %v11421_v20 = vld [vmem:[#allocation186_spill] sm:$0xff] }
 0x804   : > { %5475 = vmatprep.subr.mxu1 %v11411_v54  ;;  %v11422_v54 = vld [vmem:[#allocation187_spill] sm:$0xff] }
 0x805   : > { %5476 = vmatpush2.msra.mxu1 %v11412_v31  ;;  %v11423_v31 = vld [vmem:[#allocation188_spill] sm:$0xff] }
 0x806   : > { %5477 = vmatprep.subr.mxu1 %v11413_v5  ;;  %v11424_v5 = vld [vmem:[#allocation189_spill] sm:$0xff] }
 0x807   : > { %5478 = vmatpush2.msra.mxu1 %v11414_v57  ;;  %v11425_v57 = vld [vmem:[#allocation190_spill] sm:$0xff] }
 0x808   : > { %5479 = vmatprep.subr.mxu1 %v11415_v45  ;;  %v11426_v45 = vld [vmem:[#allocation191_spill] sm:$0xff] }
 0x809   : > { %5480 = vmatpush2.msra.mxu1 %v11416_v61  ;;  %v11427_v61 = vld [vmem:[#allocation192_spill] sm:$0xff] }
 0x80a   : > { %5481 = vmatprep.subr.mxu1 %v11417_v27  ;;  %v11428_v27 = vld [vmem:[#allocation193_spill] sm:$0xff] }
 0x80b   : > { %5482 = vmatpush2.msra.mxu1 %v11418_v22  ;;  %v11429_v22 = vld [vmem:[#allocation194_spill] sm:$0xff] }
 0x80c   : > { %5483 = vmatprep.subr.mxu1 %v11419_v9  ;;  %v11430_v9 = vld [vmem:[#allocation195_spill] sm:$0xff] }
 0x80d   : > { %5484 = vmatpush2.msra.mxu1 %v11420_v24  ;;  %v11431_v24 = vld [vmem:[#allocation196_spill] sm:$0xff] }
 0x80e   : > { %5485 = vmatprep.subr.mxu1 %v11421_v20  ;;  %v11432_v20 = vld [vmem:[#allocation197_spill] sm:$0xff] }
 0x80f   : > { %5486 = vmatpush2.msra.mxu1 %v11422_v54 }
 0x810   : > { %5487 = vmatprep.subr.mxu1 %v11423_v31  ;;  %v11433_v31 = vld [vmem:[#allocation45_spill] sm:$0xff] }
 0x811   : > { %5488 = vmatpush2.msra.mxu1 %v11424_v5  ;;  %v11434_v5 = vld [vmem:[#allocation49_spill] sm:$0xff] }
 0x812   : > { %5489 = vmatprep.subr.mxu1 %v11425_v57  ;;  %v11435_v57 = vld [vmem:[#allocation51_spill] sm:$0xff] }
 0x813   : > { %5490 = vmatpush2.msra.mxu1 %v11426_v45  ;;  %v11436_v45 = vld [vmem:[#allocation53_spill] sm:$0xff] }
 0x814   : > { %5491 = vmatprep.subr.mxu1 %v11427_v61  ;;  %v11437_v61 = vld [vmem:[#allocation55_spill] sm:$0xff] }
 0x815   : > { %5492 = vmatpush2.msra.mxu1 %v11428_v27  ;;  %v11438_v27 = vld [vmem:[#allocation57_spill] sm:$0xff] }
 0x816   : > { %5493 = vmatprep.subr.mxu1 %v11429_v22  ;;  %v11439_v22 = vld [vmem:[#allocation59_spill] sm:$0xff] }
 0x817   : > { %5494 = vmatpush2.msra.mxu1 %v11430_v9  ;;  %v11440_v9 = vld [vmem:[#allocation61_spill] sm:$0xff] }
 0x818   : > { %5495 = vmatprep.subr.mxu1 %v11431_v24  ;;  %v11441_v24 = vld [vmem:[#allocation63_spill] sm:$0xff] }
 0x819   : > { %5496 = vmatpush2.msra.mxu1 %v11432_v20  ;;  %v11442_v20 = vld [vmem:[#allocation65_spill] sm:$0xff] }
 0x81a   : > { %5498 = vmatmul.mubr.f32.vlgmr.msra.gmra.mxu1 %v5086_v55  ;;  %6043 = vmatprep.subr.mxu1 %v11433_v31  ;;  %v11443_v55 = vld [vmem:[#allocation67_spill] sm:$0xff]  ;;  %v11444_v31 = vld [vmem:[#allocation69_spill] sm:$0xff] }
 0x81b   : > { %6044 = vmatpush1.msra.mxu1 %v11434_v5  ;;  %v11445_v5 = vld [vmem:[#allocation71_spill] sm:$0xff] }
 0x81c   : > { %6045 = vmatprep.subr.mxu1 %v11435_v57  ;;  %v11446_v57 = vld [vmem:[#allocation75_spill] sm:$0xff] }
 0x81d   : > { %6046 = vmatpush1.msra.mxu1 %v11436_v45  ;;  %v11447_v45 = vld [vmem:[#allocation77_spill] sm:$0xff] }
 0x81e   : > { %6047 = vmatprep.subr.mxu1 %v11437_v61  ;;  %v11448_v61 = vld [vmem:[#allocation79_spill] sm:$0xff] }
 0x81f   : > { %6048 = vmatpush1.msra.mxu1 %v11438_v27  ;;  %v11449_v27 = vld [vmem:[#allocation81_spill] sm:$0xff] }
 0x820   : > { %6049 = vmatprep.subr.mxu1 %v11439_v22  ;;  %v11450_v22 = vld [vmem:[#allocation85_spill] sm:$0xff] }
 0x821   : > { %6050 = vmatpush1.msra.mxu1 %v11440_v9  ;;  %v11451_v9 = vld [vmem:[#allocation28_spill] sm:$0xff] }
 0x822   : > { %6051 = vmatprep.subr.mxu1 %v11441_v24  ;;  %v11452_v24 = vld [vmem:[#allocation27_spill] sm:$0xff] }
 0x823   : > { %6052 = vmatpush1.msra.mxu1 %v11442_v20  ;;  %v11453_v20 = vld [vmem:[#allocation26_spill] sm:$0xff] }
 0x824   : > { %6053 = vmatprep.subr.mxu1 %v11443_v55  ;;  %v11454_v55 = vld [vmem:[#allocation34_spill] sm:$0xff] }
 0x825   : > { %6054 = vmatpush1.msra.mxu1 %v11444_v31  ;;  %v11455_v31 = vld [vmem:[#allocation8_spill] sm:$0xff] }
 0x826   : > { %6055 = vmatprep.subr.mxu1 %v11445_v5  ;;  %v11456_v5 = vld [vmem:[#allocation47_spill] sm:$0xff] }
 0x827   : > { %6056 = vmatpush1.msra.mxu1 %v11446_v57  ;;  %v11457_v57 = vld [vmem:[#allocation22_spill] sm:$0xff] }
 0x828   : > { %6057 = vmatprep.subr.mxu1 %v11447_v45  ;;  %v11458_v45 = vld [vmem:[#allocation21_spill] sm:$0xff] }
 0x829   : > { %6058 = vmatpush1.msra.mxu1 %v11448_v61  ;;  %v11459_v61 = vld [vmem:[#allocation20_spill] sm:$0xff] }
 0x82a   : > { %6059 = vmatprep.subr.mxu1 %v11449_v27  ;;  %v11460_v27 = vld [vmem:[#allocation19_spill] sm:$0xff] }
 0x82b   : > { %6060 = vmatpush1.msra.mxu1 %v11450_v22  ;;  %v11461_v22 = vld [vmem:[#allocation18_spill] sm:$0xff] }
 0x82c   : > { %6061 = vmatprep.subr.mxu1 %v11451_v9  ;;  %v11462_v9 = vld [vmem:[#allocation17_spill] sm:$0xff] }
 0x82d   : > { %6062 = vmatpush1.msra.mxu1 %v11452_v24  ;;  %v11463_v24 = vld [vmem:[#allocation16_spill] sm:$0xff] }
 0x82e   : > { %6063 = vmatprep.subr.mxu1 %v11453_v20  ;;  %v11464_v20 = vld [vmem:[#allocation15_spill] sm:$0xff] }
 0x82f   : > { %6064 = vmatpush1.msra.mxu1 %v11454_v55  ;;  %v11465_v55 = vld [vmem:[#allocation112_spill] sm:$0xff] }
 0x830   : > { %6065 = vmatprep.subr.mxu1 %v11455_v31  ;;  %v11466_v31 = vld [vmem:[#allocation110_spill] sm:$0xff] }
 0x831   : > { %6066 = vmatpush1.msra.mxu1 %v11456_v5  ;;  %v11467_v5 = vld [vmem:[#allocation113_spill] sm:$0xff] }
 0x832   : > { %6067 = vmatprep.subr.mxu1 %v11457_v57  ;;  %v11468_v57 = vld [vmem:[#allocation115_spill] sm:$0xff] }
 0x833   : > { %6068 = vmatpush1.msra.mxu1 %v11458_v45  ;;  %v11469_v45 = vld [vmem:[#allocation117_spill] sm:$0xff] }
 0x834   : > { %6069 = vmatprep.subr.mxu1 %v11459_v61  ;;  %v11470_v61 = vld [vmem:[#allocation119_spill] sm:$0xff] }
 0x835   : > { %6070 = vmatpush1.msra.mxu1 %v11460_v27  ;;  %v11471_v27 = vld [vmem:[#allocation121_spill] sm:$0xff] }
 0x836   : > { %6071 = vmatprep.subr.mxu1 %v11461_v22  ;;  %v11472_v22 = vld [vmem:[#allocation123_spill] sm:$0xff] }
 0x837   : > { %6072 = vmatpush1.msra.mxu1 %v11462_v9  ;;  %v11473_v9 = vld [vmem:[#allocation125_spill] sm:$0xff] }
 0x838   : > { %6073 = vmatprep.subr.mxu1 %v11463_v24  ;;  %v11474_v24 = vld [vmem:[#allocation127_spill] sm:$0xff] }
 0x839   : > { %6074 = vmatpush1.msra.mxu1 %v11464_v20  ;;  %v11475_v20 = vld [vmem:[#allocation129_spill] sm:$0xff] }
 0x83a   : > { %6075 = vmatprep.subr.mxu1 %v11465_v55  ;;  %v11476_v55 = vld [vmem:[#allocation131_spill] sm:$0xff] }
 0x83b   : > { %6076 = vmatpush2.msra.mxu1 %v11466_v31  ;;  %v11477_v31 = vld [vmem:[#allocation133_spill] sm:$0xff] }
 0x83c   : > { %6077 = vmatprep.subr.mxu1 %v11467_v5  ;;  %v11478_v5 = vld [vmem:[#allocation74_spill] sm:$0xff] }
 0x83d   : > { %6078 = vmatpush2.msra.mxu1 %v11468_v57  ;;  %v11479_v57 = vld [vmem:[#allocation72_spill] sm:$0xff] }
 0x83e   : > { %6079 = vmatprep.subr.mxu1 %v11469_v45  ;;  %v11480_v45 = vld [vmem:[#allocation36_spill] sm:$0xff] }
 0x83f   : > { %6080 = vmatpush2.msra.mxu1 %v11470_v61  ;;  %v11481_v61 = vld [vmem:[#allocation39_spill] sm:$0xff] }
 0x840   : > { %6081 = vmatprep.subr.mxu1 %v11471_v27  ;;  %v11482_v27 = vld [vmem:[#allocation44_spill] sm:$0xff] }
 0x841   : > { %6082 = vmatpush2.msra.mxu1 %v11472_v22  ;;  %v11483_v22 = vld [vmem:[#allocation91_spill] sm:$0xff] }
 0x842   : > { %6083 = vmatprep.subr.mxu1 %v11473_v9  ;;  %v11484_v9 = vld [vmem:[#allocation134_spill] sm:$0xff] }
 0x843   : > { %6084 = vmatpush2.msra.mxu1 %v11474_v24  ;;  %v11485_v24 = vld [vmem:[#allocation135_spill] sm:$0xff] }
 0x844   : > { %6085 = vmatprep.subr.mxu1 %v11475_v20  ;;  %v11486_v20 = vld [vmem:[#allocation136_spill] sm:$0xff] }
 0x845   : > { %6086 = vmatpush2.msra.mxu1 %v11476_v55  ;;  %v11487_v55 = vld [vmem:[#allocation137_spill] sm:$0xff] }
 0x846   : > { %6087 = vmatprep.subr.mxu1 %v11477_v31  ;;  %v11488_v31 = vld [vmem:[#allocation138_spill] sm:$0xff] }
 0x847   : > { %6088 = vmatpush2.msra.mxu1 %v11478_v5  ;;  %v11489_v5 = vld [vmem:[#allocation139_spill] sm:$0xff] }
 0x848   : > { %6089 = vmatprep.subr.mxu1 %v11479_v57  ;;  %v11490_v57 = vld [vmem:[#allocation140_spill] sm:$0xff] }
 0x849   : > { %6090 = vmatpush2.msra.mxu1 %v11480_v45  ;;  %v11491_v45 = vld [vmem:[#allocation141_spill] sm:$0xff] }
 0x84a   : > { %6091 = vmatprep.subr.mxu1 %v11481_v61  ;;  %v11492_v61 = vld [vmem:[#allocation142_spill] sm:$0xff] }
 0x84b   : > { %6092 = vmatpush2.msra.mxu1 %v11482_v27  ;;  %v11493_v27 = vld [vmem:[#allocation143_spill] sm:$0xff] }
 0x84c   : > { %6093 = vmatprep.subr.mxu1 %v11483_v22  ;;  %v11494_v22 = vld [vmem:[#allocation10_spill] sm:$0xff] }
 0x84d   : > { %6094 = vmatpush2.msra.mxu1 %v11484_v9  ;;  %v11495_v9 = vld [vmem:[#allocation88_spill] sm:$0xff] }
 0x84e   : > { %6095 = vmatprep.subr.mxu1 %v11485_v24  ;;  %v11496_v24 = vld [vmem:[#allocation82_spill] sm:$0xff] }
 0x84f   : > { %6096 = vmatpush2.msra.mxu1 %v11486_v20 }
 0x850   : > { %6097 = vmatprep.subr.mxu1 %v11487_v55 }
 0x851   : > { %6098 = vmatpush2.msra.mxu1 %v11488_v31 }
 0x852   : > { %6099 = vmatprep.subr.mxu1 %v11489_v5 }
 0x853   : > { %6100 = vmatpush2.msra.mxu1 %v11490_v57 }
 0x854   : > { %6101 = vmatprep.subr.mxu1 %v11491_v45  ;;  %v11497_v45 = vld [vmem:[#allocation4_spill] sm:$0xff] }
 0x855   : > { %6102 = vmatpush2.msra.mxu1 %v11492_v61 }
 0x856   : > { %6103 = vmatprep.subr.mxu1 %v11493_v27  ;;  %v11498_v27 = vld [vmem:[#allocation5_spill] sm:$0xff] }
 0x857   : > { %6104 = vmatpush2.msra.mxu1 %v11494_v22 }
 0x858   : > { %6105 = vmatprep.subr.mxu1 %v11495_v9 }
 0x859   : > { %6106 = vmatpush2.msra.mxu1 %v11496_v24 }
 0x89a   : > { %v5357_v20 = vpop.f32.mrf.mxu1 }
 0x89c   : > { %v5359_v54 = vpop.f32.mrf.mxu1 }
 0x89e   : > { %v5428_v55 = vpop.f32.mrf.mxu0 }
 0x89f   : > { %v5429_v39 = vadd.f32 %v5428_v55, %v5357_v20 }
 0x8a0   : > { %v5430_v31 = vpop.f32.mrf.mxu0 }
 0x8a1   : > { %v5431_v13 = vadd.f32 %v5430_v31, %v5359_v54 }
 0x8da   : > { %v5499_v5 = vpop.f32.mrf.mxu1 }
 0x8db   : > { %v5500_v57 = vadd.f32 %v5499_v5, %v5429_v39 }
 0x8dc   : > { %v5501_v46 = vpop.f32.mrf.mxu1 }
 0x8dd   : > { %v5504_v42 = vsub.f32 %v11497_v45, %v5500_v57  ;;  %v5502_v61 = vadd.f32 %v5501_v46, %v5431_v13 }
 0x8df   : > { %v5506_v7 = vrot.slane %v5504_v42, 4  ;;  %v5505_v8 = vsub.f32 %v11498_v27, %v5502_v61 }
 0x8e1   : > { %v5507_v22 = vmax.f32 %v5504_v42, %v5506_v7  ;;  %v5512_v36 = vrot.slane %v5505_v8, 4 }
 0x8e3   : > { %v5508_v9 = vrot.slane %v5507_v22, 2  ;;  %v5513_v14 = vmax.f32 %v5505_v8, %v5512_v36 }
 0x8e5   : > { %v5509_v24 = vmax.f32 %v5507_v22, %v5508_v9  ;;  %v5514_v18 = vrot.slane %v5513_v14, 2 }
 0x8e7   : > { %v5510_v4 = vrot.slane %v5509_v24, 1  ;;  %v5515_v47 = vmax.f32 %v5513_v14, %v5514_v18 }
 0x8e9   : > { %v5511_v53 = vmax.f32 %v5509_v24, %v5510_v4  ;;  %v5516_v20 = vrot.slane %v5515_v47, 1 }
 0x8eb   : > { %v5518_v55 = vsub.f32 %v5504_v42, %v5511_v53  ;;  %v5517_v54 = vmax.f32 %v5515_v47, %v5516_v20  ;;  %v6594_v20 = vld [vmem:[%s10229_s4 + $0x60] sm:$0xff] }
 0x8ed   : > { %v5520_v39 = vmul.f32 1.442695, %v5518_v55  ;;  %v5519_v31 = vsub.f32 %v5505_v8, %v5517_v54  ;;  %v11523_v55 = vld [vmem:[#allocation106_spill] sm:$0xff]  ;;  %v11524_v54 = vld [vmem:[#allocation107_spill] sm:$0xff] }
 0x8ef   : > { %7033 = vpow2.f32 %v5520_v39  ;;  %v5522_v5 = vmul.f32 1.442695, %v5519_v31  ;;  %v11525_v39 = vld [vmem:[#allocation108_spill] sm:$0xff]  ;;  %v11526_v31 = vld [vmem:[#allocation109_spill] sm:$0xff] }
 0x8f1   : > { %7035 = vpow2.f32 %v5522_v5  ;;  %v11527_v5 = vld [vmem:[#allocation111_spill] sm:$0xff] }
 0x8fc   : > { %v7034_v46 = vpop.eup %7033 }
 0x8fd   : > { %v5524_v13 = vrot.slane %v7034_v46, 4 }
 0x8fe   : > { %v7036_v57 = vpop.eup %7035 }
 0x8ff   : > { %v5530_v7 = vrot.slane %v7036_v57, 4  ;;  %v5525_v61 = vadd.f32 %v7034_v46, %v5524_v13  ;;  %v11529_v13 = vld [vmem:[#allocation116_spill] sm:$0xff] }
 0x901   : > { %v5531_v27 = vadd.f32 %v7036_v57, %v5530_v7  ;;  %v5526_v36 = vrot.slane %v5525_v61, 2  ;;  %v11531_v7 = vld [vmem:[#allocation120_spill] sm:$0xff] }
 0x903   : > { %v5532_v22 = vrot.slane %v5531_v27, 2  ;;  %v5527_v9 = vadd.f32 %v5526_v36, %v5525_v61  ;;  %v11532_v61 = vld [vmem:[#allocation122_spill] sm:$0xff]  ;;  %v11533_v36 = vld [vmem:[#allocation124_spill] sm:$0xff] }
 0x905   : > { %v5533_v45 = vadd.f32 %v5532_v22, %v5531_v27  ;;  %v5528_v18 = vrot.slane %v5527_v9, 1  ;;  %v6598_v27 = vld [vmem:[%s10229_s4 + $0x70] sm:$0xff] }
 0x906   : > { %v11534_v22 = vld [vmem:[#allocation126_spill] sm:$0xff] }
 0x907   : > { %v5534_v14 = vrot.slane %v5533_v45, 1  ;;  %v5529_v4 = vadd.f32 %v5528_v18, %v5527_v9  ;;  %v11535_v9 = vld [vmem:[#allocation128_spill] sm:$0xff] }
 0x908   : > { %v11536_v18 = vld [vmem:[#allocation132_spill] sm:$0xff] }
 0x909   : > { %v5535_v42 = vadd.f32 %v5534_v14, %v5533_v45  ;;  %7037 = vrcp.f32 %v5529_v4  ;;  %v6596_v45 = vld [vmem:[%s10229_s4 + $0x68] sm:$0xff]  ;;  %v11537_v14 = vld [vmem:[#allocation84_spill] sm:$0xff]  ;;  %v11538_v4 = vld [vmem:[#allocation87_spill] sm:$0xff] }
 0x90b   : > { %7039 = vrcp.f32 %v5535_v42  ;;  %v11539_v42 = vld [vmem:[#allocation96_spill] sm:$0xff] }
 0x916   : > { %v7038_v8 = vpop.eup %7037 }
 0x917   : > { %v5538_v24 = vmul.f32 %v7038_v8, %v7034_v46  ;;  %v11528_v46 = vld [vmem:[#allocation114_spill] sm:$0xff] }
 0x918   : > { %v7040_v47 = vpop.eup %7039 }
 0x919   : > { %v5539_v53 = vmul.f32 %v7040_v47, %v7036_v57  ;;  %v11530_v57 = vld [vmem:[#allocation118_spill] sm:$0xff] }
 0x91b   : > { %5575 = vmatprep.subr.mxu0 %v5539_v53 }
 0x91c   : > { %5576 = vmatpush1.msra.mxu0 %v5538_v24 }
 0x91d   : > { %6595 = vmatmul.mubr.msk.f32.vlgmr.msra.gmra.mxu0 %vm299_vm0, %v6594_v20  ;;  %5653 = vmatprep.subr.mxu0 %v5539_v53  ;;  %v11541_v20 = vld [vmem:[#allocation93_spill] sm:$0xff] }
 0x91e   : > { %5654 = vmatpush1.msra.mxu0 %v5538_v24  ;;  %5687 = vmatprep.mubr.f32.mxu0 %v11189_v1 }
 0x91f   : > { %5731 = vmatprep.subr.mxu0 %v5539_v53 }
 0x921   : > { %6597 = vmatmul.mubr.msk.f32.vlgmr.msra.gmra.mxu0 %vm299_vm0, %v6596_v45 }
 0x922   : > { %5732 = vmatpush1.msra.mxu0 %v5538_v24  ;;  %5765 = vmatprep.mubr.f32.mxu0 %v11189_v1  ;;  %v11499_v1 = vld [vmem:[#allocation78_spill] sm:$0xff]  ;;  %v11540_v24 = vld [vmem:[#allocation95_spill] sm:$0xff] }
 0x923   : > { %5972 = vmatprep.subr.mxu0 %v11190_v48  ;;  %v11500_v48 = vld [vmem:[#allocation80_spill] sm:$0xff] }
 0x925   : > { %6599 = vmatmul.mubr.msk.f32.vlgmr.msra.gmra.mxu0 %vm299_vm0, %v6598_v27 }
 0x926   : > { %5973 = vmatpush1.msra.mxu0 %v11191_v34  ;;  %v11501_v34 = vld [vmem:[#allocation83_spill] sm:$0xff] }
 0x927   : > { %5974 = vmatprep.subr.mxu0 %v11192_v0  ;;  %v11502_v0 = vld [vmem:[#allocation86_spill] sm:$0xff] }
 0x928   : > { %5975 = vmatpush1.msra.mxu0 %v11193_v51  ;;  %v11503_v51 = vld [vmem:[#allocation14_spill] sm:$0xff] }
 0x929   : > { %5976 = vmatprep.subr.mxu0 %v11194_v2  ;;  %v11504_v2 = vld [vmem:[#allocation12_spill] sm:$0xff] }
 0x92a   : > { %5977 = vmatpush1.msra.mxu0 %v11195_v49  ;;  %v11505_v49 = vld [vmem:[#allocation29_spill] sm:$0xff] }
 0x92b   : > { %5978 = vmatprep.subr.mxu0 %v11196_v63  ;;  %v11506_v63 = vld [vmem:[#allocation25_spill] sm:$0xff] }
 0x92c   : > { %5979 = vmatpush1.msra.mxu0 %v11197_v62  ;;  %v11507_v62 = vld [vmem:[#allocation6_spill] sm:$0xff] }
 0x92d   : > { %5980 = vmatprep.subr.mxu0 %v11198_v38  ;;  %v11508_v38 = vld [vmem:[#allocation23_spill] sm:$0xff] }
 0x92e   : > { %5981 = vmatpush1.msra.mxu0 %v11199_v44  ;;  %v11509_v44 = vld [vmem:[#allocation11_spill] sm:$0xff] }
 0x92f   : > { %5982 = vmatprep.subr.mxu0 %v11200_v28  ;;  %v11510_v28 = vld [vmem:[#allocation9_spill] sm:$0xff] }
 0x930   : > { %5983 = vmatpush1.msra.mxu0 %v11344_v52  ;;  %v11511_v52 = vld [vmem:[#allocation7_spill] sm:$0xff] }
 0x931   : > { %5984 = vmatprep.subr.mxu0 %v11345_v17  ;;  %v11512_v17 = vld [vmem:[#allocation41_spill] sm:$0xff] }
 0x932   : > { %5985 = vmatpush1.msra.mxu0 %v11346_v33  ;;  %v11513_v33 = vld [vmem:[#allocation48_spill] sm:$0xff] }
 0x933   : > { %5986 = vmatprep.subr.mxu0 %v11347_v60  ;;  %v11514_v60 = vld [vmem:[#allocation97_spill] sm:$0xff] }
 0x934   : > { %5987 = vmatpush1.msra.mxu0 %v11348_v26  ;;  %v11515_v26 = vld [vmem:[#allocation98_spill] sm:$0xff] }
 0x935   : > { %5988 = vmatprep.subr.mxu0 %v11349_v11  ;;  %v11516_v11 = vld [vmem:[#allocation99_spill] sm:$0xff] }
 0x936   : > { %5989 = vmatpush1.msra.mxu0 %v11350_v19  ;;  %v11517_v19 = vld [vmem:[#allocation100_spill] sm:$0xff] }
 0x937   : > { %5990 = vmatprep.subr.mxu0 %v11351_v40  ;;  %v11518_v40 = vld [vmem:[#allocation101_spill] sm:$0xff] }
 0x938   : > { %5991 = vmatpush1.msra.mxu0 %v11352_v35  ;;  %v11519_v35 = vld [vmem:[#allocation102_spill] sm:$0xff] }
 0x939   : > { %5992 = vmatprep.subr.mxu0 %v11353_v59  ;;  %v11520_v59 = vld [vmem:[#allocation103_spill] sm:$0xff] }
 0x93a   : > { %5993 = vmatpush1.msra.mxu0 %v11354_v10  ;;  %v11521_v10 = vld [vmem:[#allocation104_spill] sm:$0xff] }
 0x93b   : > { %5994 = vmatprep.subr.mxu0 %v11355_v43  ;;  %v11522_v43 = vld [vmem:[#allocation105_spill] sm:$0xff] }
 0x93c   : > { %5995 = vmatpush1.msra.mxu0 %v11499_v1  ;;  %v11557_v1 = vld [vmem:[#allocation167_spill] sm:$0xff] }
 0x93d   : > { %5996 = vmatprep.subr.mxu0 %v11500_v48  ;;  %v11558_v48 = vld [vmem:[#allocation168_spill] sm:$0xff] }
 0x93e   : > { %5997 = vmatpush1.msra.mxu0 %v11501_v34  ;;  %v11559_v34 = vld [vmem:[#allocation169_spill] sm:$0xff] }
 0x93f   : > { %5998 = vmatprep.subr.mxu0 %v11502_v0  ;;  %v11560_v0 = vld [vmem:[#allocation170_spill] sm:$0xff] }
 0x940   : > { %5999 = vmatpush1.msra.mxu0 %v11503_v51  ;;  %v11561_v51 = vld [vmem:[#allocation171_spill] sm:$0xff] }
 0x941   : > { %6000 = vmatprep.subr.mxu0 %v11504_v2  ;;  %v11562_v2 = vld [vmem:[#allocation172_spill] sm:$0xff] }
 0x942   : > { %6001 = vmatpush1.msra.mxu0 %v11505_v49  ;;  %v11563_v49 = vld [vmem:[#allocation173_spill] sm:$0xff] }
 0x943   : > { %6002 = vmatprep.subr.mxu0 %v11506_v63  ;;  %v11564_v63 = vld [vmem:[#allocation174_spill] sm:$0xff] }
 0x944   : > { %6003 = vmatpush1.msra.mxu0 %v11507_v62  ;;  %v11565_v62 = vld [vmem:[#allocation175_spill] sm:$0xff] }
 0x945   : > { %6004 = vmatprep.subr.mxu0 %v11508_v38  ;;  %v11566_v38 = vld [vmem:[#allocation176_spill] sm:$0xff] }
 0x946   : > { %6005 = vmatpush2.msra.mxu0 %v11509_v44  ;;  %v11567_v44 = vld [vmem:[#allocation177_spill] sm:$0xff] }
 0x947   : > { %6006 = vmatprep.subr.mxu0 %v11510_v28  ;;  %v11568_v28 = vld [vmem:[#allocation178_spill] sm:$0xff] }
 0x948   : > { %6007 = vmatpush2.msra.mxu0 %v11511_v52  ;;  %v11569_v52 = vld [vmem:[#allocation179_spill] sm:$0xff] }
 0x949   : > { %6008 = vmatprep.subr.mxu0 %v11512_v17  ;;  %v11570_v17 = vld [vmem:[#allocation180_spill] sm:$0xff] }
 0x94a   : > { %6009 = vmatpush2.msra.mxu0 %v11513_v33  ;;  %v11571_v33 = vld [vmem:[#allocation181_spill] sm:$0xff] }
 0x94b   : > { %6010 = vmatprep.subr.mxu0 %v11514_v60  ;;  %v11572_v60 = vld [vmem:[#allocation182_spill] sm:$0xff] }
 0x94c   : > { %6011 = vmatpush2.msra.mxu0 %v11515_v26  ;;  %v11573_v26 = vld [vmem:[#allocation183_spill] sm:$0xff] }
 0x94d   : > { %6012 = vmatprep.subr.mxu0 %v11516_v11  ;;  %v11574_v11 = vld [vmem:[#allocation184_spill] sm:$0xff] }
 0x94e   : > { %6013 = vmatpush2.msra.mxu0 %v11517_v19  ;;  %v11575_v19 = vld [vmem:[#allocation185_spill] sm:$0xff] }
 0x94f   : > { %6014 = vmatprep.subr.mxu0 %v11518_v40  ;;  %v11576_v40 = vld [vmem:[#allocation186_spill] sm:$0xff] }
 0x950   : > { %6015 = vmatpush2.msra.mxu0 %v11519_v35  ;;  %v11577_v35 = vld [vmem:[#allocation187_spill] sm:$0xff] }
 0x951   : > { %6016 = vmatprep.subr.mxu0 %v11520_v59  ;;  %v11578_v59 = vld [vmem:[#allocation188_spill] sm:$0xff] }
 0x952   : > { %6017 = vmatpush2.msra.mxu0 %v11521_v10  ;;  %v11579_v10 = vld [vmem:[#allocation189_spill] sm:$0xff] }
 0x953   : > { %6018 = vmatprep.subr.mxu0 %v11522_v43  ;;  %v11580_v43 = vld [vmem:[#allocation190_spill] sm:$0xff] }
 0x954   : > { %6019 = vmatpush2.msra.mxu0 %v11523_v55  ;;  %v11581_v55 = vld [vmem:[#allocation191_spill] sm:$0xff] }
 0x955   : > { %6020 = vmatprep.subr.mxu0 %v11524_v54  ;;  %v11582_v54 = vld [vmem:[#allocation192_spill] sm:$0xff] }
 0x956   : > { %6021 = vmatpush2.msra.mxu0 %v11525_v39  ;;  %v11583_v39 = vld [vmem:[#allocation193_spill] sm:$0xff] }
 0x957   : > { %6022 = vmatprep.subr.mxu0 %v11526_v31  ;;  %v11584_v31 = vld [vmem:[#allocation194_spill] sm:$0xff] }
 0x958   : > { %6023 = vmatpush2.msra.mxu0 %v11527_v5  ;;  %v11585_v5 = vld [vmem:[#allocation195_spill] sm:$0xff] }
 0x959   : > { %6024 = vmatprep.subr.mxu0 %v11528_v46  ;;  %v11586_v46 = vld [vmem:[#allocation196_spill] sm:$0xff] }
 0x95a   : > { %6025 = vmatpush2.msra.mxu0 %v11529_v13  ;;  %v11587_v13 = vld [vmem:[#allocation197_spill] sm:$0xff] }
 0x95b   : > { %6026 = vmatprep.subr.mxu0 %v11530_v57 }
 0x95c   : > { %6027 = vmatpush2.msra.mxu0 %v11531_v7 }
 0x95d   : > { %6028 = vmatprep.subr.mxu0 %v11532_v61 }
 0x95e   : > { %6029 = vmatpush2.msra.mxu0 %v11533_v36 }
 0x95f   : > { %6030 = vmatprep.subr.mxu0 %v11534_v22 }
 0x960   : > { %6031 = vmatpush2.msra.mxu0 %v11535_v9 }
 0x961   : > { %6032 = vmatprep.subr.mxu0 %v11393_v58 }
 0x962   : > { %6033 = vmatpush2.msra.mxu0 %v11536_v18 }
 0x963   : > { %6034 = vmatprep.subr.mxu0 %v11537_v14 }
 0x964   : > { %6035 = vmatpush2.msra.mxu0 %v11538_v4 }
 0x965   : > { %6114 = vmatprep.subr.mxu0 %v11539_v42  ;;  %v11588_v42 = vld [vmem:[#allocation4_spill] sm:$0xff] }
 0x9dd   : > { %v5611_v8 = vpop.f32.mrf.mxu0 }
 0x9df   : > { %v5613_v47 = vpop.f32.mrf.mxu0 }
 0x9e0   : > { %6036 = vmatprep.mubr.f32.mxu0 %v5613_v47 }
 0x9e1   : > { %v5689_v53 = vpop.f32.mrf.mxu0  ;;  %6037 = vmatmul.mubr.f32.vlgmr.msra.gmra.mxu0 %v5611_v8 }
 0x9e2   : > { %6115 = vmatpush1.msra.mxu0 %v11540_v24 }
 0x9e3   : > { %6116 = vmatprep.subr.mxu0 %v11541_v20  ;;  %v5691_v45 = vpop.f32.mrf.mxu0 }
 0x9e4   : > { %6117 = vmatpush1.msra.mxu0 %v11400_v25  ;;  %6107 = vmatprep.mubr.f32.mxu1 %v5691_v45  ;;  %v11542_v25 = vld [vmem:[#allocation152_spill] sm:$0xff] }
 0x9e5   : > { %6118 = vmatprep.subr.mxu0 %v11401_v6  ;;  %6108 = vmatmul.mubr.f32.vlgmr.msra.gmra.mxu1 %v5689_v53  ;;  %v5767_v58 = vpop.f32.mrf.mxu0  ;;  %v11553_v6 = vld [vmem:[#allocation163_spill] sm:$0xff]  ;;  %v11589_v53 = vld [vmem:[#allocation5_spill] sm:$0xff] }
 0x9e6   : > { %6119 = vmatpush1.msra.mxu0 %v11402_v56  ;;  %v11554_v56 = vld [vmem:[#allocation164_spill] sm:$0xff] }
 0x9e7   : > { %6120 = vmatprep.subr.mxu0 %v11403_v3  ;;  %v5769_v27 = vpop.f32.mrf.mxu0  ;;  %v11555_v3 = vld [vmem:[#allocation165_spill] sm:$0xff] }
 0x9e8   : > { %6121 = vmatpush1.msra.mxu0 %v11404_v29  ;;  %6178 = vmatprep.mubr.f32.mxu0 %v5769_v27  ;;  %v11556_v29 = vld [vmem:[#allocation166_spill] sm:$0xff] }
 0x9e9   : > { %6122 = vmatprep.subr.mxu0 %v11405_v30  ;;  %v11543_v30 = vld [vmem:[#allocation153_spill] sm:$0xff] }
 0x9ea   : > { %6123 = vmatpush1.msra.mxu0 %v11406_v50  ;;  %v11544_v50 = vld [vmem:[#allocation154_spill] sm:$0xff] }
 0x9eb   : > { %6124 = vmatprep.subr.mxu0 %v11264_v41  ;;  %v11545_v41 = vld [vmem:[#allocation155_spill] sm:$0xff] }
 0x9ec   : > { %6125 = vmatpush1.msra.mxu0 %v11265_v12  ;;  %v11546_v12 = vld [vmem:[#allocation156_spill] sm:$0xff] }
 0x9ed   : > { %6126 = vmatprep.subr.mxu0 %v11266_v23  ;;  %v11547_v23 = vld [vmem:[#allocation157_spill] sm:$0xff] }
 0x9ee   : > { %6127 = vmatpush1.msra.mxu0 %v11267_v16  ;;  %v11548_v16 = vld [vmem:[#allocation158_spill] sm:$0xff] }
 0x9ef   : > { %6128 = vmatprep.subr.mxu0 %v11268_v21  ;;  %v11549_v21 = vld [vmem:[#allocation159_spill] sm:$0xff] }
 0x9f0   : > { %6129 = vmatpush1.msra.mxu0 %v11269_v37  ;;  %v11550_v37 = vld [vmem:[#allocation160_spill] sm:$0xff] }
 0x9f1   : > { %6130 = vmatprep.subr.mxu0 %v11270_v15  ;;  %v11551_v15 = vld [vmem:[#allocation161_spill] sm:$0xff] }
 0x9f2   : > { %6131 = vmatpush1.msra.mxu0 %v11271_v32  ;;  %v11552_v32 = vld [vmem:[#allocation162_spill] sm:$0xff] }
 0x9f3   : > { %6132 = vmatprep.subr.mxu0 %v11542_v25 }
 0x9f4   : > { %6133 = vmatpush1.msra.mxu0 %v11543_v30 }
 0x9f5   : > { %6134 = vmatprep.subr.mxu0 %v11544_v50 }
 0x9f6   : > { %6135 = vmatpush1.msra.mxu0 %v11545_v41 }
 0x9f7   : > { %6136 = vmatprep.subr.mxu0 %v11546_v12 }
 0x9f8   : > { %6137 = vmatpush1.msra.mxu0 %v11547_v23 }
 0x9f9   : > { %6138 = vmatprep.subr.mxu0 %v11548_v16 }
 0x9fa   : > { %6139 = vmatpush1.msra.mxu0 %v11549_v21 }
 0x9fb   : > { %6140 = vmatprep.subr.mxu0 %v11550_v37 }
 0x9fc   : > { %6141 = vmatpush1.msra.mxu0 %v11551_v15 }
 0x9fd   : > { %6142 = vmatprep.subr.mxu0 %v11552_v32 }
 0x9fe   : > { %6143 = vmatpush1.msra.mxu0 %v11553_v6 }
 0x9ff   : > { %6144 = vmatprep.subr.mxu0 %v11554_v56 }
 0xa00   : > { %6145 = vmatpush1.msra.mxu0 %v11555_v3 }
 0xa01   : > { %6146 = vmatprep.subr.mxu0 %v11556_v29 }
 0xa02   : > { %6147 = vmatpush2.msra.mxu0 %v11557_v1 }
 0xa03   : > { %6148 = vmatprep.subr.mxu0 %v11558_v48 }
 0xa04   : > { %6149 = vmatpush2.msra.mxu0 %v11559_v34 }
 0xa05   : > { %6150 = vmatprep.subr.mxu0 %v11560_v0 }
 0xa06   : > { %6151 = vmatpush2.msra.mxu0 %v11561_v51 }
 0xa07   : > { %6152 = vmatprep.subr.mxu0 %v11562_v2 }
 0xa08   : > { %6153 = vmatpush2.msra.mxu0 %v11563_v49 }
 0xa09   : > { %6154 = vmatprep.subr.mxu0 %v11564_v63 }
 0xa0a   : > { %6155 = vmatpush2.msra.mxu0 %v11565_v62 }
 0xa0b   : > { %6156 = vmatprep.subr.mxu0 %v11566_v38 }
 0xa0c   : > { %6157 = vmatpush2.msra.mxu0 %v11567_v44 }
 0xa0d   : > { %6158 = vmatprep.subr.mxu0 %v11568_v28 }
 0xa0e   : > { %6159 = vmatpush2.msra.mxu0 %v11569_v52 }
 0xa0f   : > { %6160 = vmatprep.subr.mxu0 %v11570_v17 }
 0xa10   : > { %6161 = vmatpush2.msra.mxu0 %v11571_v33 }
 0xa11   : > { %6162 = vmatprep.subr.mxu0 %v11572_v60 }
 0xa12   : > { %6163 = vmatpush2.msra.mxu0 %v11573_v26 }
 0xa13   : > { %6164 = vmatprep.subr.mxu0 %v11574_v11 }
 0xa14   : > { %6165 = vmatpush2.msra.mxu0 %v11575_v19 }
 0xa15   : > { %6166 = vmatprep.subr.mxu0 %v11576_v40 }
 0xa16   : > { %6167 = vmatpush2.msra.mxu0 %v11577_v35 }
 0xa17   : > { %6168 = vmatprep.subr.mxu0 %v11578_v59 }
 0xa18   : > { %6169 = vmatpush2.msra.mxu0 %v11579_v10 }
 0xa19   : > { %6170 = vmatprep.subr.mxu0 %v11580_v43 }
 0xa1a   : > { %6171 = vmatpush2.msra.mxu0 %v11581_v55 }
 0xa1b   : > { %6172 = vmatprep.subr.mxu0 %v11582_v54 }
 0xa1c   : > { %6173 = vmatpush2.msra.mxu0 %v11583_v39 }
 0xa1d   : > { %6174 = vmatprep.subr.mxu0 %v11584_v31 }
 0xa1e   : > { %6175 = vmatpush2.msra.mxu0 %v11585_v5 }
 0xa1f   : > { %6176 = vmatprep.subr.mxu0 %v11586_v46 }
 0xa20   : > { %6177 = vmatpush2.msra.mxu0 %v11587_v13 }
 0xa21   : > { %6179 = vmatmul.mubr.f32.vlgmr.msra.gmra.mxu0 %v5767_v58 }
 0xaa1   : > { %v6038_v57 = vpop.f32.mrf.mxu0 }
 0xaa3   : > { %v6040_v61 = vpop.f32.mrf.mxu0 }
 0xaa5   : > { %v6109_v7 = vpop.f32.mrf.mxu1 }
 0xaa6   : > { %v6110_v22 = vadd.f32 %v6109_v7, %v6038_v57 }
 0xaa7   : > { %v6111_v36 = vpop.f32.mrf.mxu1 }
 0xaa8   : > { %v6112_v18 = vadd.f32 %v6111_v36, %v6040_v61 }
 0xae1   : > { %v6180_v9 = vpop.f32.mrf.mxu0 }
 0xae2   : > { %v6181_v14 = vadd.f32 %v6180_v9, %v6110_v22 }
 0xae3   : > { %v6182_v4 = vpop.f32.mrf.mxu0 }
 0xae4   : > { %v6185_v8 = vsub.f32 %v11588_v42, %v6181_v14  ;;  %v6183_v47 = vadd.f32 %v6182_v4, %v6112_v18 }
 0xae6   : > { %6187 = vst [vmem:[%s264_s30] sm:$0xff] %v6185_v8  ;;  %v6186_v24 = vsub.f32 %v11589_v53, %v6183_v47 }
 0xae8   : > { %6188 = vst [vmem:[%s264_s30 + $0x8] sm:$0xff] %v6186_v24 }
 0xae9 PF: > { %s15_s18 = sadd.s32 1, %s7047_s18  }
 0xaea   : > { %p12_p4 = scmp.ge.s32.totalorder %s15_s18, 4  }
 0xaec   :  { %14 = sbr.rel (!%p12_p4) target bundleno = 1 (0x1), region = 96 }

</bundles_post_ra>
